<compile_context>
chip_gen: v7x
topology: tpu7x:2x2x1
jax: 0.10.0
libtpu: 0.0.40
codegen_flags: <defaults>
</compile_context>

<pallas_src>
import functools
import math

import jax
import jax.numpy as jnp
from jax.experimental import pallas as pl
from jax.experimental.pallas import tpu as pltpu


# ---------------------------------------------------------------------------
# Layer 1: big HBM-streamed matmul + bias + ReLU (K-reduction grid axis).
# ---------------------------------------------------------------------------
def _linear_kernel(x_ref, w_ref, b_ref, o_ref, *, apply_relu):
    k = pl.program_id(1)

    @pl.when(k == 0)
    def _():
        o_ref[...] = jnp.zeros_like(o_ref)

    # Accumulate directly into the f32 output block (resident across k).
    o_ref[...] += jnp.dot(
        x_ref[...], w_ref[...], preferred_element_type=jnp.float32
    )

    @pl.when(k == pl.num_programs(1) - 1)
    def _():
        out = o_ref[...] + b_ref[...]
        if apply_relu:
            out = jnp.maximum(out, 0.0)
        o_ref[...] = out


def linear_pallas(x, w, b, *, apply_relu, tk=2048, tn=1024,
                  vmem_limit_bytes=40 << 20):
    """y = relu?(x @ w + b). Requires K to be a multiple of the K tile
    (weights are pre-padded once in prepare_params; x is padded by caller)."""
    M, K = x.shape
    Kw, N = w.shape
    assert K == Kw, "x / w contraction dims must already match (pre-padded)"

    tk_ = K if K <= tk else tk
    assert K % tk_ == 0, "pad K to a tile multiple at init (prepare_params)"
    tn_ = tn if (N >= tn and N % tn == 0) else N
    num_n = N // tn_
    num_k = K // tk_

    if b.ndim == 1:
        b = b.reshape(1, N)

    kernel = functools.partial(_linear_kernel, apply_relu=apply_relu)

    return pl.pallas_call(
        kernel,
        out_shape=jax.ShapeDtypeStruct((M, N), jnp.float32),
        grid_spec=pltpu.PrefetchScalarGridSpec(
            num_scalar_prefetch=0,
            grid=(num_n, num_k),  # K (reduction) innermost
            in_specs=[
                pl.BlockSpec((M, tk_), lambda j, k: (0, k)),
                pl.BlockSpec((tk_, tn_), lambda j, k: (k, j)),
                pl.BlockSpec((1, tn_), lambda j, k: (0, j)),
            ],
            out_specs=pl.BlockSpec((M, tn_), lambda j, k: (0, j)),
        ),
        compiler_params=pltpu.CompilerParams(
            dimension_semantics=("parallel", "arbitrary"),
            vmem_limit_bytes=vmem_limit_bytes,
        ),
    )(x, w, b)


# ---------------------------------------------------------------------------
# Layers 2-5 fused: all weights resident in VMEM, single dispatch, no grid.
# ---------------------------------------------------------------------------
def _make_tail_kernel(n_layers):
    def kernel(*refs):
        x_ref = refs[0]
        o_ref = refs[-1]
        h = x_ref[...]
        for i in range(n_layers):
            w_ref = refs[1 + 2 * i]
            b_ref = refs[2 + 2 * i]
            h = jnp.dot(h, w_ref[...], preferred_element_type=jnp.float32)
            h = h + b_ref[...]
            if i < n_layers - 1:
                h = jnp.maximum(h, 0.0)
        o_ref[...] = h

    return kernel


def mlp_tail_pallas(x, layers):
    """Fused [Linear+ReLU]*(n-1) + Linear with every weight resident in VMEM."""
    M = x.shape[0]
    n_layers = len(layers)
    num_classes = layers[-1][0].shape[1]

    args = [x]
    for w, b in layers:
        args.append(w)
        args.append(b if b.ndim == 2 else b.reshape(1, -1))

    return pl.pallas_call(
        _make_tail_kernel(n_layers),
        out_shape=jax.ShapeDtypeStruct((M, num_classes), jnp.float32),
    )(*args)


# ---------------------------------------------------------------------------
# Parameters + forward
# ---------------------------------------------------------------------------
def init_linearnet_params(key, num_classes=6):
    """Deterministic parameter init matching the LinearNet layer shapes."""
    dims = [108 * 108 * 3, 2048, 512, 128, 32, num_classes]
    params = []
    for i in range(len(dims) - 1):
        key, kw, kb = jax.random.split(key, 3)
        fan_in = dims[i]
        bound = 1.0 / math.sqrt(fan_in)
        w = jax.random.uniform(
            kw, (dims[i], dims[i + 1]), jnp.float32, -bound, bound
        )
        b = jax.random.uniform(kb, (dims[i + 1],), jnp.float32, -bound, bound)
        params.append((w, b))
    return params


def prepare_params(params, *, tk=2048):
    """One-time preprocessing hoisted out of the per-forward hot path:
    zero-pad the layer-1 weight contraction dim to a K-tile multiple and
    reshape biases to (1, N)."""
    (w1, b1), *rest = params
    K = w1.shape[0]
    Kp = K if K <= tk else (-(-K // tk)) * tk
    if Kp != K:
        w1 = jnp.pad(w1, ((0, Kp - K), (0, 0)))  # zeros contribute nothing
    return {
        "layer1": (w1, b1.reshape(1, -1)),
        "tail": [(w, b.reshape(1, -1)) for (w, b) in rest],
    }


def linearnet_forward(x_nchw, prepared):
    """LinearNet forward: Flatten -> [Linear+ReLU]x4 -> Linear."""
    B = x_nchw.shape[0]
    x = x_nchw.reshape(B, -1)  # nn.Flatten on NCHW, row-major -> (B, 34992)

    w1, b1 = prepared["layer1"]
    Kp = w1.shape[0]
    K = x.shape[1]
    if Kp != K:
        # Only the tiny activation (~280 KB) is padded per forward.
        x = jnp.pad(x, ((0, 0), (0, Kp - K)))

    h = linear_pallas(x, w1, b1, apply_relu=True, tk=2048, tn=1024)
    return mlp_tail_pallas(h, prepared["tail"])


if __name__ == "__main__":
    key = jax.random.PRNGKey(0)
    k_x, k_p = jax.random.split(key)

    # Feature sizes are dictated by the module (108x108x3 input); small batch.
    x = jax.random.normal(k_x, (2, 3, 108, 108), dtype=jnp.float32)
    params = init_linearnet_params(k_p, num_classes=6)
    prepared = prepare_params(params)  # one-time; NOT in the hot path

    fwd = jax.jit(linearnet_forward)
    out = jax.block_until_ready(fwd(x, prepared))

    # Sanity check against a plain-JAX reference (unpadded f32 params).
    ref = x.reshape(2, -1)
    for i, (w, b) in enumerate(params):
        ref = ref @ w + b
        if i < len(params) - 1:
            ref = jnp.maximum(ref, 0.0)
    assert out.shape == (2, 6)
    assert jnp.allclose(out, ref, atol=1e-3, rtol=1e-3), float(
        jnp.max(jnp.abs(out - ref))
    )

    print("KERNEL_OK")
</pallas_src>

<mosaic_0001>
module attributes {stable_mosaic.version = 11 : i64} {
  func.func @_linear_kernel(%arg0: i32, %arg1: i32, %arg2: memref<2x2048xf32, #tpu.memory_space<vmem>>, %arg3: memref<2048x1024xf32, #tpu.memory_space<vmem>>, %arg4: memref<1x1024xf32, #tpu.memory_space<vmem>>, %arg5: memref<2x1024xf32, #tpu.memory_space<vmem>>) attributes {dimension_semantics = [#tpu.dimension_semantics<parallel>, #tpu.dimension_semantics<arbitrary>], iteration_bounds = array<i64: 2, 18>, scalar_prefetch = 0 : i64, scratch_operands = 0 : i64, tpu.core_type = #tpu.core_type<tc>, window_params = [{transform_indices = @transform_0, window_bounds = array<i64: 2, 2048>}, {transform_indices = @transform_1, window_bounds = array<i64: 2048, 1024>}, {transform_indices = @transform_2, window_bounds = array<i64: 1, 1024>}, {transform_indices = @transform_3, window_bounds = array<i64: 2, 1024>}]} {
    %c0_i32 = arith.constant 0 : i32
    %0 = arith.cmpi eq, %arg1, %c0_i32 : i32
    %1 = arith.extui %0 : i1 to i32
    %c0_i32_0 = arith.constant 0 : i32
    %2 = arith.cmpi ne, %1, %c0_i32_0 : i32
    scf.if %2 {
      %cst_9 = arith.constant 0.000000e+00 : f32
      %12 = vector.broadcast %cst_9 : f32 to vector<2x1024xf32>
      %c0_10 = arith.constant 0 : index
      %c0_11 = arith.constant 0 : index
      %13 = vector.load %arg5[%c0_10, %c0_11] : memref<2x1024xf32, #tpu.memory_space<vmem>>, vector<2x1024xf32>
      tpu.vector_store %arg5[%c0_10, %c0_11], %12 {strides = array<i32>} : memref<2x1024xf32, #tpu.memory_space<vmem>>, vector<2x1024xf32>,
    } else {
    }
    %c0 = arith.constant 0 : index
    %c0_1 = arith.constant 0 : index
    %3 = vector.load %arg5[%c0, %c0_1] : memref<2x1024xf32, #tpu.memory_space<vmem>>, vector<2x1024xf32>
    %c0_2 = arith.constant 0 : index
    %c0_3 = arith.constant 0 : index
    %4 = vector.load %arg2[%c0_2, %c0_3] : memref<2x2048xf32, #tpu.memory_space<vmem>>, vector<2x2048xf32>
    %c0_4 = arith.constant 0 : index
    %c0_5 = arith.constant 0 : index
    %5 = vector.load %arg3[%c0_4, %c0_5] : memref<2048x1024xf32, #tpu.memory_space<vmem>>, vector<2048x1024xf32>
    %cst = arith.constant dense<0.000000e+00> : vector<2x1024xf32>
    %6 = tpu.matmul %4, %5, %cst {dimension_numbers = #tpu.dot_dimension_numbers<[1], [0], [0], [1], [0, 0, 1, 1], [], []>} : vector<2x2048xf32>, vector<2048x1024xf32>, vector<2x1024xf32> -> vector<2x1024xf32>
    %7 = arith.addf %3, %6 : vector<2x1024xf32>
    %c0_6 = arith.constant 0 : index
    %c0_7 = arith.constant 0 : index
    %8 = vector.load %arg5[%c0_6, %c0_7] : memref<2x1024xf32, #tpu.memory_space<vmem>>, vector<2x1024xf32>
    tpu.vector_store %arg5[%c0_6, %c0_7], %7 {strides = array<i32>} : memref<2x1024xf32, #tpu.memory_space<vmem>>, vector<2x1024xf32>,
    %c17_i32 = arith.constant 17 : i32
    %9 = arith.cmpi eq, %arg1, %c17_i32 : i32
    %10 = arith.extui %9 : i1 to i32
    %c0_i32_8 = arith.constant 0 : i32
    %11 = arith.cmpi ne, %10, %c0_i32_8 : i32
    scf.if %11 {
      %c0_9 = arith.constant 0 : index
      %c0_10 = arith.constant 0 : index
      %12 = vector.load %arg5[%c0_9, %c0_10] : memref<2x1024xf32, #tpu.memory_space<vmem>>, vector<2x1024xf32>
      %c0_11 = arith.constant 0 : index
      %c0_12 = arith.constant 0 : index
      %13 = vector.load %arg4[%c0_11, %c0_12] : memref<1x1024xf32, #tpu.memory_space<vmem>>, vector<1x1024xf32>
      %14 = vector.broadcast %13 : vector<1x1024xf32> to vector<2x1024xf32>
      %15 = arith.addf %12, %14 : vector<2x1024xf32>
      %cst_13 = arith.constant 0.000000e+00 : f32
      %16 = vector.broadcast %cst_13 : f32 to vector<2x1024xf32>
      %17 = arith.maximumf %15, %16 : vector<2x1024xf32>
      %c0_14 = arith.constant 0 : index
      %c0_15 = arith.constant 0 : index
      %18 = vector.load %arg5[%c0_14, %c0_15] : memref<2x1024xf32, #tpu.memory_space<vmem>>, vector<2x1024xf32>
      tpu.vector_store %arg5[%c0_14, %c0_15], %17 {strides = array<i32>} : memref<2x1024xf32, #tpu.memory_space<vmem>>, vector<2x1024xf32>,
    } else {
    }
    return
  }
  func.func @transform_0(%arg0: i32, %arg1: i32) -> (i32, i32) {
    %c0_i32 = arith.constant 0 : i32
    %c0_i32_0 = arith.constant 0 : i32
    return %c0_i32, %arg1 : i32, i32
  }
  func.func @transform_1(%arg0: i32, %arg1: i32) -> (i32, i32) {
    %c0_i32 = arith.constant 0 : i32
    return %arg1, %arg0 : i32, i32
  }
  func.func @transform_2(%arg0: i32, %arg1: i32) -> (i32, i32) {
    %c0_i32 = arith.constant 0 : i32
    %c0_i32_0 = arith.constant 0 : i32
    return %c0_i32, %arg0 : i32, i32
  }
  func.func @transform_3(%arg0: i32, %arg1: i32) -> (i32, i32) {
    %c0_i32 = arith.constant 0 : i32
    %c0_i32_0 = arith.constant 0 : i32
    return %c0_i32, %arg0 : i32, i32
  }
}

module attributes {stable_mosaic.version = 11 : i64} {
  func.func @kernel(%arg0: memref<2x2048xf32, #tpu.memory_space<vmem>>, %arg1: memref<2048x512xf32, #tpu.memory_space<vmem>>, %arg2: memref<1x512xf32, #tpu.memory_space<vmem>>, %arg3: memref<512x128xf32, #tpu.memory_space<vmem>>, %arg4: memref<1x128xf32, #tpu.memory_space<vmem>>, %arg5: memref<128x32xf32, #tpu.memory_space<vmem>>, %arg6: memref<1x32xf32, #tpu.memory_space<vmem>>, %arg7: memref<32x6xf32, #tpu.memory_space<vmem>>, %arg8: memref<1x6xf32, #tpu.memory_space<vmem>>, %arg9: memref<2x6xf32, #tpu.memory_space<vmem>>) attributes {dimension_semantics = [], scalar_prefetch = 0 : i64, scratch_operands = 0 : i64, tpu.core_type = #tpu.core_type<tc>} {
    %c0 = arith.constant 0 : index
    %c0_0 = arith.constant 0 : index
    %0 = vector.load %arg0[%c0, %c0_0] : memref<2x2048xf32, #tpu.memory_space<vmem>>, vector<2x2048xf32>
    %c0_1 = arith.constant 0 : index
    %c0_2 = arith.constant 0 : index
    %1 = vector.load %arg1[%c0_1, %c0_2] : memref<2048x512xf32, #tpu.memory_space<vmem>>, vector<2048x512xf32>
    %cst = arith.constant dense<0.000000e+00> : vector<2x512xf32>
    %2 = tpu.matmul %0, %1, %cst {dimension_numbers = #tpu.dot_dimension_numbers<[1], [0], [0], [1], [0, 0, 1, 1], [], []>} : vector<2x2048xf32>, vector<2048x512xf32>, vector<2x512xf32> -> vector<2x512xf32>
    %c0_3 = arith.constant 0 : index
    %c0_4 = arith.constant 0 : index
    %3 = vector.load %arg2[%c0_3, %c0_4] : memref<1x512xf32, #tpu.memory_space<vmem>>, vector<1x512xf32>
    %4 = vector.broadcast %3 : vector<1x512xf32> to vector<2x512xf32>
    %5 = arith.addf %2, %4 : vector<2x512xf32>
    %cst_5 = arith.constant 0.000000e+00 : f32
    %6 = vector.broadcast %cst_5 : f32 to vector<2x512xf32>
    %7 = arith.maximumf %5, %6 : vector<2x512xf32>
    %c0_6 = arith.constant 0 : index
    %c0_7 = arith.constant 0 : index
    %8 = vector.load %arg3[%c0_6, %c0_7] : memref<512x128xf32, #tpu.memory_space<vmem>>, vector<512x128xf32>
    %cst_8 = arith.constant dense<0.000000e+00> : vector<2x128xf32>
    %9 = tpu.matmul %7, %8, %cst_8 {dimension_numbers = #tpu.dot_dimension_numbers<[1], [0], [0], [1], [0, 0, 1, 1], [], []>} : vector<2x512xf32>, vector<512x128xf32>, vector<2x128xf32> -> vector<2x128xf32>
    %c0_9 = arith.constant 0 : index
    %c0_10 = arith.constant 0 : index
    %10 = vector.load %arg4[%c0_9, %c0_10] : memref<1x128xf32, #tpu.memory_space<vmem>>, vector<1x128xf32>
    %11 = vector.broadcast %10 : vector<1x128xf32> to vector<2x128xf32>
    %12 = arith.addf %9, %11 : vector<2x128xf32>
    %cst_11 = arith.constant 0.000000e+00 : f32
    %13 = vector.broadcast %cst_11 : f32 to vector<2x128xf32>
    %14 = arith.maximumf %12, %13 : vector<2x128xf32>
    %c0_12 = arith.constant 0 : index
    %c0_13 = arith.constant 0 : index
    %15 = vector.load %arg5[%c0_12, %c0_13] : memref<128x32xf32, #tpu.memory_space<vmem>>, vector<128x32xf32>
    %cst_14 = arith.constant dense<0.000000e+00> : vector<2x32xf32>
    %16 = tpu.matmul %14, %15, %cst_14 {dimension_numbers = #tpu.dot_dimension_numbers<[1], [0], [0], [1], [0, 0, 1, 1], [], []>} : vector<2x128xf32>, vector<128x32xf32>, vector<2x32xf32> -> vector<2x32xf32>
    %c0_15 = arith.constant 0 : index
    %c0_16 = arith.constant 0 : index
    %17 = vector.load %arg6[%c0_15, %c0_16] : memref<1x32xf32, #tpu.memory_space<vmem>>, vector<1x32xf32>
    %18 = vector.broadcast %17 : vector<1x32xf32> to vector<2x32xf32>
    %19 = arith.addf %16, %18 : vector<2x32xf32>
    %cst_17 = arith.constant 0.000000e+00 : f32
    %20 = vector.broadcast %cst_17 : f32 to vector<2x32xf32>
    %21 = arith.maximumf %19, %20 : vector<2x32xf32>
    %c0_18 = arith.constant 0 : index
    %c0_19 = arith.constant 0 : index
    %22 = vector.load %arg7[%c0_18, %c0_19] : memref<32x6xf32, #tpu.memory_space<vmem>>, vector<32x6xf32>
    %cst_20 = arith.constant dense<0.000000e+00> : vector<2x6xf32>
    %23 = tpu.matmul %21, %22, %cst_20 {dimension_numbers = #tpu.dot_dimension_numbers<[1], [0], [0], [1], [0, 0, 1, 1], [], []>} : vector<2x32xf32>, vector<32x6xf32>, vector<2x6xf32> -> vector<2x6xf32>
    %c0_21 = arith.constant 0 : index
    %c0_22 = arith.constant 0 : index
    %24 = vector.load %arg8[%c0_21, %c0_22] : memref<1x6xf32, #tpu.memory_space<vmem>>, vector<1x6xf32>
    %25 = vector.broadcast %24 : vector<1x6xf32> to vector<2x6xf32>
    %26 = arith.addf %23, %25 : vector<2x6xf32>
    %c0_23 = arith.constant 0 : index
    %c0_24 = arith.constant 0 : index
    %27 = vector.load %arg9[%c0_23, %c0_24] : memref<2x6xf32, #tpu.memory_space<vmem>>, vector<2x6xf32>
    tpu.vector_store %arg9[%c0_23, %c0_24], %26 {strides = array<i32>} : memref<2x6xf32, #tpu.memory_space<vmem>>, vector<2x6xf32>,
    return
  }
}

</mosaic_0001>

<bundles_post_ra>
// kernel: linearnet_forward.3
= control target key start
LH: loop header
LB: loop body
LE: loop exit
PB: predicated region body
PF: predicated region fallthrough
CT: control target
= control target key end

     0   :  { %s7553_s0 = inlined_call_operand.vmem [shape: f32[2,2048], index: 0, kind: input, shape index: {}]   ;;  %s7554_s1 = inlined_call_operand.vmem [shape: f32[2048,512], index: 1, kind: input, shape index: {}]   ;;  %s7555_s2 = inlined_call_operand.vmem [shape: f32[1,512], index: 2, kind: input, shape index: {}]   ;;  %s7556_s3 = inlined_call_operand.vmem [shape: f32[512,128], index: 3, kind: input, shape index: {}]   ;;  %s7557_s4 = inlined_call_operand.vmem [shape: f32[1,128], index: 4, kind: input, shape index: {}]   ;;  %s7558_s5 = inlined_call_operand.vmem [shape: f32[128,32], index: 5, kind: input, shape index: {}]   ;;  %s7559_s6 = inlined_call_operand.vmem [shape: f32[1,32], index: 6, kind: input, shape index: {}]   ;;  %s7560_s7 = inlined_call_operand.vmem [shape: f32[32,6], index: 7, kind: input, shape index: {}]   ;;  %s7561_s8 = inlined_call_operand.vmem [shape: f32[1,6], index: 8, kind: input, shape index: {}]   ;;  %s7562_s9 = inlined_call_operand.hbm [shape: f32[2,6], index: 9, kind: output, shape index: {}]  }
   0x1   :  { %v38_v0 = vld [vmem:[%s7554_s1 + $0x8] sm:$0xff]  ;;  %v40_v2 = vld [vmem:[%s7554_s1 + $0x18] sm:$0xff]  ;;  %v37_v5 = vld [vmem:[%s7554_s1] sm:$0xff] }
   0x2   :  { %v42_v1 = vld [vmem:[%s7554_s1 + $0x28] sm:$0xff]  ;;  %v44_v4 = vld [vmem:[%s7554_s1 + $0x38] sm:$0xff]  ;;  %v41_v6 = vld [vmem:[%s7554_s1 + $0x20] sm:$0xff] }
   0x3   :  { %v2860_v3 = vpack.c.bf16 %v42_v1, %v38_v0  ;;  %v3372_v7 = vpack.c.bf16 %v44_v4, %v40_v2  ;;  %v2862_v8 = vpack.c.bf16 %v41_v6, %v37_v5  ;;  %v39_v9 = vld [vmem:[%s7554_s1 + $0x10] sm:$0xff]  ;;  %v46_v11 = vld [vmem:[%s7554_s1 + $0x48] sm:$0xff]  ;;  %v48_v14 = vld [vmem:[%s7554_s1 + $0x58] sm:$0xff] }
   0x4   :  { %v43_v10 = vld [vmem:[%s7554_s1 + $0x30] sm:$0xff]  ;;  %v50_v13 = vld [vmem:[%s7554_s1 + $0x68] sm:$0xff]  ;;  %v52_v15 = vld [vmem:[%s7554_s1 + $0x78] sm:$0xff] }
   0x5   :  { %2861 = vmatprep.subr.bf16.mxu0 %v2860_v3  ;;  %v3374_v12 = vpack.c.bf16 %v43_v10, %v39_v9  ;;  %3373 = vmatprep.subr.bf16.mxu1 %v3372_v7  ;;  %v2864_v16 = vpack.c.bf16 %v50_v13, %v46_v11  ;;  %v3376_v17 = vpack.c.bf16 %v52_v15, %v48_v14  ;;  %v45_v18 = vld [vmem:[%s7554_s1 + $0x40] sm:$0xff]  ;;  %v47_v20 = vld [vmem:[%s7554_s1 + $0x50] sm:$0xff]  ;;  %v54_v23 = vld [vmem:[%s7554_s1 + $0x88] sm:$0xff] }
   0x6   :  { %2863 = vmatpush1.bf16.msra.mxu0 %v2862_v8  ;;  %v49_v19 = vld [vmem:[%s7554_s1 + $0x60] sm:$0xff]  ;;  %v51_v22 = vld [vmem:[%s7554_s1 + $0x70] sm:$0xff]  ;;  %v58_v24 = vld [vmem:[%s7554_s1 + $0xa8] sm:$0xff] }
   0x7   :  { %3375 = vmatpush1.bf16.msra.mxu1 %v3374_v12  ;;  %v2866_v21 = vpack.c.bf16 %v49_v19, %v45_v18  ;;  %2865 = vmatprep.subr.bf16.mxu0 %v2864_v16  ;;  %v3378_v25 = vpack.c.bf16 %v51_v22, %v47_v20  ;;  %v2868_v26 = vpack.c.bf16 %v58_v24, %v54_v23  ;;  %v56_v27 = vld [vmem:[%s7554_s1 + $0x98] sm:$0xff]  ;;  %v53_v29 = vld [vmem:[%s7554_s1 + $0x80] sm:$0xff]  ;;  %v55_v32 = vld [vmem:[%s7554_s1 + $0x90] sm:$0xff] }
   0x8   :  { %3377 = vmatprep.subr.bf16.mxu1 %v3376_v17  ;;  %v60_v28 = vld [vmem:[%s7554_s1 + $0xb8] sm:$0xff]  ;;  %v57_v31 = vld [vmem:[%s7554_s1 + $0xa0] sm:$0xff]  ;;  %v59_v33 = vld [vmem:[%s7554_s1 + $0xb0] sm:$0xff] }
   0x9   :  { %v3380_v30 = vpack.c.bf16 %v60_v28, %v56_v27  ;;  %v2870_v34 = vpack.c.bf16 %v57_v31, %v53_v29  ;;  %v62_v35 = vld [vmem:[%s7554_s1 + $0xc8] sm:$0xff]  ;;  %v64_v37 = vld [vmem:[%s7554_s1 + $0xd8] sm:$0xff]  ;;  %v3382_v38 = vpack.c.bf16 %v59_v33, %v55_v32  ;;  %v61_v41 = vld [vmem:[%s7554_s1 + $0xc0] sm:$0xff] }
   0xa   :  { %2867 = vmatpush1.bf16.msra.mxu0 %v2866_v21  ;;  %v66_v36 = vld [vmem:[%s7554_s1 + $0xe8] sm:$0xff]  ;;  %v68_v40 = vld [vmem:[%s7554_s1 + $0xf8] sm:$0xff]  ;;  %v65_v42 = vld [vmem:[%s7554_s1 + $0xe0] sm:$0xff] }
   0xb   :  { %3379 = vmatpush1.bf16.msra.mxu1 %v3378_v25  ;;  %2869 = vmatprep.subr.bf16.mxu0 %v2868_v26  ;;  %v2872_v39 = vpack.c.bf16 %v66_v36, %v62_v35  ;;  %v3384_v43 = vpack.c.bf16 %v68_v40, %v64_v37  ;;  %v63_v44 = vld [vmem:[%s7554_s1 + $0xd0] sm:$0xff]  ;;  %v70_v46 = vld [vmem:[%s7554_s1 + $0x108] sm:$0xff]  ;;  %v72_v48 = vld [vmem:[%s7554_s1 + $0x118] sm:$0xff]  ;;  %v2874_v50 = vpack.c.bf16 %v65_v42, %v61_v41 }
   0xc   :  { %3381 = vmatprep.subr.bf16.mxu1 %v3380_v30  ;;  %v67_v45 = vld [vmem:[%s7554_s1 + $0xf0] sm:$0xff]  ;;  %v74_v47 = vld [vmem:[%s7554_s1 + $0x128] sm:$0xff]  ;;  %v76_v49 = vld [vmem:[%s7554_s1 + $0x138] sm:$0xff] }
   0xd   :  { %v3386_v51 = vpack.c.bf16 %v67_v45, %v63_v44  ;;  %v2876_v52 = vpack.c.bf16 %v74_v47, %v70_v46  ;;  %v69_v53 = vld [vmem:[%s7554_s1 + $0x100] sm:$0xff]  ;;  %v71_v55 = vld [vmem:[%s7554_s1 + $0x110] sm:$0xff]  ;;  %v3388_v56 = vpack.c.bf16 %v76_v49, %v72_v48  ;;  %v78_v58 = vld [vmem:[%s7554_s1 + $0x148] sm:$0xff]  ;;  %v1063_v46 = vlaneseq }
   0xe   :  { %2871 = vmatpush1.bf16.msra.mxu0 %v2870_v34  ;;  %v73_v54 = vld [vmem:[%s7554_s1 + $0x120] sm:$0xff]  ;;  %v75_v57 = vld [vmem:[%s7554_s1 + $0x130] sm:$0xff]  ;;  %v82_v59 = vld [vmem:[%s7554_s1 + $0x168] sm:$0xff]  ;;  %v4043_v47 = vmov 1983009808  }
   0xf   :  { %3383 = vmatpush1.bf16.msra.mxu1 %v3382_v38  ;;  %2873 = vmatprep.subr.bf16.mxu0 %v2872_v39  ;;  %v80_v60 = vld [vmem:[%s7554_s1 + $0x158] sm:$0xff]  ;;  %v2878_v62 = vpack.c.bf16 %v73_v54, %v69_v53  ;;  %v3390_v63 = vpack.c.bf16 %v75_v57, %v71_v55  ;;  %v2880_v0 = vpack.c.bf16 %v82_v59, %v78_v58  ;;  %v77_v1 = vld [vmem:[%s7554_s1 + $0x140] sm:$0xff]  ;;  %v79_v3 = vld [vmem:[%s7554_s1 + $0x150] sm:$0xff]  ;;  %v1089_v48 = vunpack.c.l.s4 %v4043_v47 }
  0x10   :  { %3385 = vmatprep.subr.bf16.mxu1 %v3384_v43  ;;  %v84_v61 = vld [vmem:[%s7554_s1 + $0x178] sm:$0xff]  ;;  %v81_v2 = vld [vmem:[%s7554_s1 + $0x160] sm:$0xff]  ;;  %v83_v5 = vld [vmem:[%s7554_s1 + $0x170] sm:$0xff] }
  0x11   :  { %v3392_v4 = vpack.c.bf16 %v84_v61, %v80_v60  ;;  %v86_v6 = vld [vmem:[%s7554_s1 + $0x188] sm:$0xff]  ;;  %v88_v8 = vld [vmem:[%s7554_s1 + $0x198] sm:$0xff]  ;;  %v2882_v10 = vpack.c.bf16 %v81_v2, %v77_v1  ;;  %v3394_v11 = vpack.c.bf16 %v83_v5, %v79_v3  ;;  %v85_v13 = vld [vmem:[%s7554_s1 + $0x180] sm:$0xff]  ;;  %v4350_v61 = vshrl.u32 %v1063_v46, 7 }
  0x12   :  { %2875 = vmatpush1.bf16.msra.mxu0 %v2874_v50  ;;  %v90_v7 = vld [vmem:[%s7554_s1 + $0x1a8] sm:$0xff]  ;;  %v92_v9 = vld [vmem:[%s7554_s1 + $0x1b8] sm:$0xff]  ;;  %v89_v14 = vld [vmem:[%s7554_s1 + $0x1a0] sm:$0xff] }
  0x13   :  { %3387 = vmatpush1.bf16.msra.mxu1 %v3386_v51  ;;  %2877 = vmatprep.subr.bf16.mxu0 %v2876_v52  ;;  %v2884_v12 = vpack.c.bf16 %v90_v7, %v86_v6  ;;  %v87_v15 = vld [vmem:[%s7554_s1 + $0x190] sm:$0xff]  ;;  %v3396_v16 = vpack.c.bf16 %v92_v9, %v88_v8  ;;  %v94_v18 = vld [vmem:[%s7554_s1 + $0x1c8] sm:$0xff]  ;;  %v96_v20 = vld [vmem:[%s7554_s1 + $0x1d8] sm:$0xff]  ;;  %v2886_v22 = vpack.c.bf16 %v89_v14, %v85_v13 }
  0x14   :  { %3389 = vmatprep.subr.bf16.mxu1 %v3388_v56  ;;  %v91_v17 = vld [vmem:[%s7554_s1 + $0x1b0] sm:$0xff]  ;;  %v98_v19 = vld [vmem:[%s7554_s1 + $0x1e8] sm:$0xff]  ;;  %v100_v21 = vld [vmem:[%s7554_s1 + $0x1f8] sm:$0xff] }
  0x15   :  { %v3398_v23 = vpack.c.bf16 %v91_v17, %v87_v15  ;;  %v2888_v24 = vpack.c.bf16 %v98_v19, %v94_v18  ;;  %v93_v25 = vld [vmem:[%s7554_s1 + $0x1c0] sm:$0xff]  ;;  %v95_v27 = vld [vmem:[%s7554_s1 + $0x1d0] sm:$0xff]  ;;  %v3400_v28 = vpack.c.bf16 %v100_v21, %v96_v20  ;;  %v102_v30 = vld [vmem:[%s7554_s1 + $0x208] sm:$0xff] }
  0x16   :  { %2879 = vmatpush1.bf16.msra.mxu0 %v2878_v62  ;;  %v97_v26 = vld [vmem:[%s7554_s1 + $0x1e0] sm:$0xff]  ;;  %v99_v29 = vld [vmem:[%s7554_s1 + $0x1f0] sm:$0xff]  ;;  %v106_v31 = vld [vmem:[%s7554_s1 + $0x228] sm:$0xff]  ;;  %v1090_v62 = vunpack.c.0.s8 %v1089_v48 }
  0x17   :  { %3391 = vmatpush1.bf16.msra.mxu1 %v3390_v63  ;;  %2881 = vmatprep.subr.bf16.mxu0 %v2880_v0  ;;  %v104_v32 = vld [vmem:[%s7554_s1 + $0x218] sm:$0xff]  ;;  %v2890_v34 = vpack.c.bf16 %v97_v26, %v93_v25  ;;  %v3402_v35 = vpack.c.bf16 %v99_v29, %v95_v27  ;;  %v2892_v36 = vpack.c.bf16 %v106_v31, %v102_v30  ;;  %v101_v37 = vld [vmem:[%s7554_s1 + $0x200] sm:$0xff]  ;;  %v103_v39 = vld [vmem:[%s7554_s1 + $0x210] sm:$0xff] }
  0x18   :  { %3393 = vmatprep.subr.bf16.mxu1 %v3392_v4  ;;  %v108_v33 = vld [vmem:[%s7554_s1 + $0x238] sm:$0xff]  ;;  %v105_v38 = vld [vmem:[%s7554_s1 + $0x220] sm:$0xff]  ;;  %v107_v41 = vld [vmem:[%s7554_s1 + $0x230] sm:$0xff] }
  0x19   :  { %v3404_v40 = vpack.c.bf16 %v108_v33, %v104_v32  ;;  %v110_v42 = vld [vmem:[%s7554_s1 + $0x248] sm:$0xff]  ;;  %v112_v44 = vld [vmem:[%s7554_s1 + $0x258] sm:$0xff]  ;;  %v2894_v49 = vpack.c.bf16 %v105_v38, %v101_v37  ;;  %v3406_v50 = vpack.c.bf16 %v107_v41, %v103_v39  ;;  %v109_v52 = vld [vmem:[%s7554_s1 + $0x240] sm:$0xff] }
  0x1a   :  { %2883 = vmatpush1.bf16.msra.mxu0 %v2882_v10  ;;  %v114_v43 = vld [vmem:[%s7554_s1 + $0x268] sm:$0xff]  ;;  %v116_v45 = vld [vmem:[%s7554_s1 + $0x278] sm:$0xff]  ;;  %v113_v53 = vld [vmem:[%s7554_s1 + $0x260] sm:$0xff] }
  0x1b   :  { %3395 = vmatpush1.bf16.msra.mxu1 %v3394_v11  ;;  %2885 = vmatprep.subr.bf16.mxu0 %v2884_v12  ;;  %v2896_v51 = vpack.c.bf16 %v114_v43, %v110_v42  ;;  %v111_v54 = vld [vmem:[%s7554_s1 + $0x250] sm:$0xff]  ;;  %v3408_v55 = vpack.c.bf16 %v116_v45, %v112_v44  ;;  %v118_v57 = vld [vmem:[%s7554_s1 + $0x288] sm:$0xff]  ;;  %v120_v59 = vld [vmem:[%s7554_s1 + $0x298] sm:$0xff]  ;;  %v2898_v63 = vpack.c.bf16 %v113_v53, %v109_v52 }
  0x1c   :  { %3397 = vmatprep.subr.bf16.mxu1 %v3396_v16  ;;  %v115_v56 = vld [vmem:[%s7554_s1 + $0x270] sm:$0xff]  ;;  %v122_v58 = vld [vmem:[%s7554_s1 + $0x2a8] sm:$0xff]  ;;  %v124_v60 = vld [vmem:[%s7554_s1 + $0x2b8] sm:$0xff]  ;;  %v4377_v11 = vsub.s32 %v1090_v62, %v4350_v61 }
  0x1d   :  { %v3410_v0 = vpack.c.bf16 %v115_v56, %v111_v54  ;;  %v2900_v1 = vpack.c.bf16 %v122_v58, %v118_v57  ;;  %v117_v2 = vld [vmem:[%s7554_s1 + $0x280] sm:$0xff]  ;;  %v119_v4 = vld [vmem:[%s7554_s1 + $0x290] sm:$0xff]  ;;  %v3412_v5 = vpack.c.bf16 %v124_v60, %v120_v59  ;;  %v126_v7 = vld [vmem:[%s7554_s1 + $0x2c8] sm:$0xff] }
  0x1e   :  { %2887 = vmatpush1.bf16.msra.mxu0 %v2886_v22  ;;  %v121_v3 = vld [vmem:[%s7554_s1 + $0x2a0] sm:$0xff]  ;;  %v123_v6 = vld [vmem:[%s7554_s1 + $0x2b0] sm:$0xff]  ;;  %v130_v8 = vld [vmem:[%s7554_s1 + $0x2e8] sm:$0xff] }
  0x1f   :  { %3399 = vmatpush1.bf16.msra.mxu1 %v3398_v23  ;;  %2889 = vmatprep.subr.bf16.mxu0 %v2888_v24  ;;  %v128_v9 = vld [vmem:[%s7554_s1 + $0x2d8] sm:$0xff]  ;;  %v2902_v12 = vpack.c.bf16 %v121_v3, %v117_v2  ;;  %v125_v13 = vld [vmem:[%s7554_s1 + $0x2c0] sm:$0xff]  ;;  %v3414_v14 = vpack.c.bf16 %v123_v6, %v119_v4  ;;  %v2904_v15 = vpack.c.bf16 %v130_v8, %v126_v7  ;;  %v127_v17 = vld [vmem:[%s7554_s1 + $0x2d0] sm:$0xff] }
  0x20   :  { %3401 = vmatprep.subr.bf16.mxu1 %v3400_v28  ;;  %v132_v10 = vld [vmem:[%s7554_s1 + $0x2f8] sm:$0xff]  ;;  %v129_v16 = vld [vmem:[%s7554_s1 + $0x2e0] sm:$0xff]  ;;  %v131_v18 = vld [vmem:[%s7554_s1 + $0x2f0] sm:$0xff] }
  0x21   :  { %v3416_v19 = vpack.c.bf16 %v132_v10, %v128_v9  ;;  %v134_v20 = vld [vmem:[%s7554_s1 + $0x308] sm:$0xff]  ;;  %v4400_v22 = vld [vmem:[%s7553_s0] sm:$0xff]  ;;  %v136_v23 = vld [vmem:[%s7554_s1 + $0x318] sm:$0xff]  ;;  %v2906_v26 = vpack.c.bf16 %v129_v16, %v125_v13  ;;  %v3418_v27 = vpack.c.bf16 %v131_v18, %v127_v17 }
  0x22   :  { %2891 = vmatpush1.bf16.msra.mxu0 %v2890_v34  ;;  %v138_v21 = vld [vmem:[%s7554_s1 + $0x328] sm:$0xff]  ;;  %v140_v24 = vld [vmem:[%s7554_s1 + $0x338] sm:$0xff]  ;;  %v4410_v25 = vrot.slane %v4400_v22, %v4377_v11  ;;  %v133_v29 = vld [vmem:[%s7554_s1 + $0x300] sm:$0xff]  ;;  %v1087_v8 = vcombine.high %v4400_v22, %v4400_v22 }
  0x23   :  { %3403 = vmatpush1.bf16.msra.mxu1 %v3402_v35  ;;  %2893 = vmatprep.subr.bf16.mxu0 %v2892_v36  ;;  %v2908_v28 = vpack.c.bf16 %v138_v21, %v134_v20  ;;  %v137_v30 = vld [vmem:[%s7554_s1 + $0x320] sm:$0xff]  ;;  %v135_v31 = vld [vmem:[%s7554_s1 + $0x310] sm:$0xff]  ;;  %v3420_v33 = vpack.c.bf16 %v140_v24, %v136_v23  ;;  %v142_v35 = vld [vmem:[%s7554_s1 + $0x348] sm:$0xff] }
  0x24   :  { %3405 = vmatprep.subr.bf16.mxu1 %v3404_v40  ;;  %v1102_v32 = vcombine.high %v4410_v25, %v4410_v25  ;;  %v139_v34 = vld [vmem:[%s7554_s1 + $0x330] sm:$0xff]  ;;  %v146_v36 = vld [vmem:[%s7554_s1 + $0x368] sm:$0xff]  ;;  %v144_v37 = vld [vmem:[%s7554_s1 + $0x358] sm:$0xff]  ;;  %v2910_v39 = vpack.c.bf16 %v137_v30, %v133_v29  ;;  %v4531_v24 = vrot.slane %v1087_v8, %v4377_v11 }
  0x25   :  { %v148_v38 = vld [vmem:[%s7554_s1 + $0x378] sm:$0xff]  ;;  %v3422_v40 = vpack.c.bf16 %v139_v34, %v135_v31  ;;  %v2912_v41 = vpack.c.bf16 %v146_v36, %v142_v35  ;;  %v141_v42 = vld [vmem:[%s7554_s1 + $0x340] sm:$0xff]  ;;  %v143_v44 = vld [vmem:[%s7554_s1 + $0x350] sm:$0xff] }
  0x26   :  { %2895 = vmatpush1.bf16.msra.mxu0 %v2894_v49  ;;  %1235 = vmatprep.mubr.f32.mxu0 %v1102_v32  ;;  %v145_v43 = vld [vmem:[%s7554_s1 + $0x360] sm:$0xff]  ;;  %v3424_v45 = vpack.c.bf16 %v148_v38, %v144_v37  ;;  %v147_v46 = vld [vmem:[%s7554_s1 + $0x370] sm:$0xff]  ;;  %v150_v47 = vld [vmem:[%s7554_s1 + $0x388] sm:$0xff]  ;;  %v1103_v38 = vcombine.high %v4531_v24, %v4531_v24 }
  0x27   :  { %3407 = vmatpush1.bf16.msra.mxu1 %v3406_v50  ;;  %2897 = vmatprep.subr.bf16.mxu0 %v2896_v51  ;;  %v154_v48 = vld [vmem:[%s7554_s1 + $0x3a8] sm:$0xff]  ;;  %v152_v49 = vld [vmem:[%s7554_s1 + $0x398] sm:$0xff]  ;;  %v2914_v51 = vpack.c.bf16 %v145_v43, %v141_v42  ;;  %v3426_v52 = vpack.c.bf16 %v147_v46, %v143_v44  ;;  %v149_v54 = vld [vmem:[%s7554_s1 + $0x380] sm:$0xff] }
  0x28   :  { %3409 = vmatprep.subr.bf16.mxu1 %v3408_v55  ;;  %1803 = vmatprep.mubr.f32.mxu1 %v1102_v32  ;;  %v156_v50 = vld [vmem:[%s7554_s1 + $0x3b8] sm:$0xff]  ;;  %v2916_v53 = vpack.c.bf16 %v154_v48, %v150_v47  ;;  %v153_v55 = vld [vmem:[%s7554_s1 + $0x3a0] sm:$0xff]  ;;  %v151_v56 = vld [vmem:[%s7554_s1 + $0x390] sm:$0xff] }
  0x29   :  { %v3428_v57 = vpack.c.bf16 %v156_v50, %v152_v49  ;;  %v155_v58 = vld [vmem:[%s7554_s1 + $0x3b0] sm:$0xff]  ;;  %v158_v59 = vld [vmem:[%s7554_s1 + $0x3c8] sm:$0xff]  ;;  %v160_v62 = vld [vmem:[%s7554_s1 + $0x3d8] sm:$0xff] }
  0x2a   :  { %2899 = vmatpush1.bf16.msra.mxu0 %v2898_v63  ;;  %v162_v60 = vld [vmem:[%s7554_s1 + $0x3e8] sm:$0xff]  ;;  %v164_v63 = vld [vmem:[%s7554_s1 + $0x3f8] sm:$0xff]  ;;  %v157_v3 = vld [vmem:[%s7554_s1 + $0x3c0] sm:$0xff] }
  0x2b   :  { %3411 = vmatpush1.bf16.msra.mxu1 %v3410_v0  ;;  %2901 = vmatprep.subr.bf16.mxu0 %v2900_v1  ;;  %v2918_v0 = vpack.c.bf16 %v153_v55, %v149_v54  ;;  %v3430_v1 = vpack.c.bf16 %v155_v58, %v151_v56  ;;  %v2920_v2 = vpack.c.bf16 %v162_v60, %v158_v59  ;;  %v161_v4 = vld [vmem:[%s7554_s1 + $0x3e0] sm:$0xff]  ;;  %v163_v7 = vld [vmem:[%s7554_s1 + $0x3f0] sm:$0xff]  ;;  %v166_v9 = vld [vmem:[%s7554_s1 + $0x408] sm:$0xff] }
  0x2c   :  { %3413 = vmatprep.subr.bf16.mxu1 %v3412_v5  ;;  %v159_v5 = vld [vmem:[%s7554_s1 + $0x3d0] sm:$0xff]  ;;  %v3432_v6 = vpack.c.bf16 %v164_v63, %v160_v62  ;;  %v170_v10 = vld [vmem:[%s7554_s1 + $0x428] sm:$0xff]  ;;  %v172_v13 = vld [vmem:[%s7554_s1 + $0x438] sm:$0xff] }
  0x2d   :  { %v2924_v16 = vpack.c.bf16 %v170_v10, %v166_v9  ;;  %v165_v17 = vld [vmem:[%s7554_s1 + $0x400] sm:$0xff]  ;;  %v171_v21 = vld [vmem:[%s7554_s1 + $0x430] sm:$0xff]  ;;  %v174_v22 = vld [vmem:[%s7554_s1 + $0x448] sm:$0xff] }
  0x2e   :  { %2903 = vmatpush1.bf16.msra.mxu0 %v2902_v12  ;;  %v168_v12 = vld [vmem:[%s7554_s1 + $0x418] sm:$0xff]  ;;  %v169_v18 = vld [vmem:[%s7554_s1 + $0x420] sm:$0xff]  ;;  %v178_v23 = vld [vmem:[%s7554_s1 + $0x468] sm:$0xff] }
  0x2f   :  { %3415 = vmatpush1.bf16.msra.mxu1 %v3414_v14  ;;  %2905 = vmatprep.subr.bf16.mxu0 %v2904_v15  ;;  %v2922_v14 = vpack.c.bf16 %v161_v4, %v157_v3  ;;  %v3434_v15 = vpack.c.bf16 %v163_v7, %v159_v5  ;;  %v3436_v20 = vpack.c.bf16 %v172_v13, %v168_v12  ;;  %v173_v31 = vld [vmem:[%s7554_s1 + $0x440] sm:$0xff]  ;;  %v179_v35 = vld [vmem:[%s7554_s1 + $0x470] sm:$0xff]  ;;  %v182_v36 = vld [vmem:[%s7554_s1 + $0x488] sm:$0xff] }
  0x30   :  { %3417 = vmatprep.subr.bf16.mxu1 %v3416_v19  ;;  %v167_v19 = vld [vmem:[%s7554_s1 + $0x410] sm:$0xff]  ;;  %v2928_v30 = vpack.c.bf16 %v178_v23, %v174_v22  ;;  %v177_v32 = vld [vmem:[%s7554_s1 + $0x460] sm:$0xff]  ;;  %v186_v37 = vld [vmem:[%s7554_s1 + $0x4a8] sm:$0xff] }
  0x31   :  { %v3438_v29 = vpack.c.bf16 %v171_v21, %v167_v19  ;;  %v2932_v43 = vpack.c.bf16 %v186_v37, %v182_v36  ;;  %v181_v44 = vld [vmem:[%s7554_s1 + $0x480] sm:$0xff]  ;;  %v183_v46 = vld [vmem:[%s7554_s1 + $0x490] sm:$0xff]  ;;  %v190_v48 = vld [vmem:[%s7554_s1 + $0x4c8] sm:$0xff] }
  0x32   :  { %2907 = vmatpush1.bf16.msra.mxu0 %v2906_v26  ;;  %v176_v26 = vld [vmem:[%s7554_s1 + $0x458] sm:$0xff]  ;;  %v194_v49 = vld [vmem:[%s7554_s1 + $0x4e8] sm:$0xff]  ;;  %v189_v55 = vld [vmem:[%s7554_s1 + $0x4c0] sm:$0xff] }
  0x33   :  { %3419 = vmatpush1.bf16.msra.mxu1 %v3418_v27  ;;  %2909 = vmatprep.subr.bf16.mxu0 %v2908_v28  ;;  %v180_v27 = vld [vmem:[%s7554_s1 + $0x478] sm:$0xff]  ;;  %v2926_v28 = vpack.c.bf16 %v169_v18, %v165_v17  ;;  %v2936_v54 = vpack.c.bf16 %v194_v49, %v190_v48  ;;  %v193_v56 = vld [vmem:[%s7554_s1 + $0x4e0] sm:$0xff]  ;;  %v195_v59 = vld [vmem:[%s7554_s1 + $0x4f0] sm:$0xff] }
  0x34   :  { %3421 = vmatprep.subr.bf16.mxu1 %v3420_v33  ;;  %v175_v33 = vld [vmem:[%s7554_s1 + $0x450] sm:$0xff]  ;;  %v3440_v34 = vpack.c.bf16 %v180_v27, %v176_v26  ;;  %v192_v50 = vld [vmem:[%s7554_s1 + $0x4d8] sm:$0xff]  ;;  %v198_v60 = vld [vmem:[%s7554_s1 + $0x508] sm:$0xff] }
  0x35   :  { %v3442_v42 = vpack.c.bf16 %v179_v35, %v175_v33  ;;  %v202_v62 = vld [vmem:[%s7554_s1 + $0x528] sm:$0xff]  ;;  %v200_v63 = vld [vmem:[%s7554_s1 + $0x518] sm:$0xff]  ;;  %v197_v4 = vld [vmem:[%s7554_s1 + $0x500] sm:$0xff] }
  0x36   :  { %2911 = vmatpush1.bf16.msra.mxu0 %v2910_v39  ;;  %v184_v39 = vld [vmem:[%s7554_s1 + $0x498] sm:$0xff]  ;;  %v2940_v3 = vpack.c.bf16 %v202_v62, %v198_v60  ;;  %v201_v5 = vld [vmem:[%s7554_s1 + $0x520] sm:$0xff]  ;;  %v203_v8 = vld [vmem:[%s7554_s1 + $0x530] sm:$0xff] }
  0x37   :  { %3423 = vmatpush1.bf16.msra.mxu1 %v3422_v40  ;;  %2913 = vmatprep.subr.bf16.mxu0 %v2912_v41  ;;  %v188_v40 = vld [vmem:[%s7554_s1 + $0x4b8] sm:$0xff]  ;;  %v2930_v41 = vpack.c.bf16 %v177_v32, %v173_v31  ;;  %v206_v9 = vld [vmem:[%s7554_s1 + $0x548] sm:$0xff]  ;;  %v205_v17 = vld [vmem:[%s7554_s1 + $0x540] sm:$0xff] }
  0x38   :  { %3425 = vmatprep.subr.bf16.mxu1 %v3424_v45  ;;  %v185_v45 = vld [vmem:[%s7554_s1 + $0x4a0] sm:$0xff]  ;;  %v3444_v47 = vpack.c.bf16 %v188_v40, %v184_v39  ;;  %v210_v10 = vld [vmem:[%s7554_s1 + $0x568] sm:$0xff]  ;;  %v208_v12 = vld [vmem:[%s7554_s1 + $0x558] sm:$0xff] }
  0x39   :  { %v212_v13 = vld [vmem:[%s7554_s1 + $0x578] sm:$0xff]  ;;  %v209_v18 = vld [vmem:[%s7554_s1 + $0x560] sm:$0xff]  ;;  %v207_v19 = vld [vmem:[%s7554_s1 + $0x550] sm:$0xff] }
  0x3a   :  { %2915 = vmatpush1.bf16.msra.mxu0 %v2914_v51  ;;  %v196_v51 = vld [vmem:[%s7554_s1 + $0x4f8] sm:$0xff]  ;;  %v211_v21 = vld [vmem:[%s7554_s1 + $0x570] sm:$0xff]  ;;  %v214_v22 = vld [vmem:[%s7554_s1 + $0x588] sm:$0xff] }
  0x3b   :  { %3427 = vmatpush1.bf16.msra.mxu1 %v3426_v52  ;;  %2917 = vmatprep.subr.bf16.mxu0 %v2916_v53  ;;  %v2934_v52 = vpack.c.bf16 %v185_v45, %v181_v44  ;;  %v3448_v58 = vpack.c.bf16 %v196_v51, %v192_v50  ;;  %v218_v23 = vld [vmem:[%s7554_s1 + $0x5a8] sm:$0xff]  ;;  %v216_v26 = vld [vmem:[%s7554_s1 + $0x598] sm:$0xff]  ;;  %v213_v31 = vld [vmem:[%s7554_s1 + $0x580] sm:$0xff] }
  0x3c   :  { %3429 = vmatprep.subr.bf16.mxu1 %v3428_v57  ;;  %v191_v57 = vld [vmem:[%s7554_s1 + $0x4d0] sm:$0xff]  ;;  %v220_v27 = vld [vmem:[%s7554_s1 + $0x5b8] sm:$0xff]  ;;  %v217_v32 = vld [vmem:[%s7554_s1 + $0x5a0] sm:$0xff] }
  0x3d   :  { %v215_v33 = vld [vmem:[%s7554_s1 + $0x590] sm:$0xff]  ;;  %v222_v36 = vld [vmem:[%s7554_s1 + $0x5c8] sm:$0xff]  ;;  %v228_v39 = vld [vmem:[%s7554_s1 + $0x5f8] sm:$0xff]  ;;  %v2950_v40 = vpack.c.bf16 %v217_v32, %v213_v31 }
  0x3e   :  { %2919 = vmatpush1.bf16.msra.mxu0 %v2918_v0  ;;  %v204_v0 = vld [vmem:[%s7554_s1 + $0x538] sm:$0xff]  ;;  %v219_v35 = vld [vmem:[%s7554_s1 + $0x5b0] sm:$0xff]  ;;  %v226_v37 = vld [vmem:[%s7554_s1 + $0x5e8] sm:$0xff] }
  0x3f   :  { %3431 = vmatpush1.bf16.msra.mxu1 %v3430_v1  ;;  %2921 = vmatprep.subr.bf16.mxu0 %v2920_v2  ;;  %v2938_v1 = vpack.c.bf16 %v193_v56, %v189_v55  ;;  %v3450_v2 = vpack.c.bf16 %v195_v59, %v191_v57  ;;  %v3452_v7 = vpack.c.bf16 %v204_v0, %v200_v63  ;;  %v225_v44 = vld [vmem:[%s7554_s1 + $0x5e0] sm:$0xff]  ;;  %v223_v45 = vld [vmem:[%s7554_s1 + $0x5d0] sm:$0xff]  ;;  %v234_v48 = vld [vmem:[%s7554_s1 + $0x628] sm:$0xff] }
  0x40   :  { %3433 = vmatprep.subr.bf16.mxu1 %v3432_v6  ;;  %v199_v6 = vld [vmem:[%s7554_s1 + $0x510] sm:$0xff]  ;;  %v232_v49 = vld [vmem:[%s7554_s1 + $0x618] sm:$0xff]  ;;  %v233_v55 = vld [vmem:[%s7554_s1 + $0x620] sm:$0xff] }
  0x41   :  { %v236_v50 = vld [vmem:[%s7554_s1 + $0x638] sm:$0xff]  ;;  %v231_v56 = vld [vmem:[%s7554_s1 + $0x610] sm:$0xff]  ;;  %v238_v59 = vld [vmem:[%s7554_s1 + $0x648] sm:$0xff] }
  0x42   :  { %2923 = vmatpush1.bf16.msra.mxu0 %v2922_v14  ;;  %v2942_v14 = vpack.c.bf16 %v201_v5, %v197_v4  ;;  %v3468_v57 = vpack.c.bf16 %v236_v50, %v232_v49  ;;  %v242_v60 = vld [vmem:[%s7554_s1 + $0x668] sm:$0xff]  ;;  %v240_v62 = vld [vmem:[%s7554_s1 + $0x658] sm:$0xff]  ;;  %v241_v4 = vld [vmem:[%s7554_s1 + $0x660] sm:$0xff] }
  0x43   :  { %3435 = vmatpush1.bf16.msra.mxu1 %v3434_v15  ;;  %2925 = vmatprep.subr.bf16.mxu0 %v2924_v16  ;;  %v3454_v15 = vpack.c.bf16 %v203_v8, %v199_v6  ;;  %v2944_v16 = vpack.c.bf16 %v210_v10, %v206_v9  ;;  %v244_v63 = vld [vmem:[%s7554_s1 + $0x678] sm:$0xff]  ;;  %v239_v5 = vld [vmem:[%s7554_s1 + $0x650] sm:$0xff]  ;;  %v246_v8 = vld [vmem:[%s7554_s1 + $0x688] sm:$0xff] }
  0x44   :  { %3437 = vmatprep.subr.bf16.mxu1 %v3436_v20  ;;  %v3456_v20 = vpack.c.bf16 %v212_v13, %v208_v12  ;;  %v3472_v6 = vpack.c.bf16 %v244_v63, %v240_v62  ;;  %v250_v9 = vld [vmem:[%s7554_s1 + $0x6a8] sm:$0xff]  ;;  %v248_v10 = vld [vmem:[%s7554_s1 + $0x698] sm:$0xff]  ;;  %v257_v31 = vld [vmem:[%s7554_s1 + $0x6e0] sm:$0xff] }
  0x45   :  { %1236 = vmatmul.mubr.f32.vlgmr.msra.gmra.mrb[0].mxu0 %v4410_v25  ;;  %v252_v12 = vld [vmem:[%s7554_s1 + $0x6b8] sm:$0xff]  ;;  %v255_v32 = vld [vmem:[%s7554_s1 + $0x6d0] sm:$0xff] }
  0x46   :  { %2927 = vmatpush1.bf16.msra.mxu0 %v2926_v28  ;;  %1804 = vmatmul.mubr.f32.vlgmr.msra.gmra.mrb[0].mxu1 %v4410_v25  ;;  %v187_v25 = vld [vmem:[%s7554_s1 + $0x4b0] sm:$0xff]  ;;  %v2946_v28 = vpack.c.bf16 %v209_v18, %v205_v17  ;;  %v249_v17 = vld [vmem:[%s7554_s1 + $0x6a0] sm:$0xff]  ;;  %v276_v49 = vld [vmem:[%s7554_s1 + $0x778] sm:$0xff] }
  0x47   :  { %3439 = vmatpush1.bf16.msra.mxu1 %v3438_v29  ;;  %2929 = vmatprep.subr.bf16.mxu0 %v2928_v30  ;;  %v3446_v53 = vpack.c.bf16 %v187_v25, %v183_v46  ;;  %v3458_v29 = vpack.c.bf16 %v211_v21, %v207_v19  ;;  %v2948_v30 = vpack.c.bf16 %v218_v23, %v214_v22  ;;  %v230_v25 = vld [vmem:[%s7554_s1 + $0x608] sm:$0xff]  ;;  %v247_v18 = vld [vmem:[%s7554_s1 + $0x690] sm:$0xff]  ;;  %v256_v23 = vld [vmem:[%s7554_s1 + $0x6d8] sm:$0xff] }
  0x48   :  { %3441 = vmatprep.subr.bf16.mxu1 %v3440_v34  ;;  %1306 = vmatprep.mubr.f32.mxu0 %v1103_v38  ;;  %v3460_v34 = vpack.c.bf16 %v220_v27, %v216_v26  ;;  %v3476_v19 = vpack.c.bf16 %v252_v12, %v248_v10  ;;  %v254_v21 = vld [vmem:[%s7554_s1 + $0x6c8] sm:$0xff]  ;;  %v260_v26 = vld [vmem:[%s7554_s1 + $0x6f8] sm:$0xff] }
  0x49   :  { %1874 = vmatprep.mubr.f32.mxu1 %v1103_v38  ;;  %v224_v38 = vld [vmem:[%s7554_s1 + $0x5d8] sm:$0xff]  ;;  %v258_v22 = vld [vmem:[%s7554_s1 + $0x6e8] sm:$0xff] }
  0x4a   :  { %2931 = vmatpush1.bf16.msra.mxu0 %v2930_v41  ;;  %v3462_v41 = vpack.c.bf16 %v219_v35, %v215_v33  ;;  %v3464_v46 = vpack.c.bf16 %v228_v39, %v224_v38  ;;  %v3480_v33 = vpack.c.bf16 %v260_v26, %v256_v23  ;;  %v262_v35 = vld [vmem:[%s7554_s1 + $0x708] sm:$0xff]  ;;  %v268_v38 = vld [vmem:[%s7554_s1 + $0x738] sm:$0xff] }
  0x4b   :  { %3443 = vmatpush1.bf16.msra.mxu1 %v3442_v42  ;;  %2933 = vmatprep.subr.bf16.mxu0 %v2932_v43  ;;  %v2952_v42 = vpack.c.bf16 %v226_v37, %v222_v36  ;;  %v221_v43 = vld [vmem:[%s7554_s1 + $0x5c0] sm:$0xff]  ;;  %v266_v36 = vld [vmem:[%s7554_s1 + $0x728] sm:$0xff]  ;;  %v264_v37 = vld [vmem:[%s7554_s1 + $0x718] sm:$0xff] }
  0x4c   :  { %3445 = vmatprep.subr.bf16.mxu1 %v3444_v47  ;;  %v227_v47 = vld [vmem:[%s7554_s1 + $0x5f0] sm:$0xff]  ;;  %v2954_v51 = vpack.c.bf16 %v225_v44, %v221_v43  ;;  %v265_v43 = vld [vmem:[%s7554_s1 + $0x720] sm:$0xff]  ;;  %v284_v62 = vld [vmem:[%s7554_s1 + $0x7b8] sm:$0xff] }
  0x4d   :  { %v263_v44 = vld [vmem:[%s7554_s1 + $0x710] sm:$0xff]  ;;  %v292_v10 = vld [vmem:[%s7554_s1 + $0x7f8] sm:$0xff] }
  0x4e   :  { %2935 = vmatpush1.bf16.msra.mxu0 %v2934_v52  ;;  %v3466_v52 = vpack.c.bf16 %v227_v47, %v223_v45  ;;  %v3484_v45 = vpack.c.bf16 %v268_v38, %v264_v37  ;;  %v270_v47 = vld [vmem:[%s7554_s1 + $0x748] sm:$0xff]  ;;  %v300_v23 = vld [vmem:[%s7554_s1 + $0x838] sm:$0xff] }
  0x4f   :  { %3447 = vmatpush1.bf16.msra.mxu1 %v3446_v53  ;;  %2937 = vmatprep.subr.bf16.mxu0 %v2936_v54  ;;  %v2956_v53 = vpack.c.bf16 %v234_v48, %v230_v25  ;;  %v229_v54 = vld [vmem:[%s7554_s1 + $0x600] sm:$0xff]  ;;  %v274_v25 = vld [vmem:[%s7554_s1 + $0x768] sm:$0xff]  ;;  %v272_v48 = vld [vmem:[%s7554_s1 + $0x758] sm:$0xff] }
  0x50   :  { %3449 = vmatprep.subr.bf16.mxu1 %v3448_v58  ;;  %v235_v58 = vld [vmem:[%s7554_s1 + $0x630] sm:$0xff]  ;;  %v2958_v0 = vpack.c.bf16 %v233_v55, %v229_v54  ;;  %v273_v54 = vld [vmem:[%s7554_s1 + $0x760] sm:$0xff]  ;;  %v308_v37 = vld [vmem:[%s7554_s1 + $0x878] sm:$0xff] }
  0x51   :  { %v271_v55 = vld [vmem:[%s7554_s1 + $0x750] sm:$0xff] }
  0x52   :  { %2939 = vmatpush1.bf16.msra.mxu0 %v2938_v1  ;;  %v3470_v1 = vpack.c.bf16 %v235_v58, %v231_v56  ;;  %v3488_v56 = vpack.c.bf16 %v276_v49, %v272_v48  ;;  %v278_v58 = vld [vmem:[%s7554_s1 + $0x788] sm:$0xff]  ;;  %v312_v49 = vld [vmem:[%s7554_s1 + $0x898] sm:$0xff] }
  0x53   :  { %3451 = vmatpush1.bf16.msra.mxu1 %v3450_v2  ;;  %2941 = vmatprep.subr.bf16.mxu0 %v2940_v3  ;;  %v2960_v2 = vpack.c.bf16 %v242_v60, %v238_v59  ;;  %v237_v3 = vld [vmem:[%s7554_s1 + $0x640] sm:$0xff]  ;;  %v282_v59 = vld [vmem:[%s7554_s1 + $0x7a8] sm:$0xff]  ;;  %v280_v60 = vld [vmem:[%s7554_s1 + $0x798] sm:$0xff] }
  0x54   :  { %3453 = vmatprep.subr.bf16.mxu1 %v3452_v7  ;;  %v243_v7 = vld [vmem:[%s7554_s1 + $0x670] sm:$0xff]  ;;  %v2962_v13 = vpack.c.bf16 %v241_v4, %v237_v3  ;;  %v281_v3 = vld [vmem:[%s7554_s1 + $0x7a0] sm:$0xff]  ;;  %v314_v48 = vld [vmem:[%s7554_s1 + $0x8a8] sm:$0xff] }
  0x55   :  { %v279_v4 = vld [vmem:[%s7554_s1 + $0x790] sm:$0xff] }
  0x56   :  { %2943 = vmatpush1.bf16.msra.mxu0 %v2942_v14  ;;  %v3474_v14 = vpack.c.bf16 %v243_v7, %v239_v5  ;;  %v3492_v5 = vpack.c.bf16 %v284_v62, %v280_v60  ;;  %v286_v7 = vld [vmem:[%s7554_s1 + $0x7c8] sm:$0xff]  ;;  %v320_v62 = vld [vmem:[%s7554_s1 + $0x8d8] sm:$0xff] }
  0x57   :  { %3455 = vmatpush1.bf16.msra.mxu1 %v3454_v15  ;;  %2945 = vmatprep.subr.bf16.mxu0 %v2944_v16  ;;  %v2964_v15 = vpack.c.bf16 %v250_v9, %v246_v8  ;;  %v245_v16 = vld [vmem:[%s7554_s1 + $0x680] sm:$0xff]  ;;  %v290_v8 = vld [vmem:[%s7554_s1 + $0x7e8] sm:$0xff]  ;;  %v288_v9 = vld [vmem:[%s7554_s1 + $0x7d8] sm:$0xff] }
  0x58   :  { %3457 = vmatprep.subr.bf16.mxu1 %v3456_v20  ;;  %v251_v20 = vld [vmem:[%s7554_s1 + $0x6b0] sm:$0xff]  ;;  %v2966_v27 = vpack.c.bf16 %v249_v17, %v245_v16  ;;  %v289_v16 = vld [vmem:[%s7554_s1 + $0x7e0] sm:$0xff]  ;;  %v322_v60 = vld [vmem:[%s7554_s1 + $0x8e8] sm:$0xff] }
  0x59   :  { %v287_v17 = vld [vmem:[%s7554_s1 + $0x7d0] sm:$0xff] }
  0x5a   :  { %2947 = vmatpush1.bf16.msra.mxu0 %v2946_v28  ;;  %v3478_v28 = vpack.c.bf16 %v251_v20, %v247_v18  ;;  %v3496_v18 = vpack.c.bf16 %v292_v10, %v288_v9  ;;  %v294_v20 = vld [vmem:[%s7554_s1 + $0x808] sm:$0xff]  ;;  %v328_v10 = vld [vmem:[%s7554_s1 + $0x918] sm:$0xff] }
  0x5b   :  { %3459 = vmatpush1.bf16.msra.mxu1 %v3458_v29  ;;  %2949 = vmatprep.subr.bf16.mxu0 %v2948_v30  ;;  %v2968_v29 = vpack.c.bf16 %v258_v22, %v254_v21  ;;  %v253_v30 = vld [vmem:[%s7554_s1 + $0x6c0] sm:$0xff]  ;;  %v298_v21 = vld [vmem:[%s7554_s1 + $0x828] sm:$0xff]  ;;  %v296_v22 = vld [vmem:[%s7554_s1 + $0x818] sm:$0xff] }
  0x5c   :  { %3461 = vmatprep.subr.bf16.mxu1 %v3460_v34  ;;  %v259_v34 = vld [vmem:[%s7554_s1 + $0x6f0] sm:$0xff]  ;;  %v2970_v39 = vpack.c.bf16 %v257_v31, %v253_v30  ;;  %v297_v30 = vld [vmem:[%s7554_s1 + $0x820] sm:$0xff]  ;;  %v330_v9 = vld [vmem:[%s7554_s1 + $0x928] sm:$0xff] }
  0x5d   :  { %v295_v31 = vld [vmem:[%s7554_s1 + $0x810] sm:$0xff] }
  0x5e   :  { %2951 = vmatpush1.bf16.msra.mxu0 %v2950_v40  ;;  %v3482_v40 = vpack.c.bf16 %v259_v34, %v255_v32  ;;  %v3500_v32 = vpack.c.bf16 %v300_v23, %v296_v22  ;;  %v302_v34 = vld [vmem:[%s7554_s1 + $0x848] sm:$0xff]  ;;  %v336_v23 = vld [vmem:[%s7554_s1 + $0x958] sm:$0xff] }
  0x5f   :  { %3463 = vmatpush1.bf16.msra.mxu1 %v3462_v41  ;;  %2953 = vmatprep.subr.bf16.mxu0 %v2952_v42  ;;  %v2972_v41 = vpack.c.bf16 %v266_v36, %v262_v35  ;;  %v261_v42 = vld [vmem:[%s7554_s1 + $0x700] sm:$0xff]  ;;  %v306_v35 = vld [vmem:[%s7554_s1 + $0x868] sm:$0xff]  ;;  %v304_v36 = vld [vmem:[%s7554_s1 + $0x858] sm:$0xff] }
  0x60   :  { %3465 = vmatprep.subr.bf16.mxu1 %v3464_v46  ;;  %v267_v46 = vld [vmem:[%s7554_s1 + $0x730] sm:$0xff]  ;;  %v2974_v50 = vpack.c.bf16 %v265_v43, %v261_v42  ;;  %v301_v42 = vld [vmem:[%s7554_s1 + $0x840] sm:$0xff]  ;;  %v338_v22 = vld [vmem:[%s7554_s1 + $0x968] sm:$0xff] }
  0x61   :  { %v305_v43 = vld [vmem:[%s7554_s1 + $0x860] sm:$0xff] }
  0x62   :  { %2955 = vmatpush1.bf16.msra.mxu0 %v2954_v51  ;;  %v3486_v51 = vpack.c.bf16 %v267_v46, %v263_v44  ;;  %v303_v44 = vld [vmem:[%s7554_s1 + $0x850] sm:$0xff]  ;;  %v3504_v46 = vpack.c.bf16 %v308_v37, %v304_v36  ;;  %v346_v36 = vld [vmem:[%s7554_s1 + $0x9a8] sm:$0xff]  ;;  %v344_v37 = vld [vmem:[%s7554_s1 + $0x998] sm:$0xff] }
  0x63   :  { %3467 = vmatpush1.bf16.msra.mxu1 %v3466_v52  ;;  %2957 = vmatprep.subr.bf16.mxu0 %v2956_v53  ;;  %v2976_v52 = vpack.c.bf16 %v274_v25, %v270_v47  ;;  %v269_v53 = vld [vmem:[%s7554_s1 + $0x740] sm:$0xff]  ;;  %v307_v47 = vld [vmem:[%s7554_s1 + $0x870] sm:$0xff]  ;;  %v310_v25 = vld [vmem:[%s7554_s1 + $0x888] sm:$0xff] }
  0x64   :  { %3469 = vmatprep.subr.bf16.mxu1 %v3468_v57  ;;  %v275_v57 = vld [vmem:[%s7554_s1 + $0x770] sm:$0xff]  ;;  %v2978_v63 = vpack.c.bf16 %v273_v54, %v269_v53  ;;  %v3506_v53 = vpack.c.bf16 %v307_v47, %v303_v44  ;;  %v2996_v54 = vpack.c.bf16 %v314_v48, %v310_v25  ;;  %v345_v44 = vld [vmem:[%s7554_s1 + $0x9a0] sm:$0xff]  ;;  %v350_v48 = vld [vmem:[%s7554_s1 + $0x9c8] sm:$0xff] }
  0x65   :  { %v347_v25 = vld [vmem:[%s7554_s1 + $0x9b0] sm:$0xff] }
  0x66   :  { %2959 = vmatpush1.bf16.msra.mxu0 %v2958_v0  ;;  %v3490_v0 = vpack.c.bf16 %v275_v57, %v271_v55  ;;  %v309_v55 = vld [vmem:[%s7554_s1 + $0x880] sm:$0xff]  ;;  %v311_v57 = vld [vmem:[%s7554_s1 + $0x890] sm:$0xff] }
  0x67   :  { %3471 = vmatpush1.bf16.msra.mxu1 %v3470_v1  ;;  %2961 = vmatprep.subr.bf16.mxu0 %v2960_v2  ;;  %v2980_v1 = vpack.c.bf16 %v282_v59, %v278_v58  ;;  %v277_v2 = vld [vmem:[%s7554_s1 + $0x780] sm:$0xff]  ;;  %v318_v59 = vld [vmem:[%s7554_s1 + $0x8c8] sm:$0xff] }
  0x68   :  { %3473 = vmatprep.subr.bf16.mxu1 %v3472_v6  ;;  %v283_v6 = vld [vmem:[%s7554_s1 + $0x7b0] sm:$0xff]  ;;  %v2982_v12 = vpack.c.bf16 %v281_v3, %v277_v2  ;;  %v3000_v2 = vpack.c.bf16 %v322_v60, %v318_v59  ;;  %v317_v3 = vld [vmem:[%s7554_s1 + $0x8c0] sm:$0xff]  ;;  %v358_v59 = vld [vmem:[%s7554_s1 + $0xa08] sm:$0xff] }
  0x69   :  { %v362_v60 = vld [vmem:[%s7554_s1 + $0xa28] sm:$0xff] }
  0x6a   :  { %2963 = vmatpush1.bf16.msra.mxu0 %v2962_v13  ;;  %v3494_v13 = vpack.c.bf16 %v283_v6, %v279_v4  ;;  %v321_v4 = vld [vmem:[%s7554_s1 + $0x8e0] sm:$0xff] }
  0x6b   :  { %3475 = vmatpush1.bf16.msra.mxu1 %v3474_v14  ;;  %2965 = vmatprep.subr.bf16.mxu0 %v2964_v15  ;;  %v2984_v14 = vpack.c.bf16 %v290_v8, %v286_v7  ;;  %v285_v15 = vld [vmem:[%s7554_s1 + $0x7c0] sm:$0xff]  ;;  %v323_v7 = vld [vmem:[%s7554_s1 + $0x8f0] sm:$0xff]  ;;  %v326_v8 = vld [vmem:[%s7554_s1 + $0x908] sm:$0xff] }
  0x6c   :  { %3477 = vmatprep.subr.bf16.mxu1 %v3476_v19  ;;  %v291_v19 = vld [vmem:[%s7554_s1 + $0x7f0] sm:$0xff]  ;;  %v2986_v26 = vpack.c.bf16 %v289_v16, %v285_v15  ;;  %v3004_v15 = vpack.c.bf16 %v330_v9, %v326_v8  ;;  %v325_v16 = vld [vmem:[%s7554_s1 + $0x900] sm:$0xff]  ;;  %v366_v8 = vld [vmem:[%s7554_s1 + $0xa48] sm:$0xff] }
  0x6d   :  { %v370_v9 = vld [vmem:[%s7554_s1 + $0xa68] sm:$0xff] }
  0x6e   :  { %2967 = vmatpush1.bf16.msra.mxu0 %v2966_v27  ;;  %v3498_v27 = vpack.c.bf16 %v291_v19, %v287_v17  ;;  %v329_v17 = vld [vmem:[%s7554_s1 + $0x920] sm:$0xff] }
  0x6f   :  { %3479 = vmatpush1.bf16.msra.mxu1 %v3478_v28  ;;  %2969 = vmatprep.subr.bf16.mxu0 %v2968_v29  ;;  %v2988_v28 = vpack.c.bf16 %v298_v21, %v294_v20  ;;  %v293_v29 = vld [vmem:[%s7554_s1 + $0x800] sm:$0xff]  ;;  %v331_v20 = vld [vmem:[%s7554_s1 + $0x930] sm:$0xff]  ;;  %v334_v21 = vld [vmem:[%s7554_s1 + $0x948] sm:$0xff] }
  0x70   :  { %3481 = vmatprep.subr.bf16.mxu1 %v3480_v33  ;;  %v299_v33 = vld [vmem:[%s7554_s1 + $0x830] sm:$0xff]  ;;  %v2990_v38 = vpack.c.bf16 %v297_v30, %v293_v29  ;;  %v3008_v29 = vpack.c.bf16 %v338_v22, %v334_v21  ;;  %v333_v30 = vld [vmem:[%s7554_s1 + $0x940] sm:$0xff]  ;;  %v374_v21 = vld [vmem:[%s7554_s1 + $0xa88] sm:$0xff] }
  0x71   :  { %v378_v22 = vld [vmem:[%s7554_s1 + $0xaa8] sm:$0xff] }
  0x72   :  { %2971 = vmatpush1.bf16.msra.mxu0 %v2970_v39  ;;  %v4930_v39 = vld [vmem:[%s7553_s0 + $0x8] sm:$0xff] }
  0x73   :  { %3483 = vmatpush1.bf16.msra.mxu1 %v3482_v40  ;;  %2973 = vmatprep.subr.bf16.mxu0 %v2972_v41  ;;  %v3502_v40 = vpack.c.bf16 %v299_v33, %v295_v31  ;;  %v2992_v41 = vpack.c.bf16 %v306_v35, %v302_v34  ;;  %v337_v31 = vld [vmem:[%s7554_s1 + $0x960] sm:$0xff]  ;;  %v339_v34 = vld [vmem:[%s7554_s1 + $0x970] sm:$0xff]  ;;  %v342_v35 = vld [vmem:[%s7554_s1 + $0x988] sm:$0xff] }
  0x74   :  { %3485 = vmatprep.subr.bf16.mxu1 %v3484_v45  ;;  %v4943_v45 = vrot.slane %v4930_v39, %v4377_v11 }
  0x76   :  { %2975 = vmatpush1.bf16.msra.mxu0 %v2974_v50  ;;  %v316_v50 = vld [vmem:[%s7554_s1 + $0x8b8] sm:$0xff] }
  0x77   :  { %3487 = vmatpush1.bf16.msra.mxu1 %v3486_v51  ;;  %2977 = vmatprep.subr.bf16.mxu0 %v2976_v52  ;;  %v1119_v51 = vcombine.high %v4943_v45, %v4943_v45  ;;  %v2994_v52 = vpack.c.bf16 %v305_v43, %v301_v42  ;;  %v3508_v58 = vpack.c.bf16 %v316_v50, %v312_v49  ;;  %v341_v43 = vld [vmem:[%s7554_s1 + $0x980] sm:$0xff]  ;;  %v354_v49 = vld [vmem:[%s7554_s1 + $0x9e8] sm:$0xff]  ;;  %v352_v50 = vld [vmem:[%s7554_s1 + $0x9d8] sm:$0xff] }
  0x78   :  { %3489 = vmatprep.subr.bf16.mxu1 %v3488_v56  ;;  %v313_v56 = vld [vmem:[%s7554_s1 + $0x8a0] sm:$0xff]  ;;  %v3012_v42 = vpack.c.bf16 %v346_v36, %v342_v35  ;;  %v382_v35 = vld [vmem:[%s7554_s1 + $0xac8] sm:$0xff] }
  0x79   :  { %v386_v36 = vld [vmem:[%s7554_s1 + $0xae8] sm:$0xff] }
  0x7a   :  { %2979 = vmatpush1.bf16.msra.mxu0 %v2978_v63  ;;  %v324_v63 = vld [vmem:[%s7554_s1 + $0x8f8] sm:$0xff] }
  0x7b   :  { %3491 = vmatpush1.bf16.msra.mxu1 %v3490_v0  ;;  %2981 = vmatprep.subr.bf16.mxu0 %v2980_v1  ;;  %v2998_v0 = vpack.c.bf16 %v313_v56, %v309_v55  ;;  %v3512_v6 = vpack.c.bf16 %v324_v63, %v320_v62  ;;  %v349_v55 = vld [vmem:[%s7554_s1 + $0x9c0] sm:$0xff]  ;;  %v360_v62 = vld [vmem:[%s7554_s1 + $0xa18] sm:$0xff] }
  0x7c   :  { %3493 = vmatprep.subr.bf16.mxu1 %v3492_v5  ;;  %v319_v5 = vld [vmem:[%s7554_s1 + $0x8d0] sm:$0xff]  ;;  %v353_v56 = vld [vmem:[%s7554_s1 + $0x9e0] sm:$0xff]  ;;  %v364_v63 = vld [vmem:[%s7554_s1 + $0xa38] sm:$0xff] }
  0x7e   :  { %2983 = vmatpush1.bf16.msra.mxu0 %v2982_v12  ;;  %v332_v12 = vld [vmem:[%s7554_s1 + $0x938] sm:$0xff] }
  0x7f   :  { %3495 = vmatpush1.bf16.msra.mxu1 %v3494_v13  ;;  %2985 = vmatprep.subr.bf16.mxu0 %v2984_v14  ;;  %v3002_v13 = vpack.c.bf16 %v321_v4, %v317_v3  ;;  %v3514_v14 = vpack.c.bf16 %v323_v7, %v319_v5  ;;  %v3516_v19 = vpack.c.bf16 %v332_v12, %v328_v10  ;;  %v357_v3 = vld [vmem:[%s7554_s1 + $0xa00] sm:$0xff]  ;;  %v359_v5 = vld [vmem:[%s7554_s1 + $0xa10] sm:$0xff]  ;;  %v368_v10 = vld [vmem:[%s7554_s1 + $0xa58] sm:$0xff] }
  0x80   :  { %3497 = vmatprep.subr.bf16.mxu1 %v3496_v18  ;;  %v327_v18 = vld [vmem:[%s7554_s1 + $0x910] sm:$0xff]  ;;  %v361_v4 = vld [vmem:[%s7554_s1 + $0xa20] sm:$0xff]  ;;  %v372_v12 = vld [vmem:[%s7554_s1 + $0xa78] sm:$0xff] }
  0x81   :  { %v363_v7 = vld [vmem:[%s7554_s1 + $0xa30] sm:$0xff] }
  0x82   :  { %2987 = vmatpush1.bf16.msra.mxu0 %v2986_v26  ;;  %v340_v26 = vld [vmem:[%s7554_s1 + $0x978] sm:$0xff] }
  0x83   :  { %3499 = vmatpush1.bf16.msra.mxu1 %v3498_v27  ;;  %2989 = vmatprep.subr.bf16.mxu0 %v2988_v28  ;;  %v3006_v27 = vpack.c.bf16 %v329_v17, %v325_v16  ;;  %v3518_v28 = vpack.c.bf16 %v331_v20, %v327_v18  ;;  %v3520_v33 = vpack.c.bf16 %v340_v26, %v336_v23  ;;  %v365_v16 = vld [vmem:[%s7554_s1 + $0xa40] sm:$0xff]  ;;  %v367_v18 = vld [vmem:[%s7554_s1 + $0xa50] sm:$0xff]  ;;  %v376_v23 = vld [vmem:[%s7554_s1 + $0xa98] sm:$0xff] }
  0x84   :  { %3501 = vmatprep.subr.bf16.mxu1 %v3500_v32  ;;  %v335_v32 = vld [vmem:[%s7554_s1 + $0x950] sm:$0xff]  ;;  %v369_v17 = vld [vmem:[%s7554_s1 + $0xa60] sm:$0xff]  ;;  %v380_v26 = vld [vmem:[%s7554_s1 + $0xab8] sm:$0xff] }
  0x85   :  { %1307 = vmatmul.mubr.f32.vlgmr.msra.gmra.mrb[0].mxu0 %v4531_v24  ;;  %v371_v20 = vld [vmem:[%s7554_s1 + $0xa70] sm:$0xff] }
  0x86   :  { %2991 = vmatpush1.bf16.msra.mxu0 %v2990_v38  ;;  %1875 = vmatmul.mubr.f32.vlgmr.msra.gmra.mrb[0].mxu1 %v4531_v24  ;;  %v315_v24 = vld [vmem:[%s7554_s1 + $0x8b0] sm:$0xff]  ;;  %v348_v38 = vld [vmem:[%s7554_s1 + $0x9b8] sm:$0xff] }
  0x87   :  { %3503 = vmatpush1.bf16.msra.mxu1 %v3502_v40  ;;  %2993 = vmatprep.subr.bf16.mxu0 %v2992_v41  ;;  %v3510_v1 = vpack.c.bf16 %v315_v24, %v311_v57  ;;  %v3010_v40 = vpack.c.bf16 %v337_v31, %v333_v30  ;;  %v3522_v41 = vpack.c.bf16 %v339_v34, %v335_v32  ;;  %v351_v57 = vld [vmem:[%s7554_s1 + $0x9d0] sm:$0xff]  ;;  %v373_v30 = vld [vmem:[%s7554_s1 + $0xa80] sm:$0xff] }
  0x88   :  { %3505 = vmatprep.subr.bf16.mxu1 %v3504_v46  ;;  %1377 = vmatprep.mubr.f32.mxu0 %v1119_v51  ;;  %v343_v46 = vld [vmem:[%s7554_s1 + $0x990] sm:$0xff]  ;;  %v3524_v47 = vpack.c.bf16 %v348_v38, %v344_v37  ;;  %v377_v31 = vld [vmem:[%s7554_s1 + $0xaa0] sm:$0xff]  ;;  %v384_v37 = vld [vmem:[%s7554_s1 + $0xad8] sm:$0xff] }
  0x89   :  { %1945 = vmatprep.mubr.f32.mxu1 %v1119_v51  ;;  %v356_v51 = vld [vmem:[%s7554_s1 + $0x9f8] sm:$0xff]  ;;  %v355_v24 = vld [vmem:[%s7554_s1 + $0x9f0] sm:$0xff] }
  0x8a   :  { %2995 = vmatpush1.bf16.msra.mxu0 %v2994_v52  ;;  %v3014_v52 = vpack.c.bf16 %v345_v44, %v341_v43  ;;  %v375_v32 = vld [vmem:[%s7554_s1 + $0xa90] sm:$0xff]  ;;  %v388_v38 = vld [vmem:[%s7554_s1 + $0xaf8] sm:$0xff]  ;;  %v381_v43 = vld [vmem:[%s7554_s1 + $0xac0] sm:$0xff] }
  0x8b   :  { %3507 = vmatpush1.bf16.msra.mxu1 %v3506_v53  ;;  %2997 = vmatprep.subr.bf16.mxu0 %v2996_v54  ;;  %v3526_v53 = vpack.c.bf16 %v347_v25, %v343_v46  ;;  %v3016_v54 = vpack.c.bf16 %v354_v49, %v350_v48  ;;  %v379_v34 = vld [vmem:[%s7554_s1 + $0xab0] sm:$0xff]  ;;  %v385_v44 = vld [vmem:[%s7554_s1 + $0xae0] sm:$0xff]  ;;  %v390_v48 = vld [vmem:[%s7554_s1 + $0xb08] sm:$0xff] }
  0x8c   :  { %3509 = vmatprep.subr.bf16.mxu1 %v3508_v58  ;;  %v3528_v58 = vpack.c.bf16 %v356_v51, %v352_v50  ;;  %v383_v46 = vld [vmem:[%s7554_s1 + $0xad0] sm:$0xff]  ;;  %v394_v49 = vld [vmem:[%s7554_s1 + $0xb28] sm:$0xff]  ;;  %v392_v50 = vld [vmem:[%s7554_s1 + $0xb18] sm:$0xff] }
  0x8d   :  { %v387_v25 = vld [vmem:[%s7554_s1 + $0xaf0] sm:$0xff]  ;;  %v396_v51 = vld [vmem:[%s7554_s1 + $0xb38] sm:$0xff] }
  0x8e   :  { %2999 = vmatpush1.bf16.msra.mxu0 %v2998_v0  ;;  %v3018_v0 = vpack.c.bf16 %v353_v56, %v349_v55  ;;  %v389_v55 = vld [vmem:[%s7554_s1 + $0xb00] sm:$0xff] }
  0x8f   :  { %3511 = vmatpush1.bf16.msra.mxu1 %v3510_v1  ;;  %3001 = vmatprep.subr.bf16.mxu0 %v3000_v2  ;;  %v3530_v1 = vpack.c.bf16 %v355_v24, %v351_v57  ;;  %v3020_v2 = vpack.c.bf16 %v362_v60, %v358_v59  ;;  %v393_v56 = vld [vmem:[%s7554_s1 + $0xb20] sm:$0xff]  ;;  %v391_v57 = vld [vmem:[%s7554_s1 + $0xb10] sm:$0xff]  ;;  %v398_v59 = vld [vmem:[%s7554_s1 + $0xb48] sm:$0xff] }
  0x90   :  { %3513 = vmatprep.subr.bf16.mxu1 %v3512_v6  ;;  %v3532_v6 = vpack.c.bf16 %v364_v63, %v360_v62  ;;  %v395_v24 = vld [vmem:[%s7554_s1 + $0xb30] sm:$0xff]  ;;  %v402_v60 = vld [vmem:[%s7554_s1 + $0xb68] sm:$0xff]  ;;  %v400_v62 = vld [vmem:[%s7554_s1 + $0xb58] sm:$0xff] }
  0x91   :  { %v404_v63 = vld [vmem:[%s7554_s1 + $0xb78] sm:$0xff] }
  0x92   :  { %3003 = vmatpush1.bf16.msra.mxu0 %v3002_v13  ;;  %v3022_v13 = vpack.c.bf16 %v361_v4, %v357_v3  ;;  %v397_v3 = vld [vmem:[%s7554_s1 + $0xb40] sm:$0xff] }
  0x93   :  { %3515 = vmatpush1.bf16.msra.mxu1 %v3514_v14  ;;  %3005 = vmatprep.subr.bf16.mxu0 %v3004_v15  ;;  %v3534_v14 = vpack.c.bf16 %v363_v7, %v359_v5  ;;  %v3024_v15 = vpack.c.bf16 %v370_v9, %v366_v8  ;;  %v401_v4 = vld [vmem:[%s7554_s1 + $0xb60] sm:$0xff]  ;;  %v399_v5 = vld [vmem:[%s7554_s1 + $0xb50] sm:$0xff]  ;;  %v406_v8 = vld [vmem:[%s7554_s1 + $0xb88] sm:$0xff] }
  0x94   :  { %3517 = vmatprep.subr.bf16.mxu1 %v3516_v19  ;;  %v3536_v19 = vpack.c.bf16 %v372_v12, %v368_v10  ;;  %v403_v7 = vld [vmem:[%s7554_s1 + $0xb70] sm:$0xff]  ;;  %v410_v9 = vld [vmem:[%s7554_s1 + $0xba8] sm:$0xff]  ;;  %v408_v10 = vld [vmem:[%s7554_s1 + $0xb98] sm:$0xff] }
  0x95   :  { %v412_v12 = vld [vmem:[%s7554_s1 + $0xbb8] sm:$0xff] }
  0x96   :  { %3007 = vmatpush1.bf16.msra.mxu0 %v3006_v27  ;;  %v3026_v27 = vpack.c.bf16 %v369_v17, %v365_v16  ;;  %v405_v16 = vld [vmem:[%s7554_s1 + $0xb80] sm:$0xff] }
  0x97   :  { %3519 = vmatpush1.bf16.msra.mxu1 %v3518_v28  ;;  %3009 = vmatprep.subr.bf16.mxu0 %v3008_v29  ;;  %v3538_v28 = vpack.c.bf16 %v371_v20, %v367_v18  ;;  %v3028_v29 = vpack.c.bf16 %v378_v22, %v374_v21  ;;  %v409_v17 = vld [vmem:[%s7554_s1 + $0xba0] sm:$0xff]  ;;  %v407_v18 = vld [vmem:[%s7554_s1 + $0xb90] sm:$0xff]  ;;  %v414_v21 = vld [vmem:[%s7554_s1 + $0xbc8] sm:$0xff] }
  0x98   :  { %3521 = vmatprep.subr.bf16.mxu1 %v3520_v33  ;;  %v3540_v33 = vpack.c.bf16 %v380_v26, %v376_v23  ;;  %v411_v20 = vld [vmem:[%s7554_s1 + $0xbb0] sm:$0xff]  ;;  %v418_v22 = vld [vmem:[%s7554_s1 + $0xbe8] sm:$0xff]  ;;  %v416_v23 = vld [vmem:[%s7554_s1 + $0xbd8] sm:$0xff] }
  0x99   :  { %v420_v26 = vld [vmem:[%s7554_s1 + $0xbf8] sm:$0xff] }
  0x9a   :  { %3011 = vmatpush1.bf16.msra.mxu0 %v3010_v40  ;;  %v3030_v40 = vpack.c.bf16 %v377_v31, %v373_v30  ;;  %v413_v30 = vld [vmem:[%s7554_s1 + $0xbc0] sm:$0xff] }
  0x9b   :  { %3523 = vmatpush1.bf16.msra.mxu1 %v3522_v41  ;;  %3013 = vmatprep.subr.bf16.mxu0 %v3012_v42  ;;  %v3542_v41 = vpack.c.bf16 %v379_v34, %v375_v32  ;;  %v3032_v42 = vpack.c.bf16 %v386_v36, %v382_v35  ;;  %v417_v31 = vld [vmem:[%s7554_s1 + $0xbe0] sm:$0xff]  ;;  %v415_v32 = vld [vmem:[%s7554_s1 + $0xbd0] sm:$0xff]  ;;  %v422_v35 = vld [vmem:[%s7554_s1 + $0xc08] sm:$0xff] }
  0x9c   :  { %3525 = vmatprep.subr.bf16.mxu1 %v3524_v47  ;;  %v3544_v47 = vpack.c.bf16 %v388_v38, %v384_v37  ;;  %v419_v34 = vld [vmem:[%s7554_s1 + $0xbf0] sm:$0xff]  ;;  %v426_v36 = vld [vmem:[%s7554_s1 + $0xc28] sm:$0xff]  ;;  %v1104_v37 = vcombine.high %v4930_v39, %v4930_v39  ;;  %v424_v38 = vld [vmem:[%s7554_s1 + $0xc18] sm:$0xff] }
  0x9d   :  { %v425_v39 = vld [vmem:[%s7554_s1 + $0xc20] sm:$0xff] }
  0x9e   :  { %3015 = vmatpush1.bf16.msra.mxu0 %v3014_v52  ;;  %v3034_v52 = vpack.c.bf16 %v385_v44, %v381_v43  ;;  %v3052_v43 = vpack.c.bf16 %v426_v36, %v422_v35  ;;  %v421_v44 = vld [vmem:[%s7554_s1 + $0xc00] sm:$0xff]  ;;  %v459_v35 = vld [vmem:[%s7554_s1 + $0xd30] sm:$0xff]  ;;  %v462_v36 = vld [vmem:[%s7554_s1 + $0xd48] sm:$0xff] }
  0x9f   :  { %3527 = vmatpush1.bf16.msra.mxu1 %v3526_v53  ;;  %3017 = vmatprep.subr.bf16.mxu0 %v3016_v54  ;;  %v3546_v53 = vpack.c.bf16 %v387_v25, %v383_v46  ;;  %v3036_v54 = vpack.c.bf16 %v394_v49, %v390_v48  ;;  %v423_v46 = vld [vmem:[%s7554_s1 + $0xc10] sm:$0xff]  ;;  %v430_v48 = vld [vmem:[%s7554_s1 + $0xc48] sm:$0xff] }
  0xa0   :  { %3529 = vmatprep.subr.bf16.mxu1 %v3528_v58  ;;  %v3548_v58 = vpack.c.bf16 %v396_v51, %v392_v50  ;;  %v427_v25 = vld [vmem:[%s7554_s1 + $0xc30] sm:$0xff]  ;;  %v434_v49 = vld [vmem:[%s7554_s1 + $0xc68] sm:$0xff]  ;;  %v5321_v50 = vrot.slane %v1104_v37, %v4377_v11  ;;  %v432_v51 = vld [vmem:[%s7554_s1 + $0xc58] sm:$0xff] }
  0xa1   :  { %v466_v37 = vld [vmem:[%s7554_s1 + $0xd68] sm:$0xff] }
  0xa2   :  { %3019 = vmatpush1.bf16.msra.mxu0 %v3018_v0  ;;  %v3038_v0 = vpack.c.bf16 %v393_v56, %v389_v55  ;;  %v3056_v55 = vpack.c.bf16 %v434_v49, %v430_v48  ;;  %v429_v56 = vld [vmem:[%s7554_s1 + $0xc40] sm:$0xff]  ;;  %v470_v48 = vld [vmem:[%s7554_s1 + $0xd88] sm:$0xff] }
  0xa3   :  { %3531 = vmatpush1.bf16.msra.mxu1 %v3530_v1  ;;  %3021 = vmatprep.subr.bf16.mxu0 %v3020_v2  ;;  %v3550_v1 = vpack.c.bf16 %v395_v24, %v391_v57  ;;  %v3040_v2 = vpack.c.bf16 %v402_v60, %v398_v59  ;;  %v433_v57 = vld [vmem:[%s7554_s1 + $0xc60] sm:$0xff]  ;;  %v435_v59 = vld [vmem:[%s7554_s1 + $0xc70] sm:$0xff]  ;;  %v438_v60 = vld [vmem:[%s7554_s1 + $0xc88] sm:$0xff] }
  0xa4   :  { %3533 = vmatprep.subr.bf16.mxu1 %v3532_v6  ;;  %v3552_v6 = vpack.c.bf16 %v404_v63, %v400_v62  ;;  %v442_v62 = vld [vmem:[%s7554_s1 + $0xca8] sm:$0xff]  ;;  %v1120_v63 = vcombine.high %v5321_v50, %v5321_v50 }
  0xa5   :  { %v474_v49 = vld [vmem:[%s7554_s1 + $0xda8] sm:$0xff] }
  0xa6   :  { %3023 = vmatpush1.bf16.msra.mxu0 %v3022_v13  ;;  %v3042_v13 = vpack.c.bf16 %v401_v4, %v397_v3  ;;  %v3060_v4 = vpack.c.bf16 %v442_v62, %v438_v60  ;;  %v478_v60 = vld [vmem:[%s7554_s1 + $0xdc8] sm:$0xff] }
  0xa7   :  { %3535 = vmatpush1.bf16.msra.mxu1 %v3534_v14  ;;  %3025 = vmatprep.subr.bf16.mxu0 %v3024_v15  ;;  %v3554_v14 = vpack.c.bf16 %v403_v7, %v399_v5  ;;  %v3044_v15 = vpack.c.bf16 %v410_v9, %v406_v8  ;;  %v437_v5 = vld [vmem:[%s7554_s1 + $0xc80] sm:$0xff]  ;;  %v439_v7 = vld [vmem:[%s7554_s1 + $0xc90] sm:$0xff]  ;;  %v446_v9 = vld [vmem:[%s7554_s1 + $0xcc8] sm:$0xff] }
  0xa8   :  { %3537 = vmatprep.subr.bf16.mxu1 %v3536_v19  ;;  %v3556_v19 = vpack.c.bf16 %v412_v12, %v408_v10  ;;  %v450_v10 = vld [vmem:[%s7554_s1 + $0xce8] sm:$0xff]  ;;  %v448_v12 = vld [vmem:[%s7554_s1 + $0xcd8] sm:$0xff] }
  0xa9   :  { %v482_v62 = vld [vmem:[%s7554_s1 + $0xde8] sm:$0xff] }
  0xaa   :  { %3027 = vmatpush1.bf16.msra.mxu0 %v3026_v27  ;;  %v3046_v27 = vpack.c.bf16 %v409_v17, %v405_v16  ;;  %v3064_v16 = vpack.c.bf16 %v450_v10, %v446_v9  ;;  %v445_v17 = vld [vmem:[%s7554_s1 + $0xcc0] sm:$0xff]  ;;  %v490_v9 = vld [vmem:[%s7554_s1 + $0xe28] sm:$0xff]  ;;  %v488_v10 = vld [vmem:[%s7554_s1 + $0xe18] sm:$0xff] }
  0xab   :  { %3539 = vmatpush1.bf16.msra.mxu1 %v3538_v28  ;;  %3029 = vmatprep.subr.bf16.mxu0 %v3028_v29  ;;  %v3558_v28 = vpack.c.bf16 %v411_v20, %v407_v18  ;;  %v3048_v29 = vpack.c.bf16 %v418_v22, %v414_v21  ;;  %v449_v18 = vld [vmem:[%s7554_s1 + $0xce0] sm:$0xff]  ;;  %v451_v21 = vld [vmem:[%s7554_s1 + $0xcf0] sm:$0xff]  ;;  %v454_v22 = vld [vmem:[%s7554_s1 + $0xd08] sm:$0xff] }
  0xac   :  { %3541 = vmatprep.subr.bf16.mxu1 %v3540_v33  ;;  %v3560_v33 = vpack.c.bf16 %v420_v26, %v416_v23  ;;  %v458_v23 = vld [vmem:[%s7554_s1 + $0xd28] sm:$0xff]  ;;  %v456_v26 = vld [vmem:[%s7554_s1 + $0xd18] sm:$0xff] }
  0xae   :  { %3031 = vmatpush1.bf16.msra.mxu0 %v3030_v40  ;;  %v428_v40 = vld [vmem:[%s7554_s1 + $0xc38] sm:$0xff] }
  0xaf   :  { %3543 = vmatpush1.bf16.msra.mxu1 %v3542_v41  ;;  %3033 = vmatprep.subr.bf16.mxu0 %v3032_v42  ;;  %v3050_v41 = vpack.c.bf16 %v417_v31, %v413_v30  ;;  %v3562_v42 = vpack.c.bf16 %v419_v34, %v415_v32  ;;  %v3068_v30 = vpack.c.bf16 %v458_v23, %v454_v22  ;;  %v453_v31 = vld [vmem:[%s7554_s1 + $0xd00] sm:$0xff]  ;;  %v498_v22 = vld [vmem:[%s7554_s1 + $0xe68] sm:$0xff]  ;;  %v496_v23 = vld [vmem:[%s7554_s1 + $0xe58] sm:$0xff] }
  0xb0   :  { %3545 = vmatprep.subr.bf16.mxu1 %v3544_v47  ;;  %v3564_v47 = vpack.c.bf16 %v428_v40, %v424_v38  ;;  %v457_v32 = vld [vmem:[%s7554_s1 + $0xd20] sm:$0xff]  ;;  %v464_v38 = vld [vmem:[%s7554_s1 + $0xd58] sm:$0xff] }
  0xb1   :  { %v468_v40 = vld [vmem:[%s7554_s1 + $0xd78] sm:$0xff] }
  0xb2   :  { %3035 = vmatpush1.bf16.msra.mxu0 %v3034_v52  ;;  %v436_v52 = vld [vmem:[%s7554_s1 + $0xc78] sm:$0xff] }
  0xb3   :  { %3547 = vmatpush1.bf16.msra.mxu1 %v3546_v53  ;;  %3037 = vmatprep.subr.bf16.mxu0 %v3036_v54  ;;  %v3054_v53 = vpack.c.bf16 %v425_v39, %v421_v44  ;;  %v3566_v54 = vpack.c.bf16 %v427_v25, %v423_v46  ;;  %v3568_v24 = vpack.c.bf16 %v436_v52, %v432_v51  ;;  %v461_v44 = vld [vmem:[%s7554_s1 + $0xd40] sm:$0xff]  ;;  %v463_v46 = vld [vmem:[%s7554_s1 + $0xd50] sm:$0xff]  ;;  %v472_v51 = vld [vmem:[%s7554_s1 + $0xd98] sm:$0xff] }
  0xb4   :  { %3549 = vmatprep.subr.bf16.mxu1 %v3548_v58  ;;  %v431_v58 = vld [vmem:[%s7554_s1 + $0xc50] sm:$0xff]  ;;  %v465_v39 = vld [vmem:[%s7554_s1 + $0xd60] sm:$0xff]  ;;  %v476_v52 = vld [vmem:[%s7554_s1 + $0xdb8] sm:$0xff] }
  0xb5   :  { %v3570_v3 = vpack.c.bf16 %v435_v59, %v431_v58  ;;  %v467_v25 = vld [vmem:[%s7554_s1 + $0xd70] sm:$0xff] }
  0xb6   :  { %3039 = vmatpush1.bf16.msra.mxu0 %v3038_v0  ;;  %v440_v0 = vld [vmem:[%s7554_s1 + $0xc98] sm:$0xff]  ;;  %v471_v58 = vld [vmem:[%s7554_s1 + $0xd90] sm:$0xff] }
  0xb7   :  { %3551 = vmatpush1.bf16.msra.mxu1 %v3550_v1  ;;  %3041 = vmatprep.subr.bf16.mxu0 %v3040_v2  ;;  %v444_v1 = vld [vmem:[%s7554_s1 + $0xcb8] sm:$0xff]  ;;  %v3058_v2 = vpack.c.bf16 %v433_v57, %v429_v56  ;;  %v469_v56 = vld [vmem:[%s7554_s1 + $0xd80] sm:$0xff]  ;;  %v475_v59 = vld [vmem:[%s7554_s1 + $0xdb0] sm:$0xff] }
  0xb8   :  { %3553 = vmatprep.subr.bf16.mxu1 %v3552_v6  ;;  %v441_v6 = vld [vmem:[%s7554_s1 + $0xca0] sm:$0xff]  ;;  %v3572_v8 = vpack.c.bf16 %v444_v1, %v440_v0  ;;  %v484_v0 = vld [vmem:[%s7554_s1 + $0xdf8] sm:$0xff] }
  0xb9   :  { %v473_v57 = vld [vmem:[%s7554_s1 + $0xda0] sm:$0xff] }
  0xba   :  { %3043 = vmatpush1.bf16.msra.mxu0 %v3042_v13  ;;  %v452_v13 = vld [vmem:[%s7554_s1 + $0xcf8] sm:$0xff]  ;;  %v3078_v1 = vpack.c.bf16 %v473_v57, %v469_v56  ;;  %v513_v56 = vld [vmem:[%s7554_s1 + $0xee0] sm:$0xff]  ;;  %v511_v57 = vld [vmem:[%s7554_s1 + $0xed0] sm:$0xff] }
  0xbb   :  { %3555 = vmatpush1.bf16.msra.mxu1 %v3554_v14  ;;  %3045 = vmatprep.subr.bf16.mxu0 %v3044_v15  ;;  %v3062_v14 = vpack.c.bf16 %v441_v6, %v437_v5  ;;  %v3576_v20 = vpack.c.bf16 %v452_v13, %v448_v12  ;;  %v481_v5 = vld [vmem:[%s7554_s1 + $0xde0] sm:$0xff]  ;;  %v479_v6 = vld [vmem:[%s7554_s1 + $0xdd0] sm:$0xff]  ;;  %v492_v12 = vld [vmem:[%s7554_s1 + $0xe38] sm:$0xff] }
  0xbc   :  { %3557 = vmatprep.subr.bf16.mxu1 %v3556_v19  ;;  %v447_v19 = vld [vmem:[%s7554_s1 + $0xcd0] sm:$0xff] }
  0xbe   :  { %3047 = vmatpush1.bf16.msra.mxu0 %v3046_v27  ;;  %v460_v27 = vld [vmem:[%s7554_s1 + $0xd38] sm:$0xff] }
  0xbf   :  { %3559 = vmatpush1.bf16.msra.mxu1 %v3558_v28  ;;  %3049 = vmatprep.subr.bf16.mxu0 %v3048_v29  ;;  %v3066_v28 = vpack.c.bf16 %v449_v18, %v445_v17  ;;  %v3578_v29 = vpack.c.bf16 %v451_v21, %v447_v19  ;;  %v3580_v34 = vpack.c.bf16 %v460_v27, %v456_v26  ;;  %v489_v17 = vld [vmem:[%s7554_s1 + $0xe20] sm:$0xff]  ;;  %v487_v18 = vld [vmem:[%s7554_s1 + $0xe10] sm:$0xff]  ;;  %v494_v21 = vld [vmem:[%s7554_s1 + $0xe48] sm:$0xff] }
  0xc0   :  { %3561 = vmatprep.subr.bf16.mxu1 %v3560_v33  ;;  %v455_v33 = vld [vmem:[%s7554_s1 + $0xd10] sm:$0xff]  ;;  %v3596_v19 = vpack.c.bf16 %v492_v12, %v488_v10  ;;  %v500_v26 = vld [vmem:[%s7554_s1 + $0xe78] sm:$0xff] }
  0xc1   :  { %v532_v10 = vld [vmem:[%s7554_s1 + $0xf78] sm:$0xff] }
  0xc2   :  { %3051 = vmatpush1.bf16.msra.mxu0 %v3050_v41  ;;  %v3070_v41 = vpack.c.bf16 %v457_v32, %v453_v31  ;;  %v497_v31 = vld [vmem:[%s7554_s1 + $0xe60] sm:$0xff]  ;;  %v495_v32 = vld [vmem:[%s7554_s1 + $0xe50] sm:$0xff] }
  0xc3   :  { %3563 = vmatpush1.bf16.msra.mxu1 %v3562_v42  ;;  %3053 = vmatprep.subr.bf16.mxu0 %v3052_v43  ;;  %v3582_v42 = vpack.c.bf16 %v459_v35, %v455_v33  ;;  %v3072_v43 = vpack.c.bf16 %v466_v37, %v462_v36  ;;  %v3600_v33 = vpack.c.bf16 %v500_v26, %v496_v23  ;;  %v502_v35 = vld [vmem:[%s7554_s1 + $0xe88] sm:$0xff]  ;;  %v504_v37 = vld [vmem:[%s7554_s1 + $0xe98] sm:$0xff] }
  0xc4   :  { %3565 = vmatprep.subr.bf16.mxu1 %v3564_v47  ;;  %v3584_v47 = vpack.c.bf16 %v468_v40, %v464_v38  ;;  %v506_v36 = vld [vmem:[%s7554_s1 + $0xea8] sm:$0xff]  ;;  %v508_v38 = vld [vmem:[%s7554_s1 + $0xeb8] sm:$0xff] }
  0xc5   :  { %1378 = vmatmul.mubr.f32.vlgmr.msra.gmra.mrb[0].mxu0 %v4943_v45  ;;  %v540_v23 = vld [vmem:[%s7554_s1 + $0xfb8] sm:$0xff] }
  0xc6   :  { %3055 = vmatpush1.bf16.msra.mxu0 %v3054_v53  ;;  %1946 = vmatmul.mubr.f32.vlgmr.msra.gmra.mrb[0].mxu1 %v4943_v45  ;;  %v443_v45 = vld [vmem:[%s7554_s1 + $0xcb0] sm:$0xff]  ;;  %v3074_v53 = vpack.c.bf16 %v465_v39, %v461_v44  ;;  %v505_v44 = vld [vmem:[%s7554_s1 + $0xea0] sm:$0xff] }
  0xc7   :  { %3567 = vmatpush1.bf16.msra.mxu1 %v3566_v54  ;;  %3057 = vmatprep.subr.bf16.mxu0 %v3056_v55  ;;  %v3574_v15 = vpack.c.bf16 %v443_v45, %v439_v7  ;;  %v3586_v54 = vpack.c.bf16 %v467_v25, %v463_v46  ;;  %v3076_v55 = vpack.c.bf16 %v474_v49, %v470_v48  ;;  %v486_v45 = vld [vmem:[%s7554_s1 + $0xe08] sm:$0xff]  ;;  %v503_v39 = vld [vmem:[%s7554_s1 + $0xe90] sm:$0xff]  ;;  %v512_v49 = vld [vmem:[%s7554_s1 + $0xed8] sm:$0xff] }
  0xc8   :  { %3569 = vmatprep.subr.bf16.mxu1 %v3568_v24  ;;  %1448 = vmatprep.mubr.f32.mxu0 %v1120_v63  ;;  %v3588_v24 = vpack.c.bf16 %v476_v52, %v472_v51  ;;  %v3604_v46 = vpack.c.bf16 %v508_v38, %v504_v37  ;;  %v510_v25 = vld [vmem:[%s7554_s1 + $0xec8] sm:$0xff]  ;;  %v516_v51 = vld [vmem:[%s7554_s1 + $0xef8] sm:$0xff] }
  0xc9   :  { %2016 = vmatprep.mubr.f32.mxu1 %v1120_v63  ;;  %v480_v63 = vld [vmem:[%s7554_s1 + $0xdd8] sm:$0xff]  ;;  %v514_v48 = vld [vmem:[%s7554_s1 + $0xee8] sm:$0xff] }
  0xca   :  { %3059 = vmatpush1.bf16.msra.mxu0 %v3058_v2  ;;  %v3590_v2 = vpack.c.bf16 %v475_v59, %v471_v58  ;;  %v3592_v7 = vpack.c.bf16 %v484_v0, %v480_v63  ;;  %v3608_v58 = vpack.c.bf16 %v516_v51, %v512_v49  ;;  %v518_v59 = vld [vmem:[%s7554_s1 + $0xf08] sm:$0xff]  ;;  %v524_v63 = vld [vmem:[%s7554_s1 + $0xf38] sm:$0xff]  ;;  %v5696_v51 = vld [vmem:[%s7553_s0 + $0x10] sm:$0xff] }
  0xcb   :  { %3571 = vmatpush1.bf16.msra.mxu1 %v3570_v3  ;;  %3061 = vmatprep.subr.bf16.mxu0 %v3060_v4  ;;  %v3080_v3 = vpack.c.bf16 %v482_v62, %v478_v60  ;;  %v477_v4 = vld [vmem:[%s7554_s1 + $0xdc0] sm:$0xff]  ;;  %v522_v60 = vld [vmem:[%s7554_s1 + $0xf28] sm:$0xff]  ;;  %v520_v62 = vld [vmem:[%s7554_s1 + $0xf18] sm:$0xff] }
  0xcc   :  { %3573 = vmatprep.subr.bf16.mxu1 %v3572_v8  ;;  %v483_v8 = vld [vmem:[%s7554_s1 + $0xdf0] sm:$0xff]  ;;  %v3082_v13 = vpack.c.bf16 %v481_v5, %v477_v4  ;;  %v521_v4 = vld [vmem:[%s7554_s1 + $0xf20] sm:$0xff]  ;;  %v548_v37 = vld [vmem:[%s7554_s1 + $0xff8] sm:$0xff] }
  0xcd   :  { %v519_v5 = vld [vmem:[%s7554_s1 + $0xf10] sm:$0xff]  ;;  %v556_v49 = vld [vmem:[%s7554_s1 + $0x1038] sm:$0xff] }
  0xce   :  { %3063 = vmatpush1.bf16.msra.mxu0 %v3062_v14  ;;  %v3594_v14 = vpack.c.bf16 %v483_v8, %v479_v6  ;;  %v3612_v6 = vpack.c.bf16 %v524_v63, %v520_v62  ;;  %v526_v8 = vld [vmem:[%s7554_s1 + $0xf48] sm:$0xff]  ;;  %v5718_v62 = vrot.slane %v5696_v51, %v4377_v11  ;;  %v560_v63 = vld [vmem:[%s7554_s1 + $0x1058] sm:$0xff] }
  0xcf   :  { %3575 = vmatpush1.bf16.msra.mxu1 %v3574_v15  ;;  %3065 = vmatprep.subr.bf16.mxu0 %v3064_v16  ;;  %v3084_v15 = vpack.c.bf16 %v490_v9, %v486_v45  ;;  %v485_v16 = vld [vmem:[%s7554_s1 + $0xe00] sm:$0xff]  ;;  %v530_v45 = vld [vmem:[%s7554_s1 + $0xf68] sm:$0xff]  ;;  %v528_v9 = vld [vmem:[%s7554_s1 + $0xf58] sm:$0xff] }
  0xd0   :  { %3577 = vmatprep.subr.bf16.mxu1 %v3576_v20  ;;  %v491_v20 = vld [vmem:[%s7554_s1 + $0xe30] sm:$0xff]  ;;  %v3086_v27 = vpack.c.bf16 %v489_v17, %v485_v16  ;;  %v529_v16 = vld [vmem:[%s7554_s1 + $0xf60] sm:$0xff] }
  0xd1   :  { %v527_v17 = vld [vmem:[%s7554_s1 + $0xf50] sm:$0xff] }
  0xd2   :  { %3067 = vmatpush1.bf16.msra.mxu0 %v3066_v28  ;;  %v3598_v28 = vpack.c.bf16 %v491_v20, %v487_v18  ;;  %v3616_v18 = vpack.c.bf16 %v532_v10, %v528_v9  ;;  %v534_v20 = vld [vmem:[%s7554_s1 + $0xf88] sm:$0xff]  ;;  %v1136_v10 = vcombine.high %v5718_v62, %v5718_v62 }
  0xd3   :  { %3579 = vmatpush1.bf16.msra.mxu1 %v3578_v29  ;;  %3069 = vmatprep.subr.bf16.mxu0 %v3068_v30  ;;  %v3088_v29 = vpack.c.bf16 %v498_v22, %v494_v21  ;;  %v493_v30 = vld [vmem:[%s7554_s1 + $0xe40] sm:$0xff]  ;;  %v538_v21 = vld [vmem:[%s7554_s1 + $0xfa8] sm:$0xff]  ;;  %v536_v22 = vld [vmem:[%s7554_s1 + $0xf98] sm:$0xff] }
  0xd4   :  { %3581 = vmatprep.subr.bf16.mxu1 %v3580_v34  ;;  %v499_v34 = vld [vmem:[%s7554_s1 + $0xe70] sm:$0xff]  ;;  %v3090_v40 = vpack.c.bf16 %v497_v31, %v493_v30  ;;  %v537_v30 = vld [vmem:[%s7554_s1 + $0xfa0] sm:$0xff]  ;;  %v570_v9 = vld [vmem:[%s7554_s1 + $0x10a8] sm:$0xff] }
  0xd5   :  { %v535_v31 = vld [vmem:[%s7554_s1 + $0xf90] sm:$0xff] }
  0xd6   :  { %3071 = vmatpush1.bf16.msra.mxu0 %v3070_v41  ;;  %v3602_v41 = vpack.c.bf16 %v499_v34, %v495_v32  ;;  %v3620_v32 = vpack.c.bf16 %v540_v23, %v536_v22  ;;  %v542_v34 = vld [vmem:[%s7554_s1 + $0xfc8] sm:$0xff] }
  0xd7   :  { %3583 = vmatpush1.bf16.msra.mxu1 %v3582_v42  ;;  %3073 = vmatprep.subr.bf16.mxu0 %v3072_v43  ;;  %v3092_v42 = vpack.c.bf16 %v506_v36, %v502_v35  ;;  %v501_v43 = vld [vmem:[%s7554_s1 + $0xe80] sm:$0xff]  ;;  %v546_v35 = vld [vmem:[%s7554_s1 + $0xfe8] sm:$0xff]  ;;  %v544_v36 = vld [vmem:[%s7554_s1 + $0xfd8] sm:$0xff] }
  0xd8   :  { %3585 = vmatprep.subr.bf16.mxu1 %v3584_v47  ;;  %v507_v47 = vld [vmem:[%s7554_s1 + $0xeb0] sm:$0xff]  ;;  %v3094_v52 = vpack.c.bf16 %v505_v44, %v501_v43  ;;  %v545_v43 = vld [vmem:[%s7554_s1 + $0xfe0] sm:$0xff] }
  0xd9   :  { %v543_v44 = vld [vmem:[%s7554_s1 + $0xfd0] sm:$0xff] }
  0xda   :  { %3075 = vmatpush1.bf16.msra.mxu0 %v3074_v53  ;;  %v3606_v53 = vpack.c.bf16 %v507_v47, %v503_v39  ;;  %v3624_v39 = vpack.c.bf16 %v548_v37, %v544_v36  ;;  %v550_v47 = vld [vmem:[%s7554_s1 + $0x1008] sm:$0xff] }
  0xdb   :  { %3587 = vmatpush1.bf16.msra.mxu1 %v3586_v54  ;;  %3077 = vmatprep.subr.bf16.mxu0 %v3076_v55  ;;  %v3096_v54 = vpack.c.bf16 %v514_v48, %v510_v25  ;;  %v509_v55 = vld [vmem:[%s7554_s1 + $0xec0] sm:$0xff]  ;;  %v554_v25 = vld [vmem:[%s7554_s1 + $0x1028] sm:$0xff]  ;;  %v552_v48 = vld [vmem:[%s7554_s1 + $0x1018] sm:$0xff] }
  0xdc   :  { %3589 = vmatprep.subr.bf16.mxu1 %v3588_v24  ;;  %v515_v24 = vld [vmem:[%s7554_s1 + $0xef0] sm:$0xff]  ;;  %v3098_v0 = vpack.c.bf16 %v513_v56, %v509_v55  ;;  %v549_v55 = vld [vmem:[%s7554_s1 + $0x1000] sm:$0xff] }
  0xdd   :  { %v553_v56 = vld [vmem:[%s7554_s1 + $0x1020] sm:$0xff] }
  0xde   :  { %3079 = vmatpush1.bf16.msra.mxu0 %v3078_v1  ;;  %v3610_v1 = vpack.c.bf16 %v515_v24, %v511_v57  ;;  %v551_v57 = vld [vmem:[%s7554_s1 + $0x1010] sm:$0xff] }
  0xdf   :  { %3591 = vmatpush1.bf16.msra.mxu1 %v3590_v2  ;;  %3081 = vmatprep.subr.bf16.mxu0 %v3080_v3  ;;  %v3100_v2 = vpack.c.bf16 %v522_v60, %v518_v59  ;;  %v517_v3 = vld [vmem:[%s7554_s1 + $0xf00] sm:$0xff]  ;;  %v555_v24 = vld [vmem:[%s7554_s1 + $0x1030] sm:$0xff]  ;;  %v558_v59 = vld [vmem:[%s7554_s1 + $0x1048] sm:$0xff] }
  0xe0   :  { %3593 = vmatprep.subr.bf16.mxu1 %v3592_v7  ;;  %v523_v7 = vld [vmem:[%s7554_s1 + $0xf30] sm:$0xff]  ;;  %v3102_v12 = vpack.c.bf16 %v521_v4, %v517_v3  ;;  %v562_v60 = vld [vmem:[%s7554_s1 + $0x1068] sm:$0xff]  ;;  %v557_v4 = vld [vmem:[%s7554_s1 + $0x1040] sm:$0xff] }
  0xe1   :  { %v3120_v3 = vpack.c.bf16 %v562_v60, %v558_v59 }
  0xe2   :  { %3083 = vmatpush1.bf16.msra.mxu0 %v3082_v13  ;;  %v3614_v13 = vpack.c.bf16 %v523_v7, %v519_v5  ;;  %v561_v5 = vld [vmem:[%s7554_s1 + $0x1060] sm:$0xff] }
  0xe3   :  { %3595 = vmatpush1.bf16.msra.mxu1 %v3594_v14  ;;  %3085 = vmatprep.subr.bf16.mxu0 %v3084_v15  ;;  %v3104_v14 = vpack.c.bf16 %v530_v45, %v526_v8  ;;  %v525_v15 = vld [vmem:[%s7554_s1 + $0xf40] sm:$0xff]  ;;  %v563_v8 = vld [vmem:[%s7554_s1 + $0x1070] sm:$0xff]  ;;  %v566_v45 = vld [vmem:[%s7554_s1 + $0x1088] sm:$0xff] }
  0xe4   :  { %3597 = vmatprep.subr.bf16.mxu1 %v3596_v19  ;;  %v531_v19 = vld [vmem:[%s7554_s1 + $0xf70] sm:$0xff]  ;;  %v3106_v26 = vpack.c.bf16 %v529_v16, %v525_v15 }
  0xe6   :  { %3087 = vmatpush1.bf16.msra.mxu0 %v3086_v27  ;;  %v3618_v27 = vpack.c.bf16 %v531_v19, %v527_v17 }
  0xe7   :  { %3599 = vmatpush1.bf16.msra.mxu1 %v3598_v28  ;;  %3089 = vmatprep.subr.bf16.mxu0 %v3088_v29  ;;  %v3108_v28 = vpack.c.bf16 %v538_v21, %v534_v20  ;;  %v533_v29 = vld [vmem:[%s7554_s1 + $0xf80] sm:$0xff] }
  0xe8   :  { %3601 = vmatprep.subr.bf16.mxu1 %v3600_v33  ;;  %v539_v33 = vld [vmem:[%s7554_s1 + $0xfb0] sm:$0xff]  ;;  %v3110_v38 = vpack.c.bf16 %v537_v30, %v533_v29 }
  0xea   :  { %3091 = vmatpush1.bf16.msra.mxu0 %v3090_v40  ;;  %v3622_v40 = vpack.c.bf16 %v539_v33, %v535_v31 }
  0xeb   :  { %3603 = vmatpush1.bf16.msra.mxu1 %v3602_v41  ;;  %3093 = vmatprep.subr.bf16.mxu0 %v3092_v42  ;;  %v3112_v41 = vpack.c.bf16 %v546_v35, %v542_v34  ;;  %v541_v42 = vld [vmem:[%s7554_s1 + $0xfc0] sm:$0xff] }
  0xec   :  { %3605 = vmatprep.subr.bf16.mxu1 %v3604_v46  ;;  %v547_v46 = vld [vmem:[%s7554_s1 + $0xff0] sm:$0xff] }
  0xee   :  { %3095 = vmatpush1.bf16.msra.mxu0 %v3094_v52  ;;  %v3114_v52 = vpack.c.bf16 %v545_v43, %v541_v42 }
  0xef   :  { %3607 = vmatpush1.bf16.msra.mxu1 %v3606_v53  ;;  %3097 = vmatprep.subr.bf16.mxu0 %v3096_v54  ;;  %v3626_v53 = vpack.c.bf16 %v547_v46, %v543_v44  ;;  %v3116_v54 = vpack.c.bf16 %v554_v25, %v550_v47 }
  0xf0   :  { %3609 = vmatprep.subr.bf16.mxu1 %v3608_v58  ;;  %v3628_v58 = vpack.c.bf16 %v556_v49, %v552_v48 }
  0xf2   :  { %3099 = vmatpush1.bf16.msra.mxu0 %v3098_v0  ;;  %v564_v0 = vld [vmem:[%s7554_s1 + $0x1078] sm:$0xff] }
  0xf3   :  { %3611 = vmatpush1.bf16.msra.mxu1 %v3610_v1  ;;  %3101 = vmatprep.subr.bf16.mxu0 %v3100_v2  ;;  %v3118_v1 = vpack.c.bf16 %v553_v56, %v549_v55  ;;  %v3630_v2 = vpack.c.bf16 %v555_v24, %v551_v57  ;;  %v3632_v7 = vpack.c.bf16 %v564_v0, %v560_v63 }
  0xf4   :  { %3613 = vmatprep.subr.bf16.mxu1 %v3612_v6  ;;  %v559_v6 = vld [vmem:[%s7554_s1 + $0x1050] sm:$0xff] }
  0xf6   :  { %3103 = vmatpush1.bf16.msra.mxu0 %v3102_v12  ;;  %v568_v12 = vld [vmem:[%s7554_s1 + $0x1098] sm:$0xff] }
  0xf7   :  { %3615 = vmatpush1.bf16.msra.mxu1 %v3614_v13  ;;  %3105 = vmatprep.subr.bf16.mxu0 %v3104_v14  ;;  %v572_v13 = vld [vmem:[%s7554_s1 + $0x10b8] sm:$0xff] }
  0xf8   :  { %3617 = vmatprep.subr.bf16.mxu1 %v3616_v18 }
  0xfa   :  { %3107 = vmatpush1.bf16.msra.mxu0 %v3106_v26 }
  0xfb   :  { %3619 = vmatpush1.bf16.msra.mxu1 %v3618_v27  ;;  %3109 = vmatprep.subr.bf16.mxu0 %v3108_v28 }
  0xfc   :  { %3621 = vmatprep.subr.bf16.mxu1 %v3620_v32 }
  0xfe   :  { %3111 = vmatpush1.bf16.msra.mxu0 %v3110_v38 }
  0xff   :  { %3623 = vmatpush1.bf16.msra.mxu1 %v3622_v40  ;;  %3113 = vmatprep.subr.bf16.mxu0 %v3112_v41 }
 0x100   :  { %3625 = vmatprep.subr.bf16.mxu1 %v3624_v39 }
 0x102   :  { %3115 = vmatpush1.bf16.msra.mxu0 %v3114_v52 }
 0x103   :  { %3627 = vmatpush1.bf16.msra.mxu1 %v3626_v53  ;;  %3117 = vmatprep.subr.bf16.mxu0 %v3116_v54 }
 0x104   :  { %3629 = vmatprep.subr.bf16.mxu1 %v3628_v58 }
 0x105   :  { %1449 = vmatmul.mubr.f32.vlgmr.msra.gmra.mrb[0].mxu0 %v5321_v50 }
 0x106   :  { %14 = vsyncpa [#allocation3], 0  ;;  %3119 = vmatpush1.bf16.msra.mxu0 %v3118_v1  ;;  %2017 = vmatmul.mubr.f32.vlgmr.msra.gmra.mrb[0].mxu1 %v5321_v50  ;;  %v3122_v14 = vpack.c.bf16 %v561_v5, %v557_v4  ;;  %v3634_v15 = vpack.c.bf16 %v563_v8, %v559_v6  ;;  %v3124_v16 = vpack.c.bf16 %v570_v9, %v566_v45  ;;  %v565_v17 = vld [vmem:[%s7554_s1 + $0x1080] sm:$0xff]  ;;  %v567_v19 = vld [vmem:[%s7554_s1 + $0x1090] sm:$0xff]  ;;  %vm4045_vm0 = vmmov 0  }
 0x107   :  { %3631 = vmatpush1.bf16.msra.mxu1 %v3630_v2  ;;  %3121 = vmatprep.subr.bf16.mxu0 %v3120_v3  ;;  %v569_v18 = vld [vmem:[%s7554_s1 + $0x10a0] sm:$0xff]  ;;  %v3636_v20 = vpack.c.bf16 %v572_v13, %v568_v12  ;;  %v571_v50 = vld [vmem:[%s7554_s1 + $0x10b0] sm:$0xff]  ;;  %v574_v21 = vld [vmem:[%s7554_s1 + $0x10c8] sm:$0xff]  ;;  %vm2628_vm1 = vcmask 261120   ;;  %vm2702_vm2 = vcmask 41984  }
 0x108   :  { %3633 = vmatprep.subr.bf16.mxu1 %v3632_v7  ;;  %v578_v22 = vld [vmem:[%s7554_s1 + $0x10e8] sm:$0xff]  ;;  %1519 = vmatprep.mubr.f32.mxu0 %v1136_v10  ;;  %v576_v23 = vld [vmem:[%s7554_s1 + $0x10d8] sm:$0xff]  ;;  %v3126_v27 = vpack.c.bf16 %v569_v18, %v565_v17  ;;  %v3638_v28 = vpack.c.bf16 %v571_v50, %v567_v19  ;;  %v573_v30 = vld [vmem:[%s7554_s1 + $0x10c0] sm:$0xff] }
 0x109   :  { %v580_v26 = vld [vmem:[%s7554_s1 + $0x10f8] sm:$0xff]  ;;  %2087 = vmatprep.mubr.f32.mxu1 %v1136_v10  ;;  %v3128_v29 = vpack.c.bf16 %v578_v22, %v574_v21  ;;  %v577_v31 = vld [vmem:[%s7554_s1 + $0x10e0] sm:$0xff]  ;;  %v575_v32 = vld [vmem:[%s7554_s1 + $0x10d0] sm:$0xff] }
 0x10a   :  { %3123 = vmatpush1.bf16.msra.mxu0 %v3122_v14  ;;  %v3640_v33 = vpack.c.bf16 %v580_v26, %v576_v23  ;;  %v579_v34 = vld [vmem:[%s7554_s1 + $0x10f0] sm:$0xff]  ;;  %v582_v35 = vld [vmem:[%s7554_s1 + $0x1108] sm:$0xff]  ;;  %v584_v37 = vld [vmem:[%s7554_s1 + $0x1118] sm:$0xff]  ;;  %v3130_v40 = vpack.c.bf16 %v577_v31, %v573_v30 }
 0x10b   :  { %3635 = vmatpush1.bf16.msra.mxu1 %v3634_v15  ;;  %3125 = vmatprep.subr.bf16.mxu0 %v3124_v16  ;;  %v586_v36 = vld [vmem:[%s7554_s1 + $0x1128] sm:$0xff]  ;;  %v588_v38 = vld [vmem:[%s7554_s1 + $0x1138] sm:$0xff]  ;;  %v3642_v41 = vpack.c.bf16 %v579_v34, %v575_v32  ;;  %v581_v43 = vld [vmem:[%s7554_s1 + $0x1100] sm:$0xff] }
 0x10c   :  { %3637 = vmatprep.subr.bf16.mxu1 %v3636_v20  ;;  %v3132_v42 = vpack.c.bf16 %v586_v36, %v582_v35  ;;  %v585_v44 = vld [vmem:[%s7554_s1 + $0x1120] sm:$0xff]  ;;  %v583_v39 = vld [vmem:[%s7554_s1 + $0x1110] sm:$0xff]  ;;  %v3644_v46 = vpack.c.bf16 %v588_v38, %v584_v37  ;;  %v590_v25 = vld [vmem:[%s7554_s1 + $0x1148] sm:$0xff] }
 0x10d   :  { %v587_v47 = vld [vmem:[%s7554_s1 + $0x1130] sm:$0xff]  ;;  %v594_v48 = vld [vmem:[%s7554_s1 + $0x1168] sm:$0xff]  ;;  %v592_v49 = vld [vmem:[%s7554_s1 + $0x1158] sm:$0xff]  ;;  %v3134_v53 = vpack.c.bf16 %v585_v44, %v581_v43 }
 0x10e   :  { %3127 = vmatpush1.bf16.msra.mxu0 %v3126_v27  ;;  %v596_v52 = vld [vmem:[%s7554_s1 + $0x1178] sm:$0xff]  ;;  %v3646_v54 = vpack.c.bf16 %v587_v47, %v583_v39  ;;  %v3136_v55 = vpack.c.bf16 %v594_v48, %v590_v25  ;;  %v589_v56 = vld [vmem:[%s7554_s1 + $0x1140] sm:$0xff]  ;;  %v591_v58 = vld [vmem:[%s7554_s1 + $0x1150] sm:$0xff] }
 0x10f   :  { %3639 = vmatpush1.bf16.msra.mxu1 %v3638_v28  ;;  %3129 = vmatprep.subr.bf16.mxu0 %v3128_v29  ;;  %v593_v57 = vld [vmem:[%s7554_s1 + $0x1160] sm:$0xff]  ;;  %v3648_v24 = vpack.c.bf16 %v596_v52, %v592_v49  ;;  %v595_v59 = vld [vmem:[%s7554_s1 + $0x1170] sm:$0xff]  ;;  %v598_v60 = vld [vmem:[%s7554_s1 + $0x1188] sm:$0xff] }
 0x110   :  { %3641 = vmatprep.subr.bf16.mxu1 %v3640_v33  ;;  %v602_v63 = vld [vmem:[%s7554_s1 + $0x11a8] sm:$0xff]  ;;  %v600_v0 = vld [vmem:[%s7554_s1 + $0x1198] sm:$0xff]  ;;  %v3138_v2 = vpack.c.bf16 %v593_v57, %v589_v56  ;;  %v3650_v3 = vpack.c.bf16 %v595_v59, %v591_v58  ;;  %v597_v5 = vld [vmem:[%s7554_s1 + $0x1180] sm:$0xff] }
 0x111   :  { %v604_v1 = vld [vmem:[%s7554_s1 + $0x11b8] sm:$0xff]  ;;  %v3140_v4 = vpack.c.bf16 %v602_v63, %v598_v60  ;;  %v601_v6 = vld [vmem:[%s7554_s1 + $0x11a0] sm:$0xff]  ;;  %v599_v7 = vld [vmem:[%s7554_s1 + $0x1190] sm:$0xff] }
 0x112   :  { %3131 = vmatpush1.bf16.msra.mxu0 %v3130_v40  ;;  %v3652_v8 = vpack.c.bf16 %v604_v1, %v600_v0  ;;  %v603_v45 = vld [vmem:[%s7554_s1 + $0x11b0] sm:$0xff]  ;;  %v606_v9 = vld [vmem:[%s7554_s1 + $0x11c8] sm:$0xff]  ;;  %v608_v12 = vld [vmem:[%s7554_s1 + $0x11d8] sm:$0xff]  ;;  %v3142_v14 = vpack.c.bf16 %v601_v6, %v597_v5 }
 0x113   :  { %3643 = vmatpush1.bf16.msra.mxu1 %v3642_v41  ;;  %3133 = vmatprep.subr.bf16.mxu0 %v3132_v42  ;;  %v610_v10 = vld [vmem:[%s7554_s1 + $0x11e8] sm:$0xff]  ;;  %v612_v13 = vld [vmem:[%s7554_s1 + $0x11f8] sm:$0xff]  ;;  %v3654_v15 = vpack.c.bf16 %v603_v45, %v599_v7  ;;  %v605_v17 = vld [vmem:[%s7554_s1 + $0x11c0] sm:$0xff] }
 0x114   :  { %3645 = vmatprep.subr.bf16.mxu1 %v3644_v46  ;;  %v3144_v16 = vpack.c.bf16 %v610_v10, %v606_v9  ;;  %v609_v18 = vld [vmem:[%s7554_s1 + $0x11e0] sm:$0xff]  ;;  %v607_v19 = vld [vmem:[%s7554_s1 + $0x11d0] sm:$0xff]  ;;  %v3656_v20 = vpack.c.bf16 %v612_v13, %v608_v12  ;;  %v614_v21 = vld [vmem:[%s7554_s1 + $0x1208] sm:$0xff] }
 0x115   :  { %v611_v50 = vld [vmem:[%s7554_s1 + $0x11f0] sm:$0xff]  ;;  %v618_v22 = vld [vmem:[%s7554_s1 + $0x1228] sm:$0xff]  ;;  %v616_v23 = vld [vmem:[%s7554_s1 + $0x1218] sm:$0xff]  ;;  %v3146_v27 = vpack.c.bf16 %v609_v18, %v605_v17 }
 0x116   :  { %3135 = vmatpush1.bf16.msra.mxu0 %v3134_v53  ;;  %v620_v26 = vld [vmem:[%s7554_s1 + $0x1238] sm:$0xff]  ;;  %v3658_v28 = vpack.c.bf16 %v611_v50, %v607_v19  ;;  %v3148_v29 = vpack.c.bf16 %v618_v22, %v614_v21  ;;  %v613_v30 = vld [vmem:[%s7554_s1 + $0x1200] sm:$0xff]  ;;  %v615_v32 = vld [vmem:[%s7554_s1 + $0x1210] sm:$0xff] }
 0x117   :  { %3647 = vmatpush1.bf16.msra.mxu1 %v3646_v54  ;;  %3137 = vmatprep.subr.bf16.mxu0 %v3136_v55  ;;  %v617_v31 = vld [vmem:[%s7554_s1 + $0x1220] sm:$0xff]  ;;  %v3660_v33 = vpack.c.bf16 %v620_v26, %v616_v23  ;;  %v619_v34 = vld [vmem:[%s7554_s1 + $0x1230] sm:$0xff]  ;;  %v622_v35 = vld [vmem:[%s7554_s1 + $0x1248] sm:$0xff] }
 0x118   :  { %3649 = vmatprep.subr.bf16.mxu1 %v3648_v24  ;;  %v626_v36 = vld [vmem:[%s7554_s1 + $0x1268] sm:$0xff]  ;;  %v624_v37 = vld [vmem:[%s7554_s1 + $0x1258] sm:$0xff]  ;;  %v3150_v40 = vpack.c.bf16 %v617_v31, %v613_v30  ;;  %v3662_v41 = vpack.c.bf16 %v619_v34, %v615_v32  ;;  %v621_v43 = vld [vmem:[%s7554_s1 + $0x1240] sm:$0xff] }
 0x119   :  { %v628_v38 = vld [vmem:[%s7554_s1 + $0x1278] sm:$0xff]  ;;  %v3152_v42 = vpack.c.bf16 %v626_v36, %v622_v35  ;;  %v625_v44 = vld [vmem:[%s7554_s1 + $0x1260] sm:$0xff]  ;;  %v623_v39 = vld [vmem:[%s7554_s1 + $0x1250] sm:$0xff] }
 0x11a   :  { %3139 = vmatpush1.bf16.msra.mxu0 %v3138_v2  ;;  %v3664_v46 = vpack.c.bf16 %v628_v38, %v624_v37  ;;  %v627_v47 = vld [vmem:[%s7554_s1 + $0x1270] sm:$0xff]  ;;  %v630_v25 = vld [vmem:[%s7554_s1 + $0x1288] sm:$0xff]  ;;  %v632_v49 = vld [vmem:[%s7554_s1 + $0x1298] sm:$0xff]  ;;  %v3154_v53 = vpack.c.bf16 %v625_v44, %v621_v43 }
 0x11b   :  { %3651 = vmatpush1.bf16.msra.mxu1 %v3650_v3  ;;  %3141 = vmatprep.subr.bf16.mxu0 %v3140_v4  ;;  %v634_v48 = vld [vmem:[%s7554_s1 + $0x12a8] sm:$0xff]  ;;  %v636_v52 = vld [vmem:[%s7554_s1 + $0x12b8] sm:$0xff]  ;;  %v3666_v54 = vpack.c.bf16 %v627_v47, %v623_v39  ;;  %v629_v56 = vld [vmem:[%s7554_s1 + $0x1280] sm:$0xff] }
 0x11c   :  { %3653 = vmatprep.subr.bf16.mxu1 %v3652_v8  ;;  %v3156_v55 = vpack.c.bf16 %v634_v48, %v630_v25  ;;  %v633_v57 = vld [vmem:[%s7554_s1 + $0x12a0] sm:$0xff]  ;;  %v631_v58 = vld [vmem:[%s7554_s1 + $0x1290] sm:$0xff]  ;;  %v3668_v24 = vpack.c.bf16 %v636_v52, %v632_v49  ;;  %v638_v60 = vld [vmem:[%s7554_s1 + $0x12c8] sm:$0xff] }
 0x11d   :  { %v635_v59 = vld [vmem:[%s7554_s1 + $0x12b0] sm:$0xff]  ;;  %v642_v63 = vld [vmem:[%s7554_s1 + $0x12e8] sm:$0xff]  ;;  %v640_v0 = vld [vmem:[%s7554_s1 + $0x12d8] sm:$0xff]  ;;  %v3158_v2 = vpack.c.bf16 %v633_v57, %v629_v56 }
 0x11e   :  { %3143 = vmatpush1.bf16.msra.mxu0 %v3142_v14  ;;  %v644_v1 = vld [vmem:[%s7554_s1 + $0x12f8] sm:$0xff]  ;;  %v3670_v3 = vpack.c.bf16 %v635_v59, %v631_v58  ;;  %v3160_v4 = vpack.c.bf16 %v642_v63, %v638_v60  ;;  %v637_v5 = vld [vmem:[%s7554_s1 + $0x12c0] sm:$0xff]  ;;  %v639_v7 = vld [vmem:[%s7554_s1 + $0x12d0] sm:$0xff] }
 0x11f   :  { %3655 = vmatpush1.bf16.msra.mxu1 %v3654_v15  ;;  %3145 = vmatprep.subr.bf16.mxu0 %v3144_v16  ;;  %v641_v6 = vld [vmem:[%s7554_s1 + $0x12e0] sm:$0xff]  ;;  %v3672_v8 = vpack.c.bf16 %v644_v1, %v640_v0  ;;  %v643_v45 = vld [vmem:[%s7554_s1 + $0x12f0] sm:$0xff]  ;;  %v646_v9 = vld [vmem:[%s7554_s1 + $0x1308] sm:$0xff]  ;;  %v1121_v0 = vcombine.high %v5696_v51, %v5696_v51 }
 0x120   :  { %3657 = vmatprep.subr.bf16.mxu1 %v3656_v20  ;;  %v650_v10 = vld [vmem:[%s7554_s1 + $0x1328] sm:$0xff]  ;;  %v648_v12 = vld [vmem:[%s7554_s1 + $0x1318] sm:$0xff]  ;;  %v3162_v14 = vpack.c.bf16 %v641_v6, %v637_v5  ;;  %v3674_v15 = vpack.c.bf16 %v643_v45, %v639_v7  ;;  %v645_v17 = vld [vmem:[%s7554_s1 + $0x1300] sm:$0xff] }
 0x121   :  { %v652_v13 = vld [vmem:[%s7554_s1 + $0x1338] sm:$0xff]  ;;  %v3164_v16 = vpack.c.bf16 %v650_v10, %v646_v9  ;;  %v649_v18 = vld [vmem:[%s7554_s1 + $0x1320] sm:$0xff]  ;;  %v647_v19 = vld [vmem:[%s7554_s1 + $0x1310] sm:$0xff] }
 0x122   :  { %3147 = vmatpush1.bf16.msra.mxu0 %v3146_v27  ;;  %v3676_v20 = vpack.c.bf16 %v652_v13, %v648_v12  ;;  %v651_v50 = vld [vmem:[%s7554_s1 + $0x1330] sm:$0xff]  ;;  %v654_v21 = vld [vmem:[%s7554_s1 + $0x1348] sm:$0xff]  ;;  %v656_v23 = vld [vmem:[%s7554_s1 + $0x1358] sm:$0xff]  ;;  %v3166_v27 = vpack.c.bf16 %v649_v18, %v645_v17  ;;  %v6111_v12 = vrot.slane %v1121_v0, %v4377_v11 }
 0x123   :  { %3659 = vmatpush1.bf16.msra.mxu1 %v3658_v28  ;;  %3149 = vmatprep.subr.bf16.mxu0 %v3148_v29  ;;  %v658_v22 = vld [vmem:[%s7554_s1 + $0x1368] sm:$0xff]  ;;  %v660_v26 = vld [vmem:[%s7554_s1 + $0x1378] sm:$0xff]  ;;  %v3678_v28 = vpack.c.bf16 %v651_v50, %v647_v19  ;;  %v653_v30 = vld [vmem:[%s7554_s1 + $0x1340] sm:$0xff] }
 0x124   :  { %3661 = vmatprep.subr.bf16.mxu1 %v3660_v33  ;;  %v3168_v29 = vpack.c.bf16 %v658_v22, %v654_v21  ;;  %v657_v31 = vld [vmem:[%s7554_s1 + $0x1360] sm:$0xff]  ;;  %v655_v32 = vld [vmem:[%s7554_s1 + $0x1350] sm:$0xff]  ;;  %v3680_v33 = vpack.c.bf16 %v660_v26, %v656_v23  ;;  %v662_v35 = vld [vmem:[%s7554_s1 + $0x1388] sm:$0xff]  ;;  %v1137_v26 = vcombine.high %v6111_v12, %v6111_v12 }
 0x125   :  { %v659_v34 = vld [vmem:[%s7554_s1 + $0x1370] sm:$0xff]  ;;  %v666_v36 = vld [vmem:[%s7554_s1 + $0x13a8] sm:$0xff]  ;;  %v664_v37 = vld [vmem:[%s7554_s1 + $0x1398] sm:$0xff] }
 0x126   :  { %3151 = vmatpush1.bf16.msra.mxu0 %v3150_v40  ;;  %v668_v38 = vld [vmem:[%s7554_s1 + $0x13b8] sm:$0xff]  ;;  %v3170_v40 = vpack.c.bf16 %v657_v31, %v653_v30  ;;  %v661_v43 = vld [vmem:[%s7554_s1 + $0x1380] sm:$0xff]  ;;  %v663_v39 = vld [vmem:[%s7554_s1 + $0x1390] sm:$0xff] }
 0x127   :  { %3663 = vmatpush1.bf16.msra.mxu1 %v3662_v41  ;;  %3153 = vmatprep.subr.bf16.mxu0 %v3152_v42  ;;  %v3682_v41 = vpack.c.bf16 %v659_v34, %v655_v32  ;;  %v3172_v42 = vpack.c.bf16 %v666_v36, %v662_v35  ;;  %v665_v44 = vld [vmem:[%s7554_s1 + $0x13a0] sm:$0xff]  ;;  %v667_v47 = vld [vmem:[%s7554_s1 + $0x13b0] sm:$0xff]  ;;  %v670_v25 = vld [vmem:[%s7554_s1 + $0x13c8] sm:$0xff] }
 0x128   :  { %3665 = vmatprep.subr.bf16.mxu1 %v3664_v46  ;;  %v3684_v46 = vpack.c.bf16 %v668_v38, %v664_v37  ;;  %v674_v48 = vld [vmem:[%s7554_s1 + $0x13e8] sm:$0xff]  ;;  %v672_v49 = vld [vmem:[%s7554_s1 + $0x13d8] sm:$0xff]  ;;  %v669_v56 = vld [vmem:[%s7554_s1 + $0x13c0] sm:$0xff] }
 0x129   :  { %v676_v52 = vld [vmem:[%s7554_s1 + $0x13f8] sm:$0xff]  ;;  %v673_v57 = vld [vmem:[%s7554_s1 + $0x13e0] sm:$0xff]  ;;  %v671_v58 = vld [vmem:[%s7554_s1 + $0x13d0] sm:$0xff] }
 0x12a   :  { %3155 = vmatpush1.bf16.msra.mxu0 %v3154_v53  ;;  %v3174_v53 = vpack.c.bf16 %v665_v44, %v661_v43  ;;  %v675_v59 = vld [vmem:[%s7554_s1 + $0x13f0] sm:$0xff]  ;;  %v678_v60 = vld [vmem:[%s7554_s1 + $0x1408] sm:$0xff]  ;;  %v680_v1 = vld [vmem:[%s7554_s1 + $0x1418] sm:$0xff] }
 0x12b   :  { %3667 = vmatpush1.bf16.msra.mxu1 %v3666_v54  ;;  %3157 = vmatprep.subr.bf16.mxu0 %v3156_v55  ;;  %v3686_v54 = vpack.c.bf16 %v667_v47, %v663_v39  ;;  %v3176_v55 = vpack.c.bf16 %v674_v48, %v670_v25  ;;  %v682_v63 = vld [vmem:[%s7554_s1 + $0x1428] sm:$0xff]  ;;  %v677_v6 = vld [vmem:[%s7554_s1 + $0x1400] sm:$0xff]  ;;  %v679_v7 = vld [vmem:[%s7554_s1 + $0x1410] sm:$0xff] }
 0x12c   :  { %3669 = vmatprep.subr.bf16.mxu1 %v3668_v24  ;;  %v3688_v24 = vpack.c.bf16 %v676_v52, %v672_v49  ;;  %v3180_v5 = vpack.c.bf16 %v682_v63, %v678_v60  ;;  %v681_v51 = vld [vmem:[%s7554_s1 + $0x1420] sm:$0xff]  ;;  %v683_v45 = vld [vmem:[%s7554_s1 + $0x1430] sm:$0xff]  ;;  %v686_v9 = vld [vmem:[%s7554_s1 + $0x1448] sm:$0xff] }
 0x12d   :  { %v690_v10 = vld [vmem:[%s7554_s1 + $0x1468] sm:$0xff]  ;;  %v688_v13 = vld [vmem:[%s7554_s1 + $0x1458] sm:$0xff]  ;;  %v685_v18 = vld [vmem:[%s7554_s1 + $0x1440] sm:$0xff] }
 0x12e   :  { %3159 = vmatpush1.bf16.msra.mxu0 %v3158_v2  ;;  %v684_v2 = vld [vmem:[%s7554_s1 + $0x1438] sm:$0xff]  ;;  %v3184_v17 = vpack.c.bf16 %v690_v10, %v686_v9  ;;  %v689_v19 = vld [vmem:[%s7554_s1 + $0x1460] sm:$0xff]  ;;  %v691_v21 = vld [vmem:[%s7554_s1 + $0x1470] sm:$0xff] }
 0x12f   :  { %3671 = vmatpush1.bf16.msra.mxu1 %v3670_v3  ;;  %3161 = vmatprep.subr.bf16.mxu0 %v3160_v4  ;;  %v3178_v3 = vpack.c.bf16 %v673_v57, %v669_v56  ;;  %v3690_v4 = vpack.c.bf16 %v675_v59, %v671_v58  ;;  %v694_v22 = vld [vmem:[%s7554_s1 + $0x1488] sm:$0xff]  ;;  %v693_v32 = vld [vmem:[%s7554_s1 + $0x1480] sm:$0xff]  ;;  %v695_v34 = vld [vmem:[%s7554_s1 + $0x1490] sm:$0xff] }
 0x130   :  { %3673 = vmatprep.subr.bf16.mxu1 %v3672_v8  ;;  %v3692_v8 = vpack.c.bf16 %v684_v2, %v680_v1  ;;  %v698_v23 = vld [vmem:[%s7554_s1 + $0x14a8] sm:$0xff]  ;;  %v704_v38 = vld [vmem:[%s7554_s1 + $0x14d8] sm:$0xff]  ;;  %v701_v44 = vld [vmem:[%s7554_s1 + $0x14c0] sm:$0xff] }
 0x131   :  { %v3188_v31 = vpack.c.bf16 %v698_v23, %v694_v22  ;;  %v702_v36 = vld [vmem:[%s7554_s1 + $0x14c8] sm:$0xff]  ;;  %v705_v39 = vld [vmem:[%s7554_s1 + $0x14e0] sm:$0xff]  ;;  %v707_v25 = vld [vmem:[%s7554_s1 + $0x14f0] sm:$0xff] }
 0x132   :  { %3163 = vmatpush1.bf16.msra.mxu0 %v3162_v14  ;;  %v692_v14 = vld [vmem:[%s7554_s1 + $0x1478] sm:$0xff]  ;;  %v706_v37 = vld [vmem:[%s7554_s1 + $0x14e8] sm:$0xff]  ;;  %v709_v57 = vld [vmem:[%s7554_s1 + $0x1500] sm:$0xff] }
 0x133   :  { %3675 = vmatpush1.bf16.msra.mxu1 %v3674_v15  ;;  %3165 = vmatprep.subr.bf16.mxu0 %v3164_v16  ;;  %v3182_v15 = vpack.c.bf16 %v681_v51, %v677_v6  ;;  %v3694_v16 = vpack.c.bf16 %v683_v45, %v679_v7  ;;  %v3696_v50 = vpack.c.bf16 %v692_v14, %v688_v13  ;;  %v710_v48 = vld [vmem:[%s7554_s1 + $0x1508] sm:$0xff]  ;;  %v712_v52 = vld [vmem:[%s7554_s1 + $0x1518] sm:$0xff]  ;;  %v713_v58 = vld [vmem:[%s7554_s1 + $0x1520] sm:$0xff] }
 0x134   :  { %3677 = vmatprep.subr.bf16.mxu1 %v3676_v20  ;;  %v687_v20 = vld [vmem:[%s7554_s1 + $0x1450] sm:$0xff]  ;;  %v3192_v43 = vpack.c.bf16 %v706_v37, %v702_v36  ;;  %v714_v49 = vld [vmem:[%s7554_s1 + $0x1528] sm:$0xff]  ;;  %v720_v1 = vld [vmem:[%s7554_s1 + $0x1558] sm:$0xff] }
 0x135   :  { %v3698_v30 = vpack.c.bf16 %v691_v21, %v687_v20  ;;  %v3196_v56 = vpack.c.bf16 %v714_v49, %v710_v48  ;;  %v715_v60 = vld [vmem:[%s7554_s1 + $0x1530] sm:$0xff]  ;;  %v718_v63 = vld [vmem:[%s7554_s1 + $0x1548] sm:$0xff]  ;;  %v724_v2 = vld [vmem:[%s7554_s1 + $0x1578] sm:$0xff] }
 0x136   :  { %3167 = vmatpush1.bf16.msra.mxu0 %v3166_v27  ;;  %v696_v27 = vld [vmem:[%s7554_s1 + $0x1498] sm:$0xff]  ;;  %v722_v0 = vld [vmem:[%s7554_s1 + $0x1568] sm:$0xff]  ;;  %v717_v6 = vld [vmem:[%s7554_s1 + $0x1540] sm:$0xff] }
 0x137   :  { %3679 = vmatpush1.bf16.msra.mxu1 %v3678_v28  ;;  %3169 = vmatprep.subr.bf16.mxu0 %v3168_v29  ;;  %v700_v28 = vld [vmem:[%s7554_s1 + $0x14b8] sm:$0xff]  ;;  %v3186_v29 = vpack.c.bf16 %v689_v19, %v685_v18  ;;  %v721_v51 = vld [vmem:[%s7554_s1 + $0x1560] sm:$0xff]  ;;  %v719_v7 = vld [vmem:[%s7554_s1 + $0x1550] sm:$0xff] }
 0x138   :  { %3681 = vmatprep.subr.bf16.mxu1 %v3680_v33  ;;  %v697_v33 = vld [vmem:[%s7554_s1 + $0x14a0] sm:$0xff]  ;;  %v3700_v35 = vpack.c.bf16 %v700_v28, %v696_v27  ;;  %v723_v45 = vld [vmem:[%s7554_s1 + $0x1570] sm:$0xff]  ;;  %v726_v9 = vld [vmem:[%s7554_s1 + $0x1588] sm:$0xff] }
 0x139   :  { %v730_v10 = vld [vmem:[%s7554_s1 + $0x15a8] sm:$0xff]  ;;  %v728_v13 = vld [vmem:[%s7554_s1 + $0x1598] sm:$0xff]  ;;  %v725_v18 = vld [vmem:[%s7554_s1 + $0x1580] sm:$0xff] }
 0x13a   :  { %3171 = vmatpush1.bf16.msra.mxu0 %v3170_v40  ;;  %v708_v40 = vld [vmem:[%s7554_s1 + $0x14f8] sm:$0xff]  ;;  %v729_v19 = vld [vmem:[%s7554_s1 + $0x15a0] sm:$0xff]  ;;  %v727_v20 = vld [vmem:[%s7554_s1 + $0x1590] sm:$0xff] }
 0x13b   :  { %3683 = vmatpush1.bf16.msra.mxu1 %v3682_v41  ;;  %3173 = vmatprep.subr.bf16.mxu0 %v3172_v42  ;;  %v3190_v41 = vpack.c.bf16 %v697_v33, %v693_v32  ;;  %v3704_v47 = vpack.c.bf16 %v708_v40, %v704_v38  ;;  %v732_v14 = vld [vmem:[%s7554_s1 + $0x15b8] sm:$0xff]  ;;  %v731_v21 = vld [vmem:[%s7554_s1 + $0x15b0] sm:$0xff]  ;;  %v734_v22 = vld [vmem:[%s7554_s1 + $0x15c8] sm:$0xff]  ;;  %v3206_v28 = vpack.c.bf16 %v729_v19, %v725_v18 }
 0x13c   :  { %3685 = vmatprep.subr.bf16.mxu1 %v3684_v46  ;;  %v703_v46 = vld [vmem:[%s7554_s1 + $0x14d0] sm:$0xff]  ;;  %v738_v23 = vld [vmem:[%s7554_s1 + $0x15e8] sm:$0xff]  ;;  %v740_v27 = vld [vmem:[%s7554_s1 + $0x15f8] sm:$0xff] }
 0x13d   :  { %v737_v32 = vld [vmem:[%s7554_s1 + $0x15e0] sm:$0xff]  ;;  %v735_v33 = vld [vmem:[%s7554_s1 + $0x15d0] sm:$0xff]  ;;  %v746_v36 = vld [vmem:[%s7554_s1 + $0x1628] sm:$0xff] }
 0x13e   :  { %3175 = vmatpush1.bf16.msra.mxu0 %v3174_v53  ;;  %v716_v53 = vld [vmem:[%s7554_s1 + $0x1538] sm:$0xff]  ;;  %v754_v48 = vld [vmem:[%s7554_s1 + $0x1668] sm:$0xff]  ;;  %v769_v18 = vld [vmem:[%s7554_s1 + $0x16e0] sm:$0xff] }
 0x13f   :  { %3687 = vmatpush1.bf16.msra.mxu1 %v3686_v54  ;;  %3177 = vmatprep.subr.bf16.mxu0 %v3176_v55  ;;  %v3194_v54 = vpack.c.bf16 %v705_v39, %v701_v44  ;;  %v3706_v55 = vpack.c.bf16 %v707_v25, %v703_v46  ;;  %v3708_v59 = vpack.c.bf16 %v716_v53, %v712_v52  ;;  %v744_v37 = vld [vmem:[%s7554_s1 + $0x1618] sm:$0xff]  ;;  %v745_v44 = vld [vmem:[%s7554_s1 + $0x1620] sm:$0xff]  ;;  %v743_v39 = vld [vmem:[%s7554_s1 + $0x1610] sm:$0xff] }
 0x140   :  { %3689 = vmatprep.subr.bf16.mxu1 %v3688_v24  ;;  %v711_v24 = vld [vmem:[%s7554_s1 + $0x1510] sm:$0xff]  ;;  %v748_v38 = vld [vmem:[%s7554_s1 + $0x1638] sm:$0xff]  ;;  %v750_v25 = vld [vmem:[%s7554_s1 + $0x1648] sm:$0xff] }
 0x141   :  { %v3724_v46 = vpack.c.bf16 %v748_v38, %v744_v37  ;;  %v752_v49 = vld [vmem:[%s7554_s1 + $0x1658] sm:$0xff]  ;;  %v767_v19 = vld [vmem:[%s7554_s1 + $0x16d0] sm:$0xff] }
 0x142   :  { %3179 = vmatpush1.bf16.msra.mxu0 %v3178_v3  ;;  %v3198_v3 = vpack.c.bf16 %v713_v58, %v709_v57  ;;  %v756_v52 = vld [vmem:[%s7554_s1 + $0x1678] sm:$0xff]  ;;  %v753_v57 = vld [vmem:[%s7554_s1 + $0x1660] sm:$0xff]  ;;  %v751_v58 = vld [vmem:[%s7554_s1 + $0x1650] sm:$0xff] }
 0x143   :  { %3691 = vmatpush1.bf16.msra.mxu1 %v3690_v4  ;;  %3181 = vmatprep.subr.bf16.mxu0 %v3180_v5  ;;  %v3710_v4 = vpack.c.bf16 %v715_v60, %v711_v24  ;;  %v3200_v5 = vpack.c.bf16 %v722_v0, %v718_v63  ;;  %v3728_v24 = vpack.c.bf16 %v756_v52, %v752_v49  ;;  %v758_v60 = vld [vmem:[%s7554_s1 + $0x1688] sm:$0xff]  ;;  %v760_v0 = vld [vmem:[%s7554_s1 + $0x1698] sm:$0xff] }
 0x144   :  { %3693 = vmatprep.subr.bf16.mxu1 %v3692_v8  ;;  %v3712_v8 = vpack.c.bf16 %v724_v2, %v720_v1  ;;  %v762_v63 = vld [vmem:[%s7554_s1 + $0x16a8] sm:$0xff]  ;;  %v764_v1 = vld [vmem:[%s7554_s1 + $0x16b8] sm:$0xff] }
 0x145   :  { %1520 = vmatmul.mubr.f32.vlgmr.msra.gmra.mrb[0].mxu0 %v5718_v62  ;;  %v788_v37 = vld [vmem:[%s7554_s1 + $0x1778] sm:$0xff] }
 0x146   :  { %3183 = vmatpush1.bf16.msra.mxu0 %v3182_v15  ;;  %2088 = vmatmul.mubr.f32.vlgmr.msra.gmra.mrb[0].mxu1 %v5718_v62  ;;  %v699_v62 = vld [vmem:[%s7554_s1 + $0x14b0] sm:$0xff]  ;;  %v3202_v15 = vpack.c.bf16 %v721_v51, %v717_v6  ;;  %v761_v6 = vld [vmem:[%s7554_s1 + $0x16a0] sm:$0xff]  ;;  %v796_v49 = vld [vmem:[%s7554_s1 + $0x17b8] sm:$0xff] }
 0x147   :  { %3695 = vmatpush1.bf16.msra.mxu1 %v3694_v16  ;;  %3185 = vmatprep.subr.bf16.mxu0 %v3184_v17  ;;  %v3702_v42 = vpack.c.bf16 %v699_v62, %v695_v34  ;;  %v3714_v16 = vpack.c.bf16 %v723_v45, %v719_v7  ;;  %v3204_v17 = vpack.c.bf16 %v730_v10, %v726_v9  ;;  %v742_v62 = vld [vmem:[%s7554_s1 + $0x1608] sm:$0xff]  ;;  %v759_v51 = vld [vmem:[%s7554_s1 + $0x1690] sm:$0xff]  ;;  %v768_v10 = vld [vmem:[%s7554_s1 + $0x16d8] sm:$0xff] }
 0x148   :  { %3697 = vmatprep.subr.bf16.mxu1 %v3696_v50  ;;  %1590 = vmatprep.mubr.f32.mxu0 %v1137_v26  ;;  %v3716_v50 = vpack.c.bf16 %v732_v14, %v728_v13  ;;  %v3732_v7 = vpack.c.bf16 %v764_v1, %v760_v0  ;;  %v766_v45 = vld [vmem:[%s7554_s1 + $0x16c8] sm:$0xff]  ;;  %v772_v13 = vld [vmem:[%s7554_s1 + $0x16f8] sm:$0xff] }
 0x149   :  { %2158 = vmatprep.mubr.f32.mxu1 %v1137_v26  ;;  %v736_v26 = vld [vmem:[%s7554_s1 + $0x15d8] sm:$0xff]  ;;  %v770_v9 = vld [vmem:[%s7554_s1 + $0x16e8] sm:$0xff] }
 0x14a   :  { %3187 = vmatpush1.bf16.msra.mxu0 %v3186_v29  ;;  %v3718_v29 = vpack.c.bf16 %v731_v21, %v727_v20  ;;  %v3720_v34 = vpack.c.bf16 %v740_v27, %v736_v26  ;;  %v3736_v20 = vpack.c.bf16 %v772_v13, %v768_v10  ;;  %v774_v21 = vld [vmem:[%s7554_s1 + $0x1708] sm:$0xff]  ;;  %v780_v26 = vld [vmem:[%s7554_s1 + $0x1738] sm:$0xff] }
 0x14b   :  { %3699 = vmatpush1.bf16.msra.mxu1 %v3698_v30  ;;  %3189 = vmatprep.subr.bf16.mxu0 %v3188_v31  ;;  %v3208_v30 = vpack.c.bf16 %v738_v23, %v734_v22  ;;  %v733_v31 = vld [vmem:[%s7554_s1 + $0x15c0] sm:$0xff]  ;;  %v778_v22 = vld [vmem:[%s7554_s1 + $0x1728] sm:$0xff]  ;;  %v776_v23 = vld [vmem:[%s7554_s1 + $0x1718] sm:$0xff] }
 0x14c   :  { %3701 = vmatprep.subr.bf16.mxu1 %v3700_v35  ;;  %v739_v35 = vld [vmem:[%s7554_s1 + $0x15f0] sm:$0xff]  ;;  %v3210_v40 = vpack.c.bf16 %v737_v32, %v733_v31  ;;  %v777_v31 = vld [vmem:[%s7554_s1 + $0x1720] sm:$0xff]  ;;  %v804_v0 = vld [vmem:[%s7554_s1 + $0x17f8] sm:$0xff] }
 0x14d   :  { %v775_v32 = vld [vmem:[%s7554_s1 + $0x1710] sm:$0xff]  ;;  %v812_v10 = vld [vmem:[%s7554_s1 + $0x1838] sm:$0xff] }
 0x14e   :  { %3191 = vmatpush1.bf16.msra.mxu0 %v3190_v41  ;;  %v3722_v41 = vpack.c.bf16 %v739_v35, %v735_v33  ;;  %v3740_v33 = vpack.c.bf16 %v780_v26, %v776_v23  ;;  %v782_v35 = vld [vmem:[%s7554_s1 + $0x1748] sm:$0xff]  ;;  %v6486_v13 = vld [vmem:[%s7553_s0 + $0x18] sm:$0xff]  ;;  %s4047_s0 = smov [#allocation2]  }
 0x14f   :  { %3703 = vmatpush1.bf16.msra.mxu1 %v3702_v42  ;;  %3193 = vmatprep.subr.bf16.mxu0 %v3192_v43  ;;  %v3212_v42 = vpack.c.bf16 %v746_v36, %v742_v62  ;;  %v741_v43 = vld [vmem:[%s7554_s1 + $0x1600] sm:$0xff]  ;;  %v786_v62 = vld [vmem:[%s7554_s1 + $0x1768] sm:$0xff]  ;;  %v784_v36 = vld [vmem:[%s7554_s1 + $0x1758] sm:$0xff]  ;;  %v6508_v23 = vrot.slane %v6486_v13, %v4377_v11  ;;  %s2710_s13 = sshll.u32 %s4047_s0, 4  ;;  %s2711_s13 = int_to_ptr.vmem [resolvable:$true] %s2710_s13 }
 0x150   :  { %3705 = vmatprep.subr.bf16.mxu1 %v3704_v47  ;;  %v747_v47 = vld [vmem:[%s7554_s1 + $0x1630] sm:$0xff]  ;;  %v3214_v53 = vpack.c.bf16 %v745_v44, %v741_v43  ;;  %v785_v43 = vld [vmem:[%s7554_s1 + $0x1760] sm:$0xff]  ;;  %v816_v26 = vld [vmem:[%s7554_s1 + $0x1858] sm:$0xff]  ;;  %p4024_p1 = scmp.lt.s32.totalorder %s2711_s13, %s2711_s13 }
 0x151   :  { %v783_v44 = vld [vmem:[%s7554_s1 + $0x1750] sm:$0xff] }
 0x152   :  { %3195 = vmatpush1.bf16.msra.mxu0 %v3194_v54  ;;  %v3726_v54 = vpack.c.bf16 %v747_v47, %v743_v39  ;;  %v3744_v39 = vpack.c.bf16 %v788_v37, %v784_v36  ;;  %v790_v47 = vld [vmem:[%s7554_s1 + $0x1788] sm:$0xff]  ;;  %v1153_v37 = vcombine.high %v6508_v23, %v6508_v23 }
 0x153   :  { %3707 = vmatpush1.bf16.msra.mxu1 %v3706_v55  ;;  %3197 = vmatprep.subr.bf16.mxu0 %v3196_v56  ;;  %v3216_v55 = vpack.c.bf16 %v754_v48, %v750_v25  ;;  %v749_v56 = vld [vmem:[%s7554_s1 + $0x1640] sm:$0xff]  ;;  %v794_v25 = vld [vmem:[%s7554_s1 + $0x17a8] sm:$0xff]  ;;  %v792_v48 = vld [vmem:[%s7554_s1 + $0x1798] sm:$0xff] }
 0x154   :  { %3709 = vmatprep.subr.bf16.mxu1 %v3708_v59  ;;  %v755_v59 = vld [vmem:[%s7554_s1 + $0x1670] sm:$0xff]  ;;  %v3218_v2 = vpack.c.bf16 %v753_v57, %v749_v56  ;;  %v793_v56 = vld [vmem:[%s7554_s1 + $0x17a0] sm:$0xff]  ;;  %v826_v36 = vld [vmem:[%s7554_s1 + $0x18a8] sm:$0xff] }
 0x155   :  { %v791_v57 = vld [vmem:[%s7554_s1 + $0x1790] sm:$0xff] }
 0x156   :  { %3199 = vmatpush1.bf16.msra.mxu0 %v3198_v3  ;;  %v3730_v3 = vpack.c.bf16 %v755_v59, %v751_v58  ;;  %v3748_v58 = vpack.c.bf16 %v796_v49, %v792_v48  ;;  %v798_v59 = vld [vmem:[%s7554_s1 + $0x17c8] sm:$0xff]  ;;  %v832_v49 = vld [vmem:[%s7554_s1 + $0x18d8] sm:$0xff] }
 0x157   :  { %3711 = vmatpush1.bf16.msra.mxu1 %v3710_v4  ;;  %3201 = vmatprep.subr.bf16.mxu0 %v3200_v5  ;;  %v3220_v4 = vpack.c.bf16 %v762_v63, %v758_v60  ;;  %v757_v5 = vld [vmem:[%s7554_s1 + $0x1680] sm:$0xff]  ;;  %v802_v60 = vld [vmem:[%s7554_s1 + $0x17e8] sm:$0xff]  ;;  %v800_v63 = vld [vmem:[%s7554_s1 + $0x17d8] sm:$0xff] }
 0x158   :  { %3713 = vmatprep.subr.bf16.mxu1 %v3712_v8  ;;  %v763_v8 = vld [vmem:[%s7554_s1 + $0x16b0] sm:$0xff]  ;;  %v3222_v14 = vpack.c.bf16 %v761_v6, %v757_v5  ;;  %v801_v5 = vld [vmem:[%s7554_s1 + $0x17e0] sm:$0xff]  ;;  %v834_v48 = vld [vmem:[%s7554_s1 + $0x18e8] sm:$0xff] }
 0x159   :  { %v799_v6 = vld [vmem:[%s7554_s1 + $0x17d0] sm:$0xff] }
 0x15a   :  { %3203 = vmatpush1.bf16.msra.mxu0 %v3202_v15  ;;  %v3734_v15 = vpack.c.bf16 %v763_v8, %v759_v51  ;;  %v3752_v51 = vpack.c.bf16 %v804_v0, %v800_v63  ;;  %v806_v8 = vld [vmem:[%s7554_s1 + $0x1808] sm:$0xff]  ;;  %v840_v0 = vld [vmem:[%s7554_s1 + $0x1918] sm:$0xff] }
 0x15b   :  { %3715 = vmatpush1.bf16.msra.mxu1 %v3714_v16  ;;  %3205 = vmatprep.subr.bf16.mxu0 %v3204_v17  ;;  %v3224_v16 = vpack.c.bf16 %v770_v9, %v766_v45  ;;  %v765_v17 = vld [vmem:[%s7554_s1 + $0x16c0] sm:$0xff]  ;;  %v810_v45 = vld [vmem:[%s7554_s1 + $0x1828] sm:$0xff]  ;;  %v808_v9 = vld [vmem:[%s7554_s1 + $0x1818] sm:$0xff] }
 0x15c   :  { %3717 = vmatprep.subr.bf16.mxu1 %v3716_v50  ;;  %v771_v50 = vld [vmem:[%s7554_s1 + $0x16f0] sm:$0xff]  ;;  %v3226_v27 = vpack.c.bf16 %v769_v18, %v765_v17  ;;  %v805_v17 = vld [vmem:[%s7554_s1 + $0x1800] sm:$0xff]  ;;  %v842_v63 = vld [vmem:[%s7554_s1 + $0x1928] sm:$0xff] }
 0x15d   :  { %v809_v18 = vld [vmem:[%s7554_s1 + $0x1820] sm:$0xff] }
 0x15e   :  { %3207 = vmatpush1.bf16.msra.mxu0 %v3206_v28  ;;  %v3738_v28 = vpack.c.bf16 %v771_v50, %v767_v19  ;;  %v807_v19 = vld [vmem:[%s7554_s1 + $0x1810] sm:$0xff] }
 0x15f   :  { %3719 = vmatpush1.bf16.msra.mxu1 %v3718_v29  ;;  %3209 = vmatprep.subr.bf16.mxu0 %v3208_v30  ;;  %v3228_v29 = vpack.c.bf16 %v778_v22, %v774_v21  ;;  %v773_v30 = vld [vmem:[%s7554_s1 + $0x1700] sm:$0xff]  ;;  %v811_v50 = vld [vmem:[%s7554_s1 + $0x1830] sm:$0xff]  ;;  %v814_v21 = vld [vmem:[%s7554_s1 + $0x1848] sm:$0xff] }
 0x160   :  { %3721 = vmatprep.subr.bf16.mxu1 %v3720_v34  ;;  %v779_v34 = vld [vmem:[%s7554_s1 + $0x1730] sm:$0xff]  ;;  %v3230_v38 = vpack.c.bf16 %v777_v31, %v773_v30  ;;  %v818_v22 = vld [vmem:[%s7554_s1 + $0x1868] sm:$0xff]  ;;  %v813_v31 = vld [vmem:[%s7554_s1 + $0x1840] sm:$0xff] }
 0x161   :  { %v3248_v30 = vpack.c.bf16 %v818_v22, %v814_v21  ;;  %v851_v21 = vld [vmem:[%s7554_s1 + $0x1970] sm:$0xff]  ;;  %v854_v22 = vld [vmem:[%s7554_s1 + $0x1988] sm:$0xff] }
 0x162   :  { %3211 = vmatpush1.bf16.msra.mxu0 %v3210_v40  ;;  %v3742_v40 = vpack.c.bf16 %v779_v34, %v775_v32  ;;  %v817_v32 = vld [vmem:[%s7554_s1 + $0x1860] sm:$0xff] }
 0x163   :  { %3723 = vmatpush1.bf16.msra.mxu1 %v3722_v41  ;;  %3213 = vmatprep.subr.bf16.mxu0 %v3212_v42  ;;  %v3232_v41 = vpack.c.bf16 %v786_v62, %v782_v35  ;;  %v781_v42 = vld [vmem:[%s7554_s1 + $0x1740] sm:$0xff]  ;;  %v819_v35 = vld [vmem:[%s7554_s1 + $0x1870] sm:$0xff]  ;;  %v822_v62 = vld [vmem:[%s7554_s1 + $0x1888] sm:$0xff] }
 0x164   :  { %3725 = vmatprep.subr.bf16.mxu1 %v3724_v46  ;;  %v787_v46 = vld [vmem:[%s7554_s1 + $0x1770] sm:$0xff]  ;;  %v3234_v52 = vpack.c.bf16 %v785_v43, %v781_v42  ;;  %v3252_v43 = vpack.c.bf16 %v826_v36, %v822_v62  ;;  %v862_v36 = vld [vmem:[%s7554_s1 + $0x19c8] sm:$0xff] }
 0x165   :  { %v859_v62 = vld [vmem:[%s7554_s1 + $0x19b0] sm:$0xff] }
 0x166   :  { %3215 = vmatpush1.bf16.msra.mxu0 %v3214_v53  ;;  %v3746_v53 = vpack.c.bf16 %v787_v46, %v783_v44  ;;  %v821_v44 = vld [vmem:[%s7554_s1 + $0x1880] sm:$0xff]  ;;  %v823_v46 = vld [vmem:[%s7554_s1 + $0x1890] sm:$0xff] }
 0x167   :  { %3727 = vmatpush1.bf16.msra.mxu1 %v3726_v54  ;;  %3217 = vmatprep.subr.bf16.mxu0 %v3216_v55  ;;  %v3236_v54 = vpack.c.bf16 %v794_v25, %v790_v47  ;;  %v789_v55 = vld [vmem:[%s7554_s1 + $0x1780] sm:$0xff]  ;;  %v830_v25 = vld [vmem:[%s7554_s1 + $0x18c8] sm:$0xff] }
 0x168   :  { %3729 = vmatprep.subr.bf16.mxu1 %v3728_v24  ;;  %v795_v24 = vld [vmem:[%s7554_s1 + $0x17b0] sm:$0xff]  ;;  %v3238_v1 = vpack.c.bf16 %v793_v56, %v789_v55  ;;  %v3256_v55 = vpack.c.bf16 %v834_v48, %v830_v25  ;;  %v829_v56 = vld [vmem:[%s7554_s1 + $0x18c0] sm:$0xff]  ;;  %v870_v25 = vld [vmem:[%s7554_s1 + $0x1a08] sm:$0xff] }
 0x169   :  { %v874_v48 = vld [vmem:[%s7554_s1 + $0x1a28] sm:$0xff] }
 0x16a   :  { %3219 = vmatpush1.bf16.msra.mxu0 %v3218_v2  ;;  %v3750_v2 = vpack.c.bf16 %v795_v24, %v791_v57  ;;  %v833_v57 = vld [vmem:[%s7554_s1 + $0x18e0] sm:$0xff] }
 0x16b   :  { %3731 = vmatpush1.bf16.msra.mxu1 %v3730_v3  ;;  %3221 = vmatprep.subr.bf16.mxu0 %v3220_v4  ;;  %v3240_v3 = vpack.c.bf16 %v802_v60, %v798_v59  ;;  %v797_v4 = vld [vmem:[%s7554_s1 + $0x17c0] sm:$0xff]  ;;  %v835_v59 = vld [vmem:[%s7554_s1 + $0x18f0] sm:$0xff]  ;;  %v838_v60 = vld [vmem:[%s7554_s1 + $0x1908] sm:$0xff] }
 0x16c   :  { %3733 = vmatprep.subr.bf16.mxu1 %v3732_v7  ;;  %v803_v7 = vld [vmem:[%s7554_s1 + $0x17f0] sm:$0xff] }
 0x16e   :  { %3223 = vmatpush1.bf16.msra.mxu0 %v3222_v14  ;;  %v3242_v14 = vpack.c.bf16 %v801_v5, %v797_v4  ;;  %v3260_v4 = vpack.c.bf16 %v842_v63, %v838_v60  ;;  %v837_v5 = vld [vmem:[%s7554_s1 + $0x1900] sm:$0xff]  ;;  %v878_v60 = vld [vmem:[%s7554_s1 + $0x1a48] sm:$0xff] }
 0x16f   :  { %3735 = vmatpush1.bf16.msra.mxu1 %v3734_v15  ;;  %3225 = vmatprep.subr.bf16.mxu0 %v3224_v16  ;;  %v3754_v15 = vpack.c.bf16 %v803_v7, %v799_v6  ;;  %v3244_v16 = vpack.c.bf16 %v810_v45, %v806_v8  ;;  %v841_v6 = vld [vmem:[%s7554_s1 + $0x1920] sm:$0xff]  ;;  %v843_v8 = vld [vmem:[%s7554_s1 + $0x1930] sm:$0xff]  ;;  %v846_v45 = vld [vmem:[%s7554_s1 + $0x1948] sm:$0xff] }
 0x170   :  { %3737 = vmatprep.subr.bf16.mxu1 %v3736_v20  ;;  %v3756_v20 = vpack.c.bf16 %v812_v10, %v808_v9  ;;  %v850_v9 = vld [vmem:[%s7554_s1 + $0x1968] sm:$0xff]  ;;  %v848_v10 = vld [vmem:[%s7554_s1 + $0x1958] sm:$0xff] }
 0x171   :  { %v882_v63 = vld [vmem:[%s7554_s1 + $0x1a68] sm:$0xff] }
 0x172   :  { %3227 = vmatpush1.bf16.msra.mxu0 %v3226_v27  ;;  %v820_v27 = vld [vmem:[%s7554_s1 + $0x1878] sm:$0xff] }
 0x173   :  { %3739 = vmatpush1.bf16.msra.mxu1 %v3738_v28  ;;  %3229 = vmatprep.subr.bf16.mxu0 %v3228_v29  ;;  %v3246_v28 = vpack.c.bf16 %v809_v18, %v805_v17  ;;  %v3758_v29 = vpack.c.bf16 %v811_v50, %v807_v19  ;;  %v3760_v34 = vpack.c.bf16 %v820_v27, %v816_v26  ;;  %v845_v18 = vld [vmem:[%s7554_s1 + $0x1940] sm:$0xff]  ;;  %v858_v26 = vld [vmem:[%s7554_s1 + $0x19a8] sm:$0xff]  ;;  %v856_v27 = vld [vmem:[%s7554_s1 + $0x1998] sm:$0xff] }
 0x174   :  { %3741 = vmatprep.subr.bf16.mxu1 %v3740_v33  ;;  %v815_v33 = vld [vmem:[%s7554_s1 + $0x1850] sm:$0xff]  ;;  %v3264_v17 = vpack.c.bf16 %v850_v9, %v846_v45  ;;  %v849_v19 = vld [vmem:[%s7554_s1 + $0x1960] sm:$0xff]  ;;  %v886_v45 = vld [vmem:[%s7554_s1 + $0x1a88] sm:$0xff] }
 0x175   :  { %v3762_v42 = vpack.c.bf16 %v819_v35, %v815_v33  ;;  %v857_v33 = vld [vmem:[%s7554_s1 + $0x19a0] sm:$0xff]  ;;  %v890_v9 = vld [vmem:[%s7554_s1 + $0x1aa8] sm:$0xff] }
 0x176   :  { %3231 = vmatpush1.bf16.msra.mxu0 %v3230_v38  ;;  %v824_v38 = vld [vmem:[%s7554_s1 + $0x1898] sm:$0xff] }
 0x177   :  { %3743 = vmatpush1.bf16.msra.mxu1 %v3742_v40  ;;  %3233 = vmatprep.subr.bf16.mxu0 %v3232_v41  ;;  %v828_v40 = vld [vmem:[%s7554_s1 + $0x18b8] sm:$0xff]  ;;  %v3250_v41 = vpack.c.bf16 %v817_v32, %v813_v31  ;;  %v3268_v31 = vpack.c.bf16 %v858_v26, %v854_v22  ;;  %v853_v32 = vld [vmem:[%s7554_s1 + $0x1980] sm:$0xff]  ;;  %v894_v22 = vld [vmem:[%s7554_s1 + $0x1ac8] sm:$0xff] }
 0x178   :  { %3745 = vmatprep.subr.bf16.mxu1 %v3744_v39  ;;  %v825_v39 = vld [vmem:[%s7554_s1 + $0x18a0] sm:$0xff]  ;;  %v3764_v47 = vpack.c.bf16 %v828_v40, %v824_v38  ;;  %v864_v38 = vld [vmem:[%s7554_s1 + $0x19d8] sm:$0xff]  ;;  %v898_v26 = vld [vmem:[%s7554_s1 + $0x1ae8] sm:$0xff] }
 0x179   :  { %v868_v40 = vld [vmem:[%s7554_s1 + $0x19f8] sm:$0xff] }
 0x17a   :  { %3235 = vmatpush1.bf16.msra.mxu0 %v3234_v52  ;;  %v836_v52 = vld [vmem:[%s7554_s1 + $0x18f8] sm:$0xff] }
 0x17b   :  { %3747 = vmatpush1.bf16.msra.mxu1 %v3746_v53  ;;  %3237 = vmatprep.subr.bf16.mxu0 %v3236_v54  ;;  %v3254_v53 = vpack.c.bf16 %v825_v39, %v821_v44  ;;  %v3768_v24 = vpack.c.bf16 %v836_v52, %v832_v49  ;;  %v861_v44 = vld [vmem:[%s7554_s1 + $0x19c0] sm:$0xff]  ;;  %v872_v49 = vld [vmem:[%s7554_s1 + $0x1a18] sm:$0xff] }
 0x17c   :  { %3749 = vmatprep.subr.bf16.mxu1 %v3748_v58  ;;  %v831_v58 = vld [vmem:[%s7554_s1 + $0x18d0] sm:$0xff]  ;;  %v865_v39 = vld [vmem:[%s7554_s1 + $0x19e0] sm:$0xff]  ;;  %v876_v52 = vld [vmem:[%s7554_s1 + $0x1a38] sm:$0xff] }
 0x17e   :  { %3239 = vmatpush1.bf16.msra.mxu0 %v3238_v1  ;;  %v844_v1 = vld [vmem:[%s7554_s1 + $0x1938] sm:$0xff] }
 0x17f   :  { %3751 = vmatpush1.bf16.msra.mxu1 %v3750_v2  ;;  %3241 = vmatprep.subr.bf16.mxu0 %v3240_v3  ;;  %v3258_v2 = vpack.c.bf16 %v833_v57, %v829_v56  ;;  %v3770_v3 = vpack.c.bf16 %v835_v59, %v831_v58  ;;  %v3772_v7 = vpack.c.bf16 %v844_v1, %v840_v0  ;;  %v869_v56 = vld [vmem:[%s7554_s1 + $0x1a00] sm:$0xff]  ;;  %v871_v58 = vld [vmem:[%s7554_s1 + $0x1a10] sm:$0xff]  ;;  %v880_v0 = vld [vmem:[%s7554_s1 + $0x1a58] sm:$0xff] }
 0x180   :  { %3753 = vmatprep.subr.bf16.mxu1 %v3752_v51  ;;  %v839_v51 = vld [vmem:[%s7554_s1 + $0x1910] sm:$0xff]  ;;  %v873_v57 = vld [vmem:[%s7554_s1 + $0x1a20] sm:$0xff]  ;;  %v884_v1 = vld [vmem:[%s7554_s1 + $0x1a78] sm:$0xff] }
 0x181   :  { %v875_v59 = vld [vmem:[%s7554_s1 + $0x1a30] sm:$0xff] }
 0x182   :  { %3243 = vmatpush1.bf16.msra.mxu0 %v3242_v14  ;;  %v852_v14 = vld [vmem:[%s7554_s1 + $0x1978] sm:$0xff] }
 0x183   :  { %3755 = vmatpush1.bf16.msra.mxu1 %v3754_v15  ;;  %3245 = vmatprep.subr.bf16.mxu0 %v3244_v16  ;;  %v3262_v15 = vpack.c.bf16 %v841_v6, %v837_v5  ;;  %v3774_v16 = vpack.c.bf16 %v843_v8, %v839_v51  ;;  %v3776_v50 = vpack.c.bf16 %v852_v14, %v848_v10  ;;  %v877_v5 = vld [vmem:[%s7554_s1 + $0x1a40] sm:$0xff]  ;;  %v879_v51 = vld [vmem:[%s7554_s1 + $0x1a50] sm:$0xff]  ;;  %v888_v10 = vld [vmem:[%s7554_s1 + $0x1a98] sm:$0xff] }
 0x184   :  { %3757 = vmatprep.subr.bf16.mxu1 %v3756_v20  ;;  %v847_v20 = vld [vmem:[%s7554_s1 + $0x1950] sm:$0xff]  ;;  %v881_v6 = vld [vmem:[%s7554_s1 + $0x1a60] sm:$0xff]  ;;  %v892_v14 = vld [vmem:[%s7554_s1 + $0x1ab8] sm:$0xff] }
 0x185   :  { %1591 = vmatmul.mubr.f32.vlgmr.msra.gmra.mrb[0].mxu0 %v6111_v12  ;;  %v883_v8 = vld [vmem:[%s7554_s1 + $0x1a70] sm:$0xff] }
 0x186   :  { %3247 = vmatpush1.bf16.msra.mxu0 %v3246_v28  ;;  %2159 = vmatmul.mubr.f32.vlgmr.msra.gmra.mrb[0].mxu1 %v6111_v12  ;;  %v827_v12 = vld [vmem:[%s7554_s1 + $0x18b0] sm:$0xff]  ;;  %v860_v28 = vld [vmem:[%s7554_s1 + $0x19b8] sm:$0xff] }
 0x187   :  { %3759 = vmatpush1.bf16.msra.mxu1 %v3758_v29  ;;  %3249 = vmatprep.subr.bf16.mxu0 %v3248_v30  ;;  %v3766_v54 = vpack.c.bf16 %v827_v12, %v823_v46  ;;  %v3266_v29 = vpack.c.bf16 %v849_v19, %v845_v18  ;;  %v3778_v30 = vpack.c.bf16 %v851_v21, %v847_v20  ;;  %v863_v46 = vld [vmem:[%s7554_s1 + $0x19d0] sm:$0xff]  ;;  %v885_v18 = vld [vmem:[%s7554_s1 + $0x1a80] sm:$0xff] }
 0x188   :  { %3761 = vmatprep.subr.bf16.mxu1 %v3760_v34  ;;  %1661 = vmatprep.mubr.f32.mxu0 %v1153_v37  ;;  %v855_v34 = vld [vmem:[%s7554_s1 + $0x1990] sm:$0xff]  ;;  %v3780_v35 = vpack.c.bf16 %v860_v28, %v856_v27  ;;  %v889_v19 = vld [vmem:[%s7554_s1 + $0x1aa0] sm:$0xff]  ;;  %v896_v27 = vld [vmem:[%s7554_s1 + $0x1ad8] sm:$0xff] }
 0x189   :  { %2229 = vmatprep.mubr.f32.mxu1 %v1153_v37  ;;  %v866_v37 = vld [vmem:[%s7554_s1 + $0x19e8] sm:$0xff]  ;;  %v867_v12 = vld [vmem:[%s7554_s1 + $0x19f0] sm:$0xff]  ;;  %v900_v28 = vld [vmem:[%s7554_s1 + $0x1af8] sm:$0xff] }
 0x18a   :  { %3251 = vmatpush1.bf16.msra.mxu0 %v3250_v41  ;;  %v3270_v41 = vpack.c.bf16 %v857_v33, %v853_v32  ;;  %v887_v20 = vld [vmem:[%s7554_s1 + $0x1a90] sm:$0xff]  ;;  %v893_v32 = vld [vmem:[%s7554_s1 + $0x1ac0] sm:$0xff] }
 0x18b   :  { %3763 = vmatpush1.bf16.msra.mxu1 %v3762_v42  ;;  %3253 = vmatprep.subr.bf16.mxu0 %v3252_v43  ;;  %v3782_v42 = vpack.c.bf16 %v859_v62, %v855_v34  ;;  %v3272_v43 = vpack.c.bf16 %v866_v37, %v862_v36  ;;  %v891_v21 = vld [vmem:[%s7554_s1 + $0x1ab0] sm:$0xff]  ;;  %v897_v33 = vld [vmem:[%s7554_s1 + $0x1ae0] sm:$0xff]  ;;  %v902_v36 = vld [vmem:[%s7554_s1 + $0x1b08] sm:$0xff] }
 0x18c   :  { %3765 = vmatprep.subr.bf16.mxu1 %v3764_v47  ;;  %v3784_v47 = vpack.c.bf16 %v868_v40, %v864_v38  ;;  %v895_v34 = vld [vmem:[%s7554_s1 + $0x1ad0] sm:$0xff]  ;;  %v906_v37 = vld [vmem:[%s7554_s1 + $0x1b28] sm:$0xff]  ;;  %v904_v38 = vld [vmem:[%s7554_s1 + $0x1b18] sm:$0xff] }
 0x18d   :  { %v899_v62 = vld [vmem:[%s7554_s1 + $0x1af0] sm:$0xff]  ;;  %v908_v40 = vld [vmem:[%s7554_s1 + $0x1b38] sm:$0xff] }
 0x18e   :  { %3255 = vmatpush1.bf16.msra.mxu0 %v3254_v53  ;;  %v3274_v53 = vpack.c.bf16 %v865_v39, %v861_v44  ;;  %v901_v44 = vld [vmem:[%s7554_s1 + $0x1b00] sm:$0xff] }
 0x18f   :  { %3767 = vmatpush1.bf16.msra.mxu1 %v3766_v54  ;;  %3257 = vmatprep.subr.bf16.mxu0 %v3256_v55  ;;  %v3786_v54 = vpack.c.bf16 %v867_v12, %v863_v46  ;;  %v3276_v55 = vpack.c.bf16 %v874_v48, %v870_v25  ;;  %v905_v39 = vld [vmem:[%s7554_s1 + $0x1b20] sm:$0xff]  ;;  %v903_v46 = vld [vmem:[%s7554_s1 + $0x1b10] sm:$0xff]  ;;  %v910_v25 = vld [vmem:[%s7554_s1 + $0x1b48] sm:$0xff] }
 0x190   :  { %3769 = vmatprep.subr.bf16.mxu1 %v3768_v24  ;;  %v3788_v24 = vpack.c.bf16 %v876_v52, %v872_v49  ;;  %v907_v12 = vld [vmem:[%s7554_s1 + $0x1b30] sm:$0xff]  ;;  %v914_v48 = vld [vmem:[%s7554_s1 + $0x1b68] sm:$0xff]  ;;  %v912_v49 = vld [vmem:[%s7554_s1 + $0x1b58] sm:$0xff] }
 0x191   :  { %v916_v52 = vld [vmem:[%s7554_s1 + $0x1b78] sm:$0xff] }
 0x192   :  { %3259 = vmatpush1.bf16.msra.mxu0 %v3258_v2  ;;  %v3278_v2 = vpack.c.bf16 %v873_v57, %v869_v56  ;;  %v909_v56 = vld [vmem:[%s7554_s1 + $0x1b40] sm:$0xff] }
 0x193   :  { %3771 = vmatpush1.bf16.msra.mxu1 %v3770_v3  ;;  %3261 = vmatprep.subr.bf16.mxu0 %v3260_v4  ;;  %v3790_v3 = vpack.c.bf16 %v875_v59, %v871_v58  ;;  %v3280_v4 = vpack.c.bf16 %v882_v63, %v878_v60  ;;  %v913_v57 = vld [vmem:[%s7554_s1 + $0x1b60] sm:$0xff]  ;;  %v911_v58 = vld [vmem:[%s7554_s1 + $0x1b50] sm:$0xff]  ;;  %v918_v60 = vld [vmem:[%s7554_s1 + $0x1b88] sm:$0xff] }
 0x194   :  { %3773 = vmatprep.subr.bf16.mxu1 %v3772_v7  ;;  %v3792_v7 = vpack.c.bf16 %v884_v1, %v880_v0  ;;  %v915_v59 = vld [vmem:[%s7554_s1 + $0x1b70] sm:$0xff]  ;;  %v922_v63 = vld [vmem:[%s7554_s1 + $0x1ba8] sm:$0xff]  ;;  %v920_v0 = vld [vmem:[%s7554_s1 + $0x1b98] sm:$0xff] }
 0x195   :  { %v924_v1 = vld [vmem:[%s7554_s1 + $0x1bb8] sm:$0xff] }
 0x196   :  { %3263 = vmatpush1.bf16.msra.mxu0 %v3262_v15  ;;  %v3282_v15 = vpack.c.bf16 %v881_v6, %v877_v5  ;;  %v917_v5 = vld [vmem:[%s7554_s1 + $0x1b80] sm:$0xff] }
 0x197   :  { %3775 = vmatpush1.bf16.msra.mxu1 %v3774_v16  ;;  %3265 = vmatprep.subr.bf16.mxu0 %v3264_v17  ;;  %v3794_v16 = vpack.c.bf16 %v883_v8, %v879_v51  ;;  %v3284_v17 = vpack.c.bf16 %v890_v9, %v886_v45  ;;  %v921_v6 = vld [vmem:[%s7554_s1 + $0x1ba0] sm:$0xff]  ;;  %v919_v51 = vld [vmem:[%s7554_s1 + $0x1b90] sm:$0xff]  ;;  %v926_v45 = vld [vmem:[%s7554_s1 + $0x1bc8] sm:$0xff] }
 0x198   :  { %3777 = vmatprep.subr.bf16.mxu1 %v3776_v50  ;;  %v3796_v50 = vpack.c.bf16 %v892_v14, %v888_v10  ;;  %v923_v8 = vld [vmem:[%s7554_s1 + $0x1bb0] sm:$0xff]  ;;  %v930_v9 = vld [vmem:[%s7554_s1 + $0x1be8] sm:$0xff]  ;;  %v928_v10 = vld [vmem:[%s7554_s1 + $0x1bd8] sm:$0xff] }
 0x199   :  { %v932_v14 = vld [vmem:[%s7554_s1 + $0x1bf8] sm:$0xff] }
 0x19a   :  { %3267 = vmatpush1.bf16.msra.mxu0 %v3266_v29  ;;  %v3286_v29 = vpack.c.bf16 %v889_v19, %v885_v18  ;;  %v925_v18 = vld [vmem:[%s7554_s1 + $0x1bc0] sm:$0xff] }
 0x19b   :  { %3779 = vmatpush1.bf16.msra.mxu1 %v3778_v30  ;;  %3269 = vmatprep.subr.bf16.mxu0 %v3268_v31  ;;  %v3798_v30 = vpack.c.bf16 %v891_v21, %v887_v20  ;;  %v3288_v31 = vpack.c.bf16 %v898_v26, %v894_v22  ;;  %v929_v19 = vld [vmem:[%s7554_s1 + $0x1be0] sm:$0xff]  ;;  %v927_v20 = vld [vmem:[%s7554_s1 + $0x1bd0] sm:$0xff]  ;;  %v934_v22 = vld [vmem:[%s7554_s1 + $0x1c08] sm:$0xff] }
 0x19c   :  { %3781 = vmatprep.subr.bf16.mxu1 %v3780_v35  ;;  %v3800_v35 = vpack.c.bf16 %v900_v28, %v896_v27  ;;  %v931_v21 = vld [vmem:[%s7554_s1 + $0x1bf0] sm:$0xff]  ;;  %v938_v26 = vld [vmem:[%s7554_s1 + $0x1c28] sm:$0xff]  ;;  %v1138_v27 = vcombine.high %v6486_v13, %v6486_v13  ;;  %v936_v28 = vld [vmem:[%s7554_s1 + $0x1c18] sm:$0xff] }
 0x19d   :  { %v937_v13 = vld [vmem:[%s7554_s1 + $0x1c20] sm:$0xff] }
 0x19e   :  { %3271 = vmatpush1.bf16.msra.mxu0 %v3270_v41  ;;  %v3290_v41 = vpack.c.bf16 %v897_v33, %v893_v32  ;;  %v3308_v32 = vpack.c.bf16 %v938_v26, %v934_v22  ;;  %v933_v33 = vld [vmem:[%s7554_s1 + $0x1c00] sm:$0xff]  ;;  %v974_v22 = vld [vmem:[%s7554_s1 + $0x1d48] sm:$0xff] }
 0x19f   :  { %3783 = vmatpush1.bf16.msra.mxu1 %v3782_v42  ;;  %3273 = vmatprep.subr.bf16.mxu0 %v3272_v43  ;;  %v3802_v42 = vpack.c.bf16 %v899_v62, %v895_v34  ;;  %v3292_v43 = vpack.c.bf16 %v906_v37, %v902_v36  ;;  %v935_v34 = vld [vmem:[%s7554_s1 + $0x1c10] sm:$0xff]  ;;  %v942_v36 = vld [vmem:[%s7554_s1 + $0x1c48] sm:$0xff] }
 0x1a0   :  { %3785 = vmatprep.subr.bf16.mxu1 %v3784_v47  ;;  %v3804_v47 = vpack.c.bf16 %v908_v40, %v904_v38  ;;  %v939_v62 = vld [vmem:[%s7554_s1 + $0x1c30] sm:$0xff]  ;;  %v946_v37 = vld [vmem:[%s7554_s1 + $0x1c68] sm:$0xff]  ;;  %v6901_v38 = vrot.slane %v1138_v27, %v4377_v11  ;;  %v944_v40 = vld [vmem:[%s7554_s1 + $0x1c58] sm:$0xff] }
 0x1a1   :  { %v945_v11 = vld [vmem:[%s7554_s1 + $0x1c60] sm:$0xff]  ;;  %v978_v26 = vld [vmem:[%s7554_s1 + $0x1d68] sm:$0xff]  ;;  %v976_v27 = vld [vmem:[%s7554_s1 + $0x1d58] sm:$0xff] }
 0x1a2   :  { %3275 = vmatpush1.bf16.msra.mxu0 %v3274_v53  ;;  %v3294_v53 = vpack.c.bf16 %v905_v39, %v901_v44  ;;  %v3312_v44 = vpack.c.bf16 %v946_v37, %v942_v36  ;;  %v941_v39 = vld [vmem:[%s7554_s1 + $0x1c40] sm:$0xff]  ;;  %v986_v36 = vld [vmem:[%s7554_s1 + $0x1da8] sm:$0xff]  ;;  %v984_v37 = vld [vmem:[%s7554_s1 + $0x1d98] sm:$0xff] }
 0x1a3   :  { %3787 = vmatpush1.bf16.msra.mxu1 %v3786_v54  ;;  %3277 = vmatprep.subr.bf16.mxu0 %v3276_v55  ;;  %v3806_v54 = vpack.c.bf16 %v907_v12, %v903_v46  ;;  %v3296_v55 = vpack.c.bf16 %v914_v48, %v910_v25  ;;  %v943_v46 = vld [vmem:[%s7554_s1 + $0x1c50] sm:$0xff]  ;;  %v950_v25 = vld [vmem:[%s7554_s1 + $0x1c88] sm:$0xff] }
 0x1a4   :  { %3789 = vmatprep.subr.bf16.mxu1 %v3788_v24  ;;  %v3808_v24 = vpack.c.bf16 %v916_v52, %v912_v49  ;;  %v947_v12 = vld [vmem:[%s7554_s1 + $0x1c70] sm:$0xff]  ;;  %v954_v48 = vld [vmem:[%s7554_s1 + $0x1ca8] sm:$0xff]  ;;  %v1154_v49 = vcombine.high %v6901_v38, %v6901_v38  ;;  %v952_v52 = vld [vmem:[%s7554_s1 + $0x1c98] sm:$0xff] }
 0x1a6   :  { %3279 = vmatpush1.bf16.msra.mxu0 %v3278_v2  ;;  %v3298_v2 = vpack.c.bf16 %v913_v57, %v909_v56  ;;  %v3316_v56 = vpack.c.bf16 %v954_v48, %v950_v25  ;;  %v949_v57 = vld [vmem:[%s7554_s1 + $0x1c80] sm:$0xff]  ;;  %v994_v25 = vld [vmem:[%s7554_s1 + $0x1de8] sm:$0xff]  ;;  %v992_v48 = vld [vmem:[%s7554_s1 + $0x1dd8] sm:$0xff] }
 0x1a7   :  { %3791 = vmatpush1.bf16.msra.mxu1 %v3790_v3  ;;  %3281 = vmatprep.subr.bf16.mxu0 %v3280_v4  ;;  %v3810_v3 = vpack.c.bf16 %v915_v59, %v911_v58  ;;  %v3300_v4 = vpack.c.bf16 %v922_v63, %v918_v60  ;;  %v953_v58 = vld [vmem:[%s7554_s1 + $0x1ca0] sm:$0xff]  ;;  %v958_v60 = vld [vmem:[%s7554_s1 + $0x1cc8] sm:$0xff] }
 0x1a8   :  { %3793 = vmatprep.subr.bf16.mxu1 %v3792_v7  ;;  %v3812_v7 = vpack.c.bf16 %v924_v1, %v920_v0  ;;  %v962_v63 = vld [vmem:[%s7554_s1 + $0x1ce8] sm:$0xff]  ;;  %v960_v0 = vld [vmem:[%s7554_s1 + $0x1cd8] sm:$0xff] }
 0x1a9   :  { %v964_v1 = vld [vmem:[%s7554_s1 + $0x1cf8] sm:$0xff] }
 0x1aa   :  { %3283 = vmatpush1.bf16.msra.mxu0 %v3282_v15  ;;  %v3302_v15 = vpack.c.bf16 %v921_v6, %v917_v5  ;;  %v957_v5 = vld [vmem:[%s7554_s1 + $0x1cc0] sm:$0xff] }
 0x1ab   :  { %3795 = vmatpush1.bf16.msra.mxu1 %v3794_v16  ;;  %3285 = vmatprep.subr.bf16.mxu0 %v3284_v17  ;;  %v3814_v16 = vpack.c.bf16 %v923_v8, %v919_v51  ;;  %v3304_v17 = vpack.c.bf16 %v930_v9, %v926_v45  ;;  %v961_v6 = vld [vmem:[%s7554_s1 + $0x1ce0] sm:$0xff]  ;;  %v959_v51 = vld [vmem:[%s7554_s1 + $0x1cd0] sm:$0xff]  ;;  %v966_v45 = vld [vmem:[%s7554_s1 + $0x1d08] sm:$0xff] }
 0x1ac   :  { %3797 = vmatprep.subr.bf16.mxu1 %v3796_v50  ;;  %v3816_v50 = vpack.c.bf16 %v932_v14, %v928_v10  ;;  %v963_v8 = vld [vmem:[%s7554_s1 + $0x1cf0] sm:$0xff]  ;;  %v970_v9 = vld [vmem:[%s7554_s1 + $0x1d28] sm:$0xff]  ;;  %v968_v10 = vld [vmem:[%s7554_s1 + $0x1d18] sm:$0xff] }
 0x1ad   :  { %v972_v14 = vld [vmem:[%s7554_s1 + $0x1d38] sm:$0xff] }
 0x1ae   :  { %3287 = vmatpush1.bf16.msra.mxu0 %v3286_v29  ;;  %v940_v29 = vld [vmem:[%s7554_s1 + $0x1c38] sm:$0xff] }
 0x1af   :  { %3799 = vmatpush1.bf16.msra.mxu1 %v3798_v30  ;;  %3289 = vmatprep.subr.bf16.mxu0 %v3288_v31  ;;  %v3306_v30 = vpack.c.bf16 %v929_v19, %v925_v18  ;;  %v3818_v31 = vpack.c.bf16 %v931_v21, %v927_v20  ;;  %v965_v18 = vld [vmem:[%s7554_s1 + $0x1d00] sm:$0xff]  ;;  %v967_v20 = vld [vmem:[%s7554_s1 + $0x1d10] sm:$0xff] }
 0x1b0   :  { %3801 = vmatprep.subr.bf16.mxu1 %v3800_v35  ;;  %v3820_v35 = vpack.c.bf16 %v940_v29, %v936_v28  ;;  %v969_v19 = vld [vmem:[%s7554_s1 + $0x1d20] sm:$0xff]  ;;  %v971_v21 = vld [vmem:[%s7554_s1 + $0x1d30] sm:$0xff]  ;;  %v980_v28 = vld [vmem:[%s7554_s1 + $0x1d78] sm:$0xff] }
 0x1b1   :  { %v3326_v29 = vpack.c.bf16 %v969_v19, %v965_v18  ;;  %v1007_v18 = vld [vmem:[%s7554_s1 + $0x1e50] sm:$0xff] }
 0x1b2   :  { %3291 = vmatpush1.bf16.msra.mxu0 %v3290_v41  ;;  %v948_v41 = vld [vmem:[%s7554_s1 + $0x1c78] sm:$0xff] }
 0x1b3   :  { %3803 = vmatpush1.bf16.msra.mxu1 %v3802_v42  ;;  %3293 = vmatprep.subr.bf16.mxu0 %v3292_v43  ;;  %v3310_v42 = vpack.c.bf16 %v937_v13, %v933_v33  ;;  %v3822_v43 = vpack.c.bf16 %v939_v62, %v935_v34  ;;  %v977_v33 = vld [vmem:[%s7554_s1 + $0x1d60] sm:$0xff]  ;;  %v975_v13 = vld [vmem:[%s7554_s1 + $0x1d50] sm:$0xff]  ;;  %v3840_v34 = vpack.c.bf16 %v980_v28, %v976_v27  ;;  %v982_v62 = vld [vmem:[%s7554_s1 + $0x1d88] sm:$0xff] }
 0x1b4   :  { %3805 = vmatprep.subr.bf16.mxu1 %v3804_v47  ;;  %v3824_v47 = vpack.c.bf16 %v948_v41, %v944_v40  ;;  %v988_v40 = vld [vmem:[%s7554_s1 + $0x1db8] sm:$0xff] }
 0x1b6   :  { %3295 = vmatpush1.bf16.msra.mxu0 %v3294_v53  ;;  %v956_v53 = vld [vmem:[%s7554_s1 + $0x1cb8] sm:$0xff] }
 0x1b7   :  { %3807 = vmatpush1.bf16.msra.mxu1 %v3806_v54  ;;  %3297 = vmatprep.subr.bf16.mxu0 %v3296_v55  ;;  %v3314_v54 = vpack.c.bf16 %v945_v11, %v941_v39  ;;  %v3826_v55 = vpack.c.bf16 %v947_v12, %v943_v46  ;;  %v3828_v59 = vpack.c.bf16 %v956_v53, %v952_v52  ;;  %v985_v39 = vld [vmem:[%s7554_s1 + $0x1da0] sm:$0xff]  ;;  %v983_v11 = vld [vmem:[%s7554_s1 + $0x1d90] sm:$0xff]  ;;  %v990_v12 = vld [vmem:[%s7554_s1 + $0x1dc8] sm:$0xff] }
 0x1b8   :  { %3809 = vmatprep.subr.bf16.mxu1 %v3808_v24  ;;  %v951_v24 = vld [vmem:[%s7554_s1 + $0x1c90] sm:$0xff]  ;;  %v3844_v46 = vpack.c.bf16 %v988_v40, %v984_v37 }
 0x1ba   :  { %3299 = vmatpush1.bf16.msra.mxu0 %v3298_v2  ;;  %v3318_v2 = vpack.c.bf16 %v953_v58, %v949_v57  ;;  %v991_v57 = vld [vmem:[%s7554_s1 + $0x1dd0] sm:$0xff] }
 0x1bb   :  { %3811 = vmatpush1.bf16.msra.mxu1 %v3810_v3  ;;  %3301 = vmatprep.subr.bf16.mxu0 %v3300_v4  ;;  %v3320_v4 = vpack.c.bf16 %v962_v63, %v958_v60  ;;  %v1000_v60 = vld [vmem:[%s7554_s1 + $0x1e18] sm:$0xff] }
 0x1bc   :  { %3813 = vmatprep.subr.bf16.mxu1 %v3812_v7  ;;  %v3832_v7 = vpack.c.bf16 %v964_v1, %v960_v0  ;;  %v1004_v63 = vld [vmem:[%s7554_s1 + $0x1e38] sm:$0xff] }
 0x1be   :  { %3303 = vmatpush1.bf16.msra.mxu0 %v3302_v15  ;;  %v3322_v15 = vpack.c.bf16 %v961_v6, %v957_v5  ;;  %v999_v5 = vld [vmem:[%s7554_s1 + $0x1e10] sm:$0xff]  ;;  %v3852_v6 = vpack.c.bf16 %v1004_v63, %v1000_v60 }
 0x1bf   :  { %3815 = vmatpush1.bf16.msra.mxu1 %v3814_v16  ;;  %3305 = vmatprep.subr.bf16.mxu0 %v3304_v17  ;;  %v3834_v16 = vpack.c.bf16 %v963_v8, %v959_v51  ;;  %v3324_v17 = vpack.c.bf16 %v970_v9, %v966_v45  ;;  %v1003_v51 = vld [vmem:[%s7554_s1 + $0x1e30] sm:$0xff]  ;;  %v1010_v8 = vld [vmem:[%s7554_s1 + $0x1e68] sm:$0xff]  ;;  %v1008_v45 = vld [vmem:[%s7554_s1 + $0x1e58] sm:$0xff] }
 0x1c0   :  { %3817 = vmatprep.subr.bf16.mxu1 %v3816_v50  ;;  %v3836_v50 = vpack.c.bf16 %v972_v14, %v968_v10  ;;  %v1012_v9 = vld [vmem:[%s7554_s1 + $0x1e78] sm:$0xff]  ;;  %v3854_v14 = vpack.c.bf16 %v1003_v51, %v999_v5  ;;  %v1043_v5 = vld [vmem:[%s7554_s1 + $0x1f70] sm:$0xff]  ;;  %v1050_v51 = vld [vmem:[%s7554_s1 + $0x1fa8] sm:$0xff] }
 0x1c1   :  { %v3856_v19 = vpack.c.bf16 %v1012_v9, %v1008_v45 }
 0x1c2   :  { %3307 = vmatpush1.bf16.msra.mxu0 %v3306_v30  ;;  %v3838_v30 = vpack.c.bf16 %v971_v21, %v967_v20  ;;  %v1011_v20 = vld [vmem:[%s7554_s1 + $0x1e70] sm:$0xff]  ;;  %v1018_v21 = vld [vmem:[%s7554_s1 + $0x1ea8] sm:$0xff] }
 0x1c3   :  { %3819 = vmatpush1.bf16.msra.mxu1 %v3818_v31  ;;  %3309 = vmatprep.subr.bf16.mxu0 %v3308_v32  ;;  %v3328_v31 = vpack.c.bf16 %v978_v26, %v974_v22  ;;  %v973_v32 = vld [vmem:[%s7554_s1 + $0x1d40] sm:$0xff]  ;;  %v1016_v22 = vld [vmem:[%s7554_s1 + $0x1e98] sm:$0xff]  ;;  %v3858_v28 = vpack.c.bf16 %v1011_v20, %v1007_v18  ;;  %v1051_v18 = vld [vmem:[%s7554_s1 + $0x1fb0] sm:$0xff] }
 0x1c4   :  { %3821 = vmatprep.subr.bf16.mxu1 %v3820_v35  ;;  %v979_v35 = vld [vmem:[%s7554_s1 + $0x1d70] sm:$0xff]  ;;  %v3330_v41 = vpack.c.bf16 %v977_v33, %v973_v32  ;;  %v1020_v26 = vld [vmem:[%s7554_s1 + $0x1eb8] sm:$0xff]  ;;  %v1058_v20 = vld [vmem:[%s7554_s1 + $0x1fe8] sm:$0xff] }
 0x1c5   :  { %1662 = vmatmul.mubr.f32.vlgmr.msra.gmra.mrb[0].mxu0 %v6508_v23  ;;  %v1015_v32 = vld [vmem:[%s7554_s1 + $0x1e90] sm:$0xff]  ;;  %v3860_v33 = vpack.c.bf16 %v1020_v26, %v1016_v22 }
 0x1c6   :  { %3311 = vmatpush1.bf16.msra.mxu0 %v3310_v42  ;;  %2230 = vmatmul.mubr.f32.vlgmr.msra.gmra.mrb[0].mxu1 %v6508_v23  ;;  %v955_v23 = vld [vmem:[%s7554_s1 + $0x1cb0] sm:$0xff]  ;;  %v3842_v42 = vpack.c.bf16 %v979_v35, %v975_v13  ;;  %v1026_v35 = vld [vmem:[%s7554_s1 + $0x1ee8] sm:$0xff] }
 0x1c7   :  { %3823 = vmatpush1.bf16.msra.mxu1 %v3822_v43  ;;  %3313 = vmatprep.subr.bf16.mxu0 %v3312_v44  ;;  %v3830_v3 = vpack.c.bf16 %v955_v23, %v951_v24  ;;  %v3332_v43 = vpack.c.bf16 %v986_v36, %v982_v62  ;;  %v981_v44 = vld [vmem:[%s7554_s1 + $0x1d80] sm:$0xff]  ;;  %v995_v24 = vld [vmem:[%s7554_s1 + $0x1df0] sm:$0xff]  ;;  %v1002_v23 = vld [vmem:[%s7554_s1 + $0x1e28] sm:$0xff] }
 0x1c8   :  { %3825 = vmatprep.subr.bf16.mxu1 %v3824_v47  ;;  %1732 = vmatprep.mubr.f32.mxu0 %v1154_v49  ;;  %v987_v47 = vld [vmem:[%s7554_s1 + $0x1db0] sm:$0xff]  ;;  %v3334_v52 = vpack.c.bf16 %v985_v39, %v981_v44  ;;  %v3850_v1 = vpack.c.bf16 %v995_v24, %v991_v57  ;;  %v1024_v62 = vld [vmem:[%s7554_s1 + $0x1ed8] sm:$0xff]  ;;  %v1042_v24 = vld [vmem:[%s7554_s1 + $0x1f68] sm:$0xff] }
 0x1c9   :  { %2300 = vmatprep.mubr.f32.mxu1 %v1154_v49  ;;  %v996_v49 = vld [vmem:[%s7554_s1 + $0x1df8] sm:$0xff]  ;;  %v3846_v53 = vpack.c.bf16 %v987_v47, %v983_v11  ;;  %v1019_v13 = vld [vmem:[%s7554_s1 + $0x1eb0] sm:$0xff]  ;;  %v1034_v47 = vld [vmem:[%s7554_s1 + $0x1f28] sm:$0xff] }
 0x1ca   :  { %3315 = vmatpush1.bf16.msra.mxu0 %v3314_v54  ;;  %v3336_v54 = vpack.c.bf16 %v994_v25, %v990_v12  ;;  %v3848_v58 = vpack.c.bf16 %v996_v49, %v992_v48  ;;  %v1028_v36 = vld [vmem:[%s7554_s1 + $0x1ef8] sm:$0xff]  ;;  %v3862_v40 = vpack.c.bf16 %v1019_v13, %v1015_v32  ;;  %v1023_v44 = vld [vmem:[%s7554_s1 + $0x1ed0] sm:$0xff]  ;;  %v2328_v13 = vld [vmem:[%s7556_s3 + $0x88] sm:$0xff] }
 0x1cb   :  { %3827 = vmatpush1.bf16.msra.mxu1 %v3826_v55  ;;  %3317 = vmatprep.subr.bf16.mxu0 %v3316_v56  ;;  %v989_v55 = vld [vmem:[%s7554_s1 + $0x1dc0] sm:$0xff]  ;;  %v3864_v39 = vpack.c.bf16 %v1028_v36, %v1024_v62  ;;  %v1027_v11 = vld [vmem:[%s7554_s1 + $0x1ef0] sm:$0xff]  ;;  %v1032_v12 = vld [vmem:[%s7554_s1 + $0x1f18] sm:$0xff] }
 0x1cc   :  { %3829 = vmatprep.subr.bf16.mxu1 %v3828_v59  ;;  %v993_v56 = vld [vmem:[%s7554_s1 + $0x1de0] sm:$0xff]  ;;  %v998_v59 = vld [vmem:[%s7554_s1 + $0x1e08] sm:$0xff]  ;;  %v1036_v25 = vld [vmem:[%s7554_s1 + $0x1f38] sm:$0xff]  ;;  %v3866_v49 = vpack.c.bf16 %v1027_v11, %v1023_v44 }
 0x1cd   :  { %v3338_v0 = vpack.c.bf16 %v993_v56, %v989_v55  ;;  %v1031_v55 = vld [vmem:[%s7554_s1 + $0x1f10] sm:$0xff]  ;;  %v3868_v56 = vpack.c.bf16 %v1036_v25, %v1032_v12  ;;  %v2344_v44 = vld [vmem:[%s7556_s3 + $0x108] sm:$0xff]  ;;  %v2330_v11 = vld [vmem:[%s7556_s3 + $0x98] sm:$0xff] }
 0x1ce   :  { %3319 = vmatpush1.bf16.msra.mxu0 %v3318_v2  ;;  %v3340_v2 = vpack.c.bf16 %v1002_v23, %v998_v59  ;;  %v1035_v57 = vld [vmem:[%s7554_s1 + $0x1f30] sm:$0xff]  ;;  %v1040_v59 = vld [vmem:[%s7554_s1 + $0x1f58] sm:$0xff] }
 0x1cf   :  { %3831 = vmatpush1.bf16.msra.mxu1 %v3830_v3  ;;  %3321 = vmatprep.subr.bf16.mxu0 %v3320_v4  ;;  %v997_v3 = vld [vmem:[%s7554_s1 + $0x1e00] sm:$0xff]  ;;  %v1044_v23 = vld [vmem:[%s7554_s1 + $0x1f78] sm:$0xff]  ;;  %v3870_v63 = vpack.c.bf16 %v1035_v57, %v1031_v55  ;;  %v1059_v32 = vld [vmem:[%s7554_s1 + $0x1ff0] sm:$0xff] }
 0x1d0   :  { %3833 = vmatprep.subr.bf16.mxu1 %v3832_v7  ;;  %v1001_v4 = vld [vmem:[%s7554_s1 + $0x1e20] sm:$0xff]  ;;  %v1006_v7 = vld [vmem:[%s7554_s1 + $0x1e48] sm:$0xff]  ;;  %v2346_v55 = vld [vmem:[%s7556_s3 + $0x118] sm:$0xff] }
 0x1d1   :  { %v3342_v10 = vpack.c.bf16 %v1001_v4, %v997_v3  ;;  %v1039_v3 = vld [vmem:[%s7554_s1 + $0x1f50] sm:$0xff]  ;;  %v3872_v4 = vpack.c.bf16 %v1044_v23, %v1040_v59  ;;  %v2332_v57 = vld [vmem:[%s7556_s3 + $0xa8] sm:$0xff] }
 0x1d2   :  { %3323 = vmatpush1.bf16.msra.mxu0 %v3322_v15  ;;  %v3344_v15 = vpack.c.bf16 %v1010_v8, %v1006_v7  ;;  %v1048_v7 = vld [vmem:[%s7554_s1 + $0x1f98] sm:$0xff]  ;;  %v3874_v9 = vpack.c.bf16 %v1043_v5, %v1039_v3  ;;  %v2333_v3 = vld [vmem:[%s7556_s3 + $0xb0] sm:$0xff] }
 0x1d3   :  { %3835 = vmatpush1.bf16.msra.mxu1 %v3834_v16  ;;  %3325 = vmatprep.subr.bf16.mxu0 %v3324_v17  ;;  %v1005_v16 = vld [vmem:[%s7554_s1 + $0x1e40] sm:$0xff]  ;;  %v1052_v8 = vld [vmem:[%s7554_s1 + $0x1fb8] sm:$0xff]  ;;  %v2365_v5 = vld [vmem:[%s7556_s3 + $0x1b0] sm:$0xff] }
 0x1d4   :  { %3837 = vmatprep.subr.bf16.mxu1 %v3836_v50  ;;  %v1009_v17 = vld [vmem:[%s7554_s1 + $0x1e60] sm:$0xff]  ;;  %v1014_v50 = vld [vmem:[%s7554_s1 + $0x1e88] sm:$0xff] }
 0x1d5   :  { %v3346_v27 = vpack.c.bf16 %v1009_v17, %v1005_v16  ;;  %v1047_v16 = vld [vmem:[%s7554_s1 + $0x1f90] sm:$0xff]  ;;  %v3876_v17 = vpack.c.bf16 %v1052_v8, %v1048_v7 }
 0x1d6   :  { %3327 = vmatpush1.bf16.msra.mxu0 %v3326_v29  ;;  %v3348_v29 = vpack.c.bf16 %v1018_v21, %v1014_v50  ;;  %v1056_v50 = vld [vmem:[%s7554_s1 + $0x1fd8] sm:$0xff]  ;;  %v3878_v26 = vpack.c.bf16 %v1051_v18, %v1047_v16  ;;  %v2335_v16 = vld [vmem:[%s7556_s3 + $0xc0] sm:$0xff] }
 0x1d7   :  { %3839 = vmatpush1.bf16.msra.mxu1 %v3838_v30  ;;  %3329 = vmatprep.subr.bf16.mxu0 %v3328_v31  ;;  %v1013_v30 = vld [vmem:[%s7554_s1 + $0x1e80] sm:$0xff]  ;;  %v1060_v21 = vld [vmem:[%s7554_s1 + $0x1ff8] sm:$0xff] }
 0x1d8   :  { %3841 = vmatprep.subr.bf16.mxu1 %v3840_v34  ;;  %v1017_v31 = vld [vmem:[%s7554_s1 + $0x1ea0] sm:$0xff]  ;;  %v1022_v34 = vld [vmem:[%s7554_s1 + $0x1ec8] sm:$0xff] }
 0x1d9   :  { %v3350_v37 = vpack.c.bf16 %v1017_v31, %v1013_v30  ;;  %v1055_v30 = vld [vmem:[%s7554_s1 + $0x1fd0] sm:$0xff]  ;;  %v3880_v31 = vpack.c.bf16 %v1060_v21, %v1056_v50  ;;  %v2367_v18 = vld [vmem:[%s7556_s3 + $0x1c0] sm:$0xff] }
 0x1da   :  { %3331 = vmatpush1.bf16.msra.mxu0 %v3330_v41  ;;  %v3352_v41 = vpack.c.bf16 %v1026_v35, %v1022_v34  ;;  %v2359_v34 = vld [vmem:[%s7556_s3 + $0x180] sm:$0xff]  ;;  %v2360_v35 = vld [vmem:[%s7556_s3 + $0x188] sm:$0xff]  ;;  %v3882_v36 = vpack.c.bf16 %v1059_v32, %v1055_v30  ;;  %v2337_v30 = vld [vmem:[%s7556_s3 + $0xd0] sm:$0xff] }
 0x1db   :  { %3843 = vmatpush1.bf16.msra.mxu1 %v3842_v42  ;;  %3333 = vmatprep.subr.bf16.mxu0 %v3332_v43  ;;  %v1021_v42 = vld [vmem:[%s7554_s1 + $0x1ec0] sm:$0xff]  ;;  %v2369_v32 = vld [vmem:[%s7556_s3 + $0x1d0] sm:$0xff] }
 0x1dc   :  { %3845 = vmatprep.subr.bf16.mxu1 %v3844_v46  ;;  %v1025_v43 = vld [vmem:[%s7554_s1 + $0x1ee0] sm:$0xff]  ;;  %v1030_v46 = vld [vmem:[%s7554_s1 + $0x1f08] sm:$0xff] }
 0x1dd   :  { %v3354_v48 = vpack.c.bf16 %v1025_v43, %v1021_v42  ;;  %v2343_v42 = vld [vmem:[%s7556_s3 + $0x100] sm:$0xff]  ;;  %v3916_v43 = vpack.c.bf16 %v2360_v35, %v2359_v34 }
 0x1de   :  { %3335 = vmatpush1.bf16.msra.mxu0 %v3334_v52  ;;  %v3356_v52 = vpack.c.bf16 %v1034_v47, %v1030_v46  ;;  %v2361_v46 = vld [vmem:[%s7556_s3 + $0x190] sm:$0xff]  ;;  %v2362_v47 = vld [vmem:[%s7556_s3 + $0x198] sm:$0xff]  ;;  %v3918_v25 = vpack.c.bf16 %v2344_v44, %v2343_v42  ;;  %v2339_v42 = vld [vmem:[%s7556_s3 + $0xe0] sm:$0xff] }
 0x1df   :  { %3847 = vmatpush1.bf16.msra.mxu1 %v3846_v53  ;;  %3337 = vmatprep.subr.bf16.mxu0 %v3336_v54  ;;  %v1029_v53 = vld [vmem:[%s7554_s1 + $0x1f00] sm:$0xff] }
 0x1e0   :  { %3849 = vmatprep.subr.bf16.mxu1 %v3848_v58  ;;  %v1033_v54 = vld [vmem:[%s7554_s1 + $0x1f20] sm:$0xff]  ;;  %v1038_v58 = vld [vmem:[%s7554_s1 + $0x1f48] sm:$0xff] }
 0x1e1   :  { %v3358_v60 = vpack.c.bf16 %v1033_v54, %v1029_v53  ;;  %v2345_v53 = vld [vmem:[%s7556_s3 + $0x110] sm:$0xff]  ;;  %v3920_v54 = vpack.c.bf16 %v2362_v47, %v2361_v46  ;;  %v2371_v44 = vld [vmem:[%s7556_s3 + $0x1e0] sm:$0xff] }
 0x1e2   :  { %3339 = vmatpush1.bf16.msra.mxu0 %v3338_v0  ;;  %v3360_v0 = vpack.c.bf16 %v1042_v24, %v1038_v58  ;;  %v2363_v58 = vld [vmem:[%s7556_s3 + $0x1a0] sm:$0xff]  ;;  %v2364_v24 = vld [vmem:[%s7556_s3 + $0x1a8] sm:$0xff]  ;;  %v3922_v23 = vpack.c.bf16 %v2346_v55, %v2345_v53  ;;  %v2341_v55 = vld [vmem:[%s7556_s3 + $0xf0] sm:$0xff] }
 0x1e3   :  { %3851 = vmatpush1.bf16.msra.mxu1 %v3850_v1  ;;  %3341 = vmatprep.subr.bf16.mxu0 %v3340_v2  ;;  %v1037_v1 = vld [vmem:[%s7554_s1 + $0x1f40] sm:$0xff]  ;;  %v2356_v53 = vld [vmem:[%s7556_s3 + $0x168] sm:$0xff] }
 0x1e4   :  { %3853 = vmatprep.subr.bf16.mxu1 %v3852_v6  ;;  %v1041_v2 = vld [vmem:[%s7554_s1 + $0x1f60] sm:$0xff]  ;;  %v1046_v6 = vld [vmem:[%s7554_s1 + $0x1f88] sm:$0xff] }
 0x1e5   :  { %v3362_v45 = vpack.c.bf16 %v1041_v2, %v1037_v1  ;;  %v2347_v1 = vld [vmem:[%s7556_s3 + $0x120] sm:$0xff]  ;;  %v2348_v2 = vld [vmem:[%s7556_s3 + $0x128] sm:$0xff] }
 0x1e6   :  { %3343 = vmatpush1.bf16.msra.mxu0 %v3342_v10  ;;  %v3364_v10 = vpack.c.bf16 %v1050_v51, %v1046_v6  ;;  %v2366_v6 = vld [vmem:[%s7556_s3 + $0x1b8] sm:$0xff]  ;;  %v3926_v7 = vpack.c.bf16 %v2348_v2, %v2347_v1  ;;  %v4044_v2 = vmov 0.0|0.0  }
 0x1e7   :  { %3855 = vmatpush1.bf16.msra.mxu1 %v3854_v14  ;;  %3345 = vmatprep.subr.bf16.mxu0 %v3344_v15  ;;  %v1045_v14 = vld [vmem:[%s7554_s1 + $0x1f80] sm:$0xff]  ;;  %v2358_v1 = vld [vmem:[%s7556_s3 + $0x178] sm:$0xff] }
 0x1e8   :  { %3857 = vmatprep.subr.bf16.mxu1 %v3856_v19  ;;  %v1049_v15 = vld [vmem:[%s7554_s1 + $0x1fa0] sm:$0xff]  ;;  %v1054_v19 = vld [vmem:[%s7554_s1 + $0x1fc8] sm:$0xff] }
 0x1e9   :  { %v3366_v22 = vpack.c.bf16 %v1049_v15, %v1045_v14  ;;  %v3928_v14 = vpack.c.bf16 %v2366_v6, %v2365_v5  ;;  %v2350_v15 = vld [vmem:[%s7556_s3 + $0x138] sm:$0xff]  ;;  %v1073_v5 = vsub.s32 2, %v4350_v61  ;;  %v1069_v6 = vsub.s32 1, %v4350_v61 }
 0x1ea   :  { %3347 = vmatpush1.bf16.msra.mxu0 %v3346_v27  ;;  %v3368_v27 = vpack.c.bf16 %v1058_v20, %v1054_v19  ;;  %v2368_v19 = vld [vmem:[%s7556_s3 + $0x1c8] sm:$0xff] }
 0x1eb   :  { %3859 = vmatpush1.bf16.msra.mxu1 %v3858_v28  ;;  %3349 = vmatprep.subr.bf16.mxu0 %v3348_v29  ;;  %v1053_v28 = vld [vmem:[%s7554_s1 + $0x1fc0] sm:$0xff] }
 0x1ec   :  { %3861 = vmatprep.subr.bf16.mxu1 %v3860_v33  ;;  %v1057_v29 = vld [vmem:[%s7554_s1 + $0x1fe0] sm:$0xff] }
 0x1ed   :  { %v2327_v33 = vld [vmem:[%s7556_s3 + $0x80] sm:$0xff]  ;;  %v3370_v62 = vpack.c.bf16 %v1057_v29, %v1053_v28  ;;  %v3932_v28 = vpack.c.bf16 %v2368_v19, %v2367_v18  ;;  %v2352_v29 = vld [vmem:[%s7556_s3 + $0x148] sm:$0xff] }
 0x1ee   :  { %3351 = vmatpush1.bf16.msra.mxu0 %v3350_v37  ;;  %v3884_v37 = vpack.c.bf16 %v2328_v13, %v2327_v33  ;;  %v2370_v33 = vld [vmem:[%s7556_s3 + $0x1d8] sm:$0xff]  ;;  %v2524_v18 = vld [vmem:[%s7558_s5 + $0x8] sm:$0xff] }
 0x1ef   :  { %3863 = vmatpush1.bf16.msra.mxu1 %v3862_v40  ;;  %3353 = vmatprep.subr.bf16.mxu0 %v3352_v41  ;;  %v2311_v40 = vld [vmem:[%s7556_s3] sm:$0xff]  ;;  %v2312_v41 = vld [vmem:[%s7556_s3 + $0x8] sm:$0xff] }
 0x1f0   :  { %3865 = vmatprep.subr.bf16.mxu1 %v3864_v39  ;;  %v2329_v39 = vld [vmem:[%s7556_s3 + $0x90] sm:$0xff]  ;;  %v3886_v12 = vpack.c.bf16 %v2312_v41, %v2311_v40  ;;  %v3936_v40 = vpack.c.bf16 %v2370_v33, %v2369_v32  ;;  %v2354_v41 = vld [vmem:[%s7556_s3 + $0x158] sm:$0xff]  ;;  %v2527_v32 = vld [vmem:[%s7558_s5 + $0x20] sm:$0xff] }
 0x1f1   :  { %v2528_v33 = vld [vmem:[%s7558_s5 + $0x28] sm:$0xff] }
 0x1f2   :  { %3355 = vmatpush1.bf16.msra.mxu0 %v3354_v48  ;;  %v3888_v48 = vpack.c.bf16 %v2330_v11, %v2329_v39  ;;  %v2372_v39 = vld [vmem:[%s7556_s3 + $0x1e8] sm:$0xff] }
 0x1f3   :  { %3867 = vmatpush1.bf16.msra.mxu1 %v3866_v49  ;;  %3357 = vmatprep.subr.bf16.mxu0 %v3356_v52  ;;  %v2313_v49 = vld [vmem:[%s7556_s3 + $0x10] sm:$0xff]  ;;  %v2314_v52 = vld [vmem:[%s7556_s3 + $0x18] sm:$0xff] }
 0x1f4   :  { %3869 = vmatprep.subr.bf16.mxu1 %v3868_v56  ;;  %v2331_v56 = vld [vmem:[%s7556_s3 + $0xa0] sm:$0xff]  ;;  %v3890_v59 = vpack.c.bf16 %v2314_v52, %v2313_v49 }
 0x1f5   :  { %v2355_v49 = vld [vmem:[%s7556_s3 + $0x160] sm:$0xff] }
 0x1f6   :  { %3359 = vmatpush1.bf16.msra.mxu0 %v3358_v60  ;;  %v3892_v60 = vpack.c.bf16 %v2332_v57, %v2331_v56  ;;  %v2342_v56 = vld [vmem:[%s7556_s3 + $0xf8] sm:$0xff]  ;;  %v2373_v57 = vld [vmem:[%s7556_s3 + $0x1f0] sm:$0xff] }
 0x1f7   :  { %3871 = vmatpush1.bf16.msra.mxu1 %v3870_v63  ;;  %3361 = vmatprep.subr.bf16.mxu0 %v3360_v0  ;;  %v2315_v63 = vld [vmem:[%s7556_s3 + $0x20] sm:$0xff]  ;;  %v2316_v0 = vld [vmem:[%s7556_s3 + $0x28] sm:$0xff] }
 0x1f8   :  { %3873 = vmatprep.subr.bf16.mxu1 %v3872_v4  ;;  %v2334_v4 = vld [vmem:[%s7556_s3 + $0xb8] sm:$0xff]  ;;  %v3894_v51 = vpack.c.bf16 %v2316_v0, %v2315_v63  ;;  %v2357_v0 = vld [vmem:[%s7556_s3 + $0x170] sm:$0xff] }
 0x1f9   :  { %v3896_v8 = vpack.c.bf16 %v2334_v4, %v2333_v3  ;;  %v1065_v3 = vsub.s32 0, %v4350_v61  ;;  %v1061_v4 = vld [vmem:[%s7555_s2] sm:$0xf] }
 0x1fa   :  { %3363 = vmatpush1.bf16.msra.mxu0 %v3362_v45  ;;  %v2317_v45 = vld [vmem:[%s7556_s3 + $0x30] sm:$0xff] }
 0x1fb   :  { %3875 = vmatpush1.bf16.msra.mxu1 %v3874_v9  ;;  %3365 = vmatprep.subr.bf16.mxu0 %v3364_v10  ;;  %v2318_v9 = vld [vmem:[%s7556_s3 + $0x38] sm:$0xff]  ;;  %v2349_v10 = vld [vmem:[%s7556_s3 + $0x130] sm:$0xff] }
 0x1fc   :  { %3877 = vmatprep.subr.bf16.mxu1 %v3876_v17  ;;  %v2336_v17 = vld [vmem:[%s7556_s3 + $0xc8] sm:$0xff]  ;;  %v3898_v20 = vpack.c.bf16 %v2318_v9, %v2317_v45  ;;  %v3930_v50 = vpack.c.bf16 %v2350_v15, %v2349_v10  ;;  %v1070_v45 = vrot.slane %v1061_v4, %v1069_v6  ;;  %v2720_v6 = vld [vmem:[%s7561_s8] ss:$0 sm:$0xff] }
 0x1fd   :  { %v3900_v21 = vpack.c.bf16 %v2336_v17, %v2335_v16  ;;  %v2523_v17 = vld [vmem:[%s7558_s5] sm:$0xff] }
 0x1fe   :  { %3367 = vmatpush1.bf16.msra.mxu0 %v3366_v22  ;;  %v2319_v22 = vld [vmem:[%s7556_s3 + $0x40] sm:$0xff] }
 0x1ff   :  { %3879 = vmatpush1.bf16.msra.mxu1 %v3878_v26  ;;  %3369 = vmatprep.subr.bf16.mxu0 %v3368_v27  ;;  %v2320_v26 = vld [vmem:[%s7556_s3 + $0x48] sm:$0xff]  ;;  %v2351_v27 = vld [vmem:[%s7556_s3 + $0x140] sm:$0xff] }
 0x200   :  { %3881 = vmatprep.subr.bf16.mxu1 %v3880_v31  ;;  %v2338_v31 = vld [vmem:[%s7556_s3 + $0xd8] sm:$0xff]  ;;  %v3902_v13 = vpack.c.bf16 %v2320_v26, %v2319_v22  ;;  %v3934_v34 = vpack.c.bf16 %v2352_v29, %v2351_v27  ;;  %v3949_v22 = vpack.c.bf16 %v2524_v18, %v2523_v17 }
 0x201   :  { %v3904_v35 = vpack.c.bf16 %v2338_v31, %v2337_v30  ;;  %v2526_v29 = vld [vmem:[%s7558_s5 + $0x18] sm:$0xff] }
 0x202   :  { %3371 = vmatpush1.bf16.msra.mxu0 %v3370_v62  ;;  %v2321_v62 = vld [vmem:[%s7556_s3 + $0x50] sm:$0xff] }
 0x203   :  { %3883 = vmatpush1.bf16.msra.mxu1 %v3882_v36  ;;  %3885 = vmatprep.subr.bf16.mxu0 %v3884_v37  ;;  %v2322_v36 = vld [vmem:[%s7556_s3 + $0x58] sm:$0xff]  ;;  %v2353_v37 = vld [vmem:[%s7556_s3 + $0x150] sm:$0xff] }
 0x204   :  { %3917 = vmatprep.subr.bf16.mxu1 %v3916_v43  ;;  %v2340_v43 = vld [vmem:[%s7556_s3 + $0xe8] sm:$0xff]  ;;  %v3906_v11 = vpack.c.bf16 %v2322_v36, %v2321_v62  ;;  %v3938_v46 = vpack.c.bf16 %v2354_v41, %v2353_v37  ;;  %v2531_v36 = vld [vmem:[%s7558_s5 + $0x40] sm:$0xff]  ;;  %v2533_v41 = vld [vmem:[%s7558_s5 + $0x50] sm:$0xff] }
 0x205   :  { %1733 = vmatmul.mubr.f32.vlgmr.msra.gmra.mrb[0].mxu0 %v6901_v38  ;;  %v3908_v47 = vpack.c.bf16 %v2340_v43, %v2339_v42  ;;  %v2532_v37 = vld [vmem:[%s7558_s5 + $0x48] sm:$0xff]  ;;  %v2534_v42 = vld [vmem:[%s7558_s5 + $0x58] sm:$0xff] }
 0x206   :  { %2301 = vmatmul.mubr.f32.vlgmr.msra.gmra.mrb[0].mxu1 %v6901_v38  ;;  %3887 = vmatpush3.bf16.msra.mxu0 %v3886_v12  ;;  %v3924_v38 = vpack.c.bf16 %v2364_v24, %v2363_v58  ;;  %v3940_v12 = vpack.c.bf16 %v2372_v39, %v2371_v44  ;;  %v3912_v58 = vpack.c.bf16 %v2342_v56, %v2341_v55  ;;  %v2374_v24 = vld [vmem:[%s7556_s3 + $0x1f8] sm:$0xff]  ;;  %v2535_v44 = vld [vmem:[%s7558_s5 + $0x60] sm:$0xff]  ;;  %v2536_v39 = vld [vmem:[%s7558_s5 + $0x68] sm:$0xff] }
 0x207   :  { %3919 = vmatpush3.bf16.msra.mxu1 %v3918_v25  ;;  %3889 = vmatprep.subr.bf16.mxu0 %v3888_v48  ;;  %v2323_v25 = vld [vmem:[%s7556_s3 + $0x60] sm:$0xff]  ;;  %v2324_v48 = vld [vmem:[%s7556_s3 + $0x68] sm:$0xff]  ;;  %v3964_v43 = vpack.c.bf16 %v2534_v42, %v2533_v41 }
 0x208   :  { %3921 = vmatprep.subr.bf16.mxu1 %v3920_v54  ;;  %v3910_v52 = vpack.c.bf16 %v2324_v48, %v2323_v25  ;;  %v3942_v54 = vpack.c.bf16 %v2356_v53, %v2355_v49  ;;  %v4046_v25 = vmov 0.0   ;;  %v2617_v48 = vld [vmem:[%s7560_s7] sm:$0xff]  ;;  %v2618_v49 = vld [vmem:[%s7560_s7 + $0x8] sm:$0xff] }
 0x209   :  { %v2718_v55 = vld [vmem:[%s7557_s4] ss:$0 sm:$0xff] }
 0x20a   :  { %3891 = vmatpush3.bf16.msra.mxu0 %v3890_v59  ;;  %v2325_v59 = vld [vmem:[%s7556_s3 + $0x70] sm:$0xff] }
 0x20b   :  { %3923 = vmatpush3.bf16.msra.mxu1 %v3922_v23  ;;  %3893 = vmatprep.subr.bf16.mxu0 %v3892_v60  ;;  %v2326_v23 = vld [vmem:[%s7556_s3 + $0x78] sm:$0xff]  ;;  %v3944_v60 = vpack.c.bf16 %v2374_v24, %v2373_v57 }
 0x20c   :  { %3925 = vmatprep.subr.bf16.mxu1 %v3924_v38  ;;  %v3914_v63 = vpack.c.bf16 %v2326_v23, %v2325_v59  ;;  %v3946_v38 = vpack.c.bf16 %v2358_v1, %v2357_v0  ;;  %v2620_v0 = vld [vmem:[%s7560_s7 + $0x18] sm:$0xff] }
 0x20e   :  { %3895 = vmatpush3.bf16.msra.mxu0 %v3894_v51  ;;  %v1077_v51 = vsub.s32 3, %v4350_v61 }
 0x20f   :  { %3927 = vmatpush3.bf16.msra.mxu1 %v3926_v7  ;;  %3897 = vmatprep.subr.bf16.mxu0 %v3896_v8  ;;  %v1066_v7 = vrot.slane %v1061_v4, %v1065_v3  ;;  %v1074_v8 = vrot.slane %v1061_v4, %v1073_v5 }
 0x210   :  { %3929 = vmatprep.subr.bf16.mxu1 %v3928_v14  ;;  %v1078_v9 = vrot.slane %v1061_v4, %v1077_v51 }
 0x212   :  { %3899 = vmatpush3.bf16.msra.mxu0 %v3898_v20 }
 0x213   :  { %3931 = vmatpush3.bf16.msra.mxu1 %v3930_v50  ;;  %3901 = vmatprep.subr.bf16.mxu0 %v3900_v21 }
 0x214   :  { %3933 = vmatprep.subr.bf16.mxu1 %v3932_v28  ;;  %v2525_v28 = vld [vmem:[%s7558_s5 + $0x10] sm:$0xff] }
 0x215   :  { %v3952_v31 = vpack.c.bf16 %v2526_v29, %v2525_v28 }
 0x216   :  { %3903 = vmatpush3.bf16.msra.mxu0 %v3902_v13  ;;  %v3955_v13 = vpack.c.bf16 %v2528_v33, %v2527_v32 }
 0x217   :  { %3935 = vmatpush3.bf16.msra.mxu1 %v3934_v34  ;;  %3905 = vmatprep.subr.bf16.mxu0 %v3904_v35  ;;  %v2529_v34 = vld [vmem:[%s7558_s5 + $0x30] sm:$0xff]  ;;  %v2530_v35 = vld [vmem:[%s7558_s5 + $0x38] sm:$0xff] }
 0x218   :  { %3937 = vmatprep.subr.bf16.mxu1 %v3936_v40  ;;  %v3958_v62 = vpack.c.bf16 %v2530_v35, %v2529_v34  ;;  %v3961_v40 = vpack.c.bf16 %v2532_v37, %v2531_v36 }
 0x21a   :  { %3907 = vmatpush3.bf16.msra.mxu0 %v3906_v11  ;;  %v3967_v11 = vpack.c.bf16 %v2536_v39, %v2535_v44 }
 0x21b   :  { %3939 = vmatpush3.bf16.msra.mxu1 %v3938_v46  ;;  %3909 = vmatprep.subr.bf16.mxu0 %v3908_v47  ;;  %v2537_v46 = vld [vmem:[%s7558_s5 + $0x70] sm:$0xff]  ;;  %v2538_v47 = vld [vmem:[%s7558_s5 + $0x78] sm:$0xff] }
 0x21c   :  { %3941 = vmatprep.subr.bf16.mxu1 %v3940_v12  ;;  %v3970_v12 = vpack.c.bf16 %v2538_v47, %v2537_v46 }
 0x21e   :  { %3911 = vmatpush3.bf16.msra.mxu0 %v3910_v52  ;;  %v3973_v52 = vpack.c.bf16 %v2618_v49, %v2617_v48 }
 0x21f   :  { %3943 = vmatpush3.bf16.msra.mxu1 %v3942_v54  ;;  %3913 = vmatprep.subr.bf16.mxu0 %v3912_v58 }
 0x220   :  { %3945 = vmatprep.subr.bf16.mxu1 %v3944_v60 }
 0x222   :  { %3915 = vmatpush3.bf16.msra.mxu0 %v3914_v63  ;;  %v2619_v63 = vld [vmem:[%s7560_s7 + $0x10] sm:$0xff]  ;;  %s4019_s7 = scalar_lea.vmem %s2711_s13, 32 }
 0x223   :  { %3947 = vmatpush3.bf16.msra.mxu1 %v3946_v38  ;;  %3948 = vmatprep.subr.bf16.mxu0 %v4044_v2  ;;  %v3976_v1 = vpack.c.bf16 %v2620_v0, %v2619_v63  ;;  %v2719_v38 = vld [vmem:[%s7559_s6] ss:$0 sm:$0xff]  ;;  %p4020_p0 = scmp.ne.s32.totalorder %s2711_s13, %s4019_s7  ;;  %p4025_p2 = scmp.lt.s32.totalorder %s4019_s7, %s4019_s7 }
 0x224   :  { %3972 = vmatprep.subr.bf16.mxu1 %v4044_v2 }
 0x225   :  { %p4026_p3 = por %p4025_p2, %p4024_p1 }
 0x227   :  { %p4027_p4 = pnand %p4026_p3, %p4020_p0 }
 0x2d8   :  { %v1734_v10 = vpop.f32.mrb[0].mxu0 }
 0x2d9   :  { %v3978_v14 = vadd.f32 %v1734_v10, %v1066_v7  ;;  %v2302_v15 = vpop.f32.mrb[0].mxu1  ;;  %v1736_v16 = vpop.f32.mrb[1].mxu0 }
 0x2da   :  { %v3980_v19 = vadd.f32 %v2302_v15, %v1074_v8  ;;  %v3979_v20 = vadd.f32 %v1736_v16, %v1070_v45  ;;  %v2304_v50 = vpop.f32.mrb[1].mxu1 }
 0x2db   :  { %v3981_v61 = vadd.f32 %v2304_v50, %v1078_v9  ;;  %v2307_v26 = vmax.f32 %v3978_v14, 0.0 }
 0x2dc   :  { %v2308_v21 = vmax.f32 %v3979_v20, 0.0  ;;  %v2309_v30 = vmax.f32 %v3980_v19, 0.0 }
 0x2dd   :  { %v2310_v27 = vmax.f32 %v3981_v61, 0.0 }
 0x2de   :  { %2446 = vmatprep.mubr.f32.mxu0 %v2308_v21 }
 0x2df   :  { %2516 = vmatprep.mubr.f32.mxu1 %v2310_v27  ;;  %2447 = vmatmul.mubr.f32.vlgmr.msra.gmra.mrb[2].mxu0 %v2307_v26 }
 0x2e0   :  { %2517 = vmatmul.mubr.f32.vlgmr.msra.gmra.mrb[2].mxu1 %v2309_v30  ;;  %3950 = vmatpush3.bf16.msra.mxu0 %v3949_v22 }
 0x2e1   :  { %3951 = vmatprep.subr.bf16.mxu0 %v4044_v2  ;;  %2846 = vmatprep.mubr.msk.f32.mxu0 %vm4045_vm0, %v4046_v25 }
 0x2e2   :  { %2857 = vmatprep.mubr.msk.f32.mxu1 %vm4045_vm0, %v4046_v25  ;;  %3974 = vmatpush3.bf16.msra.mxu1 %v3973_v52 }
 0x2e3   :  { %3975 = vmatprep.subr.bf16.mxu1 %v4044_v2 }
 0x2e4   :  { %3953 = vmatpush3.bf16.msra.mxu0 %v3952_v31 }
 0x2e5   :  { %3954 = vmatprep.subr.bf16.mxu0 %v4044_v2 }
 0x2e6   :  { %3977 = vmatpush3.bf16.msra.mxu1 %v3976_v1 }
 0x2e8   :  { %3956 = vmatpush3.bf16.msra.mxu0 %v3955_v13 }
 0x2e9   :  { %3957 = vmatprep.subr.bf16.mxu0 %v4044_v2 }
 0x2ec   :  { %3959 = vmatpush3.bf16.msra.mxu0 %v3958_v62 }
 0x2ed   :  { %3960 = vmatprep.subr.bf16.mxu0 %v4044_v2 }
 0x2f0   :  { %3962 = vmatpush3.bf16.msra.mxu0 %v3961_v40 }
 0x2f1   :  { %3963 = vmatprep.subr.bf16.mxu0 %v4044_v2 }
 0x2f4   :  { %3965 = vmatpush3.bf16.msra.mxu0 %v3964_v43 }
 0x2f5   :  { %3966 = vmatprep.subr.bf16.mxu0 %v4044_v2 }
 0x2f8   :  { %3968 = vmatpush3.bf16.msra.mxu0 %v3967_v11 }
 0x2f9   :  { %3969 = vmatprep.subr.bf16.mxu0 %v4044_v2 }
 0x2fc   :  { %3971 = vmatpush3.bf16.msra.mxu0 %v3970_v12 }
 0x3b2   :  { %v2754_v53 = vpop.f32.mrb[2].mxu0 }
 0x3b3   :  { %v2789_v54 = vpop.f32.mrb[2].mxu1  ;;  %v2755_v56 = vpop.f32.mrb[3].mxu0 }
 0x3b4   :  { %v2756_v57 = vadd.f32 %v2755_v56, %v2754_v53  ;;  %v2790_v58 = vpop.f32.mrb[3].mxu1 }
 0x3b5   :  { %v2791_v24 = vadd.f32 %v2790_v58, %v2789_v54 }
 0x3b6   :  { %v2449_v59 = vadd.f32 %v2756_v57, %v2718_v55 }
 0x3b8   :  { %v2519_v23 = vadd.f32 %v2791_v24, %v2449_v59 }
 0x3ba   :  { %v2522_v60 = vmax.f32 %v2519_v23, 0.0 }
 0x3bc   :  { %2847 = vmatmul.mubr.f32.vlgmr.msra.gmra.mrb[4].mxu0 %v2522_v60 }
 0x48f   :  { %v2612_v2 = vpop.f32.mrb[4].mxu0 }
 0x490   :  { %v2613_v3 = vadd.f32 %v2719_v38, %v2612_v2  ;;  %v2848_v4 = vpop.f32.mrb[5].mxu0 }
 0x492   :  { %v2616_v5 = vmax.f32 %v2613_v3, 0.0 }
 0x494   :  { %2858 = vmatmul.mubr.msk.f32.vlgmr.msra.gmra.mrb[4].mxu1 %vm2628_vm1, %v2616_v5 }
 0x567   :  { %v2698_v51 = vpop.f32.mrb[4].mxu1 }
 0x568   :  { %v2699_v7 = vadd.f32 %v2720_v6, %v2698_v51  ;;  %v2859_v8 = vpop.f32.mrb[5].mxu1 }
 0x56a   :  { %2703 = vst.msk [vmem:[#allocation2] sm:$0x3] %vm2702_vm2, %v2699_v7 }
 0x56b   :  { %4030 = shalt.err (!%p4027_p4)
}
 0x56c   :  { %s4031_s15 = scalar_lea.hbm %s7562_s9, 32 }
 0x56d   :  { %p4032_p5 = scmp.ne.s32.totalorder %s7562_s9, %s4031_s15  ;;  %p4035_p6 = scmp.lt.u32.totalorder %s4031_s15, %s7562_s9 }
 0x56f   :  { %p4037_p7 = pnand %p4035_p6, %p4032_p5 }
 0x571   :  { %4040 = shalt.err (!%p4037_p7)
}
 0x572   :  { %2713 = dma.vmem_to_hbm [thread:$0]  %s2711_s13, 32, %s7562_s9, [#allocation3]  }
 0x573   :  { %4041 = dma.done.wait [#allocation3], 32  }
 0x574   :  { %4042 = vsyncadd [#allocation3], 4294967264 }
 0x575   :  { %2717 = vsyncpa [#allocation3], 1 }

// kernel: linearnet_forward.2
= control target key start
LH: loop header
LB: loop body
LE: loop exit
PB: predicated region body
PF: predicated region fallthrough
CT: control target
= control target key end

     0   :  { %s9865_s0 = inlined_call_operand.vmem [shape: f32[2,36864], index: 0, kind: input, shape index: {}]   ;;  %s9866_s1 = inlined_call_operand.hbm [shape: f32[36864,2048], index: 1, kind: input, shape index: {}]   ;;  %s9867_s2 = inlined_call_operand.hbm [shape: f32[1,2048], index: 2, kind: input, shape index: {}]   ;;  %s9868_s3 = inlined_call_operand.vmem [shape: f32[2,2048], index: 3, kind: output, shape index: {}]  }
   0x1   :  { %9874 = sst [smem:[#allocation9_spill]] %s9866_s1 }
   0x2   :  { %8 = vsyncpa [#allocation3], 0 }
   0x3   :  { %10 = vsyncpa [#allocation3 + $0x1], 0 }
   0x4   :  { %11 = vsyncpa [#allocation5], 0 }
   0x5   :  { %13 = vsyncpa [#allocation5 + $0x1], 0  ;;  %s7360_s12 = smov 0   ;;  %s7362_s13 = smov 0  }
   0x6   :  { %s7364_s14 = smov 0   ;;  %s7366_s15 = smov 0  }
   0x7   :  { %s7368_s16 = smov 0   ;;  %s7370_s17 = smov 0  }
   0x8   :  { %s7372_s18 = smov 0   ;;  %s7374_s19 = smov 0  }
   0x9   :  { %s7376_s20 = smov 0   ;;  %s7378_s21 = smov 0  }
   0xa   :  { %s7380_s22 = smov 0  }
   0xb LB: > { %s28_s23 = sadd.s32 1, %s7323_s20  ;;  %s66_s24 = sadd.s32 1, %s7311_s17  ;;  %s7331_s22 = sphi %s7380_s22, %s19_s22   ;;  %s7327_s21 = sphi %s7378_s21, %s9900_s21   ;;  %s7323_s20 = sphi %s7376_s20, %s9899_s20   ;;  %s7319_s19 = sphi %s7374_s19, %s9898_s19   ;;  %s7315_s18 = sphi %s7372_s18, %s9897_s18   ;;  %s7311_s17 = sphi %s7370_s17, %s9896_s17   ;;  %s7307_s16 = sphi %s7368_s16, %s9895_s16   ;;  %s7303_s15 = sphi %s7366_s15, %s9894_s15   ;;  %s7299_s14 = sphi %s7364_s14, %s9893_s14   ;;  %s7295_s13 = sphi %s7362_s13, %s9892_s13   ;;  %s7291_s12 = sphi %s7360_s12, %s9891_s12  }
   0xc   : > { %p7417_p0 = scmp.ge.s32.totalorder %s28_s23, 18  ;;  %p73_p1 = scmp.ne.s32.totalorder %s7311_s17, %s7307_s16 }
   0xd   : > { %p9870_p2 = scmp.eq.s32.totalorder %s7331_s22, 0  ;;  %p9869_p4 = scmp.lt.s32.totalorder %s7331_s22, 36 }
   0xe   : > { %s9902_s23 = smov (%p7417_p0, %s28_s23), 0  ;;  %s164_s27 = sand.u32 1, %s7311_s17  }
   0xf   : > { %p75_p3 = por %p9870_p2, %p73_p1  ;;  %s61_s26 = ssub.s32 %s7323_s20, %s9902_s23 }
  0x10   : > { %s4943_s28 = sshll.u32 %s164_s27, 14  ;;  %s4945_s29 = sshll.u32 %s7327_s21, 3 }
  0x11   : > { %s4962_s30 = sshll.u32 %s7323_s20, 12  ;;  %s168_s4 = scalar_lea.vmem [#allocation2], %s4943_s28 }
  0x12   : > { %s178_s5 = sshll.u32 %s168_s4, 4  ;;  %s175_s6 = sadd.s32 %s4962_s30, %s4945_s29  ;;  %s7436_s5 = int_to_ptr.vmem [resolvable:$true] %s178_s5 }
  0x13   : > { %s4947_s7 = sshll.u32 %s175_s6, 7  ;;  %p7440_p5 = pnand %p9869_p4, %p75_p3 }
  0x14   : > { %s9877_s1 = sld [smem:[#allocation9_spill]]  ;;  %s7450_s28 = scalar_lea.sflag [#allocation3], %s164_s27 }
  0x15   : > { %p7179_p8 = pneg %p7440_p5 }
  0x1a   : > { %s7447_s11 = scalar_lea.hbm %s9877_s1, %s4947_s7  ;;  %s7182_s6 = scalar_lea.hbm %s9877_s1, 9437184 }
  0x1b   : > { %s7177_s29 = scalar_lea.hbm %s7447_s11, 262144  ;;  %p7183_p11 = scmp.lt.u32.totalorder %s7447_s11, %s9877_s1 }
  0x1c   : > { %p7178_p7 = scmp.ne.s32.totalorder %s7447_s11, %s7177_s29  ;;  %p7184_p12 = scmp.lt.u32.totalorder %s7182_s6, %s7177_s29 }
  0x1d   : > { %p7186_p1 = scmp.lt.u32.totalorder %s7177_s29, %s7447_s11 }
  0x1e   : > { %p7180_p9 = pnand %p7179_p8, %p7178_p7  ;;  %p7185_p13 = por %p7184_p12, %p7183_p11 }
  0x20   : > { %p7181_p10 = pneg %p7180_p9  ;;  %p7187_p3 = por %p7186_p1, %p7185_p13 }
  0x22   : > { %p7188_p4 = pnand %p7187_p3, %p7181_p10 }
  0x24   : > { %7191 = shalt.err (!%p7188_p4)
}
  0x25   : > { %s7192_s27 = scalar_lea.vmem %s7436_s5, 262144  ;;  %s7333_s10 = smov [#allocation2]  }
  0x26   : > { %p7193_p7 = scmp.ne.s32.totalorder %s7436_s5, %s7192_s27  ;;  %s7197_s30 = sshll.u32 %s7333_s10, 4  ;;  %s7198_s30 = int_to_ptr.vmem [resolvable:$false] %s7197_s30 }
  0x27   : > { %s7199_s4 = scalar_lea.vmem %s7198_s30, 524288  ;;  %p7200_p6 = scmp.lt.s32.totalorder %s7436_s5, %s7198_s30 }
  0x28   : > { %p7195_p9 = pnand %p7193_p7, %p7179_p8  ;;  %p7201_p11 = scmp.lt.s32.totalorder %s7199_s4, %s7192_s27 }
  0x2a   : > { %p7196_p2 = pneg %p7195_p9  ;;  %p7202_p12 = por %p7201_p11, %p7200_p6 }
  0x2c   : > { %p7203_p13 = pnand %p7202_p12, %p7196_p2 }
  0x2e   : > { %7206 = shalt.err (!%p7203_p13)
}
  0x2f   : > { %s7334_s29 = smov 2048   ;;  %s7335_s6 = smov 1024  }
  0x30   : > { %s7336_s7 = smov 64   ;;  %p205_p2 = scmp.lt.s32.totalorder %s7331_s22, 37 }
  0x31   : > { %7075 = dma.hbm_to_vmem [thread:$0]  (!%p7440_p5), %s7447_s11, 262144, %s7436_s5, %s7450_s28, %s7334_s29, %s7335_s6, %s7336_s7  }
  0x32   : > { %p9878_p4 = scmp.ge.s32.totalorder %s7331_s22, 1  ;;  %s4939_s27 = sadd.s32 4294967295, %s7331_s22  }
  0x33   : > { %s31_s10 = sadd.s32 1, %s7327_s21  ;;  %p79_p8 = scmp.ne.s32.totalorder %s7307_s16, %s7303_s15 }
  0x34   : > { %p7481_p6 = pnand %p9878_p4, %p205_p2  ;;  %s9904_s10 = smov (!%p7417_p0, %s31_s10), %s7327_s21 }
  0x35   : > { %p7492_p10 = scmp.eq.s32.totalorder %s4939_s27, 0  ;;  %p33_p5 = scmp.ge.s32.totalorder %s9904_s10, 2 }
  0x36   : > { %s92_s5 = sadd.s32 1, %s7299_s14  ;;  %p99_p3 = scmp.ne.s32.totalorder %s7299_s14, %s7295_s13 }
  0x37   : > { %p7499_p1 = por %p7492_p10, %p79_p8  ;;  %s9906_s10 = smov (%p33_p5, %s9904_s10), 0 }
  0x38   : > { %9882 = sst [smem:[#allocation8_spill]] %s9906_s10  ;;  %p9883_p0 = scmp.eq.s32.totalorder %s7331_s22, 0 }
  0x39   : > { %s9881_s11 = scalar_select %p7499_p1, 1, 0 }
  0x3a   : > { %p7509_p7 = por %p99_p3, %p9883_p0  ;;  %p105_p9 = scmp.ne.s32.totalorder %s7295_s13, %s7291_s12 }
  0x3b   : > { %s62_s25 = ssub.s32 %s7327_s21, %s9906_s10  ;;  %s188_s28 = sand.u32 1, %s7299_s14  }
  0x3c   : > { %s63_s30 = sor.u32 %s62_s25, %s61_s26  ;;  %p90_p11 = scmp.eq.s32.totalorder %s62_s25, 0 }
  0x3d   : > { %p64_p12 = scmp.eq.s32.totalorder %s63_s30, 0  ;;  %p7523_p13 = por %p105_p9, %p7492_p10 }
  0x3e   : > { %s7528_s29 = scalar_select %p90_p11, %s7299_s14, %s92_s5  }
  0x3f   : > { %s9885_s4 = scalar_select %p7523_p13, 1, 0 }
  0x40   : > { %s7533_s6 = scalar_select %p64_p12, %s7311_s17, %s66_s24  }
  0x41   : > { %s4948_s7 = sshll.u32 %s188_s28, 3  ;;  %s4963_s27 = sshll.u32 %s7327_s21, 7 }
  0x42   : > { %s7539_s10 = scalar_lea.hbm %s9867_s2, %s4963_s27  ;;  %s192_s26 = scalar_lea.vmem [#allocation4], %s4948_s7 }
  0x43   : > { %s200_s8 = sshll.u32 %s192_s26, 4  ;;  %p9886_p2 = scmp.lt.s32.totalorder %s7331_s22, 36  ;;  %s7541_s8 = int_to_ptr.vmem [resolvable:$true] %s200_s8 }
  0x44   : > { %s189_s5 = scalar_lea.sflag [#allocation5], %s188_s28  ;;  %s7207_s1 = scalar_lea.hbm %s7539_s10, 128 }
  0x45   : > { %p7547_p4 = pnand %p9886_p2, %p7509_p7  ;;  %p7208_p8 = scmp.ne.s32.totalorder %s7539_s10, %s7207_s1 }
  0x46   : > { %s7212_s15 = scalar_lea.hbm %s9867_s2, 256  ;;  %p7213_p0 = scmp.lt.u32.totalorder %s7539_s10, %s9867_s2 }
  0x47   : > { %p7209_p10 = pneg %p7547_p4  ;;  %p7214_p7 = scmp.lt.u32.totalorder %s7212_s15, %s7207_s1 }
  0x48   : > { %p7216_p11 = scmp.lt.u32.totalorder %s7207_s1, %s7539_s10 }
  0x49   : > { %p7210_p5 = pnand %p7209_p10, %p7208_p8  ;;  %p7215_p9 = por %p7214_p7, %p7213_p0 }
  0x4b   : > { %p7211_p3 = pneg %p7210_p5  ;;  %p7217_p12 = por %p7216_p11, %p7215_p9 }
  0x4d   : > { %p7218_p2 = pnand %p7217_p12, %p7211_p3 }
  0x4f   : > { %7221 = shalt.err (!%p7218_p2)
}
  0x50   : > { %s7222_s28 = scalar_lea.vmem %s7541_s8, 128  ;;  %s7337_s12 = smov [#allocation4]  }
  0x51   : > { %p7223_p8 = scmp.ne.s32.totalorder %s7541_s8, %s7222_s28  ;;  %s7227_s26 = sshll.u32 %s7337_s12, 4  ;;  %s7228_s26 = int_to_ptr.vmem [resolvable:$false] %s7227_s26 }
  0x52   : > { %s7229_s25 = scalar_lea.vmem %s7228_s26, 256  ;;  %p7230_p1 = scmp.lt.s32.totalorder %s7541_s8, %s7228_s26 }
  0x53   : > { %p7225_p5 = pnand %p7223_p8, %p7209_p10  ;;  %p7231_p0 = scmp.lt.s32.totalorder %s7229_s25, %s7222_s28 }
  0x55   : > { %p7226_p13 = pneg %p7225_p5  ;;  %p7232_p7 = por %p7231_p0, %p7230_p1 }
  0x57   : > { %p7233_p9 = pnand %p7232_p7, %p7226_p13 }
  0x59   : > { %7236 = shalt.err (!%p7233_p9)
}
  0x5a   : > { %7078 = dma.hbm_to_vmem [thread:$0]  (!%p7547_p4), %s7539_s10, 128, %s7541_s8, %s189_s5  }
  0x5b   : > { %209 = sbr.rel (%p7481_p6) target bundleno = 1379 (0x563), region = 32  ;;  %s211_s1 = sand.u32 (!%p7481_p6), 1, %s7307_s16  }
  0x5c   : > { %s4952_s30 = sshll.u32 (!%p7481_p6), %s211_s1, 14  ;;  %s212_s15 = scalar_lea.sflag (!%p7481_p6), [#allocation3], %s211_s1 }
  0x5d   : > { %s7579_s7 = scalar_lea.vmem (!%p7481_p6), [#allocation2], %s4952_s30  ;;  %p9888_p10 = scmp.ne.s32.totalorder (!%p7481_p6), %s9881_s11, 0 }
  0x62   : > { %7282 = dma.done.wait (%p9888_p10), %s212_s15, 262144  }
  0x63   : > { %7284 = vsyncadd (%p9888_p10), %s212_s15, 4294705152  ;;  %s220_s24 = sand.u32 1, %s7295_s13   ;;  %p9889_p6 = scmp.ne.s32.totalorder %s9885_s4, 0 }
  0x64   : > { %s7586_s27 = sshll.u32 %s220_s24, 3  ;;  %s221_s9 = scalar_lea.sflag [#allocation5], %s220_s24 }
  0x65   : > { %s224_s10 = scalar_lea.vmem [#allocation4], %s7586_s27 }
  0x66   : > { %7286 = dma.done.wait (%p9889_p6), %s221_s9, 128  }
  0x67   : > { %7288 = vsyncadd (%p9889_p6), %s221_s9, 4294967168  ;;  %s4954_s8 = sshll.u32 %s7315_s18, 4  ;;  %s4956_s5 = sshll.u32 %s7319_s19, 3 }
  0x68   : > { %p258_p1 = scmp.lt.s32.totalorder %s4954_s8, 287  ;;  %p267_p13 = scmp.lt.s32.totalorder %s4956_s5, 15 }
  0x69   : > { %p4958_p4 = scmp.ne.s32.totalorder %s7315_s18, 0 }
  0x6a   : > { %s9908_s8 = smov (!%p258_p1, %s4954_s8), 287  ;;  %s9910_s5 = smov (!%p267_p13, %s4956_s5), 15 }
  0x6b   : > { %s4955_s11 = sshll.u32 %s9908_s8, 1  ;;  %s4957_s25 = sshll.u32 %s9910_s5, 1  ;;  %v7338_v0 = vmov (!%p4958_p4), 0.0  }
  0x6c   : > { %s7598_s26 = scalar_lea.vmem %s9865_s0, %s4955_s11  ;;  %s7603_s4 = scalar_lea.vmem %s9868_s3, %s4957_s25 }
  0x6d   : > { %275 = sbr.rel (%p4958_p4) target bundleno = 116 (0x74), region = 44  ;;  %276 = vst [vmem:[%s7603_s4] sm:$0xff] (!%p4958_p4), %v7338_v0  ;;  %277 = vst [vmem:[%s7603_s4 + $0x8] sm:$0xff] (!%p4958_p4), %v7338_v0 }
  0x74 PF: > { %v285_v1 = vld [vmem:[%s7579_s7 + $0x8] sm:$0xff]  ;;  %v287_v3 = vld [vmem:[%s7579_s7 + $0x18] sm:$0xff]  ;;  %v284_v6 = vld [vmem:[%s7579_s7] sm:$0xff]  ;;  %p4959_p3 = scmp.ne.s32.totalorder %s7315_s18, 17 }
  0x75   : > { %v293_v2 = vld [vmem:[%s7579_s7 + $0x48] sm:$0xff]  ;;  %v295_v5 = vld [vmem:[%s7579_s7 + $0x58] sm:$0xff]  ;;  %v292_v7 = vld [vmem:[%s7579_s7 + $0x40] sm:$0xff] }
  0x76   : > { %v4964_v4 = vpack.c.bf16 %v293_v2, %v285_v1  ;;  %v5476_v8 = vpack.c.bf16 %v295_v5, %v287_v3  ;;  %v4966_v9 = vpack.c.bf16 %v292_v7, %v284_v6  ;;  %v286_v10 = vld [vmem:[%s7579_s7 + $0x10] sm:$0xff]  ;;  %v301_v12 = vld [vmem:[%s7579_s7 + $0x88] sm:$0xff]  ;;  %v303_v15 = vld [vmem:[%s7579_s7 + $0x98] sm:$0xff] }
  0x77   : > { %v294_v11 = vld [vmem:[%s7579_s7 + $0x50] sm:$0xff]  ;;  %v309_v14 = vld [vmem:[%s7579_s7 + $0xc8] sm:$0xff]  ;;  %v311_v16 = vld [vmem:[%s7579_s7 + $0xd8] sm:$0xff] }
  0x78   : > { %4965 = vmatprep.subr.bf16.mxu0 %v4964_v4  ;;  %v5478_v13 = vpack.c.bf16 %v294_v11, %v286_v10  ;;  %5477 = vmatprep.subr.bf16.mxu1 %v5476_v8  ;;  %v4968_v17 = vpack.c.bf16 %v309_v14, %v301_v12  ;;  %v5480_v18 = vpack.c.bf16 %v311_v16, %v303_v15  ;;  %v300_v19 = vld [vmem:[%s7579_s7 + $0x80] sm:$0xff]  ;;  %v302_v21 = vld [vmem:[%s7579_s7 + $0x90] sm:$0xff]  ;;  %v317_v24 = vld [vmem:[%s7579_s7 + $0x108] sm:$0xff] }
  0x79   : > { %4967 = vmatpush1.bf16.msra.mxu0 %v4966_v9  ;;  %v308_v20 = vld [vmem:[%s7579_s7 + $0xc0] sm:$0xff]  ;;  %v310_v23 = vld [vmem:[%s7579_s7 + $0xd0] sm:$0xff]  ;;  %v325_v25 = vld [vmem:[%s7579_s7 + $0x148] sm:$0xff] }
  0x7a   : > { %5479 = vmatpush1.bf16.msra.mxu1 %v5478_v13  ;;  %v4970_v22 = vpack.c.bf16 %v308_v20, %v300_v19  ;;  %4969 = vmatprep.subr.bf16.mxu0 %v4968_v17  ;;  %v5482_v26 = vpack.c.bf16 %v310_v23, %v302_v21  ;;  %v4972_v27 = vpack.c.bf16 %v325_v25, %v317_v24  ;;  %v319_v28 = vld [vmem:[%s7579_s7 + $0x118] sm:$0xff]  ;;  %v316_v30 = vld [vmem:[%s7579_s7 + $0x100] sm:$0xff]  ;;  %v318_v33 = vld [vmem:[%s7579_s7 + $0x110] sm:$0xff] }
  0x7b   : > { %5481 = vmatprep.subr.bf16.mxu1 %v5480_v18  ;;  %v327_v29 = vld [vmem:[%s7579_s7 + $0x158] sm:$0xff]  ;;  %v324_v32 = vld [vmem:[%s7579_s7 + $0x140] sm:$0xff]  ;;  %v326_v34 = vld [vmem:[%s7579_s7 + $0x150] sm:$0xff] }
  0x7c   : > { %v5484_v31 = vpack.c.bf16 %v327_v29, %v319_v28  ;;  %v4974_v35 = vpack.c.bf16 %v324_v32, %v316_v30  ;;  %v333_v36 = vld [vmem:[%s7579_s7 + $0x188] sm:$0xff]  ;;  %v335_v38 = vld [vmem:[%s7579_s7 + $0x198] sm:$0xff]  ;;  %v5486_v39 = vpack.c.bf16 %v326_v34, %v318_v33  ;;  %v332_v42 = vld [vmem:[%s7579_s7 + $0x180] sm:$0xff] }
  0x7d   : > { %4971 = vmatpush1.bf16.msra.mxu0 %v4970_v22  ;;  %v341_v37 = vld [vmem:[%s7579_s7 + $0x1c8] sm:$0xff]  ;;  %v343_v41 = vld [vmem:[%s7579_s7 + $0x1d8] sm:$0xff]  ;;  %v340_v43 = vld [vmem:[%s7579_s7 + $0x1c0] sm:$0xff] }
  0x7e   : > { %5483 = vmatpush1.bf16.msra.mxu1 %v5482_v26  ;;  %4973 = vmatprep.subr.bf16.mxu0 %v4972_v27  ;;  %v4976_v40 = vpack.c.bf16 %v341_v37, %v333_v36  ;;  %v5488_v44 = vpack.c.bf16 %v343_v41, %v335_v38  ;;  %v334_v45 = vld [vmem:[%s7579_s7 + $0x190] sm:$0xff]  ;;  %v349_v47 = vld [vmem:[%s7579_s7 + $0x208] sm:$0xff]  ;;  %v351_v49 = vld [vmem:[%s7579_s7 + $0x218] sm:$0xff]  ;;  %v4978_v51 = vpack.c.bf16 %v340_v43, %v332_v42 }
  0x7f   : > { %5485 = vmatprep.subr.bf16.mxu1 %v5484_v31  ;;  %v342_v46 = vld [vmem:[%s7579_s7 + $0x1d0] sm:$0xff]  ;;  %v357_v48 = vld [vmem:[%s7579_s7 + $0x248] sm:$0xff]  ;;  %v359_v50 = vld [vmem:[%s7579_s7 + $0x258] sm:$0xff] }
  0x80   : > { %v5490_v52 = vpack.c.bf16 %v342_v46, %v334_v45  ;;  %v4980_v53 = vpack.c.bf16 %v357_v48, %v349_v47  ;;  %v348_v54 = vld [vmem:[%s7579_s7 + $0x200] sm:$0xff]  ;;  %v350_v56 = vld [vmem:[%s7579_s7 + $0x210] sm:$0xff]  ;;  %v5492_v57 = vpack.c.bf16 %v359_v50, %v351_v49  ;;  %v365_v59 = vld [vmem:[%s7579_s7 + $0x288] sm:$0xff]  ;;  %v7339_v47 = vmov 1983009808  }
  0x81   : > { %4975 = vmatpush1.bf16.msra.mxu0 %v4974_v35  ;;  %v356_v55 = vld [vmem:[%s7579_s7 + $0x240] sm:$0xff]  ;;  %v358_v58 = vld [vmem:[%s7579_s7 + $0x250] sm:$0xff]  ;;  %v373_v60 = vld [vmem:[%s7579_s7 + $0x2c8] sm:$0xff]  ;;  %v2338_v48 = vunpack.c.l.s4 %v7339_v47  ;;  %v2340_v49 = vlaneseq }
  0x82   : > { %5487 = vmatpush1.bf16.msra.mxu1 %v5486_v39  ;;  %4977 = vmatprep.subr.bf16.mxu0 %v4976_v40  ;;  %v367_v61 = vld [vmem:[%s7579_s7 + $0x298] sm:$0xff]  ;;  %v4982_v63 = vpack.c.bf16 %v356_v55, %v348_v54  ;;  %v5494_v0 = vpack.c.bf16 %v358_v58, %v350_v56  ;;  %v4984_v1 = vpack.c.bf16 %v373_v60, %v365_v59  ;;  %v364_v2 = vld [vmem:[%s7579_s7 + $0x280] sm:$0xff]  ;;  %v366_v4 = vld [vmem:[%s7579_s7 + $0x290] sm:$0xff] }
  0x83   : > { %5489 = vmatprep.subr.bf16.mxu1 %v5488_v44  ;;  %v375_v62 = vld [vmem:[%s7579_s7 + $0x2d8] sm:$0xff]  ;;  %v372_v3 = vld [vmem:[%s7579_s7 + $0x2c0] sm:$0xff]  ;;  %v374_v6 = vld [vmem:[%s7579_s7 + $0x2d0] sm:$0xff] }
  0x84   : > { %v5496_v5 = vpack.c.bf16 %v375_v62, %v367_v61  ;;  %v381_v7 = vld [vmem:[%s7579_s7 + $0x308] sm:$0xff]  ;;  %v383_v9 = vld [vmem:[%s7579_s7 + $0x318] sm:$0xff]  ;;  %v4986_v11 = vpack.c.bf16 %v372_v3, %v364_v2  ;;  %v5498_v12 = vpack.c.bf16 %v374_v6, %v366_v4  ;;  %v380_v14 = vld [vmem:[%s7579_s7 + $0x300] sm:$0xff]  ;;  %v2339_v62 = vunpack.c.0.s8 %v2338_v48 }
  0x85   : > { %4979 = vmatpush1.bf16.msra.mxu0 %v4978_v51  ;;  %v389_v8 = vld [vmem:[%s7579_s7 + $0x348] sm:$0xff]  ;;  %v391_v10 = vld [vmem:[%s7579_s7 + $0x358] sm:$0xff]  ;;  %v388_v15 = vld [vmem:[%s7579_s7 + $0x340] sm:$0xff] }
  0x86   : > { %5491 = vmatpush1.bf16.msra.mxu1 %v5490_v52  ;;  %4981 = vmatprep.subr.bf16.mxu0 %v4980_v53  ;;  %v4988_v13 = vpack.c.bf16 %v389_v8, %v381_v7  ;;  %v382_v16 = vld [vmem:[%s7579_s7 + $0x310] sm:$0xff]  ;;  %v5500_v17 = vpack.c.bf16 %v391_v10, %v383_v9  ;;  %v397_v19 = vld [vmem:[%s7579_s7 + $0x388] sm:$0xff]  ;;  %v399_v21 = vld [vmem:[%s7579_s7 + $0x398] sm:$0xff]  ;;  %v4990_v23 = vpack.c.bf16 %v388_v15, %v380_v14 }
  0x87   : > { %5493 = vmatprep.subr.bf16.mxu1 %v5492_v57  ;;  %v390_v18 = vld [vmem:[%s7579_s7 + $0x350] sm:$0xff]  ;;  %v405_v20 = vld [vmem:[%s7579_s7 + $0x3c8] sm:$0xff]  ;;  %v407_v22 = vld [vmem:[%s7579_s7 + $0x3d8] sm:$0xff] }
  0x88   : > { %v5502_v24 = vpack.c.bf16 %v390_v18, %v382_v16  ;;  %v4992_v25 = vpack.c.bf16 %v405_v20, %v397_v19  ;;  %v396_v26 = vld [vmem:[%s7579_s7 + $0x380] sm:$0xff]  ;;  %v398_v28 = vld [vmem:[%s7579_s7 + $0x390] sm:$0xff]  ;;  %v5504_v29 = vpack.c.bf16 %v407_v22, %v399_v21  ;;  %v413_v31 = vld [vmem:[%s7579_s7 + $0x408] sm:$0xff] }
  0x89   : > { %4983 = vmatpush1.bf16.msra.mxu0 %v4982_v63  ;;  %v404_v27 = vld [vmem:[%s7579_s7 + $0x3c0] sm:$0xff]  ;;  %v406_v30 = vld [vmem:[%s7579_s7 + $0x3d0] sm:$0xff]  ;;  %v421_v32 = vld [vmem:[%s7579_s7 + $0x448] sm:$0xff]  ;;  %v7692_v63 = vshrl.u32 %v2340_v49, 7 }
  0x8a   : > { %5495 = vmatpush1.bf16.msra.mxu1 %v5494_v0  ;;  %4985 = vmatprep.subr.bf16.mxu0 %v4984_v1  ;;  %v415_v33 = vld [vmem:[%s7579_s7 + $0x418] sm:$0xff]  ;;  %v4994_v35 = vpack.c.bf16 %v404_v27, %v396_v26  ;;  %v5506_v36 = vpack.c.bf16 %v406_v30, %v398_v28  ;;  %v4996_v37 = vpack.c.bf16 %v421_v32, %v413_v31  ;;  %v412_v38 = vld [vmem:[%s7579_s7 + $0x400] sm:$0xff]  ;;  %v414_v40 = vld [vmem:[%s7579_s7 + $0x410] sm:$0xff] }
  0x8b   : > { %5497 = vmatprep.subr.bf16.mxu1 %v5496_v5  ;;  %v423_v34 = vld [vmem:[%s7579_s7 + $0x458] sm:$0xff]  ;;  %v420_v39 = vld [vmem:[%s7579_s7 + $0x440] sm:$0xff]  ;;  %v422_v42 = vld [vmem:[%s7579_s7 + $0x450] sm:$0xff] }
  0x8c   : > { %v5508_v41 = vpack.c.bf16 %v423_v34, %v415_v33  ;;  %v429_v43 = vld [vmem:[%s7579_s7 + $0x488] sm:$0xff]  ;;  %v431_v45 = vld [vmem:[%s7579_s7 + $0x498] sm:$0xff]  ;;  %v4998_v50 = vpack.c.bf16 %v420_v39, %v412_v38  ;;  %v5510_v51 = vpack.c.bf16 %v422_v42, %v414_v40  ;;  %v428_v53 = vld [vmem:[%s7579_s7 + $0x480] sm:$0xff] }
  0x8d   : > { %4987 = vmatpush1.bf16.msra.mxu0 %v4986_v11  ;;  %v437_v44 = vld [vmem:[%s7579_s7 + $0x4c8] sm:$0xff]  ;;  %v439_v46 = vld [vmem:[%s7579_s7 + $0x4d8] sm:$0xff]  ;;  %v436_v54 = vld [vmem:[%s7579_s7 + $0x4c0] sm:$0xff] }
  0x8e   : > { %5499 = vmatpush1.bf16.msra.mxu1 %v5498_v12  ;;  %4989 = vmatprep.subr.bf16.mxu0 %v4988_v13  ;;  %v5000_v52 = vpack.c.bf16 %v437_v44, %v429_v43  ;;  %v430_v55 = vld [vmem:[%s7579_s7 + $0x490] sm:$0xff]  ;;  %v5512_v56 = vpack.c.bf16 %v439_v46, %v431_v45  ;;  %v445_v58 = vld [vmem:[%s7579_s7 + $0x508] sm:$0xff]  ;;  %v447_v60 = vld [vmem:[%s7579_s7 + $0x518] sm:$0xff]  ;;  %v5002_v0 = vpack.c.bf16 %v436_v54, %v428_v53 }
  0x8f   : > { %5501 = vmatprep.subr.bf16.mxu1 %v5500_v17  ;;  %v438_v57 = vld [vmem:[%s7579_s7 + $0x4d0] sm:$0xff]  ;;  %v453_v59 = vld [vmem:[%s7579_s7 + $0x548] sm:$0xff]  ;;  %v455_v61 = vld [vmem:[%s7579_s7 + $0x558] sm:$0xff]  ;;  %v7703_v12 = vsub.s32 %v2339_v62, %v7692_v63 }
  0x90   : > { %v5514_v1 = vpack.c.bf16 %v438_v57, %v430_v55  ;;  %v5004_v2 = vpack.c.bf16 %v453_v59, %v445_v58  ;;  %v444_v3 = vld [vmem:[%s7579_s7 + $0x500] sm:$0xff]  ;;  %v446_v5 = vld [vmem:[%s7579_s7 + $0x510] sm:$0xff]  ;;  %v5516_v6 = vpack.c.bf16 %v455_v61, %v447_v60  ;;  %v461_v8 = vld [vmem:[%s7579_s7 + $0x588] sm:$0xff] }
  0x91   : > { %4991 = vmatpush1.bf16.msra.mxu0 %v4990_v23  ;;  %v452_v4 = vld [vmem:[%s7579_s7 + $0x540] sm:$0xff]  ;;  %v454_v7 = vld [vmem:[%s7579_s7 + $0x550] sm:$0xff]  ;;  %v469_v9 = vld [vmem:[%s7579_s7 + $0x5c8] sm:$0xff] }
  0x92   : > { %5503 = vmatpush1.bf16.msra.mxu1 %v5502_v24  ;;  %4993 = vmatprep.subr.bf16.mxu0 %v4992_v25  ;;  %v463_v10 = vld [vmem:[%s7579_s7 + $0x598] sm:$0xff]  ;;  %v5006_v13 = vpack.c.bf16 %v452_v4, %v444_v3  ;;  %v460_v14 = vld [vmem:[%s7579_s7 + $0x580] sm:$0xff]  ;;  %v5518_v15 = vpack.c.bf16 %v454_v7, %v446_v5  ;;  %v5008_v16 = vpack.c.bf16 %v469_v9, %v461_v8  ;;  %v462_v18 = vld [vmem:[%s7579_s7 + $0x590] sm:$0xff] }
  0x93   : > { %5505 = vmatprep.subr.bf16.mxu1 %v5504_v29  ;;  %v471_v11 = vld [vmem:[%s7579_s7 + $0x5d8] sm:$0xff]  ;;  %v468_v17 = vld [vmem:[%s7579_s7 + $0x5c0] sm:$0xff]  ;;  %v470_v19 = vld [vmem:[%s7579_s7 + $0x5d0] sm:$0xff] }
  0x94   : > { %v5520_v20 = vpack.c.bf16 %v471_v11, %v463_v10  ;;  %v477_v21 = vld [vmem:[%s7579_s7 + $0x608] sm:$0xff]  ;;  %v7712_v23 = vld [vmem:[%s7598_s26] sm:$0xff]  ;;  %v479_v24 = vld [vmem:[%s7579_s7 + $0x618] sm:$0xff]  ;;  %v5010_v27 = vpack.c.bf16 %v468_v17, %v460_v14  ;;  %v5522_v28 = vpack.c.bf16 %v470_v19, %v462_v18 }
  0x95   : > { %4995 = vmatpush1.bf16.msra.mxu0 %v4994_v35  ;;  %v485_v22 = vld [vmem:[%s7579_s7 + $0x648] sm:$0xff]  ;;  %v487_v25 = vld [vmem:[%s7579_s7 + $0x658] sm:$0xff]  ;;  %v7718_v26 = vrot.slane %v7712_v23, %v7703_v12  ;;  %v476_v30 = vld [vmem:[%s7579_s7 + $0x600] sm:$0xff]  ;;  %v2336_v11 = vcombine.high %v7712_v23, %v7712_v23 }
  0x96   : > { %5507 = vmatpush1.bf16.msra.mxu1 %v5506_v36  ;;  %4997 = vmatprep.subr.bf16.mxu0 %v4996_v37  ;;  %v5012_v29 = vpack.c.bf16 %v485_v22, %v477_v21  ;;  %v484_v31 = vld [vmem:[%s7579_s7 + $0x640] sm:$0xff]  ;;  %v478_v32 = vld [vmem:[%s7579_s7 + $0x610] sm:$0xff]  ;;  %v5524_v34 = vpack.c.bf16 %v487_v25, %v479_v24  ;;  %v493_v36 = vld [vmem:[%s7579_s7 + $0x688] sm:$0xff] }
  0x97   : > { %5509 = vmatprep.subr.bf16.mxu1 %v5508_v41  ;;  %v7725_v33 = vcombine.high %v7718_v26, %v7718_v26  ;;  %v486_v35 = vld [vmem:[%s7579_s7 + $0x650] sm:$0xff]  ;;  %v501_v37 = vld [vmem:[%s7579_s7 + $0x6c8] sm:$0xff]  ;;  %v495_v38 = vld [vmem:[%s7579_s7 + $0x698] sm:$0xff]  ;;  %v5014_v40 = vpack.c.bf16 %v484_v31, %v476_v30  ;;  %v7767_v25 = vrot.slane %v2336_v11, %v7703_v12 }
  0x98   : > { %v503_v39 = vld [vmem:[%s7579_s7 + $0x6d8] sm:$0xff]  ;;  %v5526_v41 = vpack.c.bf16 %v486_v35, %v478_v32  ;;  %v5016_v42 = vpack.c.bf16 %v501_v37, %v493_v36  ;;  %v492_v43 = vld [vmem:[%s7579_s7 + $0x680] sm:$0xff]  ;;  %v494_v45 = vld [vmem:[%s7579_s7 + $0x690] sm:$0xff] }
  0x99   : > { %4999 = vmatpush1.bf16.msra.mxu0 %v4998_v50  ;;  %2484 = vmatprep.mubr.f32.mxu0 %v7725_v33  ;;  %v500_v44 = vld [vmem:[%s7579_s7 + $0x6c0] sm:$0xff]  ;;  %v5528_v46 = vpack.c.bf16 %v503_v39, %v495_v38  ;;  %v502_v47 = vld [vmem:[%s7579_s7 + $0x6d0] sm:$0xff]  ;;  %v509_v48 = vld [vmem:[%s7579_s7 + $0x708] sm:$0xff] }
  0x9a   : > { %5511 = vmatpush1.bf16.msra.mxu1 %v5510_v51  ;;  %5001 = vmatprep.subr.bf16.mxu0 %v5000_v52  ;;  %v517_v49 = vld [vmem:[%s7579_s7 + $0x748] sm:$0xff]  ;;  %v511_v50 = vld [vmem:[%s7579_s7 + $0x718] sm:$0xff]  ;;  %v5018_v52 = vpack.c.bf16 %v500_v44, %v492_v43  ;;  %v5530_v53 = vpack.c.bf16 %v502_v47, %v494_v45  ;;  %v508_v55 = vld [vmem:[%s7579_s7 + $0x700] sm:$0xff] }
  0x9b   : > { %5513 = vmatprep.subr.bf16.mxu1 %v5512_v56  ;;  %3052 = vmatprep.mubr.f32.mxu1 %v7725_v33  ;;  %v519_v51 = vld [vmem:[%s7579_s7 + $0x758] sm:$0xff]  ;;  %v5020_v54 = vpack.c.bf16 %v517_v49, %v509_v48  ;;  %v516_v56 = vld [vmem:[%s7579_s7 + $0x740] sm:$0xff]  ;;  %v510_v57 = vld [vmem:[%s7579_s7 + $0x710] sm:$0xff] }
  0x9c   : > { %v5532_v58 = vpack.c.bf16 %v519_v51, %v511_v50  ;;  %v518_v59 = vld [vmem:[%s7579_s7 + $0x750] sm:$0xff]  ;;  %v525_v60 = vld [vmem:[%s7579_s7 + $0x788] sm:$0xff]  ;;  %v527_v62 = vld [vmem:[%s7579_s7 + $0x798] sm:$0xff] }
  0x9d   : > { %5003 = vmatpush1.bf16.msra.mxu0 %v5002_v0  ;;  %v533_v61 = vld [vmem:[%s7579_s7 + $0x7c8] sm:$0xff]  ;;  %v535_v0 = vld [vmem:[%s7579_s7 + $0x7d8] sm:$0xff]  ;;  %v524_v4 = vld [vmem:[%s7579_s7 + $0x780] sm:$0xff] }
  0x9e   : > { %5515 = vmatpush1.bf16.msra.mxu1 %v5514_v1  ;;  %5005 = vmatprep.subr.bf16.mxu0 %v5004_v2  ;;  %v5022_v1 = vpack.c.bf16 %v516_v56, %v508_v55  ;;  %v5534_v2 = vpack.c.bf16 %v518_v59, %v510_v57  ;;  %v5024_v3 = vpack.c.bf16 %v533_v61, %v525_v60  ;;  %v532_v5 = vld [vmem:[%s7579_s7 + $0x7c0] sm:$0xff]  ;;  %v534_v8 = vld [vmem:[%s7579_s7 + $0x7d0] sm:$0xff]  ;;  %v541_v9 = vld [vmem:[%s7579_s7 + $0x808] sm:$0xff] }
  0x9f   : > { %5517 = vmatprep.subr.bf16.mxu1 %v5516_v6  ;;  %v526_v6 = vld [vmem:[%s7579_s7 + $0x790] sm:$0xff]  ;;  %v5536_v7 = vpack.c.bf16 %v535_v0, %v527_v62  ;;  %v549_v10 = vld [vmem:[%s7579_s7 + $0x848] sm:$0xff]  ;;  %v551_v14 = vld [vmem:[%s7579_s7 + $0x858] sm:$0xff] }
  0xa0   : > { %v5028_v17 = vpack.c.bf16 %v549_v10, %v541_v9  ;;  %v540_v18 = vld [vmem:[%s7579_s7 + $0x800] sm:$0xff]  ;;  %v550_v22 = vld [vmem:[%s7579_s7 + $0x850] sm:$0xff]  ;;  %v557_v23 = vld [vmem:[%s7579_s7 + $0x888] sm:$0xff] }
  0xa1   : > { %5007 = vmatpush1.bf16.msra.mxu0 %v5006_v13  ;;  %v543_v13 = vld [vmem:[%s7579_s7 + $0x818] sm:$0xff]  ;;  %v548_v19 = vld [vmem:[%s7579_s7 + $0x840] sm:$0xff]  ;;  %v565_v24 = vld [vmem:[%s7579_s7 + $0x8c8] sm:$0xff] }
  0xa2   : > { %5519 = vmatpush1.bf16.msra.mxu1 %v5518_v15  ;;  %5009 = vmatprep.subr.bf16.mxu0 %v5008_v16  ;;  %v5026_v15 = vpack.c.bf16 %v532_v5, %v524_v4  ;;  %v5538_v16 = vpack.c.bf16 %v534_v8, %v526_v6  ;;  %v5540_v21 = vpack.c.bf16 %v551_v14, %v543_v13  ;;  %v556_v32 = vld [vmem:[%s7579_s7 + $0x880] sm:$0xff]  ;;  %v558_v35 = vld [vmem:[%s7579_s7 + $0x890] sm:$0xff]  ;;  %v573_v38 = vld [vmem:[%s7579_s7 + $0x908] sm:$0xff] }
  0xa3   : > { %5521 = vmatprep.subr.bf16.mxu1 %v5520_v20  ;;  %v542_v20 = vld [vmem:[%s7579_s7 + $0x810] sm:$0xff]  ;;  %v5032_v31 = vpack.c.bf16 %v565_v24, %v557_v23  ;;  %v581_v39 = vld [vmem:[%s7579_s7 + $0x948] sm:$0xff]  ;;  %v580_v47 = vld [vmem:[%s7579_s7 + $0x940] sm:$0xff] }
  0xa4   : > { %v5542_v30 = vpack.c.bf16 %v550_v22, %v542_v20  ;;  %v566_v37 = vld [vmem:[%s7579_s7 + $0x8d0] sm:$0xff]  ;;  %v5036_v45 = vpack.c.bf16 %v581_v39, %v573_v38  ;;  %v589_v51 = vld [vmem:[%s7579_s7 + $0x988] sm:$0xff]  ;;  %v596_v59 = vld [vmem:[%s7579_s7 + $0x9c0] sm:$0xff] }
  0xa5   : > { %5011 = vmatpush1.bf16.msra.mxu0 %v5010_v27  ;;  %v559_v27 = vld [vmem:[%s7579_s7 + $0x898] sm:$0xff]  ;;  %v5546_v44 = vpack.c.bf16 %v566_v37, %v558_v35  ;;  %v574_v48 = vld [vmem:[%s7579_s7 + $0x910] sm:$0xff]  ;;  %v605_v0 = vld [vmem:[%s7579_s7 + $0xa08] sm:$0xff] }
  0xa6   : > { %5523 = vmatpush1.bf16.msra.mxu1 %v5522_v28  ;;  %5013 = vmatprep.subr.bf16.mxu0 %v5012_v29  ;;  %v567_v28 = vld [vmem:[%s7579_s7 + $0x8d8] sm:$0xff]  ;;  %v5030_v29 = vpack.c.bf16 %v548_v19, %v540_v18  ;;  %v582_v50 = vld [vmem:[%s7579_s7 + $0x950] sm:$0xff]  ;;  %v612_v8 = vld [vmem:[%s7579_s7 + $0xa40] sm:$0xff] }
  0xa7   : > { %5525 = vmatprep.subr.bf16.mxu1 %v5524_v34  ;;  %v564_v34 = vld [vmem:[%s7579_s7 + $0x8c0] sm:$0xff]  ;;  %v5544_v36 = vpack.c.bf16 %v567_v28, %v559_v27  ;;  %v5550_v56 = vpack.c.bf16 %v582_v50, %v574_v48  ;;  %v590_v60 = vld [vmem:[%s7579_s7 + $0x990] sm:$0xff]  ;;  %v621_v13 = vld [vmem:[%s7579_s7 + $0xa88] sm:$0xff] }
  0xa8   : > { %v5034_v43 = vpack.c.bf16 %v564_v34, %v556_v32  ;;  %v598_v62 = vld [vmem:[%s7579_s7 + $0x9d0] sm:$0xff]  ;;  %v629_v14 = vld [vmem:[%s7579_s7 + $0xac8] sm:$0xff]  ;;  %v620_v20 = vld [vmem:[%s7579_s7 + $0xa80] sm:$0xff] }
  0xa9   : > { %5015 = vmatpush1.bf16.msra.mxu0 %v5014_v40  ;;  %v7779_v40 = vcombine.high %v7767_v25, %v7767_v25  ;;  %v5554_v5 = vpack.c.bf16 %v598_v62, %v590_v60  ;;  %v606_v9 = vld [vmem:[%s7579_s7 + $0xa10] sm:$0xff]  ;;  %v5048_v19 = vpack.c.bf16 %v629_v14, %v621_v13  ;;  %v637_v27 = vld [vmem:[%s7579_s7 + $0xb08] sm:$0xff]  ;;  %v636_v35 = vld [vmem:[%s7579_s7 + $0xb00] sm:$0xff] }
  0xaa   : > { %5527 = vmatpush1.bf16.msra.mxu1 %v5526_v41  ;;  %5017 = vmatprep.subr.bf16.mxu0 %v5016_v42  ;;  %v575_v41 = vld [vmem:[%s7579_s7 + $0x918] sm:$0xff]  ;;  %v614_v11 = vld [vmem:[%s7579_s7 + $0xa50] sm:$0xff]  ;;  %v645_v28 = vld [vmem:[%s7579_s7 + $0xb48] sm:$0xff] }
  0xab   : > { %5529 = vmatprep.subr.bf16.mxu1 %v5528_v46  ;;  %v583_v42 = vld [vmem:[%s7579_s7 + $0x958] sm:$0xff]  ;;  %v572_v46 = vld [vmem:[%s7579_s7 + $0x900] sm:$0xff]  ;;  %v5558_v18 = vpack.c.bf16 %v614_v11, %v606_v9  ;;  %v622_v22 = vld [vmem:[%s7579_s7 + $0xa90] sm:$0xff]  ;;  %v5052_v34 = vpack.c.bf16 %v645_v28, %v637_v27 }
  0xac   : > { %v5548_v49 = vpack.c.bf16 %v583_v42, %v575_v41  ;;  %v5038_v55 = vpack.c.bf16 %v580_v47, %v572_v46  ;;  %v630_v24 = vld [vmem:[%s7579_s7 + $0xad0] sm:$0xff]  ;;  %v653_v41 = vld [vmem:[%s7579_s7 + $0xb88] sm:$0xff]  ;;  %v652_v48 = vld [vmem:[%s7579_s7 + $0xb80] sm:$0xff] }
  0xad   : > { %5019 = vmatpush1.bf16.msra.mxu0 %v5018_v52  ;;  %v597_v52 = vld [vmem:[%s7579_s7 + $0x9c8] sm:$0xff]  ;;  %v5562_v32 = vpack.c.bf16 %v630_v24, %v622_v22  ;;  %v638_v37 = vld [vmem:[%s7579_s7 + $0xb10] sm:$0xff]  ;;  %v668_v60 = vld [vmem:[%s7579_s7 + $0xc00] sm:$0xff] }
  0xae   : > { %5531 = vmatpush1.bf16.msra.mxu1 %v5530_v53  ;;  %5021 = vmatprep.subr.bf16.mxu0 %v5020_v54  ;;  %v591_v53 = vld [vmem:[%s7579_s7 + $0x998] sm:$0xff]  ;;  %v5040_v57 = vpack.c.bf16 %v597_v52, %v589_v51  ;;  %v646_v39 = vld [vmem:[%s7579_s7 + $0xb50] sm:$0xff]  ;;  %v661_v42 = vld [vmem:[%s7579_s7 + $0xbc8] sm:$0xff] }
  0xaf   : > { %5533 = vmatprep.subr.bf16.mxu1 %v5532_v58  ;;  %v599_v54 = vld [vmem:[%s7579_s7 + $0x9d8] sm:$0xff]  ;;  %v588_v58 = vld [vmem:[%s7579_s7 + $0x980] sm:$0xff]  ;;  %v5566_v46 = vpack.c.bf16 %v646_v39, %v638_v37  ;;  %v5056_v47 = vpack.c.bf16 %v661_v42, %v653_v41  ;;  %v654_v50 = vld [vmem:[%s7579_s7 + $0xb90] sm:$0xff] }
  0xb0   : > { %v5552_v61 = vpack.c.bf16 %v599_v54, %v591_v53  ;;  %v5042_v4 = vpack.c.bf16 %v596_v59, %v588_v58  ;;  %v662_v52 = vld [vmem:[%s7579_s7 + $0xbd0] sm:$0xff]  ;;  %v669_v53 = vld [vmem:[%s7579_s7 + $0xc08] sm:$0xff]  ;;  %v684_v9 = vld [vmem:[%s7579_s7 + $0xc80] sm:$0xff] }
  0xb1   : > { %5023 = vmatpush1.bf16.msra.mxu0 %v5022_v1  ;;  %v613_v1 = vld [vmem:[%s7579_s7 + $0xa48] sm:$0xff]  ;;  %v5570_v58 = vpack.c.bf16 %v662_v52, %v654_v50  ;;  %v670_v62 = vld [vmem:[%s7579_s7 + $0xc10] sm:$0xff]  ;;  %v700_v22 = vld [vmem:[%s7579_s7 + $0xd00] sm:$0xff] }
  0xb2   : > { %5535 = vmatpush1.bf16.msra.mxu1 %v5534_v2  ;;  %5025 = vmatprep.subr.bf16.mxu0 %v5024_v3  ;;  %v607_v2 = vld [vmem:[%s7579_s7 + $0xa18] sm:$0xff]  ;;  %v5044_v6 = vpack.c.bf16 %v613_v1, %v605_v0  ;;  %v677_v54 = vld [vmem:[%s7579_s7 + $0xc48] sm:$0xff]  ;;  %v678_v1 = vld [vmem:[%s7579_s7 + $0xc50] sm:$0xff] }
  0xb3   : > { %5537 = vmatprep.subr.bf16.mxu1 %v5536_v7  ;;  %v615_v3 = vld [vmem:[%s7579_s7 + $0xa58] sm:$0xff]  ;;  %v604_v7 = vld [vmem:[%s7579_s7 + $0xa00] sm:$0xff]  ;;  %v5060_v59 = vpack.c.bf16 %v677_v54, %v669_v53  ;;  %v686_v11 = vld [vmem:[%s7579_s7 + $0xc90] sm:$0xff] }
  0xb4   : > { %v5556_v10 = vpack.c.bf16 %v615_v3, %v607_v2  ;;  %v685_v2 = vld [vmem:[%s7579_s7 + $0xc88] sm:$0xff]  ;;  %v694_v14 = vld [vmem:[%s7579_s7 + $0xcd0] sm:$0xff]  ;;  %v716_v37 = vld [vmem:[%s7579_s7 + $0xd80] sm:$0xff] }
  0xb5   : > { %5027 = vmatpush1.bf16.msra.mxu0 %v5026_v15  ;;  %v623_v15 = vld [vmem:[%s7579_s7 + $0xa98] sm:$0xff]  ;;  %v693_v3 = vld [vmem:[%s7579_s7 + $0xcc8] sm:$0xff]  ;;  %v702_v24 = vld [vmem:[%s7579_s7 + $0xd10] sm:$0xff] }
  0xb6   : > { %5539 = vmatpush1.bf16.msra.mxu1 %v5538_v16  ;;  %5029 = vmatprep.subr.bf16.mxu0 %v5028_v17  ;;  %v631_v16 = vld [vmem:[%s7579_s7 + $0xad8] sm:$0xff]  ;;  %v5046_v17 = vpack.c.bf16 %v612_v8, %v604_v7  ;;  %v5574_v7 = vpack.c.bf16 %v678_v1, %v670_v62  ;;  %v5064_v8 = vpack.c.bf16 %v693_v3, %v685_v2  ;;  %v710_v28 = vld [vmem:[%s7579_s7 + $0xd50] sm:$0xff]  ;;  %v732_v50 = vld [vmem:[%s7579_s7 + $0xe00] sm:$0xff] }
  0xb7   : > { %5541 = vmatprep.subr.bf16.mxu1 %v5540_v21  ;;  %v628_v21 = vld [vmem:[%s7579_s7 + $0xac0] sm:$0xff]  ;;  %v5560_v23 = vpack.c.bf16 %v631_v16, %v623_v15  ;;  %v701_v15 = vld [vmem:[%s7579_s7 + $0xd08] sm:$0xff]  ;;  %v718_v39 = vld [vmem:[%s7579_s7 + $0xd90] sm:$0xff] }
  0xb8   : > { %2485 = vmatmul.mubr.f32.vlgmr.msra.gmra.mrb[0].mxu0 %v7718_v26  ;;  %v709_v16 = vld [vmem:[%s7579_s7 + $0xd48] sm:$0xff]  ;;  %v726_v42 = vld [vmem:[%s7579_s7 + $0xdd0] sm:$0xff]  ;;  %v748_v62 = vld [vmem:[%s7579_s7 + $0xe80] sm:$0xff] }
  0xb9   : > { %5031 = vmatpush1.bf16.msra.mxu0 %v5030_v29  ;;  %3053 = vmatmul.mubr.f32.vlgmr.msra.gmra.mrb[0].mxu1 %v7718_v26  ;;  %v639_v29 = vld [vmem:[%s7579_s7 + $0xb18] sm:$0xff]  ;;  %v734_v52 = vld [vmem:[%s7579_s7 + $0xe10] sm:$0xff] }
  0xba   : > { %5543 = vmatpush1.bf16.msra.mxu1 %v5542_v30  ;;  %5033 = vmatprep.subr.bf16.mxu0 %v5032_v31  ;;  %v647_v30 = vld [vmem:[%s7579_s7 + $0xb58] sm:$0xff]  ;;  %v5050_v31 = vpack.c.bf16 %v628_v21, %v620_v20  ;;  %v5578_v20 = vpack.c.bf16 %v694_v14, %v686_v11  ;;  %v5068_v21 = vpack.c.bf16 %v709_v16, %v701_v15  ;;  %v742_v54 = vld [vmem:[%s7579_s7 + $0xe50] sm:$0xff]  ;;  %v764_v11 = vld [vmem:[%s7579_s7 + $0xf00] sm:$0xff] }
  0xbb   : > { %5545 = vmatprep.subr.bf16.mxu1 %v5544_v36  ;;  %2555 = vmatprep.mubr.f32.mxu0 %v7779_v40  ;;  %v644_v36 = vld [vmem:[%s7579_s7 + $0xb40] sm:$0xff]  ;;  %v5564_v38 = vpack.c.bf16 %v647_v30, %v639_v29  ;;  %v717_v29 = vld [vmem:[%s7579_s7 + $0xd88] sm:$0xff]  ;;  %v750_v1 = vld [vmem:[%s7579_s7 + $0xe90] sm:$0xff] }
  0xbc   : > { %3123 = vmatprep.mubr.f32.mxu1 %v7779_v40  ;;  %v725_v30 = vld [vmem:[%s7579_s7 + $0xdc8] sm:$0xff]  ;;  %v758_v3 = vld [vmem:[%s7579_s7 + $0xed0] sm:$0xff] }
  0xbd   : > { %5035 = vmatpush1.bf16.msra.mxu0 %v5034_v43  ;;  %v655_v43 = vld [vmem:[%s7579_s7 + $0xb98] sm:$0xff]  ;;  %v766_v14 = vld [vmem:[%s7579_s7 + $0xf10] sm:$0xff] }
  0xbe   : > { %5547 = vmatpush1.bf16.msra.mxu1 %v5546_v44  ;;  %5037 = vmatprep.subr.bf16.mxu0 %v5036_v45  ;;  %v663_v44 = vld [vmem:[%s7579_s7 + $0xbd8] sm:$0xff]  ;;  %v5054_v45 = vpack.c.bf16 %v644_v36, %v636_v35  ;;  %v5582_v35 = vpack.c.bf16 %v710_v28, %v702_v24  ;;  %v5072_v36 = vpack.c.bf16 %v725_v30, %v717_v29  ;;  %v774_v16 = vld [vmem:[%s7579_s7 + $0xf50] sm:$0xff]  ;;  %v780_v24 = vld [vmem:[%s7579_s7 + $0xf80] sm:$0xff] }
  0xbf   : > { %5549 = vmatprep.subr.bf16.mxu1 %v5548_v49  ;;  %v660_v49 = vld [vmem:[%s7579_s7 + $0xbc0] sm:$0xff]  ;;  %v5568_v51 = vpack.c.bf16 %v663_v44, %v655_v43  ;;  %v733_v43 = vld [vmem:[%s7579_s7 + $0xe08] sm:$0xff]  ;;  %v782_v28 = vld [vmem:[%s7579_s7 + $0xf90] sm:$0xff] }
  0xc0   : > { %v741_v44 = vld [vmem:[%s7579_s7 + $0xe48] sm:$0xff]  ;;  %v790_v30 = vld [vmem:[%s7579_s7 + $0xfd0] sm:$0xff] }
  0xc1   : > { %5039 = vmatpush1.bf16.msra.mxu0 %v5038_v55  ;;  %v671_v55 = vld [vmem:[%s7579_s7 + $0xc18] sm:$0xff] }
  0xc2   : > { %5551 = vmatpush1.bf16.msra.mxu1 %v5550_v56  ;;  %5041 = vmatprep.subr.bf16.mxu0 %v5040_v57  ;;  %v679_v56 = vld [vmem:[%s7579_s7 + $0xc58] sm:$0xff]  ;;  %v5058_v57 = vpack.c.bf16 %v660_v49, %v652_v48  ;;  %v5586_v48 = vpack.c.bf16 %v726_v42, %v718_v39  ;;  %v5076_v49 = vpack.c.bf16 %v741_v44, %v733_v43  ;;  %v796_v39 = vld [vmem:[%s7579_s7 + $0x1000] sm:$0xff]  ;;  %v798_v42 = vld [vmem:[%s7579_s7 + $0x1010] sm:$0xff] }
  0xc3   : > { %5553 = vmatprep.subr.bf16.mxu1 %v5552_v61  ;;  %v676_v61 = vld [vmem:[%s7579_s7 + $0xc40] sm:$0xff]  ;;  %v5572_v0 = vpack.c.bf16 %v679_v56, %v671_v55  ;;  %v749_v55 = vld [vmem:[%s7579_s7 + $0xe88] sm:$0xff]  ;;  %v806_v44 = vld [vmem:[%s7579_s7 + $0x1050] sm:$0xff] }
  0xc4   : > { %v757_v56 = vld [vmem:[%s7579_s7 + $0xec8] sm:$0xff] }
  0xc5   : > { %5043 = vmatpush1.bf16.msra.mxu0 %v5042_v4  ;;  %v687_v4 = vld [vmem:[%s7579_s7 + $0xc98] sm:$0xff] }
  0xc6   : > { %5555 = vmatpush1.bf16.msra.mxu1 %v5554_v5  ;;  %5045 = vmatprep.subr.bf16.mxu0 %v5044_v6  ;;  %v695_v5 = vld [vmem:[%s7579_s7 + $0xcd8] sm:$0xff]  ;;  %v5062_v6 = vpack.c.bf16 %v676_v61, %v668_v60  ;;  %v5590_v60 = vpack.c.bf16 %v742_v54, %v734_v52  ;;  %v5080_v61 = vpack.c.bf16 %v757_v56, %v749_v55  ;;  %v820_v54 = vld [vmem:[%s7579_s7 + $0x10c0] sm:$0xff]  ;;  %v814_v55 = vld [vmem:[%s7579_s7 + $0x1090] sm:$0xff] }
  0xc7   : > { %5557 = vmatprep.subr.bf16.mxu1 %v5556_v10  ;;  %v692_v10 = vld [vmem:[%s7579_s7 + $0xcc0] sm:$0xff]  ;;  %v5576_v13 = vpack.c.bf16 %v695_v5, %v687_v4  ;;  %v765_v4 = vld [vmem:[%s7579_s7 + $0xf08] sm:$0xff] }
  0xc8   : > { %v773_v5 = vld [vmem:[%s7579_s7 + $0xf48] sm:$0xff] }
  0xc9   : > { %5047 = vmatpush1.bf16.msra.mxu0 %v5046_v17  ;;  %v703_v17 = vld [vmem:[%s7579_s7 + $0xd18] sm:$0xff] }
  0xca   : > { %5559 = vmatpush1.bf16.msra.mxu1 %v5558_v18  ;;  %5049 = vmatprep.subr.bf16.mxu0 %v5048_v19  ;;  %v711_v18 = vld [vmem:[%s7579_s7 + $0xd58] sm:$0xff]  ;;  %v5066_v19 = vpack.c.bf16 %v692_v10, %v684_v9  ;;  %v5594_v9 = vpack.c.bf16 %v758_v3, %v750_v1  ;;  %v5084_v10 = vpack.c.bf16 %v773_v5, %v765_v4  ;;  %v828_v4 = vld [vmem:[%s7579_s7 + $0x1100] sm:$0xff] }
  0xcb   : > { %5561 = vmatprep.subr.bf16.mxu1 %v5560_v23  ;;  %v708_v23 = vld [vmem:[%s7579_s7 + $0xd40] sm:$0xff]  ;;  %v5580_v27 = vpack.c.bf16 %v711_v18, %v703_v17  ;;  %v781_v17 = vld [vmem:[%s7579_s7 + $0xf88] sm:$0xff] }
  0xcc   : > { %v789_v18 = vld [vmem:[%s7579_s7 + $0xfc8] sm:$0xff]  ;;  %v836_v5 = vld [vmem:[%s7579_s7 + $0x1140] sm:$0xff] }
  0xcd   : > { %5051 = vmatpush1.bf16.msra.mxu0 %v5050_v31  ;;  %v719_v31 = vld [vmem:[%s7579_s7 + $0xd98] sm:$0xff] }
  0xce   : > { %5563 = vmatpush1.bf16.msra.mxu1 %v5562_v32  ;;  %5053 = vmatprep.subr.bf16.mxu0 %v5052_v34  ;;  %v727_v32 = vld [vmem:[%s7579_s7 + $0xdd8] sm:$0xff]  ;;  %v5070_v34 = vpack.c.bf16 %v708_v23, %v700_v22  ;;  %v5598_v22 = vpack.c.bf16 %v774_v16, %v766_v14  ;;  %v5088_v23 = vpack.c.bf16 %v789_v18, %v781_v17  ;;  %v844_v17 = vld [vmem:[%s7579_s7 + $0x1180] sm:$0xff] }
  0xcf   : > { %5565 = vmatprep.subr.bf16.mxu1 %v5564_v38  ;;  %v724_v38 = vld [vmem:[%s7579_s7 + $0xdc0] sm:$0xff]  ;;  %v5584_v41 = vpack.c.bf16 %v727_v32, %v719_v31  ;;  %v797_v31 = vld [vmem:[%s7579_s7 + $0x1008] sm:$0xff]  ;;  %v5102_v14 = vpack.c.bf16 %v836_v5, %v828_v4  ;;  %v911_v4 = vld [vmem:[%s7579_s7 + $0x1398] sm:$0xff] }
  0xd0   : > { %v805_v32 = vld [vmem:[%s7579_s7 + $0x1048] sm:$0xff]  ;;  %v852_v18 = vld [vmem:[%s7579_s7 + $0x11c0] sm:$0xff]  ;;  %v919_v5 = vld [vmem:[%s7579_s7 + $0x13d8] sm:$0xff] }
  0xd1   : > { %5055 = vmatpush1.bf16.msra.mxu0 %v5054_v45  ;;  %v735_v45 = vld [vmem:[%s7579_s7 + $0xe18] sm:$0xff] }
  0xd2   : > { %5567 = vmatpush1.bf16.msra.mxu1 %v5566_v46  ;;  %5057 = vmatprep.subr.bf16.mxu0 %v5056_v47  ;;  %v743_v46 = vld [vmem:[%s7579_s7 + $0xe58] sm:$0xff]  ;;  %v5074_v47 = vpack.c.bf16 %v724_v38, %v716_v37  ;;  %v5602_v37 = vpack.c.bf16 %v790_v30, %v782_v28  ;;  %v5092_v38 = vpack.c.bf16 %v805_v32, %v797_v31  ;;  %v860_v31 = vld [vmem:[%s7579_s7 + $0x1200] sm:$0xff] }
  0xd3   : > { %5569 = vmatprep.subr.bf16.mxu1 %v5568_v51  ;;  %v740_v51 = vld [vmem:[%s7579_s7 + $0xe40] sm:$0xff]  ;;  %v5588_v53 = vpack.c.bf16 %v743_v46, %v735_v45  ;;  %v813_v45 = vld [vmem:[%s7579_s7 + $0x1088] sm:$0xff]  ;;  %v5106_v28 = vpack.c.bf16 %v852_v18, %v844_v17  ;;  %v927_v17 = vld [vmem:[%s7579_s7 + $0x1418] sm:$0xff] }
  0xd4   : > { %v821_v46 = vld [vmem:[%s7579_s7 + $0x10c8] sm:$0xff]  ;;  %v868_v32 = vld [vmem:[%s7579_s7 + $0x1240] sm:$0xff]  ;;  %v935_v18 = vld [vmem:[%s7579_s7 + $0x1458] sm:$0xff] }
  0xd5   : > { %5059 = vmatpush1.bf16.msra.mxu0 %v5058_v57  ;;  %v751_v57 = vld [vmem:[%s7579_s7 + $0xe98] sm:$0xff]  ;;  %v5096_v52 = vpack.c.bf16 %v821_v46, %v813_v45  ;;  %v876_v45 = vld [vmem:[%s7579_s7 + $0x1280] sm:$0xff] }
  0xd6   : > { %5571 = vmatpush1.bf16.msra.mxu1 %v5570_v58  ;;  %5061 = vmatprep.subr.bf16.mxu0 %v5060_v59  ;;  %v759_v58 = vld [vmem:[%s7579_s7 + $0xed8] sm:$0xff]  ;;  %v5078_v59 = vpack.c.bf16 %v740_v51, %v732_v50  ;;  %v7908_v50 = vld [vmem:[%s7598_s26 + $0x8] sm:$0xff]  ;;  %v5606_v51 = vpack.c.bf16 %v806_v44, %v798_v42  ;;  %v5110_v42 = vpack.c.bf16 %v868_v32, %v860_v31  ;;  %v884_v46 = vld [vmem:[%s7579_s7 + $0x12c0] sm:$0xff] }
  0xd7   : > { %5573 = vmatprep.subr.bf16.mxu1 %v5572_v0  ;;  %v756_v0 = vld [vmem:[%s7579_s7 + $0xec0] sm:$0xff]  ;;  %v5592_v2 = vpack.c.bf16 %v759_v58, %v751_v57  ;;  %v7915_v56 = vrot.slane %v7908_v50, %v7703_v12  ;;  %v822_v58 = vld [vmem:[%s7579_s7 + $0x10d0] sm:$0xff]  ;;  %v943_v31 = vld [vmem:[%s7579_s7 + $0x1498] sm:$0xff] }
  0xd8   : > { %v951_v32 = vld [vmem:[%s7579_s7 + $0x14d8] sm:$0xff] }
  0xd9   : > { %5063 = vmatpush1.bf16.msra.mxu0 %v5062_v6  ;;  %v767_v6 = vld [vmem:[%s7579_s7 + $0xf18] sm:$0xff] }
  0xda   : > { %5575 = vmatpush1.bf16.msra.mxu1 %v5574_v7  ;;  %5065 = vmatprep.subr.bf16.mxu0 %v5064_v8  ;;  %v775_v7 = vld [vmem:[%s7579_s7 + $0xf58] sm:$0xff]  ;;  %v5082_v8 = vpack.c.bf16 %v756_v0, %v748_v62  ;;  %v7925_v0 = vcombine.high %v7915_v56, %v7915_v56 }
  0xdb   : > { %5577 = vmatprep.subr.bf16.mxu1 %v5576_v13  ;;  %v772_v13 = vld [vmem:[%s7579_s7 + $0xf40] sm:$0xff]  ;;  %v5596_v15 = vpack.c.bf16 %v775_v7, %v767_v6  ;;  %v839_v62 = vld [vmem:[%s7579_s7 + $0x1158] sm:$0xff]  ;;  %v830_v6 = vld [vmem:[%s7579_s7 + $0x1110] sm:$0xff] }
  0xdd   : > { %5067 = vmatpush1.bf16.msra.mxu0 %v5066_v19  ;;  %v783_v19 = vld [vmem:[%s7579_s7 + $0xf98] sm:$0xff] }
  0xde   : > { %5579 = vmatpush1.bf16.msra.mxu1 %v5578_v20  ;;  %5069 = vmatprep.subr.bf16.mxu0 %v5068_v21  ;;  %v791_v20 = vld [vmem:[%s7579_s7 + $0xfd8] sm:$0xff]  ;;  %v5086_v21 = vpack.c.bf16 %v772_v13, %v764_v11 }
  0xdf   : > { %5581 = vmatprep.subr.bf16.mxu1 %v5580_v27  ;;  %v788_v27 = vld [vmem:[%s7579_s7 + $0xfc0] sm:$0xff]  ;;  %v5600_v29 = vpack.c.bf16 %v791_v20, %v783_v19  ;;  %v847_v11 = vld [vmem:[%s7579_s7 + $0x1198] sm:$0xff]  ;;  %v846_v19 = vld [vmem:[%s7579_s7 + $0x1190] sm:$0xff] }
  0xe0   : > { %v855_v13 = vld [vmem:[%s7579_s7 + $0x11d8] sm:$0xff] }
  0xe1   : > { %5071 = vmatpush1.bf16.msra.mxu0 %v5070_v34  ;;  %v799_v34 = vld [vmem:[%s7579_s7 + $0x1018] sm:$0xff]  ;;  %v5616_v20 = vpack.c.bf16 %v855_v13, %v847_v11  ;;  %v910_v11 = vld [vmem:[%s7579_s7 + $0x1390] sm:$0xff]  ;;  %v5632_v13 = vpack.c.bf16 %v919_v5, %v911_v4 }
  0xe2   : > { %5583 = vmatpush1.bf16.msra.mxu1 %v5582_v35  ;;  %5073 = vmatprep.subr.bf16.mxu0 %v5072_v36  ;;  %v807_v35 = vld [vmem:[%s7579_s7 + $0x1058] sm:$0xff]  ;;  %v5090_v36 = vpack.c.bf16 %v788_v27, %v780_v24  ;;  %v974_v4 = vld [vmem:[%s7579_s7 + $0x1590] sm:$0xff] }
  0xe3   : > { %5585 = vmatprep.subr.bf16.mxu1 %v5584_v41  ;;  %v804_v41 = vld [vmem:[%s7579_s7 + $0x1040] sm:$0xff]  ;;  %v5604_v43 = vpack.c.bf16 %v807_v35, %v799_v34  ;;  %v863_v24 = vld [vmem:[%s7579_s7 + $0x1218] sm:$0xff]  ;;  %v862_v34 = vld [vmem:[%s7579_s7 + $0x1210] sm:$0xff] }
  0xe4   : > { %v871_v27 = vld [vmem:[%s7579_s7 + $0x1258] sm:$0xff] }
  0xe5   : > { %5075 = vmatpush1.bf16.msra.mxu0 %v5074_v47  ;;  %v815_v47 = vld [vmem:[%s7579_s7 + $0x1098] sm:$0xff]  ;;  %v5620_v35 = vpack.c.bf16 %v871_v27, %v863_v24  ;;  %v926_v24 = vld [vmem:[%s7579_s7 + $0x1410] sm:$0xff]  ;;  %v5636_v27 = vpack.c.bf16 %v935_v18, %v927_v17 }
  0xe6   : > { %5587 = vmatpush1.bf16.msra.mxu1 %v5586_v48  ;;  %5077 = vmatprep.subr.bf16.mxu0 %v5076_v49  ;;  %v823_v48 = vld [vmem:[%s7579_s7 + $0x10d8] sm:$0xff]  ;;  %v5094_v49 = vpack.c.bf16 %v804_v41, %v796_v39  ;;  %v990_v17 = vld [vmem:[%s7579_s7 + $0x1610] sm:$0xff] }
  0xe7   : > { %5589 = vmatprep.subr.bf16.mxu1 %v5588_v53  ;;  %v812_v53 = vld [vmem:[%s7579_s7 + $0x1080] sm:$0xff]  ;;  %v5608_v57 = vpack.c.bf16 %v823_v48, %v815_v47  ;;  %v879_v39 = vld [vmem:[%s7579_s7 + $0x1298] sm:$0xff]  ;;  %v878_v47 = vld [vmem:[%s7579_s7 + $0x1290] sm:$0xff] }
  0xe8   : > { %v5098_v1 = vpack.c.bf16 %v820_v54, %v812_v53  ;;  %v887_v41 = vld [vmem:[%s7579_s7 + $0x12d8] sm:$0xff] }
  0xe9   : > { %5079 = vmatpush1.bf16.msra.mxu0 %v5078_v59  ;;  %v829_v59 = vld [vmem:[%s7579_s7 + $0x1108] sm:$0xff]  ;;  %v5624_v48 = vpack.c.bf16 %v887_v41, %v879_v39  ;;  %v895_v53 = vld [vmem:[%s7579_s7 + $0x1318] sm:$0xff]  ;;  %v942_v39 = vld [vmem:[%s7579_s7 + $0x1490] sm:$0xff]  ;;  %v5640_v41 = vpack.c.bf16 %v951_v32, %v943_v31 }
  0xea   : > { %5591 = vmatpush1.bf16.msra.mxu1 %v5590_v60  ;;  %5081 = vmatprep.subr.bf16.mxu0 %v5080_v61  ;;  %v837_v60 = vld [vmem:[%s7579_s7 + $0x1148] sm:$0xff]  ;;  %v831_v61 = vld [vmem:[%s7579_s7 + $0x1118] sm:$0xff]  ;;  %v1006_v31 = vld [vmem:[%s7579_s7 + $0x1690] sm:$0xff] }
  0xeb   : > { %5593 = vmatprep.subr.bf16.mxu1 %v5592_v2  ;;  %v5610_v2 = vpack.c.bf16 %v822_v58, %v814_v55  ;;  %v5100_v3 = vpack.c.bf16 %v837_v60, %v829_v59  ;;  %v5612_v7 = vpack.c.bf16 %v839_v62, %v831_v61  ;;  %v903_v54 = vld [vmem:[%s7579_s7 + $0x1358] sm:$0xff]  ;;  %v5114_v55 = vpack.c.bf16 %v884_v46, %v876_v45  ;;  %v892_v59 = vld [vmem:[%s7579_s7 + $0x1300] sm:$0xff]  ;;  %v894_v61 = vld [vmem:[%s7579_s7 + $0x1310] sm:$0xff] }
  0xec   : > { %v900_v60 = vld [vmem:[%s7579_s7 + $0x1340] sm:$0xff]  ;;  %v5628_v62 = vpack.c.bf16 %v903_v54, %v895_v53  ;;  %v959_v45 = vld [vmem:[%s7579_s7 + $0x1518] sm:$0xff]  ;;  %v958_v53 = vld [vmem:[%s7579_s7 + $0x1510] sm:$0xff] }
  0xed   : > { %5083 = vmatpush1.bf16.msra.mxu0 %v5082_v8  ;;  %v838_v8 = vld [vmem:[%s7579_s7 + $0x1150] sm:$0xff]  ;;  %v967_v46 = vld [vmem:[%s7579_s7 + $0x1558] sm:$0xff] }
  0xee   : > { %5595 = vmatpush1.bf16.msra.mxu1 %v5594_v9  ;;  %5085 = vmatprep.subr.bf16.mxu0 %v5084_v10  ;;  %v845_v9 = vld [vmem:[%s7579_s7 + $0x1188] sm:$0xff]  ;;  %v5644_v54 = vpack.c.bf16 %v967_v46, %v959_v45  ;;  %v1022_v45 = vld [vmem:[%s7579_s7 + $0x1710] sm:$0xff] }
  0xef   : > { %5597 = vmatprep.subr.bf16.mxu1 %v5596_v15  ;;  %v853_v10 = vld [vmem:[%s7579_s7 + $0x11c8] sm:$0xff]  ;;  %v5614_v15 = vpack.c.bf16 %v838_v8, %v830_v6  ;;  %v5118_v6 = vpack.c.bf16 %v900_v60, %v892_v59  ;;  %v975_v59 = vld [vmem:[%s7579_s7 + $0x1598] sm:$0xff] }
  0xf0   : > { %v5104_v16 = vpack.c.bf16 %v853_v10, %v845_v9  ;;  %v908_v9 = vld [vmem:[%s7579_s7 + $0x1380] sm:$0xff]  ;;  %v983_v60 = vld [vmem:[%s7579_s7 + $0x15d8] sm:$0xff] }
  0xf1   : > { %5087 = vmatpush1.bf16.msra.mxu0 %v5086_v21  ;;  %v854_v21 = vld [vmem:[%s7579_s7 + $0x11d0] sm:$0xff]  ;;  %v916_v10 = vld [vmem:[%s7579_s7 + $0x13c0] sm:$0xff]  ;;  %v5648_v5 = vpack.c.bf16 %v983_v60, %v975_v59 }
  0xf2   : > { %5599 = vmatpush1.bf16.msra.mxu1 %v5598_v22  ;;  %5089 = vmatprep.subr.bf16.mxu0 %v5088_v23  ;;  %v861_v22 = vld [vmem:[%s7579_s7 + $0x1208] sm:$0xff]  ;;  %v1038_v59 = vld [vmem:[%s7579_s7 + $0x1790] sm:$0xff] }
  0xf3   : > { %5601 = vmatprep.subr.bf16.mxu1 %v5600_v29  ;;  %v869_v23 = vld [vmem:[%s7579_s7 + $0x1248] sm:$0xff]  ;;  %v5618_v29 = vpack.c.bf16 %v854_v21, %v846_v19  ;;  %v5122_v19 = vpack.c.bf16 %v916_v10, %v908_v9  ;;  %v991_v9 = vld [vmem:[%s7579_s7 + $0x1618] sm:$0xff] }
  0xf4   : > { %v5108_v30 = vpack.c.bf16 %v869_v23, %v861_v22  ;;  %v924_v22 = vld [vmem:[%s7579_s7 + $0x1400] sm:$0xff]  ;;  %v999_v10 = vld [vmem:[%s7579_s7 + $0x1658] sm:$0xff] }
  0xf5   : > { %5091 = vmatpush1.bf16.msra.mxu0 %v5090_v36  ;;  %v870_v36 = vld [vmem:[%s7579_s7 + $0x1250] sm:$0xff]  ;;  %v932_v23 = vld [vmem:[%s7579_s7 + $0x1440] sm:$0xff]  ;;  %v5652_v18 = vpack.c.bf16 %v999_v10, %v991_v9 }
  0xf6   : > { %5603 = vmatpush1.bf16.msra.mxu1 %v5602_v37  ;;  %5093 = vmatprep.subr.bf16.mxu0 %v5092_v38  ;;  %v877_v37 = vld [vmem:[%s7579_s7 + $0x1288] sm:$0xff]  ;;  %v1060_v9 = vld [vmem:[%s7579_s7 + $0x1840] sm:$0xff]  ;;  %v1054_v10 = vld [vmem:[%s7579_s7 + $0x1810] sm:$0xff] }
  0xf7   : > { %5605 = vmatprep.subr.bf16.mxu1 %v5604_v43  ;;  %v885_v38 = vld [vmem:[%s7579_s7 + $0x12c8] sm:$0xff]  ;;  %v5622_v43 = vpack.c.bf16 %v870_v36, %v862_v34  ;;  %v5126_v34 = vpack.c.bf16 %v932_v23, %v924_v22  ;;  %v1007_v22 = vld [vmem:[%s7579_s7 + $0x1698] sm:$0xff] }
  0xf8   : > { %2556 = vmatmul.mubr.f32.vlgmr.msra.gmra.mrb[0].mxu0 %v7767_v25  ;;  %v5112_v44 = vpack.c.bf16 %v885_v38, %v877_v37  ;;  %v940_v37 = vld [vmem:[%s7579_s7 + $0x1480] sm:$0xff]  ;;  %v1015_v23 = vld [vmem:[%s7579_s7 + $0x16d8] sm:$0xff] }
  0xf9   : > { %5095 = vmatpush1.bf16.msra.mxu0 %v5094_v49  ;;  %3124 = vmatmul.mubr.f32.vlgmr.msra.gmra.mrb[0].mxu1 %v7767_v25  ;;  %v886_v49 = vld [vmem:[%s7579_s7 + $0x12d0] sm:$0xff]  ;;  %v948_v38 = vld [vmem:[%s7579_s7 + $0x14c0] sm:$0xff]  ;;  %v5656_v32 = vpack.c.bf16 %v1015_v23, %v1007_v22 }
  0xfa   : > { %5607 = vmatpush1.bf16.msra.mxu1 %v5606_v51  ;;  %5097 = vmatprep.subr.bf16.mxu0 %v5096_v52  ;;  %v893_v51 = vld [vmem:[%s7579_s7 + $0x1308] sm:$0xff]  ;;  %v1076_v22 = vld [vmem:[%s7579_s7 + $0x18c0] sm:$0xff]  ;;  %v1070_v23 = vld [vmem:[%s7579_s7 + $0x1890] sm:$0xff] }
  0xfb   : > { %5609 = vmatprep.subr.bf16.mxu1 %v5608_v57  ;;  %2626 = vmatprep.mubr.f32.mxu0 %v7925_v0  ;;  %v901_v52 = vld [vmem:[%s7579_s7 + $0x1348] sm:$0xff]  ;;  %v5626_v57 = vpack.c.bf16 %v886_v49, %v878_v47  ;;  %v5130_v47 = vpack.c.bf16 %v948_v38, %v940_v37  ;;  %v1023_v37 = vld [vmem:[%s7579_s7 + $0x1718] sm:$0xff] }
  0xfc   : > { %3194 = vmatprep.mubr.f32.mxu1 %v7925_v0  ;;  %v5116_v58 = vpack.c.bf16 %v901_v52, %v893_v51  ;;  %v956_v51 = vld [vmem:[%s7579_s7 + $0x1500] sm:$0xff]  ;;  %v1031_v38 = vld [vmem:[%s7579_s7 + $0x1758] sm:$0xff] }
  0xfd   : > { %5099 = vmatpush1.bf16.msra.mxu0 %v5098_v1  ;;  %v902_v1 = vld [vmem:[%s7579_s7 + $0x1350] sm:$0xff]  ;;  %v964_v52 = vld [vmem:[%s7579_s7 + $0x1540] sm:$0xff]  ;;  %v5660_v46 = vpack.c.bf16 %v1031_v38, %v1023_v37 }
  0xfe   : > { %5611 = vmatpush1.bf16.msra.mxu1 %v5610_v2  ;;  %5101 = vmatprep.subr.bf16.mxu0 %v5100_v3  ;;  %v909_v2 = vld [vmem:[%s7579_s7 + $0x1388] sm:$0xff]  ;;  %v1084_v37 = vld [vmem:[%s7579_s7 + $0x1900] sm:$0xff] }
  0xff   : > { %5613 = vmatprep.subr.bf16.mxu1 %v5612_v7  ;;  %v917_v3 = vld [vmem:[%s7579_s7 + $0x13c8] sm:$0xff]  ;;  %v5630_v7 = vpack.c.bf16 %v902_v1, %v894_v61  ;;  %v5134_v61 = vpack.c.bf16 %v964_v52, %v956_v51  ;;  %v1039_v51 = vld [vmem:[%s7579_s7 + $0x1798] sm:$0xff]  ;;  %v1092_v38 = vld [vmem:[%s7579_s7 + $0x1940] sm:$0xff] }
 0x100   : > { %v5120_v8 = vpack.c.bf16 %v917_v3, %v909_v2  ;;  %v972_v2 = vld [vmem:[%s7579_s7 + $0x1580] sm:$0xff]  ;;  %v1047_v52 = vld [vmem:[%s7579_s7 + $0x17d8] sm:$0xff] }
 0x101   : > { %5103 = vmatpush1.bf16.msra.mxu0 %v5102_v14  ;;  %v918_v14 = vld [vmem:[%s7579_s7 + $0x13d0] sm:$0xff]  ;;  %v980_v3 = vld [vmem:[%s7579_s7 + $0x15c0] sm:$0xff]  ;;  %v5664_v60 = vpack.c.bf16 %v1047_v52, %v1039_v51 }
 0x102   : > { %5615 = vmatpush1.bf16.msra.mxu1 %v5614_v15  ;;  %5105 = vmatprep.subr.bf16.mxu0 %v5104_v16  ;;  %v925_v15 = vld [vmem:[%s7579_s7 + $0x1408] sm:$0xff]  ;;  %v1100_v51 = vld [vmem:[%s7579_s7 + $0x1980] sm:$0xff] }
 0x103   : > { %5617 = vmatprep.subr.bf16.mxu1 %v5616_v20  ;;  %v933_v16 = vld [vmem:[%s7579_s7 + $0x1448] sm:$0xff]  ;;  %v5634_v20 = vpack.c.bf16 %v918_v14, %v910_v11  ;;  %v5138_v11 = vpack.c.bf16 %v980_v3, %v972_v2  ;;  %v2353_v2 = vcombine.high %v7908_v50, %v7908_v50  ;;  %v1055_v3 = vld [vmem:[%s7579_s7 + $0x1818] sm:$0xff]  ;;  %v1062_v50 = vld [vmem:[%s7579_s7 + $0x1850] sm:$0xff] }
 0x104   : > { %v5124_v21 = vpack.c.bf16 %v933_v16, %v925_v15  ;;  %v988_v15 = vld [vmem:[%s7579_s7 + $0x1600] sm:$0xff] }
 0x105   : > { %5107 = vmatpush1.bf16.msra.mxu0 %v5106_v28  ;;  %v934_v28 = vld [vmem:[%s7579_s7 + $0x1450] sm:$0xff]  ;;  %v996_v16 = vld [vmem:[%s7579_s7 + $0x1640] sm:$0xff] }
 0x106   : > { %5619 = vmatpush1.bf16.msra.mxu1 %v5618_v29  ;;  %5109 = vmatprep.subr.bf16.mxu0 %v5108_v30  ;;  %v941_v29 = vld [vmem:[%s7579_s7 + $0x1488] sm:$0xff]  ;;  %v1108_v52 = vld [vmem:[%s7579_s7 + $0x19c0] sm:$0xff] }
 0x107   : > { %5621 = vmatprep.subr.bf16.mxu1 %v5620_v35  ;;  %v949_v30 = vld [vmem:[%s7579_s7 + $0x14c8] sm:$0xff]  ;;  %v5638_v35 = vpack.c.bf16 %v934_v28, %v926_v24  ;;  %v5142_v24 = vpack.c.bf16 %v996_v16, %v988_v15  ;;  %v8051_v15 = vrot.slane %v2353_v2, %v7703_v12  ;;  %v1071_v16 = vld [vmem:[%s7579_s7 + $0x1898] sm:$0xff]  ;;  %v1116_v2 = vld [vmem:[%s7579_s7 + $0x1a00] sm:$0xff] }
 0x108   : > { %v5128_v36 = vpack.c.bf16 %v949_v30, %v941_v29  ;;  %v1004_v29 = vld [vmem:[%s7579_s7 + $0x1680] sm:$0xff] }
 0x109   : > { %5111 = vmatpush1.bf16.msra.mxu0 %v5110_v42  ;;  %v950_v42 = vld [vmem:[%s7579_s7 + $0x14d0] sm:$0xff]  ;;  %v1012_v30 = vld [vmem:[%s7579_s7 + $0x16c0] sm:$0xff] }
 0x10a   : > { %5623 = vmatpush1.bf16.msra.mxu1 %v5622_v43  ;;  %5113 = vmatprep.subr.bf16.mxu0 %v5112_v44  ;;  %v957_v43 = vld [vmem:[%s7579_s7 + $0x1508] sm:$0xff] }
 0x10b   : > { %5625 = vmatprep.subr.bf16.mxu1 %v5624_v48  ;;  %v965_v44 = vld [vmem:[%s7579_s7 + $0x1548] sm:$0xff]  ;;  %v5642_v48 = vpack.c.bf16 %v950_v42, %v942_v39  ;;  %v5146_v39 = vpack.c.bf16 %v1012_v30, %v1004_v29  ;;  %v8063_v30 = vcombine.high %v8051_v15, %v8051_v15 }
 0x10c   : > { %v5132_v49 = vpack.c.bf16 %v965_v44, %v957_v43  ;;  %v1020_v43 = vld [vmem:[%s7579_s7 + $0x1700] sm:$0xff]  ;;  %v1093_v29 = vld [vmem:[%s7579_s7 + $0x1948] sm:$0xff] }
 0x10d   : > { %5115 = vmatpush1.bf16.msra.mxu0 %v5114_v55  ;;  %v966_v55 = vld [vmem:[%s7579_s7 + $0x1550] sm:$0xff]  ;;  %v1028_v44 = vld [vmem:[%s7579_s7 + $0x1740] sm:$0xff] }
 0x10e   : > { %5627 = vmatpush1.bf16.msra.mxu1 %v5626_v57  ;;  %5117 = vmatprep.subr.bf16.mxu0 %v5116_v58  ;;  %v973_v57 = vld [vmem:[%s7579_s7 + $0x1588] sm:$0xff] }
 0x10f   : > { %5629 = vmatprep.subr.bf16.mxu1 %v5628_v62  ;;  %v981_v58 = vld [vmem:[%s7579_s7 + $0x15c8] sm:$0xff]  ;;  %v5646_v62 = vpack.c.bf16 %v966_v55, %v958_v53  ;;  %v5150_v53 = vpack.c.bf16 %v1028_v44, %v1020_v43 }
 0x110   : > { %v5136_v1 = vpack.c.bf16 %v981_v58, %v973_v57  ;;  %v1036_v57 = vld [vmem:[%s7579_s7 + $0x1780] sm:$0xff]  ;;  %v1101_v43 = vld [vmem:[%s7579_s7 + $0x1988] sm:$0xff] }
 0x111   : > { %5119 = vmatpush1.bf16.msra.mxu0 %v5118_v6  ;;  %v982_v6 = vld [vmem:[%s7579_s7 + $0x15d0] sm:$0xff]  ;;  %v1044_v58 = vld [vmem:[%s7579_s7 + $0x17c0] sm:$0xff]  ;;  %v1109_v44 = vld [vmem:[%s7579_s7 + $0x19c8] sm:$0xff] }
 0x112   : > { %5631 = vmatpush1.bf16.msra.mxu1 %v5630_v7  ;;  %5121 = vmatprep.subr.bf16.mxu0 %v5120_v8  ;;  %v989_v7 = vld [vmem:[%s7579_s7 + $0x1608] sm:$0xff] }
 0x113   : > { %5633 = vmatprep.subr.bf16.mxu1 %v5632_v13  ;;  %v997_v8 = vld [vmem:[%s7579_s7 + $0x1648] sm:$0xff]  ;;  %v5650_v13 = vpack.c.bf16 %v982_v6, %v974_v4  ;;  %v1063_v4 = vld [vmem:[%s7579_s7 + $0x1858] sm:$0xff] }
 0x114   : > { %v5140_v14 = vpack.c.bf16 %v997_v8, %v989_v7  ;;  %v1052_v8 = vld [vmem:[%s7579_s7 + $0x1800] sm:$0xff] }
 0x115   : > { %5123 = vmatpush1.bf16.msra.mxu0 %v5122_v19  ;;  %v998_v19 = vld [vmem:[%s7579_s7 + $0x1650] sm:$0xff] }
 0x116   : > { %5635 = vmatpush1.bf16.msra.mxu1 %v5634_v20  ;;  %5125 = vmatprep.subr.bf16.mxu0 %v5124_v21  ;;  %v1005_v20 = vld [vmem:[%s7579_s7 + $0x1688] sm:$0xff] }
 0x117   : > { %5637 = vmatprep.subr.bf16.mxu1 %v5636_v27  ;;  %v1013_v21 = vld [vmem:[%s7579_s7 + $0x16c8] sm:$0xff]  ;;  %v5654_v27 = vpack.c.bf16 %v998_v19, %v990_v17  ;;  %v1079_v17 = vld [vmem:[%s7579_s7 + $0x18d8] sm:$0xff]  ;;  %v5670_v19 = vpack.c.bf16 %v1062_v50, %v1054_v10 }
 0x118   : > { %v5144_v28 = vpack.c.bf16 %v1013_v21, %v1005_v20  ;;  %v1068_v21 = vld [vmem:[%s7579_s7 + $0x1880] sm:$0xff]  ;;  %v1143_v10 = vld [vmem:[%s7579_s7 + $0x1ad8] sm:$0xff] }
 0x119   : > { %5127 = vmatpush1.bf16.msra.mxu0 %v5126_v34  ;;  %v1014_v34 = vld [vmem:[%s7579_s7 + $0x16d0] sm:$0xff] }
 0x11a   : > { %5639 = vmatpush1.bf16.msra.mxu1 %v5638_v35  ;;  %5129 = vmatprep.subr.bf16.mxu0 %v5128_v36  ;;  %v1021_v35 = vld [vmem:[%s7579_s7 + $0x1708] sm:$0xff] }
 0x11b   : > { %5641 = vmatprep.subr.bf16.mxu1 %v5640_v41  ;;  %v1029_v36 = vld [vmem:[%s7579_s7 + $0x1748] sm:$0xff]  ;;  %v5658_v41 = vpack.c.bf16 %v1014_v34, %v1006_v31  ;;  %v1087_v31 = vld [vmem:[%s7579_s7 + $0x1918] sm:$0xff]  ;;  %v5162_v34 = vpack.c.bf16 %v1076_v22, %v1068_v21 }
 0x11c   : > { %v5148_v42 = vpack.c.bf16 %v1029_v36, %v1021_v35  ;;  %v1157_v21 = vld [vmem:[%s7579_s7 + $0x1b48] sm:$0xff]  ;;  %v1151_v22 = vld [vmem:[%s7579_s7 + $0x1b18] sm:$0xff] }
 0x11d   : > { %5131 = vmatpush1.bf16.msra.mxu0 %v5130_v47  ;;  %v1030_v47 = vld [vmem:[%s7579_s7 + $0x1750] sm:$0xff] }
 0x11e   : > { %5643 = vmatpush1.bf16.msra.mxu1 %v5642_v48  ;;  %5133 = vmatprep.subr.bf16.mxu0 %v5132_v49  ;;  %v1037_v48 = vld [vmem:[%s7579_s7 + $0x1788] sm:$0xff] }
 0x11f   : > { %5645 = vmatprep.subr.bf16.mxu1 %v5644_v54  ;;  %v1045_v49 = vld [vmem:[%s7579_s7 + $0x17c8] sm:$0xff]  ;;  %v5662_v54 = vpack.c.bf16 %v1030_v47, %v1022_v45  ;;  %v1103_v45 = vld [vmem:[%s7579_s7 + $0x1998] sm:$0xff]  ;;  %v5166_v47 = vpack.c.bf16 %v1092_v38, %v1084_v37 }
 0x120   : > { %v5152_v55 = vpack.c.bf16 %v1045_v49, %v1037_v48  ;;  %v5168_v49 = vpack.c.bf16 %v1109_v44, %v1101_v43  ;;  %v1173_v37 = vld [vmem:[%s7579_s7 + $0x1bc8] sm:$0xff]  ;;  %v1167_v38 = vld [vmem:[%s7579_s7 + $0x1b98] sm:$0xff]  ;;  %v1164_v44 = vld [vmem:[%s7579_s7 + $0x1b80] sm:$0xff] }
 0x121   : > { %5135 = vmatpush1.bf16.msra.mxu0 %v5134_v61  ;;  %v1046_v61 = vld [vmem:[%s7579_s7 + $0x17d0] sm:$0xff] }
 0x122   : > { %5647 = vmatpush1.bf16.msra.mxu1 %v5646_v62  ;;  %5137 = vmatprep.subr.bf16.mxu0 %v5136_v1  ;;  %v1053_v62 = vld [vmem:[%s7579_s7 + $0x1808] sm:$0xff]  ;;  %v5666_v6 = vpack.c.bf16 %v1046_v61, %v1038_v59  ;;  %v1119_v59 = vld [vmem:[%s7579_s7 + $0x1a18] sm:$0xff]  ;;  %v5170_v61 = vpack.c.bf16 %v1108_v52, %v1100_v51 }
 0x123   : > { %5649 = vmatprep.subr.bf16.mxu1 %v5648_v5  ;;  %v1061_v1 = vld [vmem:[%s7579_s7 + $0x1848] sm:$0xff]  ;;  %v5154_v5 = vpack.c.bf16 %v1044_v58, %v1036_v57  ;;  %v1183_v52 = vld [vmem:[%s7579_s7 + $0x1c18] sm:$0xff] }
 0x124   : > { %v5156_v7 = vpack.c.bf16 %v1061_v1, %v1053_v62  ;;  %v1117_v57 = vld [vmem:[%s7579_s7 + $0x1a08] sm:$0xff] }
 0x125   : > { %5139 = vmatpush1.bf16.msra.mxu0 %v5138_v11  ;;  %v5668_v11 = vpack.c.bf16 %v1063_v4, %v1055_v3  ;;  %v1125_v58 = vld [vmem:[%s7579_s7 + $0x1a48] sm:$0xff]  ;;  %v1124_v3 = vld [vmem:[%s7579_s7 + $0x1a40] sm:$0xff]  ;;  %v1118_v4 = vld [vmem:[%s7579_s7 + $0x1a10] sm:$0xff] }
 0x126   : > { %5651 = vmatpush1.bf16.msra.mxu1 %v5650_v13  ;;  %5141 = vmatprep.subr.bf16.mxu0 %v5140_v14  ;;  %v1069_v13 = vld [vmem:[%s7579_s7 + $0x1888] sm:$0xff]  ;;  %v5172_v1 = vpack.c.bf16 %v1125_v58, %v1117_v57  ;;  %v1180_v58 = vld [vmem:[%s7579_s7 + $0x1c00] sm:$0xff] }
 0x127   : > { %5653 = vmatprep.subr.bf16.mxu1 %v5652_v18  ;;  %v1077_v14 = vld [vmem:[%s7579_s7 + $0x18c8] sm:$0xff]  ;;  %v5158_v18 = vpack.c.bf16 %v1060_v9, %v1052_v8  ;;  %v1135_v9 = vld [vmem:[%s7579_s7 + $0x1a98] sm:$0xff] }
 0x128   : > { %v5160_v20 = vpack.c.bf16 %v1077_v14, %v1069_v13  ;;  %v1141_v8 = vld [vmem:[%s7579_s7 + $0x1ac8] sm:$0xff]  ;;  %v1132_v14 = vld [vmem:[%s7579_s7 + $0x1a80] sm:$0xff] }
 0x129   : > { %5143 = vmatpush1.bf16.msra.mxu0 %v5142_v24  ;;  %v5672_v24 = vpack.c.bf16 %v1079_v17, %v1071_v16  ;;  %v1140_v16 = vld [vmem:[%s7579_s7 + $0x1ac0] sm:$0xff]  ;;  %v1134_v17 = vld [vmem:[%s7579_s7 + $0x1a90] sm:$0xff]  ;;  %v1189_v51 = vld [vmem:[%s7579_s7 + $0x1c48] sm:$0xff] }
 0x12a   : > { %5655 = vmatpush1.bf16.msra.mxu1 %v5654_v27  ;;  %5145 = vmatprep.subr.bf16.mxu0 %v5144_v28  ;;  %v1078_v27 = vld [vmem:[%s7579_s7 + $0x18d0] sm:$0xff]  ;;  %v1085_v28 = vld [vmem:[%s7579_s7 + $0x1908] sm:$0xff] }
 0x12b   : > { %5657 = vmatprep.subr.bf16.mxu1 %v5656_v32  ;;  %v1095_v32 = vld [vmem:[%s7579_s7 + $0x1958] sm:$0xff]  ;;  %v5674_v35 = vpack.c.bf16 %v1078_v27, %v1070_v23  ;;  %v5164_v36 = vpack.c.bf16 %v1093_v29, %v1085_v28  ;;  %v1148_v29 = vld [vmem:[%s7579_s7 + $0x1b00] sm:$0xff] }
 0x12c   : > { %v1159_v23 = vld [vmem:[%s7579_s7 + $0x1b58] sm:$0xff] }
 0x12d   : > { %5147 = vmatpush1.bf16.msra.mxu0 %v5146_v39  ;;  %v1086_v39 = vld [vmem:[%s7579_s7 + $0x1910] sm:$0xff] }
 0x12e   : > { %5659 = vmatpush1.bf16.msra.mxu1 %v5658_v41  ;;  %5149 = vmatprep.subr.bf16.mxu0 %v5148_v42  ;;  %v5676_v41 = vpack.c.bf16 %v1095_v32, %v1087_v31  ;;  %v1094_v42 = vld [vmem:[%s7579_s7 + $0x1950] sm:$0xff]  ;;  %v1156_v31 = vld [vmem:[%s7579_s7 + $0x1b40] sm:$0xff] }
 0x12f   : > { %5661 = vmatprep.subr.bf16.mxu1 %v5660_v46  ;;  %v1111_v46 = vld [vmem:[%s7579_s7 + $0x19d8] sm:$0xff]  ;;  %v5678_v48 = vpack.c.bf16 %v1094_v42, %v1086_v39  ;;  %v1150_v32 = vld [vmem:[%s7579_s7 + $0x1b10] sm:$0xff] }
 0x130   : > { %v1175_v39 = vld [vmem:[%s7579_s7 + $0x1bd8] sm:$0xff] }
 0x131   : > { %5151 = vmatpush1.bf16.msra.mxu0 %v5150_v53  ;;  %v1102_v53 = vld [vmem:[%s7579_s7 + $0x1990] sm:$0xff] }
 0x132   : > { %5663 = vmatpush1.bf16.msra.mxu1 %v5662_v54  ;;  %5153 = vmatprep.subr.bf16.mxu0 %v5152_v55  ;;  %v5680_v54 = vpack.c.bf16 %v1111_v46, %v1103_v45  ;;  %v1110_v55 = vld [vmem:[%s7579_s7 + $0x19d0] sm:$0xff]  ;;  %v1172_v45 = vld [vmem:[%s7579_s7 + $0x1bc0] sm:$0xff] }
 0x133   : > { %5665 = vmatprep.subr.bf16.mxu1 %v5664_v60  ;;  %v1127_v60 = vld [vmem:[%s7579_s7 + $0x1a58] sm:$0xff]  ;;  %v5682_v62 = vpack.c.bf16 %v1110_v55, %v1102_v53  ;;  %v1166_v46 = vld [vmem:[%s7579_s7 + $0x1b90] sm:$0xff] }
 0x134   : > { %v1191_v53 = vld [vmem:[%s7579_s7 + $0x1c58] sm:$0xff] }
 0x135   : > { %5155 = vmatpush1.bf16.msra.mxu0 %v5154_v5  ;;  %v5684_v5 = vpack.c.bf16 %v1127_v60, %v1119_v59  ;;  %v1188_v59 = vld [vmem:[%s7579_s7 + $0x1c40] sm:$0xff]  ;;  %v1182_v60 = vld [vmem:[%s7579_s7 + $0x1c10] sm:$0xff] }
 0x136   : > { %5667 = vmatpush1.bf16.msra.mxu1 %v5666_v6  ;;  %5157 = vmatprep.subr.bf16.mxu0 %v5156_v7  ;;  %v1126_v6 = vld [vmem:[%s7579_s7 + $0x1a50] sm:$0xff]  ;;  %v1133_v7 = vld [vmem:[%s7579_s7 + $0x1a88] sm:$0xff] }
 0x137   : > { %5669 = vmatprep.subr.bf16.mxu1 %v5668_v11  ;;  %v5174_v11 = vpack.c.bf16 %v1124_v3, %v1116_v2  ;;  %v5686_v50 = vpack.c.bf16 %v1126_v6, %v1118_v4  ;;  %v5176_v13 = vpack.c.bf16 %v1141_v8, %v1133_v7  ;;  %v1205_v2 = vld [vmem:[%s7579_s7 + $0x1cc8] sm:$0xff]  ;;  %v1199_v3 = vld [vmem:[%s7579_s7 + $0x1c98] sm:$0xff]  ;;  %v1196_v8 = vld [vmem:[%s7579_s7 + $0x1c80] sm:$0xff] }
 0x138   : > { %2627 = vmatmul.mubr.f32.vlgmr.msra.gmra.mrb[0].mxu0 %v7915_v56  ;;  %v1207_v4 = vld [vmem:[%s7579_s7 + $0x1cd8] sm:$0xff] }
 0x139   : > { %5159 = vmatpush1.bf16.msra.mxu0 %v5158_v18  ;;  %3195 = vmatmul.mubr.f32.vlgmr.msra.gmra.mrb[0].mxu1 %v7915_v56  ;;  %v5688_v18 = vpack.c.bf16 %v1143_v10, %v1135_v9  ;;  %v1204_v9 = vld [vmem:[%s7579_s7 + $0x1cc0] sm:$0xff]  ;;  %v1198_v10 = vld [vmem:[%s7579_s7 + $0x1c90] sm:$0xff] }
 0x13a   : > { %5671 = vmatpush1.bf16.msra.mxu1 %v5670_v19  ;;  %5161 = vmatprep.subr.bf16.mxu0 %v5160_v20  ;;  %v1142_v19 = vld [vmem:[%s7579_s7 + $0x1ad0] sm:$0xff]  ;;  %v1149_v20 = vld [vmem:[%s7579_s7 + $0x1b08] sm:$0xff] }
 0x13b   : > { %5673 = vmatprep.subr.bf16.mxu1 %v5672_v24  ;;  %2697 = vmatprep.mubr.f32.mxu0 %v8063_v30  ;;  %v5178_v24 = vpack.c.bf16 %v1140_v16, %v1132_v14  ;;  %v5690_v27 = vpack.c.bf16 %v1142_v19, %v1134_v17  ;;  %v5180_v28 = vpack.c.bf16 %v1157_v21, %v1149_v20  ;;  %v1221_v14 = vld [vmem:[%s7579_s7 + $0x1d48] sm:$0xff]  ;;  %v1215_v16 = vld [vmem:[%s7579_s7 + $0x1d18] sm:$0xff]  ;;  %v1212_v21 = vld [vmem:[%s7579_s7 + $0x1d00] sm:$0xff] }
 0x13c   : > { %3265 = vmatprep.mubr.f32.mxu1 %v8063_v30  ;;  %v1223_v17 = vld [vmem:[%s7579_s7 + $0x1d58] sm:$0xff] }
 0x13d   : > { %5163 = vmatpush1.bf16.msra.mxu0 %v5162_v34  ;;  %v5692_v34 = vpack.c.bf16 %v1159_v23, %v1151_v22  ;;  %v1220_v22 = vld [vmem:[%s7579_s7 + $0x1d40] sm:$0xff]  ;;  %v1214_v23 = vld [vmem:[%s7579_s7 + $0x1d10] sm:$0xff] }
 0x13e   : > { %5675 = vmatpush1.bf16.msra.mxu1 %v5674_v35  ;;  %5165 = vmatprep.subr.bf16.mxu0 %v5164_v36  ;;  %v1158_v35 = vld [vmem:[%s7579_s7 + $0x1b50] sm:$0xff]  ;;  %v1165_v36 = vld [vmem:[%s7579_s7 + $0x1b88] sm:$0xff] }
 0x13f   : > { %5677 = vmatprep.subr.bf16.mxu1 %v5676_v41  ;;  %v5182_v41 = vpack.c.bf16 %v1156_v31, %v1148_v29  ;;  %v5694_v42 = vpack.c.bf16 %v1158_v35, %v1150_v32  ;;  %v5184_v43 = vpack.c.bf16 %v1173_v37, %v1165_v36  ;;  %v1237_v29 = vld [vmem:[%s7579_s7 + $0x1dc8] sm:$0xff]  ;;  %v1231_v31 = vld [vmem:[%s7579_s7 + $0x1d98] sm:$0xff]  ;;  %v1228_v37 = vld [vmem:[%s7579_s7 + $0x1d80] sm:$0xff] }
 0x140   : > { %v1239_v32 = vld [vmem:[%s7579_s7 + $0x1dd8] sm:$0xff] }
 0x141   : > { %5167 = vmatpush1.bf16.msra.mxu0 %v5166_v47  ;;  %v5696_v47 = vpack.c.bf16 %v1175_v39, %v1167_v38  ;;  %v1236_v38 = vld [vmem:[%s7579_s7 + $0x1dc0] sm:$0xff]  ;;  %v1230_v39 = vld [vmem:[%s7579_s7 + $0x1d90] sm:$0xff] }
 0x142   : > { %5679 = vmatpush1.bf16.msra.mxu1 %v5678_v48  ;;  %5169 = vmatprep.subr.bf16.mxu0 %v5168_v49  ;;  %v1174_v48 = vld [vmem:[%s7579_s7 + $0x1bd0] sm:$0xff]  ;;  %v1181_v49 = vld [vmem:[%s7579_s7 + $0x1c08] sm:$0xff] }
 0x143   : > { %5681 = vmatprep.subr.bf16.mxu1 %v5680_v54  ;;  %v5186_v54 = vpack.c.bf16 %v1172_v45, %v1164_v44  ;;  %v5698_v55 = vpack.c.bf16 %v1174_v48, %v1166_v46  ;;  %v5188_v57 = vpack.c.bf16 %v1189_v51, %v1181_v49  ;;  %v1253_v44 = vld [vmem:[%s7579_s7 + $0x1e48] sm:$0xff]  ;;  %v1247_v45 = vld [vmem:[%s7579_s7 + $0x1e18] sm:$0xff]  ;;  %v1244_v51 = vld [vmem:[%s7579_s7 + $0x1e00] sm:$0xff] }
 0x144   : > { %v1255_v46 = vld [vmem:[%s7579_s7 + $0x1e58] sm:$0xff] }
 0x145   : > { %5171 = vmatpush1.bf16.msra.mxu0 %v5170_v61  ;;  %v5700_v61 = vpack.c.bf16 %v1191_v53, %v1183_v52  ;;  %v1252_v52 = vld [vmem:[%s7579_s7 + $0x1e40] sm:$0xff]  ;;  %v1246_v53 = vld [vmem:[%s7579_s7 + $0x1e10] sm:$0xff] }
 0x146   : > { %5683 = vmatpush1.bf16.msra.mxu1 %v5682_v62  ;;  %5173 = vmatprep.subr.bf16.mxu0 %v5172_v1  ;;  %v1190_v62 = vld [vmem:[%s7579_s7 + $0x1c50] sm:$0xff]  ;;  %v1197_v1 = vld [vmem:[%s7579_s7 + $0x1c88] sm:$0xff] }
 0x147   : > { %5685 = vmatprep.subr.bf16.mxu1 %v5684_v5  ;;  %v5190_v5 = vpack.c.bf16 %v1188_v59, %v1180_v58  ;;  %v5702_v6 = vpack.c.bf16 %v1190_v62, %v1182_v60  ;;  %v5192_v7 = vpack.c.bf16 %v1205_v2, %v1197_v1  ;;  %v1269_v58 = vld [vmem:[%s7579_s7 + $0x1ec8] sm:$0xff]  ;;  %v1263_v59 = vld [vmem:[%s7579_s7 + $0x1e98] sm:$0xff]  ;;  %v1260_v2 = vld [vmem:[%s7579_s7 + $0x1e80] sm:$0xff] }
 0x148   : > { %v1271_v60 = vld [vmem:[%s7579_s7 + $0x1ed8] sm:$0xff] }
 0x149   : > { %5175 = vmatpush1.bf16.msra.mxu0 %v5174_v11  ;;  %v5704_v11 = vpack.c.bf16 %v1207_v4, %v1199_v3  ;;  %v1268_v3 = vld [vmem:[%s7579_s7 + $0x1ec0] sm:$0xff]  ;;  %v1262_v4 = vld [vmem:[%s7579_s7 + $0x1e90] sm:$0xff] }
 0x14a   : > { %5687 = vmatpush1.bf16.msra.mxu1 %v5686_v50  ;;  %5177 = vmatprep.subr.bf16.mxu0 %v5176_v13  ;;  %v1206_v50 = vld [vmem:[%s7579_s7 + $0x1cd0] sm:$0xff]  ;;  %v1213_v13 = vld [vmem:[%s7579_s7 + $0x1d08] sm:$0xff] }
 0x14b   : > { %5689 = vmatprep.subr.bf16.mxu1 %v5688_v18  ;;  %v5194_v18 = vpack.c.bf16 %v1204_v9, %v1196_v8  ;;  %v5706_v19 = vpack.c.bf16 %v1206_v50, %v1198_v10  ;;  %v5196_v20 = vpack.c.bf16 %v1221_v14, %v1213_v13  ;;  %v1285_v8 = vld [vmem:[%s7579_s7 + $0x1f48] sm:$0xff]  ;;  %v1279_v9 = vld [vmem:[%s7579_s7 + $0x1f18] sm:$0xff]  ;;  %v1276_v14 = vld [vmem:[%s7579_s7 + $0x1f00] sm:$0xff] }
 0x14c   : > { %v1287_v10 = vld [vmem:[%s7579_s7 + $0x1f58] sm:$0xff] }
 0x14d   : > { %5179 = vmatpush1.bf16.msra.mxu0 %v5178_v24  ;;  %v5708_v24 = vpack.c.bf16 %v1223_v17, %v1215_v16  ;;  %v1284_v16 = vld [vmem:[%s7579_s7 + $0x1f40] sm:$0xff]  ;;  %v1278_v17 = vld [vmem:[%s7579_s7 + $0x1f10] sm:$0xff] }
 0x14e   : > { %5691 = vmatpush1.bf16.msra.mxu1 %v5690_v27  ;;  %5181 = vmatprep.subr.bf16.mxu0 %v5180_v28  ;;  %v1222_v27 = vld [vmem:[%s7579_s7 + $0x1d50] sm:$0xff]  ;;  %v1229_v28 = vld [vmem:[%s7579_s7 + $0x1d88] sm:$0xff] }
 0x14f   : > { %5693 = vmatprep.subr.bf16.mxu1 %v5692_v34  ;;  %v5198_v34 = vpack.c.bf16 %v1220_v22, %v1212_v21  ;;  %v5710_v35 = vpack.c.bf16 %v1222_v27, %v1214_v23  ;;  %v5200_v36 = vpack.c.bf16 %v1237_v29, %v1229_v28  ;;  %v1301_v21 = vld [vmem:[%s7579_s7 + $0x1fc8] sm:$0xff]  ;;  %v1295_v22 = vld [vmem:[%s7579_s7 + $0x1f98] sm:$0xff]  ;;  %v1292_v29 = vld [vmem:[%s7579_s7 + $0x1f80] sm:$0xff] }
 0x150   : > { %v1303_v23 = vld [vmem:[%s7579_s7 + $0x1fd8] sm:$0xff] }
 0x151   : > { %5183 = vmatpush1.bf16.msra.mxu0 %v5182_v41  ;;  %v5712_v41 = vpack.c.bf16 %v1239_v32, %v1231_v31  ;;  %v1300_v31 = vld [vmem:[%s7579_s7 + $0x1fc0] sm:$0xff]  ;;  %v1294_v32 = vld [vmem:[%s7579_s7 + $0x1f90] sm:$0xff] }
 0x152   : > { %5695 = vmatpush1.bf16.msra.mxu1 %v5694_v42  ;;  %5185 = vmatprep.subr.bf16.mxu0 %v5184_v43  ;;  %v1238_v42 = vld [vmem:[%s7579_s7 + $0x1dd0] sm:$0xff]  ;;  %v1245_v43 = vld [vmem:[%s7579_s7 + $0x1e08] sm:$0xff] }
 0x153   : > { %5697 = vmatprep.subr.bf16.mxu1 %v5696_v47  ;;  %v5202_v47 = vpack.c.bf16 %v1236_v38, %v1228_v37  ;;  %v5714_v48 = vpack.c.bf16 %v1238_v42, %v1230_v39  ;;  %v5204_v49 = vpack.c.bf16 %v1253_v44, %v1245_v43  ;;  %v1317_v37 = vld [vmem:[%s7579_s7 + $0x2048] sm:$0xff]  ;;  %v1311_v38 = vld [vmem:[%s7579_s7 + $0x2018] sm:$0xff]  ;;  %v5218_v42 = vpack.c.bf16 %v1300_v31, %v1292_v29  ;;  %v1366_v31 = vld [vmem:[%s7579_s7 + $0x21d0] sm:$0xff] }
 0x154   : > { %v1319_v39 = vld [vmem:[%s7579_s7 + $0x2058] sm:$0xff] }
 0x155   : > { %5187 = vmatpush1.bf16.msra.mxu0 %v5186_v54  ;;  %v5716_v54 = vpack.c.bf16 %v1255_v46, %v1247_v45  ;;  %v1308_v45 = vld [vmem:[%s7579_s7 + $0x2000] sm:$0xff] }
 0x156   : > { %5699 = vmatpush1.bf16.msra.mxu1 %v5698_v55  ;;  %5189 = vmatprep.subr.bf16.mxu0 %v5188_v57  ;;  %v1254_v55 = vld [vmem:[%s7579_s7 + $0x1e50] sm:$0xff]  ;;  %v1261_v57 = vld [vmem:[%s7579_s7 + $0x1e88] sm:$0xff]  ;;  %v1316_v46 = vld [vmem:[%s7579_s7 + $0x2040] sm:$0xff] }
 0x157   : > { %5701 = vmatprep.subr.bf16.mxu1 %v5700_v61  ;;  %v5206_v61 = vpack.c.bf16 %v1252_v52, %v1244_v51  ;;  %v5718_v62 = vpack.c.bf16 %v1254_v55, %v1246_v53  ;;  %v5208_v1 = vpack.c.bf16 %v1269_v58, %v1261_v57  ;;  %v1325_v51 = vld [vmem:[%s7579_s7 + $0x2088] sm:$0xff]  ;;  %v1335_v55 = vld [vmem:[%s7579_s7 + $0x20d8] sm:$0xff]  ;;  %v5222_v57 = vpack.c.bf16 %v1316_v46, %v1308_v45  ;;  %v1382_v46 = vld [vmem:[%s7579_s7 + $0x2250] sm:$0xff] }
 0x158   : > { %v1333_v52 = vld [vmem:[%s7579_s7 + $0x20c8] sm:$0xff] }
 0x159   : > { %5191 = vmatpush1.bf16.msra.mxu0 %v5190_v5  ;;  %v5720_v5 = vpack.c.bf16 %v1271_v60, %v1263_v59  ;;  %v5224_v59 = vpack.c.bf16 %v1333_v52, %v1325_v51  ;;  %v1324_v60 = vld [vmem:[%s7579_s7 + $0x2080] sm:$0xff]  ;;  %v1399_v51 = vld [vmem:[%s7579_s7 + $0x22d8] sm:$0xff] }
 0x15a   : > { %5703 = vmatpush1.bf16.msra.mxu1 %v5702_v6  ;;  %5193 = vmatprep.subr.bf16.mxu0 %v5192_v7  ;;  %v1270_v6 = vld [vmem:[%s7579_s7 + $0x1ed0] sm:$0xff]  ;;  %v1277_v7 = vld [vmem:[%s7579_s7 + $0x1f08] sm:$0xff] }
 0x15b   : > { %5705 = vmatprep.subr.bf16.mxu1 %v5704_v11  ;;  %v5210_v11 = vpack.c.bf16 %v1268_v3, %v1260_v2  ;;  %v5722_v50 = vpack.c.bf16 %v1270_v6, %v1262_v4  ;;  %v5212_v13 = vpack.c.bf16 %v1285_v8, %v1277_v7  ;;  %v1334_v2 = vld [vmem:[%s7579_s7 + $0x20d0] sm:$0xff]  ;;  %v1341_v3 = vld [vmem:[%s7579_s7 + $0x2108] sm:$0xff]  ;;  %v1343_v6 = vld [vmem:[%s7579_s7 + $0x2118] sm:$0xff] }
 0x15c   : > { %v1349_v4 = vld [vmem:[%s7579_s7 + $0x2148] sm:$0xff]  ;;  %v1351_v7 = vld [vmem:[%s7579_s7 + $0x2158] sm:$0xff] }
 0x15d   : > { %5195 = vmatpush1.bf16.msra.mxu0 %v5194_v18  ;;  %v5724_v18 = vpack.c.bf16 %v1287_v10, %v1279_v9  ;;  %v5228_v10 = vpack.c.bf16 %v1349_v4, %v1341_v3  ;;  %v1415_v3 = vld [vmem:[%s7579_s7 + $0x2358] sm:$0xff] }
 0x15e   : > { %5707 = vmatpush1.bf16.msra.mxu1 %v5706_v19  ;;  %5197 = vmatprep.subr.bf16.mxu0 %v5196_v20  ;;  %v1286_v19 = vld [vmem:[%s7579_s7 + $0x1f50] sm:$0xff]  ;;  %v1293_v20 = vld [vmem:[%s7579_s7 + $0x1f88] sm:$0xff] }
 0x15f   : > { %5709 = vmatprep.subr.bf16.mxu1 %v5708_v24  ;;  %v5214_v24 = vpack.c.bf16 %v1284_v16, %v1276_v14  ;;  %v5726_v27 = vpack.c.bf16 %v1286_v19, %v1278_v17  ;;  %v5216_v28 = vpack.c.bf16 %v1301_v21, %v1293_v20  ;;  %v5740_v14 = vpack.c.bf16 %v1351_v7, %v1343_v6  ;;  %v1350_v16 = vld [vmem:[%s7579_s7 + $0x2150] sm:$0xff]  ;;  %v1357_v17 = vld [vmem:[%s7579_s7 + $0x2188] sm:$0xff]  ;;  %v1359_v19 = vld [vmem:[%s7579_s7 + $0x2198] sm:$0xff] }
 0x160   : > { %v1367_v20 = vld [vmem:[%s7579_s7 + $0x21d8] sm:$0xff] }
 0x161   : > { %5199 = vmatpush1.bf16.msra.mxu0 %v5198_v34  ;;  %v5728_v34 = vpack.c.bf16 %v1303_v23, %v1295_v22  ;;  %v5744_v29 = vpack.c.bf16 %v1367_v20, %v1359_v19 }
 0x162   : > { %5711 = vmatpush1.bf16.msra.mxu1 %v5710_v35  ;;  %5201 = vmatprep.subr.bf16.mxu0 %v5200_v36  ;;  %v1302_v35 = vld [vmem:[%s7579_s7 + $0x1fd0] sm:$0xff]  ;;  %v1309_v36 = vld [vmem:[%s7579_s7 + $0x2008] sm:$0xff] }
 0x163   : > { %5713 = vmatprep.subr.bf16.mxu1 %v5712_v41  ;;  %v8184_v41 = vld [vmem:[%s7598_s26 + $0x10] sm:$0xff]  ;;  %v5730_v43 = vpack.c.bf16 %v1302_v35, %v1294_v32  ;;  %v5220_v44 = vpack.c.bf16 %v1317_v37, %v1309_v36  ;;  %v1373_v32 = vld [vmem:[%s7579_s7 + $0x2208] sm:$0xff]  ;;  %v1375_v35 = vld [vmem:[%s7579_s7 + $0x2218] sm:$0xff] }
 0x164   : > { %v8194_v53 = vrot.slane %v8184_v41, %v7703_v12  ;;  %v1383_v36 = vld [vmem:[%s7579_s7 + $0x2258] sm:$0xff] }
 0x165   : > { %5203 = vmatpush1.bf16.msra.mxu0 %v5202_v47  ;;  %v1310_v47 = vld [vmem:[%s7579_s7 + $0x2010] sm:$0xff]  ;;  %v5748_v45 = vpack.c.bf16 %v1383_v36, %v1375_v35 }
 0x166   : > { %5715 = vmatpush1.bf16.msra.mxu1 %v5714_v48  ;;  %5205 = vmatprep.subr.bf16.mxu0 %v5204_v49  ;;  %v5732_v48 = vpack.c.bf16 %v1319_v39, %v1311_v38  ;;  %v1318_v49 = vld [vmem:[%s7579_s7 + $0x2050] sm:$0xff] }
 0x167   : > { %5717 = vmatprep.subr.bf16.mxu1 %v5716_v54  ;;  %v1327_v54 = vld [vmem:[%s7579_s7 + $0x2098] sm:$0xff]  ;;  %v5734_v58 = vpack.c.bf16 %v1318_v49, %v1310_v47  ;;  %v1389_v47 = vld [vmem:[%s7579_s7 + $0x2288] sm:$0xff] }
 0x168   : > { %v1391_v49 = vld [vmem:[%s7579_s7 + $0x2298] sm:$0xff] }
 0x169   : > { %5207 = vmatpush1.bf16.msra.mxu0 %v5206_v61  ;;  %v1332_v61 = vld [vmem:[%s7579_s7 + $0x20c0] sm:$0xff] }
 0x16a   : > { %5719 = vmatpush1.bf16.msra.mxu1 %v5718_v62  ;;  %5209 = vmatprep.subr.bf16.mxu0 %v5208_v1  ;;  %v1326_v62 = vld [vmem:[%s7579_s7 + $0x2090] sm:$0xff]  ;;  %v5736_v1 = vpack.c.bf16 %v1335_v55, %v1327_v54  ;;  %v5226_v8 = vpack.c.bf16 %v1332_v61, %v1324_v60  ;;  %v5752_v60 = vpack.c.bf16 %v1399_v51, %v1391_v49 }
 0x16b   : > { %5721 = vmatprep.subr.bf16.mxu1 %v5720_v5  ;;  %v8206_v5 = vcombine.high %v8194_v53, %v8194_v53  ;;  %v5738_v9 = vpack.c.bf16 %v1334_v2, %v1326_v62  ;;  %v1398_v61 = vld [vmem:[%s7579_s7 + $0x22d0] sm:$0xff]  ;;  %v1405_v62 = vld [vmem:[%s7579_s7 + $0x2308] sm:$0xff]  ;;  %v1407_v2 = vld [vmem:[%s7579_s7 + $0x2318] sm:$0xff] }
 0x16d   : > { %5211 = vmatpush1.bf16.msra.mxu0 %v5210_v11  ;;  %v1340_v11 = vld [vmem:[%s7579_s7 + $0x2100] sm:$0xff] }
 0x16e   : > { %5723 = vmatpush1.bf16.msra.mxu1 %v5722_v50  ;;  %5213 = vmatprep.subr.bf16.mxu0 %v5212_v13  ;;  %v1348_v50 = vld [vmem:[%s7579_s7 + $0x2140] sm:$0xff]  ;;  %v1342_v13 = vld [vmem:[%s7579_s7 + $0x2110] sm:$0xff] }
 0x16f   : > { %5725 = vmatprep.subr.bf16.mxu1 %v5724_v18  ;;  %v1365_v18 = vld [vmem:[%s7579_s7 + $0x21c8] sm:$0xff]  ;;  %v5230_v21 = vpack.c.bf16 %v1348_v50, %v1340_v11  ;;  %v5742_v22 = vpack.c.bf16 %v1350_v16, %v1342_v13  ;;  %v5756_v11 = vpack.c.bf16 %v1415_v3, %v1407_v2  ;;  %v1414_v50 = vld [vmem:[%s7579_s7 + $0x2350] sm:$0xff]  ;;  %v1423_v16 = vld [vmem:[%s7579_s7 + $0x2398] sm:$0xff] }
 0x170   : > { %v5232_v23 = vpack.c.bf16 %v1365_v18, %v1357_v17  ;;  %v1421_v13 = vld [vmem:[%s7579_s7 + $0x2388] sm:$0xff]  ;;  %v1431_v17 = vld [vmem:[%s7579_s7 + $0x23d8] sm:$0xff] }
 0x171   : > { %5215 = vmatpush1.bf16.msra.mxu0 %v5214_v24  ;;  %v1356_v24 = vld [vmem:[%s7579_s7 + $0x2180] sm:$0xff] }
 0x172   : > { %5727 = vmatpush1.bf16.msra.mxu1 %v5726_v27  ;;  %5217 = vmatprep.subr.bf16.mxu0 %v5216_v28  ;;  %v1364_v27 = vld [vmem:[%s7579_s7 + $0x21c0] sm:$0xff]  ;;  %v1358_v28 = vld [vmem:[%s7579_s7 + $0x2190] sm:$0xff] }
 0x173   : > { %5729 = vmatprep.subr.bf16.mxu1 %v5728_v34  ;;  %v1381_v34 = vld [vmem:[%s7579_s7 + $0x2248] sm:$0xff]  ;;  %v5234_v37 = vpack.c.bf16 %v1364_v27, %v1356_v24  ;;  %v5746_v38 = vpack.c.bf16 %v1366_v31, %v1358_v28  ;;  %v5760_v24 = vpack.c.bf16 %v1431_v17, %v1423_v16  ;;  %v1430_v27 = vld [vmem:[%s7579_s7 + $0x23d0] sm:$0xff]  ;;  %v1439_v31 = vld [vmem:[%s7579_s7 + $0x2418] sm:$0xff] }
 0x174   : > { %v5236_v39 = vpack.c.bf16 %v1381_v34, %v1373_v32  ;;  %v1437_v28 = vld [vmem:[%s7579_s7 + $0x2408] sm:$0xff]  ;;  %v1447_v32 = vld [vmem:[%s7579_s7 + $0x2458] sm:$0xff] }
 0x175   : > { %5219 = vmatpush1.bf16.msra.mxu0 %v5218_v42  ;;  %v1372_v42 = vld [vmem:[%s7579_s7 + $0x2200] sm:$0xff] }
 0x176   : > { %5731 = vmatpush1.bf16.msra.mxu1 %v5730_v43  ;;  %5221 = vmatprep.subr.bf16.mxu0 %v5220_v44  ;;  %v1380_v43 = vld [vmem:[%s7579_s7 + $0x2240] sm:$0xff]  ;;  %v1374_v44 = vld [vmem:[%s7579_s7 + $0x2210] sm:$0xff] }
 0x177   : > { %5733 = vmatprep.subr.bf16.mxu1 %v5732_v48  ;;  %v1397_v48 = vld [vmem:[%s7579_s7 + $0x22c8] sm:$0xff]  ;;  %v5238_v52 = vpack.c.bf16 %v1380_v43, %v1372_v42  ;;  %v5750_v54 = vpack.c.bf16 %v1382_v46, %v1374_v44  ;;  %v5764_v42 = vpack.c.bf16 %v1447_v32, %v1439_v31  ;;  %v1446_v43 = vld [vmem:[%s7579_s7 + $0x2450] sm:$0xff]  ;;  %v1455_v46 = vld [vmem:[%s7579_s7 + $0x2498] sm:$0xff] }
 0x178   : > { %2698 = vmatmul.mubr.f32.vlgmr.msra.gmra.mrb[0].mxu0 %v8051_v15  ;;  %v5240_v55 = vpack.c.bf16 %v1397_v48, %v1389_v47  ;;  %v1453_v44 = vld [vmem:[%s7579_s7 + $0x2488] sm:$0xff]  ;;  %v1463_v47 = vld [vmem:[%s7579_s7 + $0x24d8] sm:$0xff] }
 0x179   : > { %5223 = vmatpush1.bf16.msra.mxu0 %v5222_v57  ;;  %3266 = vmatmul.mubr.f32.vlgmr.msra.gmra.mrb[0].mxu1 %v8051_v15  ;;  %v1388_v57 = vld [vmem:[%s7579_s7 + $0x2280] sm:$0xff] }
 0x17a   : > { %5735 = vmatpush1.bf16.msra.mxu1 %v5734_v58  ;;  %5225 = vmatprep.subr.bf16.mxu0 %v5224_v59  ;;  %v1396_v58 = vld [vmem:[%s7579_s7 + $0x22c0] sm:$0xff]  ;;  %v1390_v59 = vld [vmem:[%s7579_s7 + $0x2290] sm:$0xff] }
 0x17b   : > { %5737 = vmatprep.subr.bf16.mxu1 %v5736_v1  ;;  %2768 = vmatprep.mubr.f32.mxu0 %v8206_v5  ;;  %v1413_v1 = vld [vmem:[%s7579_s7 + $0x2348] sm:$0xff]  ;;  %v5242_v4 = vpack.c.bf16 %v1396_v58, %v1388_v57  ;;  %v5754_v6 = vpack.c.bf16 %v1398_v61, %v1390_v59  ;;  %v5768_v57 = vpack.c.bf16 %v1463_v47, %v1455_v46  ;;  %v1462_v58 = vld [vmem:[%s7579_s7 + $0x24d0] sm:$0xff]  ;;  %v1471_v61 = vld [vmem:[%s7579_s7 + $0x2518] sm:$0xff] }
 0x17c   : > { %3336 = vmatprep.mubr.f32.mxu1 %v8206_v5  ;;  %v5244_v7 = vpack.c.bf16 %v1413_v1, %v1405_v62  ;;  %v1469_v59 = vld [vmem:[%s7579_s7 + $0x2508] sm:$0xff]  ;;  %v1479_v62 = vld [vmem:[%s7579_s7 + $0x2558] sm:$0xff] }
 0x17d   : > { %5227 = vmatpush1.bf16.msra.mxu0 %v5226_v8  ;;  %v1404_v8 = vld [vmem:[%s7579_s7 + $0x2300] sm:$0xff] }
 0x17e   : > { %5739 = vmatpush1.bf16.msra.mxu1 %v5738_v9  ;;  %5229 = vmatprep.subr.bf16.mxu0 %v5228_v10  ;;  %v1412_v9 = vld [vmem:[%s7579_s7 + $0x2340] sm:$0xff]  ;;  %v1406_v10 = vld [vmem:[%s7579_s7 + $0x2310] sm:$0xff] }
 0x17f   : > { %5741 = vmatprep.subr.bf16.mxu1 %v5740_v14  ;;  %v1429_v14 = vld [vmem:[%s7579_s7 + $0x23c8] sm:$0xff]  ;;  %v5246_v18 = vpack.c.bf16 %v1412_v9, %v1404_v8  ;;  %v5758_v19 = vpack.c.bf16 %v1414_v50, %v1406_v10  ;;  %v5772_v8 = vpack.c.bf16 %v1479_v62, %v1471_v61  ;;  %v1478_v9 = vld [vmem:[%s7579_s7 + $0x2550] sm:$0xff]  ;;  %v1487_v50 = vld [vmem:[%s7579_s7 + $0x2598] sm:$0xff] }
 0x180   : > { %v5248_v20 = vpack.c.bf16 %v1429_v14, %v1421_v13  ;;  %v1485_v10 = vld [vmem:[%s7579_s7 + $0x2588] sm:$0xff]  ;;  %v1495_v13 = vld [vmem:[%s7579_s7 + $0x25d8] sm:$0xff] }
 0x181   : > { %5231 = vmatpush1.bf16.msra.mxu0 %v5230_v21  ;;  %v1420_v21 = vld [vmem:[%s7579_s7 + $0x2380] sm:$0xff] }
 0x182   : > { %5743 = vmatpush1.bf16.msra.mxu1 %v5742_v22  ;;  %5233 = vmatprep.subr.bf16.mxu0 %v5232_v23  ;;  %v1428_v22 = vld [vmem:[%s7579_s7 + $0x23c0] sm:$0xff]  ;;  %v1422_v23 = vld [vmem:[%s7579_s7 + $0x2390] sm:$0xff] }
 0x183   : > { %5745 = vmatprep.subr.bf16.mxu1 %v5744_v29  ;;  %v1445_v29 = vld [vmem:[%s7579_s7 + $0x2448] sm:$0xff]  ;;  %v5250_v34 = vpack.c.bf16 %v1428_v22, %v1420_v21  ;;  %v5762_v35 = vpack.c.bf16 %v1430_v27, %v1422_v23  ;;  %v5776_v21 = vpack.c.bf16 %v1495_v13, %v1487_v50  ;;  %v1494_v22 = vld [vmem:[%s7579_s7 + $0x25d0] sm:$0xff]  ;;  %v1503_v27 = vld [vmem:[%s7579_s7 + $0x2618] sm:$0xff] }
 0x184   : > { %v5252_v36 = vpack.c.bf16 %v1445_v29, %v1437_v28  ;;  %v1501_v23 = vld [vmem:[%s7579_s7 + $0x2608] sm:$0xff]  ;;  %v1511_v28 = vld [vmem:[%s7579_s7 + $0x2658] sm:$0xff] }
 0x185   : > { %5235 = vmatpush1.bf16.msra.mxu0 %v5234_v37  ;;  %v1436_v37 = vld [vmem:[%s7579_s7 + $0x2400] sm:$0xff] }
 0x186   : > { %5747 = vmatpush1.bf16.msra.mxu1 %v5746_v38  ;;  %5237 = vmatprep.subr.bf16.mxu0 %v5236_v39  ;;  %v1444_v38 = vld [vmem:[%s7579_s7 + $0x2440] sm:$0xff]  ;;  %v1438_v39 = vld [vmem:[%s7579_s7 + $0x2410] sm:$0xff] }
 0x187   : > { %5749 = vmatprep.subr.bf16.mxu1 %v5748_v45  ;;  %v1461_v45 = vld [vmem:[%s7579_s7 + $0x24c8] sm:$0xff]  ;;  %v5254_v48 = vpack.c.bf16 %v1444_v38, %v1436_v37  ;;  %v5766_v49 = vpack.c.bf16 %v1446_v43, %v1438_v39  ;;  %v5780_v37 = vpack.c.bf16 %v1511_v28, %v1503_v27  ;;  %v1510_v38 = vld [vmem:[%s7579_s7 + $0x2650] sm:$0xff]  ;;  %v1519_v43 = vld [vmem:[%s7579_s7 + $0x2698] sm:$0xff] }
 0x188   : > { %v5256_v51 = vpack.c.bf16 %v1461_v45, %v1453_v44  ;;  %v1517_v39 = vld [vmem:[%s7579_s7 + $0x2688] sm:$0xff]  ;;  %v1527_v44 = vld [vmem:[%s7579_s7 + $0x26d8] sm:$0xff] }
 0x189   : > { %5239 = vmatpush1.bf16.msra.mxu0 %v5238_v52  ;;  %v1452_v52 = vld [vmem:[%s7579_s7 + $0x2480] sm:$0xff] }
 0x18a   : > { %5751 = vmatpush1.bf16.msra.mxu1 %v5750_v54  ;;  %5241 = vmatprep.subr.bf16.mxu0 %v5240_v55  ;;  %v1460_v54 = vld [vmem:[%s7579_s7 + $0x24c0] sm:$0xff]  ;;  %v1454_v55 = vld [vmem:[%s7579_s7 + $0x2490] sm:$0xff] }
 0x18b   : > { %5753 = vmatprep.subr.bf16.mxu1 %v5752_v60  ;;  %v1477_v60 = vld [vmem:[%s7579_s7 + $0x2548] sm:$0xff]  ;;  %v5258_v1 = vpack.c.bf16 %v1460_v54, %v1452_v52  ;;  %v5770_v2 = vpack.c.bf16 %v1462_v58, %v1454_v55  ;;  %v5784_v52 = vpack.c.bf16 %v1527_v44, %v1519_v43  ;;  %v1526_v54 = vld [vmem:[%s7579_s7 + $0x26d0] sm:$0xff]  ;;  %v1535_v58 = vld [vmem:[%s7579_s7 + $0x2718] sm:$0xff] }
 0x18c   : > { %v5260_v3 = vpack.c.bf16 %v1477_v60, %v1469_v59  ;;  %v1533_v55 = vld [vmem:[%s7579_s7 + $0x2708] sm:$0xff]  ;;  %v1543_v59 = vld [vmem:[%s7579_s7 + $0x2758] sm:$0xff] }
 0x18d   : > { %5243 = vmatpush1.bf16.msra.mxu0 %v5242_v4  ;;  %v1468_v4 = vld [vmem:[%s7579_s7 + $0x2500] sm:$0xff] }
 0x18e   : > { %5755 = vmatpush1.bf16.msra.mxu1 %v5754_v6  ;;  %5245 = vmatprep.subr.bf16.mxu0 %v5244_v7  ;;  %v1476_v6 = vld [vmem:[%s7579_s7 + $0x2540] sm:$0xff]  ;;  %v1470_v7 = vld [vmem:[%s7579_s7 + $0x2510] sm:$0xff] }
 0x18f   : > { %5757 = vmatprep.subr.bf16.mxu1 %v5756_v11  ;;  %v1493_v11 = vld [vmem:[%s7579_s7 + $0x25c8] sm:$0xff]  ;;  %v5262_v14 = vpack.c.bf16 %v1476_v6, %v1468_v4  ;;  %v5774_v16 = vpack.c.bf16 %v1478_v9, %v1470_v7  ;;  %v5788_v4 = vpack.c.bf16 %v1543_v59, %v1535_v58  ;;  %v1542_v6 = vld [vmem:[%s7579_s7 + $0x2750] sm:$0xff]  ;;  %v1551_v9 = vld [vmem:[%s7579_s7 + $0x2798] sm:$0xff] }
 0x190   : > { %v5264_v17 = vpack.c.bf16 %v1493_v11, %v1485_v10  ;;  %v1549_v7 = vld [vmem:[%s7579_s7 + $0x2788] sm:$0xff]  ;;  %v1559_v10 = vld [vmem:[%s7579_s7 + $0x27d8] sm:$0xff] }
 0x191   : > { %5247 = vmatpush1.bf16.msra.mxu0 %v5246_v18  ;;  %v1484_v18 = vld [vmem:[%s7579_s7 + $0x2580] sm:$0xff]  ;;  %v1607_v58 = vld [vmem:[%s7579_s7 + $0x2958] sm:$0xff] }
 0x192   : > { %5759 = vmatpush1.bf16.msra.mxu1 %v5758_v19  ;;  %5249 = vmatprep.subr.bf16.mxu0 %v5248_v20  ;;  %v1492_v19 = vld [vmem:[%s7579_s7 + $0x25c0] sm:$0xff]  ;;  %v1486_v20 = vld [vmem:[%s7579_s7 + $0x2590] sm:$0xff] }
 0x193   : > { %5761 = vmatprep.subr.bf16.mxu1 %v5760_v24  ;;  %v1509_v24 = vld [vmem:[%s7579_s7 + $0x2648] sm:$0xff]  ;;  %v5266_v29 = vpack.c.bf16 %v1492_v19, %v1484_v18  ;;  %v5778_v31 = vpack.c.bf16 %v1494_v22, %v1486_v20  ;;  %v5792_v18 = vpack.c.bf16 %v1559_v10, %v1551_v9  ;;  %v1558_v19 = vld [vmem:[%s7579_s7 + $0x27d0] sm:$0xff]  ;;  %v2370_v22 = vcombine.high %v8184_v41, %v8184_v41  ;;  %v1623_v9 = vld [vmem:[%s7579_s7 + $0x29d8] sm:$0xff] }
 0x194   : > { %v5268_v32 = vpack.c.bf16 %v1509_v24, %v1501_v23  ;;  %v1565_v20 = vld [vmem:[%s7579_s7 + $0x2808] sm:$0xff]  ;;  %v1567_v23 = vld [vmem:[%s7579_s7 + $0x2818] sm:$0xff]  ;;  %v1574_v41 = vld [vmem:[%s7579_s7 + $0x2850] sm:$0xff] }
 0x195   : > { %5251 = vmatpush1.bf16.msra.mxu0 %v5250_v34  ;;  %v1500_v34 = vld [vmem:[%s7579_s7 + $0x2600] sm:$0xff]  ;;  %v1575_v24 = vld [vmem:[%s7579_s7 + $0x2858] sm:$0xff] }
 0x196   : > { %5763 = vmatpush1.bf16.msra.mxu1 %v5762_v35  ;;  %5253 = vmatprep.subr.bf16.mxu0 %v5252_v36  ;;  %v1508_v35 = vld [vmem:[%s7579_s7 + $0x2640] sm:$0xff]  ;;  %v1502_v36 = vld [vmem:[%s7579_s7 + $0x2610] sm:$0xff] }
 0x197   : > { %5765 = vmatprep.subr.bf16.mxu1 %v5764_v42  ;;  %v1525_v42 = vld [vmem:[%s7579_s7 + $0x26c8] sm:$0xff]  ;;  %v5270_v45 = vpack.c.bf16 %v1508_v35, %v1500_v34  ;;  %v5782_v46 = vpack.c.bf16 %v1510_v38, %v1502_v36  ;;  %v1566_v34 = vld [vmem:[%s7579_s7 + $0x2810] sm:$0xff]  ;;  %v5796_v35 = vpack.c.bf16 %v1575_v24, %v1567_v23  ;;  %v8335_v38 = vrot.slane %v2370_v22, %v7703_v12  ;;  %v1639_v22 = vld [vmem:[%s7579_s7 + $0x2a58] sm:$0xff] }
 0x198   : > { %v5272_v47 = vpack.c.bf16 %v1525_v42, %v1517_v39  ;;  %v1581_v36 = vld [vmem:[%s7579_s7 + $0x2888] sm:$0xff]  ;;  %v1583_v39 = vld [vmem:[%s7579_s7 + $0x2898] sm:$0xff]  ;;  %v5798_v44 = vpack.c.bf16 %v1574_v41, %v1566_v34  ;;  %v1638_v34 = vld [vmem:[%s7579_s7 + $0x2a50] sm:$0xff] }
 0x199   : > { %5255 = vmatpush1.bf16.msra.mxu0 %v5254_v48  ;;  %v1516_v48 = vld [vmem:[%s7579_s7 + $0x2680] sm:$0xff]  ;;  %v1591_v42 = vld [vmem:[%s7579_s7 + $0x28d8] sm:$0xff]  ;;  %v1653_v41 = vld [vmem:[%s7579_s7 + $0x2ac8] sm:$0xff] }
 0x19a   : > { %5767 = vmatpush1.bf16.msra.mxu1 %v5766_v49  ;;  %5257 = vmatprep.subr.bf16.mxu0 %v5256_v51  ;;  %v1524_v49 = vld [vmem:[%s7579_s7 + $0x26c0] sm:$0xff]  ;;  %v1518_v51 = vld [vmem:[%s7579_s7 + $0x2690] sm:$0xff] }
 0x19b   : > { %5769 = vmatprep.subr.bf16.mxu1 %v5768_v57  ;;  %v1541_v57 = vld [vmem:[%s7579_s7 + $0x2748] sm:$0xff]  ;;  %v5274_v60 = vpack.c.bf16 %v1524_v49, %v1516_v48  ;;  %v5786_v61 = vpack.c.bf16 %v1526_v54, %v1518_v51  ;;  %v1582_v48 = vld [vmem:[%s7579_s7 + $0x2890] sm:$0xff]  ;;  %v5800_v49 = vpack.c.bf16 %v1591_v42, %v1583_v39 }
 0x19c   : > { %v5276_v62 = vpack.c.bf16 %v1541_v57, %v1533_v55  ;;  %v1590_v51 = vld [vmem:[%s7579_s7 + $0x28d0] sm:$0xff]  ;;  %v1605_v54 = vld [vmem:[%s7579_s7 + $0x2948] sm:$0xff]  ;;  %v8347_v55 = vcombine.high %v8335_v38, %v8335_v38  ;;  %v1599_v57 = vld [vmem:[%s7579_s7 + $0x2918] sm:$0xff] }
 0x19d   : > { %5259 = vmatpush1.bf16.msra.mxu0 %v5258_v1  ;;  %v1532_v1 = vld [vmem:[%s7579_s7 + $0x2700] sm:$0xff] }
 0x19e   : > { %5771 = vmatpush1.bf16.msra.mxu1 %v5770_v2  ;;  %5261 = vmatprep.subr.bf16.mxu0 %v5260_v3  ;;  %v1540_v2 = vld [vmem:[%s7579_s7 + $0x2740] sm:$0xff]  ;;  %v1534_v3 = vld [vmem:[%s7579_s7 + $0x2710] sm:$0xff] }
 0x19f   : > { %5773 = vmatprep.subr.bf16.mxu1 %v5772_v8  ;;  %v1557_v8 = vld [vmem:[%s7579_s7 + $0x27c8] sm:$0xff]  ;;  %v5278_v11 = vpack.c.bf16 %v1540_v2, %v1532_v1  ;;  %v5790_v50 = vpack.c.bf16 %v1542_v6, %v1534_v3  ;;  %v1604_v1 = vld [vmem:[%s7579_s7 + $0x2940] sm:$0xff]  ;;  %v1598_v2 = vld [vmem:[%s7579_s7 + $0x2910] sm:$0xff]  ;;  %v5804_v3 = vpack.c.bf16 %v1607_v58, %v1599_v57 }
 0x1a0   : > { %v5280_v13 = vpack.c.bf16 %v1557_v8, %v1549_v7  ;;  %v1613_v6 = vld [vmem:[%s7579_s7 + $0x2988] sm:$0xff]  ;;  %v1615_v8 = vld [vmem:[%s7579_s7 + $0x2998] sm:$0xff] }
 0x1a1   : > { %5263 = vmatpush1.bf16.msra.mxu0 %v5262_v14  ;;  %v1548_v14 = vld [vmem:[%s7579_s7 + $0x2780] sm:$0xff]  ;;  %v1621_v7 = vld [vmem:[%s7579_s7 + $0x29c8] sm:$0xff] }
 0x1a2   : > { %5775 = vmatpush1.bf16.msra.mxu1 %v5774_v16  ;;  %5265 = vmatprep.subr.bf16.mxu0 %v5264_v17  ;;  %v1556_v16 = vld [vmem:[%s7579_s7 + $0x27c0] sm:$0xff]  ;;  %v1550_v17 = vld [vmem:[%s7579_s7 + $0x2790] sm:$0xff] }
 0x1a3   : > { %5777 = vmatprep.subr.bf16.mxu1 %v5776_v21  ;;  %v1573_v21 = vld [vmem:[%s7579_s7 + $0x2848] sm:$0xff]  ;;  %v5282_v27 = vpack.c.bf16 %v1556_v16, %v1548_v14  ;;  %v5794_v28 = vpack.c.bf16 %v1558_v19, %v1550_v17  ;;  %v1620_v14 = vld [vmem:[%s7579_s7 + $0x29c0] sm:$0xff]  ;;  %v1614_v16 = vld [vmem:[%s7579_s7 + $0x2990] sm:$0xff]  ;;  %v5808_v17 = vpack.c.bf16 %v1623_v9, %v1615_v8 }
 0x1a4   : > { %v1629_v19 = vld [vmem:[%s7579_s7 + $0x2a08] sm:$0xff] }
 0x1a5   : > { %5267 = vmatpush1.bf16.msra.mxu0 %v5266_v29  ;;  %v5284_v29 = vpack.c.bf16 %v1573_v21, %v1565_v20  ;;  %v1637_v20 = vld [vmem:[%s7579_s7 + $0x2a48] sm:$0xff]  ;;  %v1631_v21 = vld [vmem:[%s7579_s7 + $0x2a18] sm:$0xff] }
 0x1a6   : > { %5779 = vmatpush1.bf16.msra.mxu1 %v5778_v31  ;;  %5269 = vmatprep.subr.bf16.mxu0 %v5268_v32  ;;  %v1564_v31 = vld [vmem:[%s7579_s7 + $0x2800] sm:$0xff] }
 0x1a7   : > { %5781 = vmatprep.subr.bf16.mxu1 %v5780_v37  ;;  %v1572_v32 = vld [vmem:[%s7579_s7 + $0x2840] sm:$0xff]  ;;  %v1589_v37 = vld [vmem:[%s7579_s7 + $0x28c8] sm:$0xff] }
 0x1a8   : > { %v5286_v43 = vpack.c.bf16 %v1572_v32, %v1564_v31  ;;  %v1630_v31 = vld [vmem:[%s7579_s7 + $0x2a10] sm:$0xff]  ;;  %v5812_v32 = vpack.c.bf16 %v1639_v22, %v1631_v21 }
 0x1a9   : > { %5271 = vmatpush1.bf16.msra.mxu0 %v5270_v45  ;;  %v5288_v45 = vpack.c.bf16 %v1589_v37, %v1581_v36  ;;  %v1647_v36 = vld [vmem:[%s7579_s7 + $0x2a98] sm:$0xff]  ;;  %v5814_v42 = vpack.c.bf16 %v1638_v34, %v1630_v31  ;;  %v1702_v31 = vld [vmem:[%s7579_s7 + $0x2c50] sm:$0xff]  ;;  %v1717_v34 = vld [vmem:[%s7579_s7 + $0x2cc8] sm:$0xff] }
 0x1aa   : > { %5783 = vmatpush1.bf16.msra.mxu1 %v5782_v46  ;;  %5273 = vmatprep.subr.bf16.mxu0 %v5272_v47  ;;  %v1580_v46 = vld [vmem:[%s7579_s7 + $0x2880] sm:$0xff]  ;;  %v1655_v37 = vld [vmem:[%s7579_s7 + $0x2ad8] sm:$0xff] }
 0x1ab   : > { %5785 = vmatprep.subr.bf16.mxu1 %v5784_v52  ;;  %v1588_v47 = vld [vmem:[%s7579_s7 + $0x28c0] sm:$0xff]  ;;  %v1597_v52 = vld [vmem:[%s7579_s7 + $0x2908] sm:$0xff] }
 0x1ac   : > { %v5290_v59 = vpack.c.bf16 %v1588_v47, %v1580_v46  ;;  %v1646_v46 = vld [vmem:[%s7579_s7 + $0x2a90] sm:$0xff]  ;;  %v5816_v47 = vpack.c.bf16 %v1655_v37, %v1647_v36 }
 0x1ad   : > { %5275 = vmatpush1.bf16.msra.mxu0 %v5274_v60  ;;  %v5802_v60 = vpack.c.bf16 %v1590_v51, %v1582_v48  ;;  %v1654_v48 = vld [vmem:[%s7579_s7 + $0x2ad0] sm:$0xff]  ;;  %v1669_v51 = vld [vmem:[%s7579_s7 + $0x2b48] sm:$0xff] }
 0x1ae   : > { %5787 = vmatpush1.bf16.msra.mxu1 %v5786_v61  ;;  %5277 = vmatprep.subr.bf16.mxu0 %v5276_v62  ;;  %v5292_v61 = vpack.c.bf16 %v1605_v54, %v1597_v52  ;;  %v1596_v62 = vld [vmem:[%s7579_s7 + $0x2900] sm:$0xff]  ;;  %v1663_v52 = vld [vmem:[%s7579_s7 + $0x2b18] sm:$0xff]  ;;  %v5818_v58 = vpack.c.bf16 %v1654_v48, %v1646_v46  ;;  %v1718_v46 = vld [vmem:[%s7579_s7 + $0x2cd0] sm:$0xff] }
 0x1af   : > { %5789 = vmatprep.subr.bf16.mxu1 %v5788_v4  ;;  %v1606_v4 = vld [vmem:[%s7579_s7 + $0x2950] sm:$0xff]  ;;  %v5294_v10 = vpack.c.bf16 %v1604_v1, %v1596_v62  ;;  %v1671_v54 = vld [vmem:[%s7579_s7 + $0x2b58] sm:$0xff]  ;;  %v1733_v48 = vld [vmem:[%s7579_s7 + $0x2d48] sm:$0xff] }
 0x1b0   : > { %v1662_v62 = vld [vmem:[%s7579_s7 + $0x2b10] sm:$0xff]  ;;  %v5820_v1 = vpack.c.bf16 %v1671_v54, %v1663_v52 }
 0x1b1   : > { %5279 = vmatpush1.bf16.msra.mxu0 %v5278_v11  ;;  %v5806_v11 = vpack.c.bf16 %v1606_v4, %v1598_v2  ;;  %v1670_v2 = vld [vmem:[%s7579_s7 + $0x2b50] sm:$0xff]  ;;  %v1685_v4 = vld [vmem:[%s7579_s7 + $0x2bc8] sm:$0xff] }
 0x1b2   : > { %5791 = vmatpush1.bf16.msra.mxu1 %v5790_v50  ;;  %5281 = vmatprep.subr.bf16.mxu0 %v5280_v13  ;;  %v5296_v50 = vpack.c.bf16 %v1621_v7, %v1613_v6  ;;  %v1612_v13 = vld [vmem:[%s7579_s7 + $0x2980] sm:$0xff]  ;;  %v1679_v6 = vld [vmem:[%s7579_s7 + $0x2b98] sm:$0xff]  ;;  %v5822_v9 = vpack.c.bf16 %v1670_v2, %v1662_v62  ;;  %v1734_v62 = vld [vmem:[%s7579_s7 + $0x2d50] sm:$0xff] }
 0x1b3   : > { %5793 = vmatprep.subr.bf16.mxu1 %v5792_v18  ;;  %v1622_v18 = vld [vmem:[%s7579_s7 + $0x29d0] sm:$0xff]  ;;  %v5298_v23 = vpack.c.bf16 %v1620_v14, %v1612_v13  ;;  %v1687_v7 = vld [vmem:[%s7579_s7 + $0x2bd8] sm:$0xff]  ;;  %v1749_v2 = vld [vmem:[%s7579_s7 + $0x2dc8] sm:$0xff] }
 0x1b4   : > { %v5810_v24 = vpack.c.bf16 %v1622_v18, %v1614_v16  ;;  %v1678_v13 = vld [vmem:[%s7579_s7 + $0x2b90] sm:$0xff]  ;;  %v5824_v14 = vpack.c.bf16 %v1687_v7, %v1679_v6  ;;  %v1701_v18 = vld [vmem:[%s7579_s7 + $0x2c48] sm:$0xff] }
 0x1b5   : > { %5283 = vmatpush1.bf16.msra.mxu0 %v5282_v27  ;;  %v5300_v27 = vpack.c.bf16 %v1637_v20, %v1629_v19  ;;  %v1686_v16 = vld [vmem:[%s7579_s7 + $0x2bd0] sm:$0xff]  ;;  %v1695_v19 = vld [vmem:[%s7579_s7 + $0x2c18] sm:$0xff] }
 0x1b6   : > { %5795 = vmatpush1.bf16.msra.mxu1 %v5794_v28  ;;  %5285 = vmatprep.subr.bf16.mxu0 %v5284_v29  ;;  %v1628_v28 = vld [vmem:[%s7579_s7 + $0x2a00] sm:$0xff]  ;;  %v1703_v20 = vld [vmem:[%s7579_s7 + $0x2c58] sm:$0xff]  ;;  %v5826_v22 = vpack.c.bf16 %v1686_v16, %v1678_v13  ;;  %v1750_v13 = vld [vmem:[%s7579_s7 + $0x2dd0] sm:$0xff] }
 0x1b7   : > { %5797 = vmatprep.subr.bf16.mxu1 %v5796_v35  ;;  %v1636_v29 = vld [vmem:[%s7579_s7 + $0x2a40] sm:$0xff]  ;;  %v1645_v35 = vld [vmem:[%s7579_s7 + $0x2a88] sm:$0xff] }
 0x1b8   : > { %2769 = vmatmul.mubr.f32.vlgmr.msra.gmra.mrb[0].mxu0 %v8194_v53  ;;  %v5302_v39 = vpack.c.bf16 %v1636_v29, %v1628_v28  ;;  %v1694_v28 = vld [vmem:[%s7579_s7 + $0x2c10] sm:$0xff]  ;;  %v5828_v29 = vpack.c.bf16 %v1703_v20, %v1695_v19  ;;  %v1765_v16 = vld [vmem:[%s7579_s7 + $0x2e48] sm:$0xff] }
 0x1b9   : > { %5287 = vmatpush1.bf16.msra.mxu0 %v5286_v43  ;;  %3337 = vmatmul.mubr.f32.vlgmr.msra.gmra.mrb[0].mxu1 %v8194_v53  ;;  %v5304_v43 = vpack.c.bf16 %v1653_v41, %v1645_v35  ;;  %v1711_v35 = vld [vmem:[%s7579_s7 + $0x2c98] sm:$0xff]  ;;  %v5830_v37 = vpack.c.bf16 %v1702_v31, %v1694_v28  ;;  %v1766_v28 = vld [vmem:[%s7579_s7 + $0x2e50] sm:$0xff]  ;;  %v1781_v31 = vld [vmem:[%s7579_s7 + $0x2ec8] sm:$0xff] }
 0x1ba   : > { %5799 = vmatpush1.bf16.msra.mxu1 %v5798_v44  ;;  %5289 = vmatprep.subr.bf16.mxu0 %v5288_v45  ;;  %v1644_v44 = vld [vmem:[%s7579_s7 + $0x2a80] sm:$0xff]  ;;  %v1719_v41 = vld [vmem:[%s7579_s7 + $0x2cd8] sm:$0xff] }
 0x1bb   : > { %5801 = vmatprep.subr.bf16.mxu1 %v5800_v49  ;;  %2839 = vmatprep.mubr.f32.mxu0 %v8347_v55  ;;  %v1652_v45 = vld [vmem:[%s7579_s7 + $0x2ac0] sm:$0xff]  ;;  %v1661_v49 = vld [vmem:[%s7579_s7 + $0x2b08] sm:$0xff] }
 0x1bc   : > { %3407 = vmatprep.mubr.f32.mxu1 %v8347_v55  ;;  %v5306_v57 = vpack.c.bf16 %v1652_v45, %v1644_v44  ;;  %v1710_v44 = vld [vmem:[%s7579_s7 + $0x2c90] sm:$0xff]  ;;  %v5832_v45 = vpack.c.bf16 %v1719_v41, %v1711_v35 }
 0x1bd   : > { %5291 = vmatpush1.bf16.msra.mxu0 %v5290_v59  ;;  %v5308_v59 = vpack.c.bf16 %v1669_v51, %v1661_v49  ;;  %v1727_v49 = vld [vmem:[%s7579_s7 + $0x2d18] sm:$0xff]  ;;  %v5834_v54 = vpack.c.bf16 %v1718_v46, %v1710_v44  ;;  %v1782_v44 = vld [vmem:[%s7579_s7 + $0x2ed0] sm:$0xff]  ;;  %v1797_v46 = vld [vmem:[%s7579_s7 + $0x2f48] sm:$0xff] }
 0x1be   : > { %5803 = vmatpush1.bf16.msra.mxu1 %v5802_v60  ;;  %5293 = vmatprep.subr.bf16.mxu0 %v5292_v61  ;;  %v1660_v60 = vld [vmem:[%s7579_s7 + $0x2b00] sm:$0xff]  ;;  %v1735_v51 = vld [vmem:[%s7579_s7 + $0x2d58] sm:$0xff] }
 0x1bf   : > { %5805 = vmatprep.subr.bf16.mxu1 %v5804_v3  ;;  %v1668_v61 = vld [vmem:[%s7579_s7 + $0x2b40] sm:$0xff]  ;;  %v1677_v3 = vld [vmem:[%s7579_s7 + $0x2b88] sm:$0xff] }
 0x1c0   : > { %v5310_v8 = vpack.c.bf16 %v1668_v61, %v1660_v60  ;;  %v1726_v60 = vld [vmem:[%s7579_s7 + $0x2d10] sm:$0xff]  ;;  %v5836_v61 = vpack.c.bf16 %v1735_v51, %v1727_v49 }
 0x1c1   : > { %5295 = vmatpush1.bf16.msra.mxu0 %v5294_v10  ;;  %v5312_v10 = vpack.c.bf16 %v1685_v4, %v1677_v3  ;;  %v1743_v3 = vld [vmem:[%s7579_s7 + $0x2d98] sm:$0xff]  ;;  %v5838_v7 = vpack.c.bf16 %v1734_v62, %v1726_v60  ;;  %v1798_v60 = vld [vmem:[%s7579_s7 + $0x2f50] sm:$0xff]  ;;  %v1813_v62 = vld [vmem:[%s7579_s7 + $0x2fc8] sm:$0xff] }
 0x1c2   : > { %5807 = vmatpush1.bf16.msra.mxu1 %v5806_v11  ;;  %5297 = vmatprep.subr.bf16.mxu0 %v5296_v50  ;;  %v1676_v11 = vld [vmem:[%s7579_s7 + $0x2b80] sm:$0xff]  ;;  %v1751_v4 = vld [vmem:[%s7579_s7 + $0x2dd8] sm:$0xff] }
 0x1c3   : > { %5809 = vmatprep.subr.bf16.mxu1 %v5808_v17  ;;  %v1684_v50 = vld [vmem:[%s7579_s7 + $0x2bc0] sm:$0xff]  ;;  %v1693_v17 = vld [vmem:[%s7579_s7 + $0x2c08] sm:$0xff] }
 0x1c4   : > { %v5314_v21 = vpack.c.bf16 %v1684_v50, %v1676_v11  ;;  %v1742_v11 = vld [vmem:[%s7579_s7 + $0x2d90] sm:$0xff]  ;;  %v5840_v50 = vpack.c.bf16 %v1751_v4, %v1743_v3 }
 0x1c5   : > { %5299 = vmatpush1.bf16.msra.mxu0 %v5298_v23  ;;  %v5316_v23 = vpack.c.bf16 %v1701_v18, %v1693_v17  ;;  %v1759_v17 = vld [vmem:[%s7579_s7 + $0x2e18] sm:$0xff]  ;;  %v5842_v20 = vpack.c.bf16 %v1750_v13, %v1742_v11  ;;  %v1814_v11 = vld [vmem:[%s7579_s7 + $0x2fd0] sm:$0xff]  ;;  %v1829_v13 = vld [vmem:[%s7579_s7 + $0x3048] sm:$0xff] }
 0x1c6   : > { %5811 = vmatpush1.bf16.msra.mxu1 %v5810_v24  ;;  %5301 = vmatprep.subr.bf16.mxu0 %v5300_v27  ;;  %v1692_v24 = vld [vmem:[%s7579_s7 + $0x2c00] sm:$0xff]  ;;  %v1767_v18 = vld [vmem:[%s7579_s7 + $0x2e58] sm:$0xff] }
 0x1c7   : > { %5813 = vmatprep.subr.bf16.mxu1 %v5812_v32  ;;  %v1700_v27 = vld [vmem:[%s7579_s7 + $0x2c40] sm:$0xff]  ;;  %v1709_v32 = vld [vmem:[%s7579_s7 + $0x2c88] sm:$0xff] }
 0x1c8   : > { %v5318_v36 = vpack.c.bf16 %v1700_v27, %v1692_v24  ;;  %v1758_v24 = vld [vmem:[%s7579_s7 + $0x2e10] sm:$0xff]  ;;  %v5844_v27 = vpack.c.bf16 %v1767_v18, %v1759_v17  ;;  %v8468_v17 = vld [vmem:[%s7598_s26 + $0x18] sm:$0xff] }
 0x1c9   : > { %5303 = vmatpush1.bf16.msra.mxu0 %v5302_v39  ;;  %v5320_v39 = vpack.c.bf16 %v1717_v34, %v1709_v32  ;;  %v1775_v32 = vld [vmem:[%s7579_s7 + $0x2e98] sm:$0xff]  ;;  %v5846_v41 = vpack.c.bf16 %v1766_v28, %v1758_v24  ;;  %v1837_v28 = vld [vmem:[%s7579_s7 + $0x3088] sm:$0xff] }
 0x1ca   : > { %5815 = vmatpush1.bf16.msra.mxu1 %v5814_v42  ;;  %5305 = vmatprep.subr.bf16.mxu0 %v5304_v43  ;;  %v1708_v42 = vld [vmem:[%s7579_s7 + $0x2c80] sm:$0xff]  ;;  %v1783_v34 = vld [vmem:[%s7579_s7 + $0x2ed8] sm:$0xff] }
 0x1cb   : > { %5817 = vmatprep.subr.bf16.mxu1 %v5816_v47  ;;  %v1716_v43 = vld [vmem:[%s7579_s7 + $0x2cc0] sm:$0xff]  ;;  %v1725_v47 = vld [vmem:[%s7579_s7 + $0x2d08] sm:$0xff] }
 0x1cc   : > { %v5322_v52 = vpack.c.bf16 %v1716_v43, %v1708_v42  ;;  %v1774_v42 = vld [vmem:[%s7579_s7 + $0x2e90] sm:$0xff]  ;;  %v5848_v43 = vpack.c.bf16 %v1783_v34, %v1775_v32  ;;  %v1839_v32 = vld [vmem:[%s7579_s7 + $0x3098] sm:$0xff] }
 0x1cd   : > { %5307 = vmatpush1.bf16.msra.mxu0 %v5306_v57  ;;  %v5324_v57 = vpack.c.bf16 %v1733_v48, %v1725_v47  ;;  %v1791_v47 = vld [vmem:[%s7579_s7 + $0x2f18] sm:$0xff]  ;;  %v5850_v51 = vpack.c.bf16 %v1782_v44, %v1774_v42  ;;  %v1838_v42 = vld [vmem:[%s7579_s7 + $0x3090] sm:$0xff] }
 0x1ce   : > { %5819 = vmatpush1.bf16.msra.mxu1 %v5818_v58  ;;  %5309 = vmatprep.subr.bf16.mxu0 %v5308_v59  ;;  %v1724_v58 = vld [vmem:[%s7579_s7 + $0x2d00] sm:$0xff]  ;;  %v1799_v48 = vld [vmem:[%s7579_s7 + $0x2f58] sm:$0xff]  ;;  %v1846_v44 = vld [vmem:[%s7579_s7 + $0x30d0] sm:$0xff] }
 0x1cf   : > { %5821 = vmatprep.subr.bf16.mxu1 %v5820_v1  ;;  %v1732_v59 = vld [vmem:[%s7579_s7 + $0x2d40] sm:$0xff]  ;;  %v1741_v1 = vld [vmem:[%s7579_s7 + $0x2d88] sm:$0xff]  ;;  %v1847_v34 = vld [vmem:[%s7579_s7 + $0x30d8] sm:$0xff] }
 0x1d0   : > { %v5326_v6 = vpack.c.bf16 %v1732_v59, %v1724_v58  ;;  %v1790_v58 = vld [vmem:[%s7579_s7 + $0x2f10] sm:$0xff]  ;;  %v5852_v59 = vpack.c.bf16 %v1799_v48, %v1791_v47  ;;  %v1855_v48 = vld [vmem:[%s7579_s7 + $0x3118] sm:$0xff] }
 0x1d1   : > { %5311 = vmatpush1.bf16.msra.mxu0 %v5310_v8  ;;  %v5328_v8 = vpack.c.bf16 %v1749_v2, %v1741_v1  ;;  %v1807_v1 = vld [vmem:[%s7579_s7 + $0x2f98] sm:$0xff]  ;;  %v5854_v4 = vpack.c.bf16 %v1798_v60, %v1790_v58  ;;  %v1860_v58 = vld [vmem:[%s7579_s7 + $0x3140] sm:$0xff] }
 0x1d2   : > { %5823 = vmatpush1.bf16.msra.mxu1 %v5822_v9  ;;  %5313 = vmatprep.subr.bf16.mxu0 %v5312_v10  ;;  %v1740_v9 = vld [vmem:[%s7579_s7 + $0x2d80] sm:$0xff]  ;;  %v1815_v2 = vld [vmem:[%s7579_s7 + $0x2fd8] sm:$0xff] }
 0x1d3   : > { %5825 = vmatprep.subr.bf16.mxu1 %v5824_v14  ;;  %v1748_v10 = vld [vmem:[%s7579_s7 + $0x2dc0] sm:$0xff]  ;;  %v1757_v14 = vld [vmem:[%s7579_s7 + $0x2e08] sm:$0xff] }
 0x1d4   : > { %v5330_v19 = vpack.c.bf16 %v1748_v10, %v1740_v9  ;;  %v1806_v9 = vld [vmem:[%s7579_s7 + $0x2f90] sm:$0xff]  ;;  %v5856_v10 = vpack.c.bf16 %v1815_v2, %v1807_v1  ;;  %v1877_v1 = vld [vmem:[%s7579_s7 + $0x31c8] sm:$0xff]  ;;  %v1871_v2 = vld [vmem:[%s7579_s7 + $0x3198] sm:$0xff] }
 0x1d5   : > { %5315 = vmatpush1.bf16.msra.mxu0 %v5314_v21  ;;  %v5332_v21 = vpack.c.bf16 %v1765_v16, %v1757_v14  ;;  %v1823_v14 = vld [vmem:[%s7579_s7 + $0x3018] sm:$0xff] }
 0x1d6   : > { %5827 = vmatpush1.bf16.msra.mxu1 %v5826_v22  ;;  %5317 = vmatprep.subr.bf16.mxu0 %v5316_v23  ;;  %v1756_v22 = vld [vmem:[%s7579_s7 + $0x2e00] sm:$0xff]  ;;  %v1831_v16 = vld [vmem:[%s7579_s7 + $0x3058] sm:$0xff] }
 0x1d7   : > { %5829 = vmatprep.subr.bf16.mxu1 %v5828_v29  ;;  %v1764_v23 = vld [vmem:[%s7579_s7 + $0x2e40] sm:$0xff]  ;;  %v1773_v29 = vld [vmem:[%s7579_s7 + $0x2e88] sm:$0xff]  ;;  %v5860_v24 = vpack.c.bf16 %v1831_v16, %v1823_v14  ;;  %v1887_v16 = vld [vmem:[%s7579_s7 + $0x3218] sm:$0xff] }
 0x1d8   : > { %v5334_v35 = vpack.c.bf16 %v1764_v23, %v1756_v22  ;;  %v1828_v22 = vld [vmem:[%s7579_s7 + $0x3040] sm:$0xff]  ;;  %v1822_v23 = vld [vmem:[%s7579_s7 + $0x3010] sm:$0xff]  ;;  %v1893_v14 = vld [vmem:[%s7579_s7 + $0x3248] sm:$0xff] }
 0x1d9   : > { %5319 = vmatpush1.bf16.msra.mxu0 %v5318_v36  ;;  %v5336_v36 = vpack.c.bf16 %v1781_v31, %v1773_v29  ;;  %v1845_v29 = vld [vmem:[%s7579_s7 + $0x30c8] sm:$0xff]  ;;  %v8478_v31 = vrot.slane %v8468_v17, %v7703_v12 }
 0x1da   : > { %5831 = vmatpush1.bf16.msra.mxu1 %v5830_v37  ;;  %5321 = vmatprep.subr.bf16.mxu0 %v5320_v39  ;;  %v1772_v37 = vld [vmem:[%s7579_s7 + $0x2e80] sm:$0xff] }
 0x1db   : > { %5833 = vmatprep.subr.bf16.mxu1 %v5832_v45  ;;  %v1780_v39 = vld [vmem:[%s7579_s7 + $0x2ec0] sm:$0xff]  ;;  %v1789_v45 = vld [vmem:[%s7579_s7 + $0x2f08] sm:$0xff]  ;;  %v8490_v47 = vcombine.high %v8478_v31, %v8478_v31 }
 0x1dc   : > { %v5338_v49 = vpack.c.bf16 %v1780_v39, %v1772_v37  ;;  %v1836_v37 = vld [vmem:[%s7579_s7 + $0x3080] sm:$0xff] }
 0x1dd   : > { %5323 = vmatpush1.bf16.msra.mxu0 %v5322_v52  ;;  %v5340_v52 = vpack.c.bf16 %v1797_v46, %v1789_v45  ;;  %v1844_v39 = vld [vmem:[%s7579_s7 + $0x30c0] sm:$0xff]  ;;  %v1853_v45 = vld [vmem:[%s7579_s7 + $0x3108] sm:$0xff] }
 0x1de   : > { %5835 = vmatpush1.bf16.msra.mxu1 %v5834_v54  ;;  %5325 = vmatprep.subr.bf16.mxu0 %v5324_v57  ;;  %v1788_v54 = vld [vmem:[%s7579_s7 + $0x2f00] sm:$0xff]  ;;  %v1861_v46 = vld [vmem:[%s7579_s7 + $0x3148] sm:$0xff] }
 0x1df   : > { %5837 = vmatprep.subr.bf16.mxu1 %v5836_v61  ;;  %v1796_v57 = vld [vmem:[%s7579_s7 + $0x2f40] sm:$0xff]  ;;  %v1805_v61 = vld [vmem:[%s7579_s7 + $0x2f88] sm:$0xff] }
 0x1e0   : > { %v5342_v3 = vpack.c.bf16 %v1796_v57, %v1788_v54  ;;  %v5356_v54 = vpack.c.bf16 %v1861_v46, %v1853_v45  ;;  %v1852_v57 = vld [vmem:[%s7579_s7 + $0x3100] sm:$0xff]  ;;  %v1910_v45 = vld [vmem:[%s7579_s7 + $0x32d0] sm:$0xff]  ;;  %v1917_v46 = vld [vmem:[%s7579_s7 + $0x3308] sm:$0xff] }
 0x1e1   : > { %5327 = vmatpush1.bf16.msra.mxu0 %v5326_v6  ;;  %v5344_v6 = vpack.c.bf16 %v1813_v62, %v1805_v61  ;;  %v1862_v61 = vld [vmem:[%s7579_s7 + $0x3150] sm:$0xff]  ;;  %v1869_v62 = vld [vmem:[%s7579_s7 + $0x3188] sm:$0xff] }
 0x1e2   : > { %5839 = vmatpush1.bf16.msra.mxu1 %v5838_v7  ;;  %5329 = vmatprep.subr.bf16.mxu0 %v5328_v8  ;;  %v1804_v7 = vld [vmem:[%s7579_s7 + $0x2f80] sm:$0xff] }
 0x1e3   : > { %5841 = vmatprep.subr.bf16.mxu1 %v5840_v50  ;;  %v1812_v8 = vld [vmem:[%s7579_s7 + $0x2fc0] sm:$0xff]  ;;  %v1821_v50 = vld [vmem:[%s7579_s7 + $0x3008] sm:$0xff] }
 0x1e4   : > { %v5346_v18 = vpack.c.bf16 %v1812_v8, %v1804_v7  ;;  %v5360_v7 = vpack.c.bf16 %v1877_v1, %v1869_v62  ;;  %v1868_v8 = vld [vmem:[%s7579_s7 + $0x3180] sm:$0xff]  ;;  %v1926_v62 = vld [vmem:[%s7579_s7 + $0x3350] sm:$0xff]  ;;  %v1933_v1 = vld [vmem:[%s7579_s7 + $0x3388] sm:$0xff] }
 0x1e5   : > { %5331 = vmatpush1.bf16.msra.mxu0 %v5330_v19  ;;  %v5858_v19 = vpack.c.bf16 %v1814_v11, %v1806_v9  ;;  %v1876_v9 = vld [vmem:[%s7579_s7 + $0x31c0] sm:$0xff] }
 0x1e6   : > { %5843 = vmatpush1.bf16.msra.mxu1 %v5842_v20  ;;  %5333 = vmatprep.subr.bf16.mxu0 %v5332_v21  ;;  %v5348_v20 = vpack.c.bf16 %v1829_v13, %v1821_v50  ;;  %v1820_v21 = vld [vmem:[%s7579_s7 + $0x3000] sm:$0xff]  ;;  %v1878_v50 = vld [vmem:[%s7579_s7 + $0x31d0] sm:$0xff]  ;;  %v1885_v13 = vld [vmem:[%s7579_s7 + $0x3208] sm:$0xff] }
 0x1e7   : > { %5845 = vmatprep.subr.bf16.mxu1 %v5844_v27  ;;  %v1830_v27 = vld [vmem:[%s7579_s7 + $0x3050] sm:$0xff] }
 0x1e9   : > { %5335 = vmatpush1.bf16.msra.mxu0 %v5334_v35  ;;  %v5350_v35 = vpack.c.bf16 %v1828_v22, %v1820_v21  ;;  %v5364_v21 = vpack.c.bf16 %v1893_v14, %v1885_v13  ;;  %v1884_v22 = vld [vmem:[%s7579_s7 + $0x3200] sm:$0xff]  ;;  %v1942_v13 = vld [vmem:[%s7579_s7 + $0x33d0] sm:$0xff]  ;;  %v1949_v14 = vld [vmem:[%s7579_s7 + $0x3408] sm:$0xff] }
 0x1ea   : > { %5847 = vmatpush1.bf16.msra.mxu1 %v5846_v41  ;;  %5337 = vmatprep.subr.bf16.mxu0 %v5336_v36  ;;  %v5862_v41 = vpack.c.bf16 %v1830_v27, %v1822_v23  ;;  %v5352_v36 = vpack.c.bf16 %v1845_v29, %v1837_v28  ;;  %v1892_v23 = vld [vmem:[%s7579_s7 + $0x3240] sm:$0xff]  ;;  %v1894_v28 = vld [vmem:[%s7579_s7 + $0x3250] sm:$0xff]  ;;  %v1901_v29 = vld [vmem:[%s7579_s7 + $0x3288] sm:$0xff] }
 0x1eb   : > { %5849 = vmatprep.subr.bf16.mxu1 %v5848_v43  ;;  %v5864_v43 = vpack.c.bf16 %v1847_v34, %v1839_v32  ;;  %v1909_v32 = vld [vmem:[%s7579_s7 + $0x32c8] sm:$0xff]  ;;  %v1903_v34 = vld [vmem:[%s7579_s7 + $0x3298] sm:$0xff] }
 0x1ed   : > { %5339 = vmatpush1.bf16.msra.mxu0 %v5338_v49  ;;  %v1863_v49 = vld [vmem:[%s7579_s7 + $0x3158] sm:$0xff] }
 0x1ee   : > { %5851 = vmatpush1.bf16.msra.mxu1 %v5850_v51  ;;  %5341 = vmatprep.subr.bf16.mxu0 %v5340_v52  ;;  %v5354_v51 = vpack.c.bf16 %v1844_v39, %v1836_v37  ;;  %v5866_v52 = vpack.c.bf16 %v1846_v44, %v1838_v42  ;;  %v5868_v60 = vpack.c.bf16 %v1863_v49, %v1855_v48  ;;  %v1900_v39 = vld [vmem:[%s7579_s7 + $0x3280] sm:$0xff]  ;;  %v1925_v48 = vld [vmem:[%s7579_s7 + $0x3348] sm:$0xff]  ;;  %v1919_v49 = vld [vmem:[%s7579_s7 + $0x3318] sm:$0xff] }
 0x1ef   : > { %5853 = vmatprep.subr.bf16.mxu1 %v5852_v59  ;;  %v1854_v59 = vld [vmem:[%s7579_s7 + $0x3110] sm:$0xff]  ;;  %v5368_v37 = vpack.c.bf16 %v1909_v32, %v1901_v29  ;;  %v1908_v42 = vld [vmem:[%s7579_s7 + $0x32c0] sm:$0xff]  ;;  %v1965_v32 = vld [vmem:[%s7579_s7 + $0x3488] sm:$0xff] }
 0x1f0   : > { %v1958_v29 = vld [vmem:[%s7579_s7 + $0x3450] sm:$0xff] }
 0x1f1   : > { %5343 = vmatpush1.bf16.msra.mxu0 %v5342_v3  ;;  %v1879_v3 = vld [vmem:[%s7579_s7 + $0x31d8] sm:$0xff] }
 0x1f2   : > { %5855 = vmatpush1.bf16.msra.mxu1 %v5854_v4  ;;  %5345 = vmatprep.subr.bf16.mxu0 %v5344_v6  ;;  %v5358_v4 = vpack.c.bf16 %v1860_v58, %v1852_v57  ;;  %v5870_v6 = vpack.c.bf16 %v1862_v61, %v1854_v59  ;;  %v5872_v11 = vpack.c.bf16 %v1879_v3, %v1871_v2  ;;  %v1916_v58 = vld [vmem:[%s7579_s7 + $0x3300] sm:$0xff]  ;;  %v1941_v2 = vld [vmem:[%s7579_s7 + $0x33c8] sm:$0xff]  ;;  %v1935_v3 = vld [vmem:[%s7579_s7 + $0x3398] sm:$0xff] }
 0x1f3   : > { %5857 = vmatprep.subr.bf16.mxu1 %v5856_v10  ;;  %v1870_v10 = vld [vmem:[%s7579_s7 + $0x3190] sm:$0xff]  ;;  %v5372_v57 = vpack.c.bf16 %v1925_v48, %v1917_v46  ;;  %v1924_v59 = vld [vmem:[%s7579_s7 + $0x3340] sm:$0xff]  ;;  %v1981_v48 = vld [vmem:[%s7579_s7 + $0x3508] sm:$0xff] }
 0x1f4   : > { %v1974_v46 = vld [vmem:[%s7579_s7 + $0x34d0] sm:$0xff] }
 0x1f5   : > { %5347 = vmatpush1.bf16.msra.mxu0 %v5346_v18  ;;  %v1895_v18 = vld [vmem:[%s7579_s7 + $0x3258] sm:$0xff] }
 0x1f6   : > { %5859 = vmatpush1.bf16.msra.mxu1 %v5858_v19  ;;  %5349 = vmatprep.subr.bf16.mxu0 %v5348_v20  ;;  %v5362_v19 = vpack.c.bf16 %v1876_v9, %v1868_v8  ;;  %v5874_v20 = vpack.c.bf16 %v1878_v50, %v1870_v10  ;;  %v5876_v27 = vpack.c.bf16 %v1895_v18, %v1887_v16  ;;  %v1932_v9 = vld [vmem:[%s7579_s7 + $0x3380] sm:$0xff]  ;;  %v1957_v16 = vld [vmem:[%s7579_s7 + $0x3448] sm:$0xff]  ;;  %v1951_v18 = vld [vmem:[%s7579_s7 + $0x3418] sm:$0xff] }
 0x1f7   : > { %5861 = vmatprep.subr.bf16.mxu1 %v5860_v24  ;;  %v1886_v24 = vld [vmem:[%s7579_s7 + $0x3210] sm:$0xff]  ;;  %v5376_v8 = vpack.c.bf16 %v1941_v2, %v1933_v1  ;;  %v1940_v10 = vld [vmem:[%s7579_s7 + $0x33c0] sm:$0xff]  ;;  %v1997_v2 = vld [vmem:[%s7579_s7 + $0x3588] sm:$0xff] }
 0x1f8   : > { %2840 = vmatmul.mubr.f32.vlgmr.msra.gmra.mrb[0].mxu0 %v8335_v38  ;;  %v1990_v1 = vld [vmem:[%s7579_s7 + $0x3550] sm:$0xff] }
 0x1f9   : > { %5351 = vmatpush1.bf16.msra.mxu0 %v5350_v35  ;;  %3408 = vmatmul.mubr.f32.vlgmr.msra.gmra.mrb[0].mxu1 %v8335_v38  ;;  %v1911_v35 = vld [vmem:[%s7579_s7 + $0x32d8] sm:$0xff] }
 0x1fa   : > { %5863 = vmatpush1.bf16.msra.mxu1 %v5862_v41  ;;  %5353 = vmatprep.subr.bf16.mxu0 %v5352_v36  ;;  %v5366_v41 = vpack.c.bf16 %v1892_v23, %v1884_v22  ;;  %v5878_v36 = vpack.c.bf16 %v1894_v28, %v1886_v24  ;;  %v5880_v44 = vpack.c.bf16 %v1911_v35, %v1903_v34  ;;  %v1948_v23 = vld [vmem:[%s7579_s7 + $0x3400] sm:$0xff]  ;;  %v1973_v34 = vld [vmem:[%s7579_s7 + $0x34c8] sm:$0xff]  ;;  %v1967_v35 = vld [vmem:[%s7579_s7 + $0x3498] sm:$0xff] }
 0x1fb   : > { %5865 = vmatprep.subr.bf16.mxu1 %v5864_v43  ;;  %2910 = vmatprep.mubr.f32.mxu0 %v8490_v47  ;;  %v1902_v43 = vld [vmem:[%s7579_s7 + $0x3290] sm:$0xff]  ;;  %v5380_v22 = vpack.c.bf16 %v1957_v16, %v1949_v14  ;;  %v1956_v24 = vld [vmem:[%s7579_s7 + $0x3440] sm:$0xff]  ;;  %v2013_v16 = vld [vmem:[%s7579_s7 + $0x3608] sm:$0xff] }
 0x1fc   : > { %3478 = vmatprep.mubr.f32.mxu1 %v8490_v47  ;;  %v2006_v14 = vld [vmem:[%s7579_s7 + $0x35d0] sm:$0xff] }
 0x1fd   : > { %5355 = vmatpush1.bf16.msra.mxu0 %v5354_v51  ;;  %v1927_v51 = vld [vmem:[%s7579_s7 + $0x3358] sm:$0xff] }
 0x1fe   : > { %5867 = vmatpush1.bf16.msra.mxu1 %v5866_v52  ;;  %5357 = vmatprep.subr.bf16.mxu0 %v5356_v54  ;;  %v5370_v52 = vpack.c.bf16 %v1908_v42, %v1900_v39  ;;  %v5882_v54 = vpack.c.bf16 %v1910_v45, %v1902_v43  ;;  %v5884_v61 = vpack.c.bf16 %v1927_v51, %v1919_v49  ;;  %v1964_v42 = vld [vmem:[%s7579_s7 + $0x3480] sm:$0xff]  ;;  %v1989_v49 = vld [vmem:[%s7579_s7 + $0x3548] sm:$0xff]  ;;  %v1983_v51 = vld [vmem:[%s7579_s7 + $0x3518] sm:$0xff] }
 0x1ff   : > { %5869 = vmatprep.subr.bf16.mxu1 %v5868_v60  ;;  %v1918_v60 = vld [vmem:[%s7579_s7 + $0x3310] sm:$0xff]  ;;  %v5384_v39 = vpack.c.bf16 %v1973_v34, %v1965_v32  ;;  %v1972_v43 = vld [vmem:[%s7579_s7 + $0x34c0] sm:$0xff]  ;;  %v2029_v34 = vld [vmem:[%s7579_s7 + $0x3688] sm:$0xff] }
 0x200   : > { %v2022_v32 = vld [vmem:[%s7579_s7 + $0x3650] sm:$0xff] }
 0x201   : > { %5359 = vmatpush1.bf16.msra.mxu0 %v5358_v4  ;;  %v1943_v4 = vld [vmem:[%s7579_s7 + $0x33d8] sm:$0xff] }
 0x202   : > { %5871 = vmatpush1.bf16.msra.mxu1 %v5870_v6  ;;  %5361 = vmatprep.subr.bf16.mxu0 %v5360_v7  ;;  %v5374_v6 = vpack.c.bf16 %v1924_v59, %v1916_v58  ;;  %v5886_v7 = vpack.c.bf16 %v1926_v62, %v1918_v60  ;;  %v5888_v50 = vpack.c.bf16 %v1943_v4, %v1935_v3  ;;  %v1980_v59 = vld [vmem:[%s7579_s7 + $0x3500] sm:$0xff]  ;;  %v2005_v3 = vld [vmem:[%s7579_s7 + $0x35c8] sm:$0xff]  ;;  %v1999_v4 = vld [vmem:[%s7579_s7 + $0x3598] sm:$0xff] }
 0x203   : > { %5873 = vmatprep.subr.bf16.mxu1 %v5872_v11  ;;  %v1934_v11 = vld [vmem:[%s7579_s7 + $0x3390] sm:$0xff]  ;;  %v5388_v58 = vpack.c.bf16 %v1989_v49, %v1981_v48  ;;  %v1988_v60 = vld [vmem:[%s7579_s7 + $0x3540] sm:$0xff]  ;;  %v2045_v49 = vld [vmem:[%s7579_s7 + $0x3708] sm:$0xff] }
 0x204   : > { %v2038_v48 = vld [vmem:[%s7579_s7 + $0x36d0] sm:$0xff] }
 0x205   : > { %5363 = vmatpush1.bf16.msra.mxu0 %v5362_v19  ;;  %v1959_v19 = vld [vmem:[%s7579_s7 + $0x3458] sm:$0xff] }
 0x206   : > { %5875 = vmatpush1.bf16.msra.mxu1 %v5874_v20  ;;  %5365 = vmatprep.subr.bf16.mxu0 %v5364_v21  ;;  %v5378_v20 = vpack.c.bf16 %v1940_v10, %v1932_v9  ;;  %v5890_v21 = vpack.c.bf16 %v1942_v13, %v1934_v11  ;;  %v5892_v28 = vpack.c.bf16 %v1959_v19, %v1951_v18  ;;  %v1996_v10 = vld [vmem:[%s7579_s7 + $0x3580] sm:$0xff]  ;;  %v2021_v18 = vld [vmem:[%s7579_s7 + $0x3648] sm:$0xff]  ;;  %v2015_v19 = vld [vmem:[%s7579_s7 + $0x3618] sm:$0xff] }
 0x207   : > { %5877 = vmatprep.subr.bf16.mxu1 %v5876_v27  ;;  %v1950_v27 = vld [vmem:[%s7579_s7 + $0x3410] sm:$0xff]  ;;  %v5392_v9 = vpack.c.bf16 %v2005_v3, %v1997_v2  ;;  %v2004_v11 = vld [vmem:[%s7579_s7 + $0x35c0] sm:$0xff]  ;;  %v2061_v3 = vld [vmem:[%s7579_s7 + $0x3788] sm:$0xff] }
 0x208   : > { %v2054_v2 = vld [vmem:[%s7579_s7 + $0x3750] sm:$0xff] }
 0x209   : > { %5367 = vmatpush1.bf16.msra.mxu0 %v5366_v41  ;;  %v1975_v41 = vld [vmem:[%s7579_s7 + $0x34d8] sm:$0xff] }
 0x20a   : > { %5879 = vmatpush1.bf16.msra.mxu1 %v5878_v36  ;;  %5369 = vmatprep.subr.bf16.mxu0 %v5368_v37  ;;  %v5382_v36 = vpack.c.bf16 %v1956_v24, %v1948_v23  ;;  %v5894_v37 = vpack.c.bf16 %v1958_v29, %v1950_v27  ;;  %v5896_v45 = vpack.c.bf16 %v1975_v41, %v1967_v35  ;;  %v2012_v24 = vld [vmem:[%s7579_s7 + $0x3600] sm:$0xff]  ;;  %v2037_v35 = vld [vmem:[%s7579_s7 + $0x36c8] sm:$0xff]  ;;  %v2031_v41 = vld [vmem:[%s7579_s7 + $0x3698] sm:$0xff] }
 0x20b   : > { %5881 = vmatprep.subr.bf16.mxu1 %v5880_v44  ;;  %v1966_v44 = vld [vmem:[%s7579_s7 + $0x3490] sm:$0xff]  ;;  %v5396_v23 = vpack.c.bf16 %v2021_v18, %v2013_v16  ;;  %v2020_v27 = vld [vmem:[%s7579_s7 + $0x3640] sm:$0xff]  ;;  %v2077_v18 = vld [vmem:[%s7579_s7 + $0x3808] sm:$0xff] }
 0x20c   : > { %v2070_v16 = vld [vmem:[%s7579_s7 + $0x37d0] sm:$0xff] }
 0x20d   : > { %5371 = vmatpush1.bf16.msra.mxu0 %v5370_v52  ;;  %v1991_v52 = vld [vmem:[%s7579_s7 + $0x3558] sm:$0xff] }
 0x20e   : > { %5883 = vmatpush1.bf16.msra.mxu1 %v5882_v54  ;;  %5373 = vmatprep.subr.bf16.mxu0 %v5372_v57  ;;  %v5386_v54 = vpack.c.bf16 %v1972_v43, %v1964_v42  ;;  %v5898_v57 = vpack.c.bf16 %v1974_v46, %v1966_v44  ;;  %v5900_v62 = vpack.c.bf16 %v1991_v52, %v1983_v51  ;;  %v2028_v43 = vld [vmem:[%s7579_s7 + $0x3680] sm:$0xff]  ;;  %v2053_v51 = vld [vmem:[%s7579_s7 + $0x3748] sm:$0xff]  ;;  %v2047_v52 = vld [vmem:[%s7579_s7 + $0x3718] sm:$0xff] }
 0x20f   : > { %5885 = vmatprep.subr.bf16.mxu1 %v5884_v61  ;;  %v1982_v61 = vld [vmem:[%s7579_s7 + $0x3510] sm:$0xff]  ;;  %v5400_v42 = vpack.c.bf16 %v2037_v35, %v2029_v34  ;;  %v2036_v44 = vld [vmem:[%s7579_s7 + $0x36c0] sm:$0xff]  ;;  %v2093_v35 = vld [vmem:[%s7579_s7 + $0x3888] sm:$0xff] }
 0x211   : > { %5375 = vmatpush1.bf16.msra.mxu0 %v5374_v6  ;;  %v2007_v6 = vld [vmem:[%s7579_s7 + $0x35d8] sm:$0xff] }
 0x212   : > { %5887 = vmatpush1.bf16.msra.mxu1 %v5886_v7  ;;  %5377 = vmatprep.subr.bf16.mxu0 %v5376_v8  ;;  %v5390_v7 = vpack.c.bf16 %v1988_v60, %v1980_v59  ;;  %v5902_v8 = vpack.c.bf16 %v1990_v1, %v1982_v61  ;;  %v5904_v13 = vpack.c.bf16 %v2007_v6, %v1999_v4  ;;  %v2044_v60 = vld [vmem:[%s7579_s7 + $0x3700] sm:$0xff]  ;;  %v2069_v4 = vld [vmem:[%s7579_s7 + $0x37c8] sm:$0xff]  ;;  %v2063_v6 = vld [vmem:[%s7579_s7 + $0x3798] sm:$0xff] }
 0x213   : > { %5889 = vmatprep.subr.bf16.mxu1 %v5888_v50  ;;  %v1998_v50 = vld [vmem:[%s7579_s7 + $0x3590] sm:$0xff]  ;;  %v5404_v59 = vpack.c.bf16 %v2053_v51, %v2045_v49  ;;  %v2052_v61 = vld [vmem:[%s7579_s7 + $0x3740] sm:$0xff] }
 0x214   : > { %v2102_v51 = vld [vmem:[%s7579_s7 + $0x38d0] sm:$0xff] }
 0x215   : > { %5379 = vmatpush1.bf16.msra.mxu0 %v5378_v20  ;;  %v2023_v20 = vld [vmem:[%s7579_s7 + $0x3658] sm:$0xff] }
 0x216   : > { %5891 = vmatpush1.bf16.msra.mxu1 %v5890_v21  ;;  %5381 = vmatprep.subr.bf16.mxu0 %v5380_v22  ;;  %v5394_v21 = vpack.c.bf16 %v2004_v11, %v1996_v10  ;;  %v5906_v22 = vpack.c.bf16 %v2006_v14, %v1998_v50  ;;  %v5908_v29 = vpack.c.bf16 %v2023_v20, %v2015_v19  ;;  %v2060_v11 = vld [vmem:[%s7579_s7 + $0x3780] sm:$0xff]  ;;  %v2085_v19 = vld [vmem:[%s7579_s7 + $0x3848] sm:$0xff] }
 0x217   : > { %5893 = vmatprep.subr.bf16.mxu1 %v5892_v28  ;;  %v2014_v28 = vld [vmem:[%s7579_s7 + $0x3610] sm:$0xff]  ;;  %v5408_v10 = vpack.c.bf16 %v2069_v4, %v2061_v3  ;;  %v2068_v50 = vld [vmem:[%s7579_s7 + $0x37c0] sm:$0xff]  ;;  %v2387_v20 = vcombine.high %v8468_v17, %v8468_v17 }
 0x218   : > { %v2086_v17 = vld [vmem:[%s7579_s7 + $0x3850] sm:$0xff] }
 0x219   : > { %5383 = vmatpush1.bf16.msra.mxu0 %v5382_v36  ;;  %v2039_v36 = vld [vmem:[%s7579_s7 + $0x36d8] sm:$0xff]  ;;  %v2110_v3 = vld [vmem:[%s7579_s7 + $0x3910] sm:$0xff] }
 0x21a   : > { %5895 = vmatpush1.bf16.msra.mxu1 %v5894_v37  ;;  %5385 = vmatprep.subr.bf16.mxu0 %v5384_v39  ;;  %v5398_v37 = vpack.c.bf16 %v2020_v27, %v2012_v24  ;;  %v5910_v39 = vpack.c.bf16 %v2022_v32, %v2014_v28  ;;  %v5912_v46 = vpack.c.bf16 %v2039_v36, %v2031_v41  ;;  %v2076_v28 = vld [vmem:[%s7579_s7 + $0x3800] sm:$0xff]  ;;  %v2078_v32 = vld [vmem:[%s7579_s7 + $0x3810] sm:$0xff]  ;;  %v2101_v41 = vld [vmem:[%s7579_s7 + $0x38c8] sm:$0xff] }
 0x21b   : > { %5897 = vmatprep.subr.bf16.mxu1 %v5896_v45  ;;  %v2030_v45 = vld [vmem:[%s7579_s7 + $0x3690] sm:$0xff]  ;;  %v5412_v27 = vpack.c.bf16 %v2085_v19, %v2077_v18  ;;  %v8619_v36 = vrot.slane %v2387_v20, %v7703_v12 }
 0x21c   : > { %v2126_v18 = vld [vmem:[%s7579_s7 + $0x3990] sm:$0xff] }
 0x21d   : > { %5387 = vmatpush1.bf16.msra.mxu0 %v5386_v54  ;;  %v2055_v54 = vld [vmem:[%s7579_s7 + $0x3758] sm:$0xff]  ;;  %v2134_v20 = vld [vmem:[%s7579_s7 + $0x39d0] sm:$0xff] }
 0x21e   : > { %5899 = vmatpush1.bf16.msra.mxu1 %v5898_v57  ;;  %5389 = vmatprep.subr.bf16.mxu0 %v5388_v58  ;;  %v5402_v57 = vpack.c.bf16 %v2036_v44, %v2028_v43  ;;  %v5914_v58 = vpack.c.bf16 %v2038_v48, %v2030_v45  ;;  %v5916_v1 = vpack.c.bf16 %v2055_v54, %v2047_v52  ;;  %v2092_v45 = vld [vmem:[%s7579_s7 + $0x3880] sm:$0xff]  ;;  %v2094_v48 = vld [vmem:[%s7579_s7 + $0x3890] sm:$0xff]  ;;  %v2109_v52 = vld [vmem:[%s7579_s7 + $0x3908] sm:$0xff] }
 0x21f   : > { %5901 = vmatprep.subr.bf16.mxu1 %v5900_v62  ;;  %v2046_v62 = vld [vmem:[%s7579_s7 + $0x3710] sm:$0xff]  ;;  %v5926_v43 = vpack.c.bf16 %v2086_v17, %v2078_v32  ;;  %v5416_v44 = vpack.c.bf16 %v2101_v41, %v2093_v35  ;;  %v2117_v54 = vld [vmem:[%s7579_s7 + $0x3948] sm:$0xff]  ;;  %v2140_v32 = vld [vmem:[%s7579_s7 + $0x3a00] sm:$0xff] }
 0x220   : > { %v2142_v17 = vld [vmem:[%s7579_s7 + $0x3a10] sm:$0xff] }
 0x221   : > { %5391 = vmatpush1.bf16.msra.mxu0 %v5390_v7  ;;  %v2071_v7 = vld [vmem:[%s7579_s7 + $0x37d8] sm:$0xff]  ;;  %v2150_v41 = vld [vmem:[%s7579_s7 + $0x3a50] sm:$0xff] }
 0x222   : > { %5903 = vmatpush1.bf16.msra.mxu1 %v5902_v8  ;;  %5393 = vmatprep.subr.bf16.mxu0 %v5392_v9  ;;  %v5406_v8 = vpack.c.bf16 %v2052_v61, %v2044_v60  ;;  %v5918_v9 = vpack.c.bf16 %v2054_v2, %v2046_v62  ;;  %v5920_v14 = vpack.c.bf16 %v2071_v7, %v2063_v6  ;;  %v2116_v2 = vld [vmem:[%s7579_s7 + $0x3940] sm:$0xff]  ;;  %v2118_v6 = vld [vmem:[%s7579_s7 + $0x3950] sm:$0xff]  ;;  %v2125_v7 = vld [vmem:[%s7579_s7 + $0x3988] sm:$0xff] }
 0x223   : > { %5905 = vmatprep.subr.bf16.mxu1 %v5904_v13  ;;  %v2062_v13 = vld [vmem:[%s7579_s7 + $0x3790] sm:$0xff]  ;;  %v5930_v61 = vpack.c.bf16 %v2102_v51, %v2094_v48  ;;  %v5420_v62 = vpack.c.bf16 %v2117_v54, %v2109_v52  ;;  %v2156_v48 = vld [vmem:[%s7579_s7 + $0x3a80] sm:$0xff] }
 0x224   : > { %v5922_v24 = vpack.c.bf16 %v2070_v16, %v2062_v13  ;;  %v2132_v16 = vld [vmem:[%s7579_s7 + $0x39c0] sm:$0xff]  ;;  %v2158_v51 = vld [vmem:[%s7579_s7 + $0x3a90] sm:$0xff] }
 0x225   : > { %5395 = vmatpush1.bf16.msra.mxu0 %v5394_v21  ;;  %v2079_v21 = vld [vmem:[%s7579_s7 + $0x3818] sm:$0xff]  ;;  %v2166_v54 = vld [vmem:[%s7579_s7 + $0x3ad0] sm:$0xff] }
 0x226   : > { %5907 = vmatpush1.bf16.msra.mxu1 %v5906_v22  ;;  %5397 = vmatprep.subr.bf16.mxu0 %v5396_v23  ;;  %v2087_v22 = vld [vmem:[%s7579_s7 + $0x3858] sm:$0xff]  ;;  %v5410_v23 = vpack.c.bf16 %v2068_v50, %v2060_v11  ;;  %v5934_v50 = vpack.c.bf16 %v2118_v6, %v2110_v3  ;;  %v2172_v3 = vld [vmem:[%s7579_s7 + $0x3b00] sm:$0xff]  ;;  %v2174_v6 = vld [vmem:[%s7579_s7 + $0x3b10] sm:$0xff] }
 0x227   : > { %5909 = vmatprep.subr.bf16.mxu1 %v5908_v29  ;;  %v2084_v29 = vld [vmem:[%s7579_s7 + $0x3840] sm:$0xff]  ;;  %v5924_v34 = vpack.c.bf16 %v2087_v22, %v2079_v21  ;;  %v2141_v21 = vld [vmem:[%s7579_s7 + $0x3a08] sm:$0xff] }
 0x228   : > { %v2149_v22 = vld [vmem:[%s7579_s7 + $0x3a48] sm:$0xff] }
 0x229   : > { %5399 = vmatpush1.bf16.msra.mxu0 %v5398_v37  ;;  %v2095_v37 = vld [vmem:[%s7579_s7 + $0x3898] sm:$0xff] }
 0x22a   : > { %5911 = vmatpush1.bf16.msra.mxu1 %v5910_v39  ;;  %5401 = vmatprep.subr.bf16.mxu0 %v5400_v42  ;;  %v2103_v39 = vld [vmem:[%s7579_s7 + $0x38d8] sm:$0xff]  ;;  %v5414_v42 = vpack.c.bf16 %v2084_v29, %v2076_v28  ;;  %v5938_v28 = vpack.c.bf16 %v2134_v20, %v2126_v18  ;;  %v5428_v29 = vpack.c.bf16 %v2149_v22, %v2141_v21  ;;  %v2188_v18 = vld [vmem:[%s7579_s7 + $0x3b80] sm:$0xff]  ;;  %v2190_v20 = vld [vmem:[%s7579_s7 + $0x3b90] sm:$0xff] }
 0x22b   : > { %5913 = vmatprep.subr.bf16.mxu1 %v5912_v46  ;;  %v2100_v46 = vld [vmem:[%s7579_s7 + $0x38c0] sm:$0xff]  ;;  %v5928_v49 = vpack.c.bf16 %v2103_v39, %v2095_v37  ;;  %v2157_v37 = vld [vmem:[%s7579_s7 + $0x3a88] sm:$0xff]  ;;  %v2198_v22 = vld [vmem:[%s7579_s7 + $0x3bd0] sm:$0xff] }
 0x22c   : > { %v5418_v60 = vpack.c.bf16 %v2100_v46, %v2092_v45  ;;  %v2165_v39 = vld [vmem:[%s7579_s7 + $0x3ac8] sm:$0xff]  ;;  %v5942_v45 = vpack.c.bf16 %v2150_v41, %v2142_v17  ;;  %v2204_v17 = vld [vmem:[%s7579_s7 + $0x3c00] sm:$0xff]  ;;  %v2206_v41 = vld [vmem:[%s7579_s7 + $0x3c10] sm:$0xff] }
 0x22d   : > { %5403 = vmatpush1.bf16.msra.mxu0 %v5402_v57  ;;  %v8631_v57 = vcombine.high %v8619_v36, %v8619_v36  ;;  %v5432_v46 = vpack.c.bf16 %v2165_v39, %v2157_v37  ;;  %v2214_v39 = vld [vmem:[%s7579_s7 + $0x3c50] sm:$0xff] }
 0x22e   : > { %5915 = vmatpush1.bf16.msra.mxu1 %v5914_v58  ;;  %5405 = vmatprep.subr.bf16.mxu0 %v5404_v59  ;;  %v2111_v58 = vld [vmem:[%s7579_s7 + $0x3918] sm:$0xff] }
 0x22f   : > { %5917 = vmatprep.subr.bf16.mxu1 %v5916_v1  ;;  %v2119_v59 = vld [vmem:[%s7579_s7 + $0x3958] sm:$0xff]  ;;  %v2108_v1 = vld [vmem:[%s7579_s7 + $0x3900] sm:$0xff] }
 0x230   : > { %v5932_v4 = vpack.c.bf16 %v2119_v59, %v2111_v58  ;;  %v5422_v11 = vpack.c.bf16 %v2116_v2, %v2108_v1  ;;  %v2173_v58 = vld [vmem:[%s7579_s7 + $0x3b08] sm:$0xff]  ;;  %v5946_v1 = vpack.c.bf16 %v2166_v54, %v2158_v51  ;;  %v2220_v51 = vld [vmem:[%s7579_s7 + $0x3c80] sm:$0xff]  ;;  %v2222_v54 = vld [vmem:[%s7579_s7 + $0x3c90] sm:$0xff] }
 0x231   : > { %5407 = vmatpush1.bf16.msra.mxu0 %v5406_v8  ;;  %v2133_v8 = vld [vmem:[%s7579_s7 + $0x39c8] sm:$0xff] }
 0x232   : > { %5919 = vmatpush1.bf16.msra.mxu1 %v5918_v9  ;;  %5409 = vmatprep.subr.bf16.mxu0 %v5408_v10  ;;  %v2127_v9 = vld [vmem:[%s7579_s7 + $0x3998] sm:$0xff]  ;;  %v5424_v13 = vpack.c.bf16 %v2133_v8, %v2125_v7  ;;  %v2181_v59 = vld [vmem:[%s7579_s7 + $0x3b48] sm:$0xff]  ;;  %v2182_v8 = vld [vmem:[%s7579_s7 + $0x3b50] sm:$0xff] }
 0x233   : > { %5921 = vmatprep.subr.bf16.mxu1 %v5920_v14  ;;  %v2135_v10 = vld [vmem:[%s7579_s7 + $0x39d8] sm:$0xff]  ;;  %v2124_v14 = vld [vmem:[%s7579_s7 + $0x3980] sm:$0xff]  ;;  %v5436_v2 = vpack.c.bf16 %v2181_v59, %v2173_v58  ;;  %v2230_v59 = vld [vmem:[%s7579_s7 + $0x3cd0] sm:$0xff] }
 0x234   : > { %v5936_v19 = vpack.c.bf16 %v2135_v10, %v2127_v9  ;;  %v2189_v9 = vld [vmem:[%s7579_s7 + $0x3b88] sm:$0xff] }
 0x235   : > { %5411 = vmatpush1.bf16.msra.mxu0 %v5410_v23  ;;  %v2143_v23 = vld [vmem:[%s7579_s7 + $0x3a18] sm:$0xff]  ;;  %v2197_v10 = vld [vmem:[%s7579_s7 + $0x3bc8] sm:$0xff] }
 0x236   : > { %5923 = vmatpush1.bf16.msra.mxu1 %v5922_v24  ;;  %5413 = vmatprep.subr.bf16.mxu0 %v5412_v27  ;;  %v2151_v24 = vld [vmem:[%s7579_s7 + $0x3a58] sm:$0xff]  ;;  %v5426_v27 = vpack.c.bf16 %v2132_v16, %v2124_v14  ;;  %v5950_v14 = vpack.c.bf16 %v2182_v8, %v2174_v6  ;;  %v5440_v16 = vpack.c.bf16 %v2197_v10, %v2189_v9  ;;  %v2236_v6 = vld [vmem:[%s7579_s7 + $0x3d00] sm:$0xff]  ;;  %v2238_v8 = vld [vmem:[%s7579_s7 + $0x3d10] sm:$0xff] }
 0x237   : > { %5925 = vmatprep.subr.bf16.mxu1 %v5924_v34  ;;  %v2148_v34 = vld [vmem:[%s7579_s7 + $0x3a40] sm:$0xff]  ;;  %v5940_v35 = vpack.c.bf16 %v2151_v24, %v2143_v23  ;;  %v2205_v23 = vld [vmem:[%s7579_s7 + $0x3c08] sm:$0xff]  ;;  %v2246_v10 = vld [vmem:[%s7579_s7 + $0x3d50] sm:$0xff] }
 0x238   : > { %2911 = vmatmul.mubr.f32.vlgmr.msra.gmra.mrb[0].mxu0 %v8478_v31  ;;  %v2213_v24 = vld [vmem:[%s7579_s7 + $0x3c48] sm:$0xff] }
 0x239   : > { %5415 = vmatpush1.bf16.msra.mxu0 %v5414_v42  ;;  %3479 = vmatmul.mubr.f32.vlgmr.msra.gmra.mrb[0].mxu1 %v8478_v31  ;;  %v2159_v42 = vld [vmem:[%s7579_s7 + $0x3a98] sm:$0xff] }
 0x23a   : > { %5927 = vmatpush1.bf16.msra.mxu1 %v5926_v43  ;;  %5417 = vmatprep.subr.bf16.mxu0 %v5416_v44  ;;  %v2167_v43 = vld [vmem:[%s7579_s7 + $0x3ad8] sm:$0xff]  ;;  %v5430_v44 = vpack.c.bf16 %v2148_v34, %v2140_v32  ;;  %v5954_v32 = vpack.c.bf16 %v2198_v22, %v2190_v20  ;;  %v5444_v34 = vpack.c.bf16 %v2213_v24, %v2205_v23  ;;  %v2252_v20 = vld [vmem:[%s7579_s7 + $0x3d80] sm:$0xff]  ;;  %v2254_v22 = vld [vmem:[%s7579_s7 + $0x3d90] sm:$0xff] }
 0x23b   : > { %5929 = vmatprep.subr.bf16.mxu1 %v5928_v49  ;;  %2981 = vmatprep.mubr.f32.mxu0 %v8631_v57  ;;  %v2164_v49 = vld [vmem:[%s7579_s7 + $0x3ac0] sm:$0xff]  ;;  %v5944_v52 = vpack.c.bf16 %v2167_v43, %v2159_v42  ;;  %v2221_v42 = vld [vmem:[%s7579_s7 + $0x3c88] sm:$0xff]  ;;  %v2262_v24 = vld [vmem:[%s7579_s7 + $0x3dd0] sm:$0xff] }
 0x23c   : > { %3549 = vmatprep.mubr.f32.mxu1 %v8631_v57  ;;  %v2229_v43 = vld [vmem:[%s7579_s7 + $0x3cc8] sm:$0xff] }
 0x23d   : > { %5419 = vmatpush1.bf16.msra.mxu0 %v5418_v60  ;;  %v2175_v60 = vld [vmem:[%s7579_s7 + $0x3b18] sm:$0xff] }
 0x23e   : > { %5931 = vmatpush1.bf16.msra.mxu1 %v5930_v61  ;;  %5421 = vmatprep.subr.bf16.mxu0 %v5420_v62  ;;  %v2183_v61 = vld [vmem:[%s7579_s7 + $0x3b58] sm:$0xff]  ;;  %v5434_v62 = vpack.c.bf16 %v2164_v49, %v2156_v48  ;;  %v5958_v48 = vpack.c.bf16 %v2214_v39, %v2206_v41  ;;  %v5448_v49 = vpack.c.bf16 %v2229_v43, %v2221_v42  ;;  %v2268_v41 = vld [vmem:[%s7579_s7 + $0x3e00] sm:$0xff]  ;;  %v2270_v39 = vld [vmem:[%s7579_s7 + $0x3e10] sm:$0xff] }
 0x23f   : > { %5933 = vmatprep.subr.bf16.mxu1 %v5932_v4  ;;  %v2180_v4 = vld [vmem:[%s7579_s7 + $0x3b40] sm:$0xff]  ;;  %v5948_v7 = vpack.c.bf16 %v2183_v61, %v2175_v60  ;;  %v2237_v60 = vld [vmem:[%s7579_s7 + $0x3d08] sm:$0xff]  ;;  %v2278_v43 = vld [vmem:[%s7579_s7 + $0x3e50] sm:$0xff] }
 0x240   : > { %v2245_v61 = vld [vmem:[%s7579_s7 + $0x3d48] sm:$0xff] }
 0x241   : > { %5423 = vmatpush1.bf16.msra.mxu0 %v5422_v11  ;;  %v2191_v11 = vld [vmem:[%s7579_s7 + $0x3b98] sm:$0xff] }
 0x242   : > { %5935 = vmatpush1.bf16.msra.mxu1 %v5934_v50  ;;  %5425 = vmatprep.subr.bf16.mxu0 %v5424_v13  ;;  %v2199_v50 = vld [vmem:[%s7579_s7 + $0x3bd8] sm:$0xff]  ;;  %v5438_v13 = vpack.c.bf16 %v2180_v4, %v2172_v3  ;;  %v5962_v3 = vpack.c.bf16 %v2230_v59, %v2222_v54  ;;  %v5452_v4 = vpack.c.bf16 %v2245_v61, %v2237_v60  ;;  %v2284_v54 = vld [vmem:[%s7579_s7 + $0x3e80] sm:$0xff]  ;;  %v2286_v59 = vld [vmem:[%s7579_s7 + $0x3e90] sm:$0xff] }
 0x243   : > { %5937 = vmatprep.subr.bf16.mxu1 %v5936_v19  ;;  %v2196_v19 = vld [vmem:[%s7579_s7 + $0x3bc0] sm:$0xff]  ;;  %v5952_v21 = vpack.c.bf16 %v2199_v50, %v2191_v11  ;;  %v2253_v11 = vld [vmem:[%s7579_s7 + $0x3d88] sm:$0xff]  ;;  %v2294_v61 = vld [vmem:[%s7579_s7 + $0x3ed0] sm:$0xff] }
 0x244   : > { %v2261_v50 = vld [vmem:[%s7579_s7 + $0x3dc8] sm:$0xff] }
 0x245   : > { %5427 = vmatpush1.bf16.msra.mxu0 %v5426_v27  ;;  %v2207_v27 = vld [vmem:[%s7579_s7 + $0x3c18] sm:$0xff] }
 0x246   : > { %5939 = vmatpush1.bf16.msra.mxu1 %v5938_v28  ;;  %5429 = vmatprep.subr.bf16.mxu0 %v5428_v29  ;;  %v2215_v28 = vld [vmem:[%s7579_s7 + $0x3c58] sm:$0xff]  ;;  %v5442_v29 = vpack.c.bf16 %v2196_v19, %v2188_v18  ;;  %v5966_v18 = vpack.c.bf16 %v2246_v10, %v2238_v8  ;;  %v5456_v19 = vpack.c.bf16 %v2261_v50, %v2253_v11  ;;  %v2300_v8 = vld [vmem:[%s7579_s7 + $0x3f00] sm:$0xff]  ;;  %v2302_v10 = vld [vmem:[%s7579_s7 + $0x3f10] sm:$0xff] }
 0x247   : > { %5941 = vmatprep.subr.bf16.mxu1 %v5940_v35  ;;  %v2212_v35 = vld [vmem:[%s7579_s7 + $0x3c40] sm:$0xff]  ;;  %v5956_v37 = vpack.c.bf16 %v2215_v28, %v2207_v27  ;;  %v2269_v27 = vld [vmem:[%s7579_s7 + $0x3e08] sm:$0xff]  ;;  %v2310_v50 = vld [vmem:[%s7579_s7 + $0x3f50] sm:$0xff] }
 0x248   : > { %v2277_v28 = vld [vmem:[%s7579_s7 + $0x3e48] sm:$0xff] }
 0x249   : > { %5431 = vmatpush1.bf16.msra.mxu0 %v5430_v44  ;;  %v2223_v44 = vld [vmem:[%s7579_s7 + $0x3c98] sm:$0xff] }
 0x24a   : > { %5943 = vmatpush1.bf16.msra.mxu1 %v5942_v45  ;;  %5433 = vmatprep.subr.bf16.mxu0 %v5432_v46  ;;  %v2231_v45 = vld [vmem:[%s7579_s7 + $0x3cd8] sm:$0xff]  ;;  %v5446_v46 = vpack.c.bf16 %v2212_v35, %v2204_v17  ;;  %v5970_v17 = vpack.c.bf16 %v2262_v24, %v2254_v22  ;;  %v5460_v35 = vpack.c.bf16 %v2277_v28, %v2269_v27  ;;  %v2316_v22 = vld [vmem:[%s7579_s7 + $0x3f80] sm:$0xff]  ;;  %v2318_v24 = vld [vmem:[%s7579_s7 + $0x3f90] sm:$0xff] }
 0x24b   : > { %5945 = vmatprep.subr.bf16.mxu1 %v5944_v52  ;;  %v2228_v52 = vld [vmem:[%s7579_s7 + $0x3cc0] sm:$0xff]  ;;  %v5960_v58 = vpack.c.bf16 %v2231_v45, %v2223_v44  ;;  %v2285_v44 = vld [vmem:[%s7579_s7 + $0x3e88] sm:$0xff]  ;;  %v2326_v28 = vld [vmem:[%s7579_s7 + $0x3fd0] sm:$0xff] }
 0x24c   : > { %v2293_v45 = vld [vmem:[%s7579_s7 + $0x3ec8] sm:$0xff] }
 0x24d   : > { %5435 = vmatpush1.bf16.msra.mxu0 %v5434_v62  ;;  %v2239_v62 = vld [vmem:[%s7579_s7 + $0x3d18] sm:$0xff] }
 0x24e   : > { %5947 = vmatpush1.bf16.msra.mxu1 %v5946_v1  ;;  %5437 = vmatprep.subr.bf16.mxu0 %v5436_v2  ;;  %v2247_v1 = vld [vmem:[%s7579_s7 + $0x3d58] sm:$0xff]  ;;  %v5450_v2 = vpack.c.bf16 %v2228_v52, %v2220_v51  ;;  %v5974_v51 = vpack.c.bf16 %v2278_v43, %v2270_v39  ;;  %v5464_v52 = vpack.c.bf16 %v2293_v45, %v2285_v44  ;;  %v288_v39 = vld [vmem:[%s7579_s7 + $0x20] sm:$0xff]  ;;  %v290_v43 = vld [vmem:[%s7579_s7 + $0x30] sm:$0xff] }
 0x24f   : > { %5949 = vmatprep.subr.bf16.mxu1 %v5948_v7  ;;  %v2244_v7 = vld [vmem:[%s7579_s7 + $0x3d40] sm:$0xff]  ;;  %v5964_v9 = vpack.c.bf16 %v2247_v1, %v2239_v62  ;;  %v2301_v62 = vld [vmem:[%s7579_s7 + $0x3f08] sm:$0xff]  ;;  %v298_v45 = vld [vmem:[%s7579_s7 + $0x70] sm:$0xff] }
 0x250   : > { %v2309_v1 = vld [vmem:[%s7579_s7 + $0x3f48] sm:$0xff] }
 0x251   : > { %5439 = vmatpush1.bf16.msra.mxu0 %v5438_v13  ;;  %v2255_v13 = vld [vmem:[%s7579_s7 + $0x3d98] sm:$0xff] }
 0x252   : > { %5951 = vmatpush1.bf16.msra.mxu1 %v5950_v14  ;;  %5441 = vmatprep.subr.bf16.mxu0 %v5440_v16  ;;  %v2263_v14 = vld [vmem:[%s7579_s7 + $0x3dd8] sm:$0xff]  ;;  %v5454_v16 = vpack.c.bf16 %v2244_v7, %v2236_v6  ;;  %v5978_v6 = vpack.c.bf16 %v2294_v61, %v2286_v59  ;;  %v5468_v7 = vpack.c.bf16 %v2309_v1, %v2301_v62  ;;  %v304_v59 = vld [vmem:[%s7579_s7 + $0xa0] sm:$0xff]  ;;  %v306_v61 = vld [vmem:[%s7579_s7 + $0xb0] sm:$0xff] }
 0x253   : > { %5953 = vmatprep.subr.bf16.mxu1 %v5952_v21  ;;  %v2260_v21 = vld [vmem:[%s7579_s7 + $0x3dc0] sm:$0xff]  ;;  %v5968_v23 = vpack.c.bf16 %v2263_v14, %v2255_v13  ;;  %v2317_v13 = vld [vmem:[%s7579_s7 + $0x3f88] sm:$0xff]  ;;  %v314_v1 = vld [vmem:[%s7579_s7 + $0xf0] sm:$0xff] }
 0x254   : > { %v2325_v14 = vld [vmem:[%s7579_s7 + $0x3fc8] sm:$0xff] }
 0x255   : > { %5443 = vmatpush1.bf16.msra.mxu0 %v5442_v29  ;;  %v2271_v29 = vld [vmem:[%s7579_s7 + $0x3e18] sm:$0xff] }
 0x256   : > { %5955 = vmatpush1.bf16.msra.mxu1 %v5954_v32  ;;  %5445 = vmatprep.subr.bf16.mxu0 %v5444_v34  ;;  %v2279_v32 = vld [vmem:[%s7579_s7 + $0x3e58] sm:$0xff]  ;;  %v5458_v34 = vpack.c.bf16 %v2260_v21, %v2252_v20  ;;  %v5982_v20 = vpack.c.bf16 %v2310_v50, %v2302_v10  ;;  %v5472_v21 = vpack.c.bf16 %v2325_v14, %v2317_v13  ;;  %v320_v10 = vld [vmem:[%s7579_s7 + $0x120] sm:$0xff]  ;;  %v322_v50 = vld [vmem:[%s7579_s7 + $0x130] sm:$0xff] }
 0x257   : > { %5957 = vmatprep.subr.bf16.mxu1 %v5956_v37  ;;  %v2276_v37 = vld [vmem:[%s7579_s7 + $0x3e40] sm:$0xff]  ;;  %v5972_v42 = vpack.c.bf16 %v2279_v32, %v2271_v29  ;;  %v289_v29 = vld [vmem:[%s7579_s7 + $0x28] sm:$0xff]  ;;  %v330_v14 = vld [vmem:[%s7579_s7 + $0x170] sm:$0xff] }
 0x258   : > { %v297_v32 = vld [vmem:[%s7579_s7 + $0x68] sm:$0xff] }
 0x259   : > { %5447 = vmatpush1.bf16.msra.mxu0 %v5446_v46  ;;  %v2287_v46 = vld [vmem:[%s7579_s7 + $0x3e98] sm:$0xff] }
 0x25a   : > { %5959 = vmatpush1.bf16.msra.mxu1 %v5958_v48  ;;  %5449 = vmatprep.subr.bf16.mxu0 %v5448_v49  ;;  %v2295_v48 = vld [vmem:[%s7579_s7 + $0x3ed8] sm:$0xff]  ;;  %v5462_v49 = vpack.c.bf16 %v2276_v37, %v2268_v41  ;;  %v5986_v41 = vpack.c.bf16 %v2326_v28, %v2318_v24  ;;  %v5988_v37 = vpack.c.bf16 %v297_v32, %v289_v29  ;;  %v336_v24 = vld [vmem:[%s7579_s7 + $0x1a0] sm:$0xff]  ;;  %v338_v28 = vld [vmem:[%s7579_s7 + $0x1b0] sm:$0xff] }
 0x25b   : > { %5961 = vmatprep.subr.bf16.mxu1 %v5960_v58  ;;  %v2292_v58 = vld [vmem:[%s7579_s7 + $0x3ec0] sm:$0xff]  ;;  %v5976_v60 = vpack.c.bf16 %v2295_v48, %v2287_v46  ;;  %v305_v46 = vld [vmem:[%s7579_s7 + $0xa8] sm:$0xff]  ;;  %v346_v32 = vld [vmem:[%s7579_s7 + $0x1f0] sm:$0xff] }
 0x25c   : > { %v313_v48 = vld [vmem:[%s7579_s7 + $0xe8] sm:$0xff] }
 0x25d   : > { %5451 = vmatpush1.bf16.msra.mxu0 %v5450_v2  ;;  %v2303_v2 = vld [vmem:[%s7579_s7 + $0x3f18] sm:$0xff] }
 0x25e   : > { %5963 = vmatpush1.bf16.msra.mxu1 %v5962_v3  ;;  %5453 = vmatprep.subr.bf16.mxu0 %v5452_v4  ;;  %v2311_v3 = vld [vmem:[%s7579_s7 + $0x3f58] sm:$0xff]  ;;  %v5466_v4 = vpack.c.bf16 %v2292_v58, %v2284_v54  ;;  %v6502_v54 = vpack.c.bf16 %v298_v45, %v290_v43  ;;  %v5992_v58 = vpack.c.bf16 %v313_v48, %v305_v46  ;;  %v360_v43 = vld [vmem:[%s7579_s7 + $0x260] sm:$0xff]  ;;  %v362_v46 = vld [vmem:[%s7579_s7 + $0x270] sm:$0xff] }
 0x25f   : > { %5965 = vmatprep.subr.bf16.mxu1 %v5964_v9  ;;  %v2308_v9 = vld [vmem:[%s7579_s7 + $0x3f40] sm:$0xff]  ;;  %v5980_v11 = vpack.c.bf16 %v2311_v3, %v2303_v2  ;;  %v321_v2 = vld [vmem:[%s7579_s7 + $0x128] sm:$0xff] }
 0x260   : > { %v329_v3 = vld [vmem:[%s7579_s7 + $0x168] sm:$0xff] }
 0x261   : > { %5455 = vmatpush1.bf16.msra.mxu0 %v5454_v16  ;;  %v2319_v16 = vld [vmem:[%s7579_s7 + $0x3f98] sm:$0xff]  ;;  %v369_v48 = vld [vmem:[%s7579_s7 + $0x2a8] sm:$0xff] }
 0x262   : > { %5967 = vmatpush1.bf16.msra.mxu1 %v5966_v18  ;;  %5457 = vmatprep.subr.bf16.mxu0 %v5456_v19  ;;  %v2327_v18 = vld [vmem:[%s7579_s7 + $0x3fd8] sm:$0xff]  ;;  %v5470_v19 = vpack.c.bf16 %v2308_v9, %v2300_v8  ;;  %v6506_v8 = vpack.c.bf16 %v314_v1, %v306_v61  ;;  %v5996_v9 = vpack.c.bf16 %v329_v3, %v321_v2  ;;  %v376_v61 = vld [vmem:[%s7579_s7 + $0x2e0] sm:$0xff]  ;;  %v378_v2 = vld [vmem:[%s7579_s7 + $0x2f0] sm:$0xff] }
 0x263   : > { %5969 = vmatprep.subr.bf16.mxu1 %v5968_v23  ;;  %v2324_v23 = vld [vmem:[%s7579_s7 + $0x3fc0] sm:$0xff]  ;;  %v5984_v27 = vpack.c.bf16 %v2327_v18, %v2319_v16  ;;  %v337_v16 = vld [vmem:[%s7579_s7 + $0x1a8] sm:$0xff] }
 0x264   : > { %v345_v18 = vld [vmem:[%s7579_s7 + $0x1e8] sm:$0xff] }
 0x265   : > { %5459 = vmatpush1.bf16.msra.mxu0 %v5458_v34  ;;  %v291_v34 = vld [vmem:[%s7579_s7 + $0x38] sm:$0xff]  ;;  %v385_v3 = vld [vmem:[%s7579_s7 + $0x328] sm:$0xff] }
 0x266   : > { %5971 = vmatpush1.bf16.msra.mxu1 %v5970_v17  ;;  %5461 = vmatprep.subr.bf16.mxu0 %v5460_v35  ;;  %v299_v17 = vld [vmem:[%s7579_s7 + $0x78] sm:$0xff]  ;;  %v5474_v35 = vpack.c.bf16 %v2324_v23, %v2316_v22  ;;  %v6510_v22 = vpack.c.bf16 %v330_v14, %v322_v50  ;;  %v6000_v23 = vpack.c.bf16 %v345_v18, %v337_v16  ;;  %v392_v50 = vld [vmem:[%s7579_s7 + $0x360] sm:$0xff]  ;;  %v394_v16 = vld [vmem:[%s7579_s7 + $0x370] sm:$0xff] }
 0x267   : > { %5973 = vmatprep.subr.bf16.mxu1 %v5972_v42  ;;  %v296_v42 = vld [vmem:[%s7579_s7 + $0x60] sm:$0xff]  ;;  %v6500_v44 = vpack.c.bf16 %v299_v17, %v291_v34  ;;  %v353_v34 = vld [vmem:[%s7579_s7 + $0x228] sm:$0xff]  ;;  %v355_v17 = vld [vmem:[%s7579_s7 + $0x238] sm:$0xff] }
 0x268   : > { %v401_v18 = vld [vmem:[%s7579_s7 + $0x3a8] sm:$0xff] }
 0x269   : > { %5463 = vmatpush1.bf16.msra.mxu0 %v5462_v49  ;;  %v307_v49 = vld [vmem:[%s7579_s7 + $0xb8] sm:$0xff] }
 0x26a   : > { %5975 = vmatpush1.bf16.msra.mxu1 %v5974_v51  ;;  %5465 = vmatprep.subr.bf16.mxu0 %v5464_v52  ;;  %v315_v51 = vld [vmem:[%s7579_s7 + $0xf8] sm:$0xff]  ;;  %v5990_v52 = vpack.c.bf16 %v296_v42, %v288_v39  ;;  %v352_v42 = vld [vmem:[%s7579_s7 + $0x220] sm:$0xff] }
 0x26b   : > { %5977 = vmatprep.subr.bf16.mxu1 %v5976_v60  ;;  %v312_v60 = vld [vmem:[%s7579_s7 + $0xe0] sm:$0xff]  ;;  %v6504_v62 = vpack.c.bf16 %v315_v51, %v307_v49  ;;  %v377_v49 = vld [vmem:[%s7579_s7 + $0x2e8] sm:$0xff]  ;;  %v371_v51 = vld [vmem:[%s7579_s7 + $0x2b8] sm:$0xff] }
 0x26d   : > { %5467 = vmatpush1.bf16.msra.mxu0 %v5466_v4  ;;  %v323_v4 = vld [vmem:[%s7579_s7 + $0x138] sm:$0xff] }
 0x26e   : > { %5979 = vmatpush1.bf16.msra.mxu1 %v5978_v6  ;;  %5469 = vmatprep.subr.bf16.mxu0 %v5468_v7  ;;  %v331_v6 = vld [vmem:[%s7579_s7 + $0x178] sm:$0xff]  ;;  %v5994_v7 = vpack.c.bf16 %v312_v60, %v304_v59  ;;  %v6008_v59 = vpack.c.bf16 %v377_v49, %v369_v48  ;;  %v368_v60 = vld [vmem:[%s7579_s7 + $0x2a0] sm:$0xff]  ;;  %v426_v48 = vld [vmem:[%s7579_s7 + $0x470] sm:$0xff] }
 0x26f   : > { %5981 = vmatprep.subr.bf16.mxu1 %v5980_v11  ;;  %v328_v11 = vld [vmem:[%s7579_s7 + $0x160] sm:$0xff]  ;;  %v6508_v13 = vpack.c.bf16 %v331_v6, %v323_v4  ;;  %v393_v4 = vld [vmem:[%s7579_s7 + $0x368] sm:$0xff]  ;;  %v387_v6 = vld [vmem:[%s7579_s7 + $0x338] sm:$0xff] }
 0x270   : > { %v433_v49 = vld [vmem:[%s7579_s7 + $0x4a8] sm:$0xff] }
 0x271   : > { %5471 = vmatpush1.bf16.msra.mxu0 %v5470_v19  ;;  %v339_v19 = vld [vmem:[%s7579_s7 + $0x1b8] sm:$0xff] }
 0x272   : > { %5983 = vmatpush1.bf16.msra.mxu1 %v5982_v20  ;;  %5473 = vmatprep.subr.bf16.mxu0 %v5472_v21  ;;  %v347_v20 = vld [vmem:[%s7579_s7 + $0x1f8] sm:$0xff]  ;;  %v5998_v21 = vpack.c.bf16 %v328_v11, %v320_v10  ;;  %v6012_v10 = vpack.c.bf16 %v393_v4, %v385_v3  ;;  %v384_v11 = vld [vmem:[%s7579_s7 + $0x320] sm:$0xff]  ;;  %v442_v3 = vld [vmem:[%s7579_s7 + $0x4f0] sm:$0xff] }
 0x273   : > { %5985 = vmatprep.subr.bf16.mxu1 %v5984_v27  ;;  %v344_v27 = vld [vmem:[%s7579_s7 + $0x1e0] sm:$0xff]  ;;  %v6512_v29 = vpack.c.bf16 %v347_v20, %v339_v19  ;;  %v409_v19 = vld [vmem:[%s7579_s7 + $0x3e8] sm:$0xff]  ;;  %v403_v20 = vld [vmem:[%s7579_s7 + $0x3b8] sm:$0xff] }
 0x274   : > { %v449_v4 = vld [vmem:[%s7579_s7 + $0x528] sm:$0xff] }
 0x275   : > { %5475 = vmatpush1.bf16.msra.mxu0 %v5474_v35  ;;  %v363_v35 = vld [vmem:[%s7579_s7 + $0x278] sm:$0xff] }
 0x276   : > { %5987 = vmatpush1.bf16.msra.mxu1 %v5986_v41  ;;  %5989 = vmatprep.subr.bf16.mxu0 %v5988_v37  ;;  %v6002_v41 = vpack.c.bf16 %v344_v27, %v336_v24  ;;  %v6514_v37 = vpack.c.bf16 %v346_v32, %v338_v28  ;;  %v6516_v45 = vpack.c.bf16 %v363_v35, %v355_v17  ;;  %v400_v27 = vld [vmem:[%s7579_s7 + $0x3a0] sm:$0xff]  ;;  %v425_v17 = vld [vmem:[%s7579_s7 + $0x468] sm:$0xff]  ;;  %v419_v35 = vld [vmem:[%s7579_s7 + $0x438] sm:$0xff] }
 0x277   : > { %6501 = vmatprep.subr.bf16.mxu1 %v6500_v44  ;;  %v354_v44 = vld [vmem:[%s7579_s7 + $0x230] sm:$0xff]  ;;  %v6016_v24 = vpack.c.bf16 %v409_v19, %v401_v18  ;;  %v408_v28 = vld [vmem:[%s7579_s7 + $0x3e0] sm:$0xff]  ;;  %v465_v19 = vld [vmem:[%s7579_s7 + $0x5a8] sm:$0xff] }
 0x278   : > { %2982 = vmatmul.mubr.f32.vlgmr.msra.gmra.mrb[0].mxu0 %v8619_v36  ;;  %v458_v18 = vld [vmem:[%s7579_s7 + $0x570] sm:$0xff] }
 0x279   : > { %3550 = vmatmul.mubr.f32.vlgmr.msra.gmra.mrb[0].mxu1 %v8619_v36  ;;  %5991 = vmatpush1.bf16.msra.mxu0 %v5990_v52  ;;  %v379_v52 = vld [vmem:[%s7579_s7 + $0x2f8] sm:$0xff] }
 0x27a   : > { %6503 = vmatpush1.bf16.msra.mxu1 %v6502_v54  ;;  %5993 = vmatprep.subr.bf16.mxu0 %v5992_v58  ;;  %v6006_v54 = vpack.c.bf16 %v360_v43, %v352_v42  ;;  %v6518_v58 = vpack.c.bf16 %v362_v46, %v354_v44  ;;  %v6520_v1 = vpack.c.bf16 %v379_v52, %v371_v51  ;;  %v416_v43 = vld [vmem:[%s7579_s7 + $0x420] sm:$0xff]  ;;  %v441_v51 = vld [vmem:[%s7579_s7 + $0x4e8] sm:$0xff]  ;;  %v435_v52 = vld [vmem:[%s7579_s7 + $0x4b8] sm:$0xff] }
 0x27b   : > { %6505 = vmatprep.subr.bf16.mxu1 %v6504_v62  ;;  %3620 = vmatprep.mubr.f32.mxu0 %v7725_v33  ;;  %v370_v62 = vld [vmem:[%s7579_s7 + $0x2b0] sm:$0xff]  ;;  %v424_v44 = vld [vmem:[%s7579_s7 + $0x460] sm:$0xff] }
 0x27c   : > { %4188 = vmatprep.mubr.f32.mxu1 %v7725_v33  ;;  %v361_v33 = vld [vmem:[%s7579_s7 + $0x268] sm:$0xff] }
 0x27d   : > { %5995 = vmatpush1.bf16.msra.mxu0 %v5994_v7  ;;  %v6004_v39 = vpack.c.bf16 %v361_v33, %v353_v34  ;;  %v395_v7 = vld [vmem:[%s7579_s7 + $0x378] sm:$0xff]  ;;  %v410_v34 = vld [vmem:[%s7579_s7 + $0x3f0] sm:$0xff]  ;;  %v417_v33 = vld [vmem:[%s7579_s7 + $0x428] sm:$0xff] }
 0x27e   : > { %6507 = vmatpush1.bf16.msra.mxu1 %v6506_v8  ;;  %5997 = vmatprep.subr.bf16.mxu0 %v5996_v9  ;;  %v6010_v8 = vpack.c.bf16 %v376_v61, %v368_v60  ;;  %v6522_v9 = vpack.c.bf16 %v378_v2, %v370_v62  ;;  %v6524_v14 = vpack.c.bf16 %v395_v7, %v387_v6  ;;  %v432_v61 = vld [vmem:[%s7579_s7 + $0x4a0] sm:$0xff]  ;;  %v457_v6 = vld [vmem:[%s7579_s7 + $0x568] sm:$0xff]  ;;  %v451_v7 = vld [vmem:[%s7579_s7 + $0x538] sm:$0xff] }
 0x27f   : > { %6509 = vmatprep.subr.bf16.mxu1 %v6508_v13  ;;  %v386_v13 = vld [vmem:[%s7579_s7 + $0x330] sm:$0xff]  ;;  %v6020_v42 = vpack.c.bf16 %v425_v17, %v417_v33  ;;  %v6024_v60 = vpack.c.bf16 %v441_v51, %v433_v49  ;;  %v440_v62 = vld [vmem:[%s7579_s7 + $0x4e0] sm:$0xff]  ;;  %v481_v17 = vld [vmem:[%s7579_s7 + $0x628] sm:$0xff] }
 0x280   : > { %v474_v33 = vld [vmem:[%s7579_s7 + $0x5f0] sm:$0xff]  ;;  %v497_v51 = vld [vmem:[%s7579_s7 + $0x6a8] sm:$0xff] }
 0x281   : > { %5999 = vmatpush1.bf16.msra.mxu0 %v5998_v21  ;;  %v411_v21 = vld [vmem:[%s7579_s7 + $0x3f8] sm:$0xff]  ;;  %v490_v49 = vld [vmem:[%s7579_s7 + $0x670] sm:$0xff] }
 0x282   : > { %6511 = vmatpush1.bf16.msra.mxu1 %v6510_v22  ;;  %6001 = vmatprep.subr.bf16.mxu0 %v6000_v23  ;;  %v6014_v22 = vpack.c.bf16 %v392_v50, %v384_v11  ;;  %v6526_v23 = vpack.c.bf16 %v394_v16, %v386_v13  ;;  %v6528_v32 = vpack.c.bf16 %v411_v21, %v403_v20  ;;  %v448_v50 = vld [vmem:[%s7579_s7 + $0x520] sm:$0xff]  ;;  %v473_v20 = vld [vmem:[%s7579_s7 + $0x5e8] sm:$0xff]  ;;  %v467_v21 = vld [vmem:[%s7579_s7 + $0x5b8] sm:$0xff] }
 0x283   : > { %6513 = vmatprep.subr.bf16.mxu1 %v6512_v29  ;;  %v402_v29 = vld [vmem:[%s7579_s7 + $0x3b0] sm:$0xff]  ;;  %v6028_v11 = vpack.c.bf16 %v457_v6, %v449_v4  ;;  %v456_v13 = vld [vmem:[%s7579_s7 + $0x560] sm:$0xff]  ;;  %v513_v6 = vld [vmem:[%s7579_s7 + $0x728] sm:$0xff] }
 0x284   : > { %v506_v4 = vld [vmem:[%s7579_s7 + $0x6f0] sm:$0xff] }
 0x285   : > { %6003 = vmatpush1.bf16.msra.mxu0 %v6002_v41  ;;  %v427_v41 = vld [vmem:[%s7579_s7 + $0x478] sm:$0xff] }
 0x286   : > { %6515 = vmatpush1.bf16.msra.mxu1 %v6514_v37  ;;  %6005 = vmatprep.subr.bf16.mxu0 %v6004_v39  ;;  %v6018_v37 = vpack.c.bf16 %v408_v28, %v400_v27  ;;  %v6530_v39 = vpack.c.bf16 %v410_v34, %v402_v29  ;;  %v6532_v46 = vpack.c.bf16 %v427_v41, %v419_v35  ;;  %v464_v28 = vld [vmem:[%s7579_s7 + $0x5a0] sm:$0xff]  ;;  %v489_v35 = vld [vmem:[%s7579_s7 + $0x668] sm:$0xff]  ;;  %v483_v41 = vld [vmem:[%s7579_s7 + $0x638] sm:$0xff] }
 0x287   : > { %6517 = vmatprep.subr.bf16.mxu1 %v6516_v45  ;;  %v418_v45 = vld [vmem:[%s7579_s7 + $0x430] sm:$0xff]  ;;  %v6032_v27 = vpack.c.bf16 %v473_v20, %v465_v19  ;;  %v472_v29 = vld [vmem:[%s7579_s7 + $0x5e0] sm:$0xff]  ;;  %v529_v20 = vld [vmem:[%s7579_s7 + $0x7a8] sm:$0xff] }
 0x288   : > { %v522_v19 = vld [vmem:[%s7579_s7 + $0x770] sm:$0xff] }
 0x289   : > { %6007 = vmatpush1.bf16.msra.mxu0 %v6006_v54  ;;  %v443_v54 = vld [vmem:[%s7579_s7 + $0x4f8] sm:$0xff] }
 0x28a   : > { %6519 = vmatpush1.bf16.msra.mxu1 %v6518_v58  ;;  %6009 = vmatprep.subr.bf16.mxu0 %v6008_v59  ;;  %v6022_v58 = vpack.c.bf16 %v424_v44, %v416_v43  ;;  %v6534_v59 = vpack.c.bf16 %v426_v48, %v418_v45  ;;  %v6536_v2 = vpack.c.bf16 %v443_v54, %v435_v52  ;;  %v480_v44 = vld [vmem:[%s7579_s7 + $0x620] sm:$0xff]  ;;  %v505_v52 = vld [vmem:[%s7579_s7 + $0x6e8] sm:$0xff]  ;;  %v499_v54 = vld [vmem:[%s7579_s7 + $0x6b8] sm:$0xff] }
 0x28b   : > { %6521 = vmatprep.subr.bf16.mxu1 %v6520_v1  ;;  %v434_v1 = vld [vmem:[%s7579_s7 + $0x4b0] sm:$0xff]  ;;  %v6036_v43 = vpack.c.bf16 %v489_v35, %v481_v17  ;;  %v488_v45 = vld [vmem:[%s7579_s7 + $0x660] sm:$0xff]  ;;  %v545_v35 = vld [vmem:[%s7579_s7 + $0x828] sm:$0xff] }
 0x28c   : > { %v538_v17 = vld [vmem:[%s7579_s7 + $0x7f0] sm:$0xff] }
 0x28d   : > { %6011 = vmatpush1.bf16.msra.mxu0 %v6010_v8  ;;  %v459_v8 = vld [vmem:[%s7579_s7 + $0x578] sm:$0xff] }
 0x28e   : > { %6523 = vmatpush1.bf16.msra.mxu1 %v6522_v9  ;;  %6013 = vmatprep.subr.bf16.mxu0 %v6012_v10  ;;  %v6026_v9 = vpack.c.bf16 %v440_v62, %v432_v61  ;;  %v6538_v10 = vpack.c.bf16 %v442_v3, %v434_v1  ;;  %v6540_v16 = vpack.c.bf16 %v459_v8, %v451_v7  ;;  %v496_v62 = vld [vmem:[%s7579_s7 + $0x6a0] sm:$0xff]  ;;  %v521_v7 = vld [vmem:[%s7579_s7 + $0x768] sm:$0xff]  ;;  %v515_v8 = vld [vmem:[%s7579_s7 + $0x738] sm:$0xff] }
 0x28f   : > { %6525 = vmatprep.subr.bf16.mxu1 %v6524_v14  ;;  %v450_v14 = vld [vmem:[%s7579_s7 + $0x530] sm:$0xff]  ;;  %v6040_v61 = vpack.c.bf16 %v505_v52, %v497_v51  ;;  %v504_v1 = vld [vmem:[%s7579_s7 + $0x6e0] sm:$0xff]  ;;  %v561_v52 = vld [vmem:[%s7579_s7 + $0x8a8] sm:$0xff] }
 0x290   : > { %v554_v51 = vld [vmem:[%s7579_s7 + $0x870] sm:$0xff] }
 0x291   : > { %6015 = vmatpush1.bf16.msra.mxu0 %v6014_v22  ;;  %v475_v22 = vld [vmem:[%s7579_s7 + $0x5f8] sm:$0xff] }
 0x292   : > { %6527 = vmatpush1.bf16.msra.mxu1 %v6526_v23  ;;  %6017 = vmatprep.subr.bf16.mxu0 %v6016_v24  ;;  %v6030_v23 = vpack.c.bf16 %v456_v13, %v448_v50  ;;  %v6542_v24 = vpack.c.bf16 %v458_v18, %v450_v14  ;;  %v6544_v34 = vpack.c.bf16 %v475_v22, %v467_v21  ;;  %v512_v13 = vld [vmem:[%s7579_s7 + $0x720] sm:$0xff]  ;;  %v537_v21 = vld [vmem:[%s7579_s7 + $0x7e8] sm:$0xff]  ;;  %v531_v22 = vld [vmem:[%s7579_s7 + $0x7b8] sm:$0xff] }
 0x293   : > { %6529 = vmatprep.subr.bf16.mxu1 %v6528_v32  ;;  %v466_v32 = vld [vmem:[%s7579_s7 + $0x5b0] sm:$0xff]  ;;  %v6044_v50 = vpack.c.bf16 %v521_v7, %v513_v6  ;;  %v520_v14 = vld [vmem:[%s7579_s7 + $0x760] sm:$0xff]  ;;  %v577_v7 = vld [vmem:[%s7579_s7 + $0x928] sm:$0xff] }
 0x294   : > { %v570_v6 = vld [vmem:[%s7579_s7 + $0x8f0] sm:$0xff] }
 0x295   : > { %6019 = vmatpush1.bf16.msra.mxu0 %v6018_v37  ;;  %v491_v37 = vld [vmem:[%s7579_s7 + $0x678] sm:$0xff] }
 0x296   : > { %6531 = vmatpush1.bf16.msra.mxu1 %v6530_v39  ;;  %6021 = vmatprep.subr.bf16.mxu0 %v6020_v42  ;;  %v6034_v39 = vpack.c.bf16 %v472_v29, %v464_v28  ;;  %v6546_v42 = vpack.c.bf16 %v474_v33, %v466_v32  ;;  %v6548_v48 = vpack.c.bf16 %v491_v37, %v483_v41  ;;  %v528_v29 = vld [vmem:[%s7579_s7 + $0x7a0] sm:$0xff]  ;;  %v553_v41 = vld [vmem:[%s7579_s7 + $0x868] sm:$0xff]  ;;  %v547_v37 = vld [vmem:[%s7579_s7 + $0x838] sm:$0xff] }
 0x297   : > { %6533 = vmatprep.subr.bf16.mxu1 %v6532_v46  ;;  %v482_v46 = vld [vmem:[%s7579_s7 + $0x630] sm:$0xff]  ;;  %v6048_v28 = vpack.c.bf16 %v537_v21, %v529_v20  ;;  %v536_v32 = vld [vmem:[%s7579_s7 + $0x7e0] sm:$0xff]  ;;  %v593_v21 = vld [vmem:[%s7579_s7 + $0x9a8] sm:$0xff] }
 0x298   : > { %v586_v20 = vld [vmem:[%s7579_s7 + $0x970] sm:$0xff] }
 0x299   : > { %6023 = vmatpush1.bf16.msra.mxu0 %v6022_v58  ;;  %v507_v58 = vld [vmem:[%s7579_s7 + $0x6f8] sm:$0xff] }
 0x29a   : > { %6535 = vmatpush1.bf16.msra.mxu1 %v6534_v59  ;;  %6025 = vmatprep.subr.bf16.mxu0 %v6024_v60  ;;  %v6038_v59 = vpack.c.bf16 %v488_v45, %v480_v44  ;;  %v6550_v60 = vpack.c.bf16 %v490_v49, %v482_v46  ;;  %v6552_v3 = vpack.c.bf16 %v507_v58, %v499_v54  ;;  %v544_v45 = vld [vmem:[%s7579_s7 + $0x820] sm:$0xff]  ;;  %v569_v54 = vld [vmem:[%s7579_s7 + $0x8e8] sm:$0xff]  ;;  %v563_v58 = vld [vmem:[%s7579_s7 + $0x8b8] sm:$0xff] }
 0x29b   : > { %6537 = vmatprep.subr.bf16.mxu1 %v6536_v2  ;;  %v498_v2 = vld [vmem:[%s7579_s7 + $0x6b0] sm:$0xff]  ;;  %v6052_v44 = vpack.c.bf16 %v553_v41, %v545_v35  ;;  %v552_v46 = vld [vmem:[%s7579_s7 + $0x860] sm:$0xff]  ;;  %v609_v35 = vld [vmem:[%s7579_s7 + $0xa28] sm:$0xff] }
 0x29c   : > { %v611_v41 = vld [vmem:[%s7579_s7 + $0xa38] sm:$0xff] }
 0x29d   : > { %6027 = vmatpush1.bf16.msra.mxu0 %v6026_v9  ;;  %v523_v9 = vld [vmem:[%s7579_s7 + $0x778] sm:$0xff] }
 0x29e   : > { %6539 = vmatpush1.bf16.msra.mxu1 %v6538_v10  ;;  %6029 = vmatprep.subr.bf16.mxu0 %v6028_v11  ;;  %v6042_v10 = vpack.c.bf16 %v504_v1, %v496_v62  ;;  %v6554_v11 = vpack.c.bf16 %v506_v4, %v498_v2  ;;  %v6556_v18 = vpack.c.bf16 %v523_v9, %v515_v8  ;;  %v560_v1 = vld [vmem:[%s7579_s7 + $0x8a0] sm:$0xff]  ;;  %v585_v8 = vld [vmem:[%s7579_s7 + $0x968] sm:$0xff]  ;;  %v579_v9 = vld [vmem:[%s7579_s7 + $0x938] sm:$0xff] }
 0x29f   : > { %6541 = vmatprep.subr.bf16.mxu1 %v6540_v16  ;;  %v514_v16 = vld [vmem:[%s7579_s7 + $0x730] sm:$0xff]  ;;  %v6056_v62 = vpack.c.bf16 %v569_v54, %v561_v52  ;;  %v568_v2 = vld [vmem:[%s7579_s7 + $0x8e0] sm:$0xff]  ;;  %v633_v52 = vld [vmem:[%s7579_s7 + $0xae8] sm:$0xff] }
 0x2a0   : > { %v627_v54 = vld [vmem:[%s7579_s7 + $0xab8] sm:$0xff] }
 0x2a1   : > { %6031 = vmatpush1.bf16.msra.mxu0 %v6030_v23  ;;  %v539_v23 = vld [vmem:[%s7579_s7 + $0x7f8] sm:$0xff] }
 0x2a2   : > { %6543 = vmatpush1.bf16.msra.mxu1 %v6542_v24  ;;  %6033 = vmatprep.subr.bf16.mxu0 %v6032_v27  ;;  %v6046_v24 = vpack.c.bf16 %v520_v14, %v512_v13  ;;  %v6558_v27 = vpack.c.bf16 %v522_v19, %v514_v16  ;;  %v6560_v33 = vpack.c.bf16 %v539_v23, %v531_v22  ;;  %v576_v14 = vld [vmem:[%s7579_s7 + $0x920] sm:$0xff]  ;;  %v601_v22 = vld [vmem:[%s7579_s7 + $0x9e8] sm:$0xff]  ;;  %v603_v23 = vld [vmem:[%s7579_s7 + $0x9f8] sm:$0xff] }
 0x2a3   : > { %6545 = vmatprep.subr.bf16.mxu1 %v6544_v34  ;;  %v530_v34 = vld [vmem:[%s7579_s7 + $0x7b0] sm:$0xff]  ;;  %v6060_v13 = vpack.c.bf16 %v585_v8, %v577_v7  ;;  %v584_v16 = vld [vmem:[%s7579_s7 + $0x960] sm:$0xff]  ;;  %v649_v7 = vld [vmem:[%s7579_s7 + $0xb68] sm:$0xff] }
 0x2a4   : > { %v643_v8 = vld [vmem:[%s7579_s7 + $0xb38] sm:$0xff] }
 0x2a5   : > { %6035 = vmatpush1.bf16.msra.mxu0 %v6034_v39  ;;  %v555_v39 = vld [vmem:[%s7579_s7 + $0x878] sm:$0xff] }
 0x2a6   : > { %6547 = vmatpush1.bf16.msra.mxu1 %v6546_v42  ;;  %6037 = vmatprep.subr.bf16.mxu0 %v6036_v43  ;;  %v6050_v42 = vpack.c.bf16 %v536_v32, %v528_v29  ;;  %v6562_v43 = vpack.c.bf16 %v538_v17, %v530_v34  ;;  %v6564_v49 = vpack.c.bf16 %v555_v39, %v547_v37  ;;  %v592_v29 = vld [vmem:[%s7579_s7 + $0x9a0] sm:$0xff]  ;;  %v594_v34 = vld [vmem:[%s7579_s7 + $0x9b0] sm:$0xff]  ;;  %v619_v37 = vld [vmem:[%s7579_s7 + $0xa78] sm:$0xff] }
 0x2a7   : > { %6549 = vmatprep.subr.bf16.mxu1 %v6548_v48  ;;  %v546_v48 = vld [vmem:[%s7579_s7 + $0x830] sm:$0xff]  ;;  %v600_v32 = vld [vmem:[%s7579_s7 + $0x9e0] sm:$0xff] }
 0x2a8   : > { %v602_v17 = vld [vmem:[%s7579_s7 + $0x9f0] sm:$0xff]  ;;  %v6066_v39 = vpack.c.bf16 %v600_v32, %v592_v29  ;;  %v664_v29 = vld [vmem:[%s7579_s7 + $0xbe0] sm:$0xff] }
 0x2a9   : > { %6039 = vmatpush1.bf16.msra.mxu0 %v6038_v59  ;;  %v571_v59 = vld [vmem:[%s7579_s7 + $0x8f8] sm:$0xff]  ;;  %v658_v32 = vld [vmem:[%s7579_s7 + $0xbb0] sm:$0xff] }
 0x2aa   : > { %6551 = vmatpush1.bf16.msra.mxu1 %v6550_v60  ;;  %6041 = vmatprep.subr.bf16.mxu0 %v6040_v61  ;;  %v6054_v60 = vpack.c.bf16 %v552_v46, %v544_v45  ;;  %v6566_v61 = vpack.c.bf16 %v554_v51, %v546_v48  ;;  %v6568_v4 = vpack.c.bf16 %v571_v59, %v563_v58  ;;  %v616_v45 = vld [vmem:[%s7579_s7 + $0xa60] sm:$0xff]  ;;  %v610_v46 = vld [vmem:[%s7579_s7 + $0xa30] sm:$0xff]  ;;  %v625_v51 = vld [vmem:[%s7579_s7 + $0xaa8] sm:$0xff] }
 0x2ab   : > { %6553 = vmatprep.subr.bf16.mxu1 %v6552_v3  ;;  %v562_v3 = vld [vmem:[%s7579_s7 + $0x8b0] sm:$0xff]  ;;  %v6580_v48 = vpack.c.bf16 %v619_v37, %v611_v41  ;;  %v635_v58 = vld [vmem:[%s7579_s7 + $0xaf8] sm:$0xff] }
 0x2ac   : > { %v683_v41 = vld [vmem:[%s7579_s7 + $0xc78] sm:$0xff] }
 0x2ad   : > { %6043 = vmatpush1.bf16.msra.mxu0 %v6042_v10  ;;  %v587_v10 = vld [vmem:[%s7579_s7 + $0x978] sm:$0xff] }
 0x2ae   : > { %6555 = vmatpush1.bf16.msra.mxu1 %v6554_v11  ;;  %6045 = vmatprep.subr.bf16.mxu0 %v6044_v50  ;;  %v6058_v11 = vpack.c.bf16 %v568_v2, %v560_v1  ;;  %v6570_v50 = vpack.c.bf16 %v570_v6, %v562_v3  ;;  %v6572_v19 = vpack.c.bf16 %v587_v10, %v579_v9  ;;  %v632_v1 = vld [vmem:[%s7579_s7 + $0xae0] sm:$0xff]  ;;  %v626_v2 = vld [vmem:[%s7579_s7 + $0xab0] sm:$0xff]  ;;  %v641_v6 = vld [vmem:[%s7579_s7 + $0xb28] sm:$0xff] }
 0x2af   : > { %6557 = vmatprep.subr.bf16.mxu1 %v6556_v18  ;;  %v578_v18 = vld [vmem:[%s7579_s7 + $0x930] sm:$0xff]  ;;  %v6584_v3 = vpack.c.bf16 %v635_v58, %v627_v54  ;;  %v651_v9 = vld [vmem:[%s7579_s7 + $0xb78] sm:$0xff] }
 0x2b0   : > { %v699_v54 = vld [vmem:[%s7579_s7 + $0xcf8] sm:$0xff] }
 0x2b1   : > { %6047 = vmatpush1.bf16.msra.mxu0 %v6046_v24  ;;  %v6062_v24 = vpack.c.bf16 %v584_v16, %v576_v14  ;;  %v648_v14 = vld [vmem:[%s7579_s7 + $0xb60] sm:$0xff]  ;;  %v642_v16 = vld [vmem:[%s7579_s7 + $0xb30] sm:$0xff] }
 0x2b2   : > { %6559 = vmatpush1.bf16.msra.mxu1 %v6558_v27  ;;  %6049 = vmatprep.subr.bf16.mxu0 %v6048_v28  ;;  %v6574_v27 = vpack.c.bf16 %v586_v20, %v578_v18  ;;  %v6064_v28 = vpack.c.bf16 %v601_v22, %v593_v21  ;;  %v6588_v18 = vpack.c.bf16 %v651_v9, %v643_v8  ;;  %v657_v20 = vld [vmem:[%s7579_s7 + $0xba8] sm:$0xff]  ;;  %v659_v22 = vld [vmem:[%s7579_s7 + $0xbb8] sm:$0xff] }
 0x2b3   : > { %6561 = vmatprep.subr.bf16.mxu1 %v6560_v33  ;;  %v665_v21 = vld [vmem:[%s7579_s7 + $0xbe8] sm:$0xff]  ;;  %v715_v8 = vld [vmem:[%s7579_s7 + $0xd78] sm:$0xff] }
 0x2b5   : > { %6051 = vmatpush1.bf16.msra.mxu0 %v6050_v42  ;;  %v6578_v42 = vpack.c.bf16 %v602_v17, %v594_v34  ;;  %v673_v17 = vld [vmem:[%s7579_s7 + $0xc28] sm:$0xff] }
 0x2b6   : > { %6563 = vmatpush1.bf16.msra.mxu1 %v6562_v43  ;;  %6053 = vmatprep.subr.bf16.mxu0 %v6052_v44  ;;  %v608_v44 = vld [vmem:[%s7579_s7 + $0xa20] sm:$0xff] }
 0x2b7   : > { %6565 = vmatprep.subr.bf16.mxu1 %v6564_v49  ;;  %v618_v49 = vld [vmem:[%s7579_s7 + $0xa70] sm:$0xff]  ;;  %v6070_v59 = vpack.c.bf16 %v616_v45, %v608_v44  ;;  %v680_v44 = vld [vmem:[%s7579_s7 + $0xc60] sm:$0xff] }
 0x2b8   : > { %3621 = vmatmul.mubr.f32.vlgmr.msra.gmra.mrb[2].mxu0 %v7718_v26  ;;  %v674_v45 = vld [vmem:[%s7579_s7 + $0xc30] sm:$0xff] }
 0x2b9   : > { %6055 = vmatpush1.bf16.msra.mxu0 %v6054_v60  ;;  %4189 = vmatmul.mubr.f32.vlgmr.msra.gmra.mrb[2].mxu1 %v7718_v26  ;;  %v595_v26 = vld [vmem:[%s7579_s7 + $0x9b8] sm:$0xff]  ;;  %v6582_v60 = vpack.c.bf16 %v618_v49, %v610_v46  ;;  %v689_v49 = vld [vmem:[%s7579_s7 + $0xca8] sm:$0xff] }
 0x2ba   : > { %6567 = vmatpush1.bf16.msra.mxu1 %v6566_v61  ;;  %6057 = vmatprep.subr.bf16.mxu0 %v6056_v62  ;;  %v6576_v33 = vpack.c.bf16 %v603_v23, %v595_v26  ;;  %v6072_v61 = vpack.c.bf16 %v633_v52, %v625_v51  ;;  %v624_v62 = vld [vmem:[%s7579_s7 + $0xaa0] sm:$0xff]  ;;  %v667_v26 = vld [vmem:[%s7579_s7 + $0xbf8] sm:$0xff]  ;;  %v697_v51 = vld [vmem:[%s7579_s7 + $0xce8] sm:$0xff] }
 0x2bb   : > { %6569 = vmatprep.subr.bf16.mxu1 %v6568_v4  ;;  %3691 = vmatprep.mubr.f32.mxu0 %v7779_v40  ;;  %v634_v4 = vld [vmem:[%s7579_s7 + $0xaf0] sm:$0xff]  ;;  %v6074_v10 = vpack.c.bf16 %v632_v1, %v624_v62  ;;  %v6592_v34 = vpack.c.bf16 %v667_v26, %v659_v22  ;;  %v691_v52 = vld [vmem:[%s7579_s7 + $0xcb8] sm:$0xff]  ;;  %v696_v62 = vld [vmem:[%s7579_s7 + $0xce0] sm:$0xff] }
 0x2bc   : > { %4259 = vmatprep.mubr.f32.mxu1 %v7779_v40  ;;  %v617_v40 = vld [vmem:[%s7579_s7 + $0xa68] sm:$0xff]  ;;  %v690_v1 = vld [vmem:[%s7579_s7 + $0xcb0] sm:$0xff]  ;;  %v731_v22 = vld [vmem:[%s7579_s7 + $0xdf8] sm:$0xff] }
 0x2bd   : > { %6059 = vmatpush1.bf16.msra.mxu0 %v6058_v11  ;;  %v6068_v43 = vpack.c.bf16 %v617_v40, %v609_v35  ;;  %v6586_v11 = vpack.c.bf16 %v634_v4, %v626_v2  ;;  %v681_v35 = vld [vmem:[%s7579_s7 + $0xc68] sm:$0xff]  ;;  %v675_v40 = vld [vmem:[%s7579_s7 + $0xc38] sm:$0xff]  ;;  %v6600_v2 = vpack.c.bf16 %v699_v54, %v691_v52 }
 0x2be   : > { %6571 = vmatpush1.bf16.msra.mxu1 %v6570_v50  ;;  %6061 = vmatprep.subr.bf16.mxu0 %v6060_v13  ;;  %v6076_v50 = vpack.c.bf16 %v649_v7, %v641_v6  ;;  %v640_v13 = vld [vmem:[%s7579_s7 + $0xb20] sm:$0xff]  ;;  %v6596_v46 = vpack.c.bf16 %v683_v41, %v675_v40  ;;  %v705_v4 = vld [vmem:[%s7579_s7 + $0xd28] sm:$0xff]  ;;  %v707_v7 = vld [vmem:[%s7579_s7 + $0xd38] sm:$0xff] }
 0x2bf   : > { %6573 = vmatprep.subr.bf16.mxu1 %v6572_v19  ;;  %v650_v19 = vld [vmem:[%s7579_s7 + $0xb70] sm:$0xff]  ;;  %v6078_v23 = vpack.c.bf16 %v648_v14, %v640_v13  ;;  %v713_v6 = vld [vmem:[%s7579_s7 + $0xd68] sm:$0xff]  ;;  %v712_v13 = vld [vmem:[%s7579_s7 + $0xd60] sm:$0xff] }
 0x2c0   : > { %v706_v14 = vld [vmem:[%s7579_s7 + $0xd30] sm:$0xff]  ;;  %v747_v40 = vld [vmem:[%s7579_s7 + $0xe78] sm:$0xff] }
 0x2c1   : > { %6063 = vmatpush1.bf16.msra.mxu0 %v6062_v24  ;;  %v6590_v24 = vpack.c.bf16 %v650_v19, %v642_v16  ;;  %v6604_v16 = vpack.c.bf16 %v715_v8, %v707_v7  ;;  %v721_v19 = vld [vmem:[%s7579_s7 + $0xda8] sm:$0xff]  ;;  %v763_v52 = vld [vmem:[%s7579_s7 + $0xef8] sm:$0xff] }
 0x2c2   : > { %6575 = vmatpush1.bf16.msra.mxu1 %v6574_v27  ;;  %6065 = vmatprep.subr.bf16.mxu0 %v6064_v28  ;;  %v6080_v27 = vpack.c.bf16 %v665_v21, %v657_v20  ;;  %v656_v28 = vld [vmem:[%s7579_s7 + $0xba0] sm:$0xff]  ;;  %v729_v20 = vld [vmem:[%s7579_s7 + $0xde8] sm:$0xff]  ;;  %v723_v21 = vld [vmem:[%s7579_s7 + $0xdb8] sm:$0xff] }
 0x2c3   : > { %6577 = vmatprep.subr.bf16.mxu1 %v6576_v33  ;;  %v666_v33 = vld [vmem:[%s7579_s7 + $0xbf0] sm:$0xff]  ;;  %v6082_v37 = vpack.c.bf16 %v664_v29, %v656_v28  ;;  %v728_v28 = vld [vmem:[%s7579_s7 + $0xde0] sm:$0xff]  ;;  %v779_v7 = vld [vmem:[%s7579_s7 + $0xf78] sm:$0xff] }
 0x2c4   : > { %v722_v29 = vld [vmem:[%s7579_s7 + $0xdb0] sm:$0xff] }
 0x2c5   : > { %6067 = vmatpush1.bf16.msra.mxu0 %v6066_v39  ;;  %v6594_v39 = vpack.c.bf16 %v666_v33, %v658_v32  ;;  %v6608_v32 = vpack.c.bf16 %v731_v22, %v723_v21  ;;  %v737_v33 = vld [vmem:[%s7579_s7 + $0xe28] sm:$0xff]  ;;  %v795_v21 = vld [vmem:[%s7579_s7 + $0xff8] sm:$0xff] }
 0x2c6   : > { %6579 = vmatpush1.bf16.msra.mxu1 %v6578_v42  ;;  %6069 = vmatprep.subr.bf16.mxu0 %v6068_v43  ;;  %v6084_v42 = vpack.c.bf16 %v681_v35, %v673_v17  ;;  %v672_v43 = vld [vmem:[%s7579_s7 + $0xc20] sm:$0xff]  ;;  %v745_v17 = vld [vmem:[%s7579_s7 + $0xe68] sm:$0xff]  ;;  %v739_v35 = vld [vmem:[%s7579_s7 + $0xe38] sm:$0xff] }
 0x2c7   : > { %6581 = vmatprep.subr.bf16.mxu1 %v6580_v48  ;;  %v682_v48 = vld [vmem:[%s7579_s7 + $0xc70] sm:$0xff]  ;;  %v6086_v58 = vpack.c.bf16 %v680_v44, %v672_v43  ;;  %v744_v43 = vld [vmem:[%s7579_s7 + $0xe60] sm:$0xff] }
 0x2c8   : > { %v738_v44 = vld [vmem:[%s7579_s7 + $0xe30] sm:$0xff] }
 0x2c9   : > { %6071 = vmatpush1.bf16.msra.mxu0 %v6070_v59  ;;  %v6598_v59 = vpack.c.bf16 %v682_v48, %v674_v45  ;;  %v6612_v45 = vpack.c.bf16 %v747_v40, %v739_v35  ;;  %v753_v48 = vld [vmem:[%s7579_s7 + $0xea8] sm:$0xff]  ;;  %v811_v35 = vld [vmem:[%s7579_s7 + $0x1078] sm:$0xff] }
 0x2ca   : > { %6583 = vmatpush1.bf16.msra.mxu1 %v6582_v60  ;;  %6073 = vmatprep.subr.bf16.mxu0 %v6072_v61  ;;  %v6088_v60 = vpack.c.bf16 %v697_v51, %v689_v49  ;;  %v688_v61 = vld [vmem:[%s7579_s7 + $0xca0] sm:$0xff]  ;;  %v761_v49 = vld [vmem:[%s7579_s7 + $0xee8] sm:$0xff]  ;;  %v755_v51 = vld [vmem:[%s7579_s7 + $0xeb8] sm:$0xff] }
 0x2cb   : > { %6585 = vmatprep.subr.bf16.mxu1 %v6584_v3  ;;  %v698_v3 = vld [vmem:[%s7579_s7 + $0xcf0] sm:$0xff]  ;;  %v6090_v9 = vpack.c.bf16 %v696_v62, %v688_v61  ;;  %v760_v61 = vld [vmem:[%s7579_s7 + $0xee0] sm:$0xff] }
 0x2cc   : > { %v754_v62 = vld [vmem:[%s7579_s7 + $0xeb0] sm:$0xff] }
 0x2cd   : > { %6075 = vmatpush1.bf16.msra.mxu0 %v6074_v10  ;;  %v6602_v10 = vpack.c.bf16 %v698_v3, %v690_v1  ;;  %v6616_v1 = vpack.c.bf16 %v763_v52, %v755_v51  ;;  %v769_v3 = vld [vmem:[%s7579_s7 + $0xf28] sm:$0xff]  ;;  %v827_v51 = vld [vmem:[%s7579_s7 + $0x10f8] sm:$0xff] }
 0x2ce   : > { %6587 = vmatpush1.bf16.msra.mxu1 %v6586_v11  ;;  %6077 = vmatprep.subr.bf16.mxu0 %v6076_v50  ;;  %v6092_v11 = vpack.c.bf16 %v713_v6, %v705_v4  ;;  %v704_v50 = vld [vmem:[%s7579_s7 + $0xd20] sm:$0xff]  ;;  %v777_v4 = vld [vmem:[%s7579_s7 + $0xf68] sm:$0xff]  ;;  %v771_v6 = vld [vmem:[%s7579_s7 + $0xf38] sm:$0xff] }
 0x2cf   : > { %6589 = vmatprep.subr.bf16.mxu1 %v6588_v18  ;;  %v714_v18 = vld [vmem:[%s7579_s7 + $0xd70] sm:$0xff]  ;;  %v6094_v26 = vpack.c.bf16 %v712_v13, %v704_v50  ;;  %v776_v50 = vld [vmem:[%s7579_s7 + $0xf60] sm:$0xff] }
 0x2d0   : > { %v770_v13 = vld [vmem:[%s7579_s7 + $0xf30] sm:$0xff] }
 0x2d1   : > { %6079 = vmatpush1.bf16.msra.mxu0 %v6078_v23  ;;  %v6606_v23 = vpack.c.bf16 %v714_v18, %v706_v14  ;;  %v6620_v14 = vpack.c.bf16 %v779_v7, %v771_v6  ;;  %v785_v18 = vld [vmem:[%s7579_s7 + $0xfa8] sm:$0xff]  ;;  %v843_v6 = vld [vmem:[%s7579_s7 + $0x1178] sm:$0xff] }
 0x2d2   : > { %6591 = vmatpush1.bf16.msra.mxu1 %v6590_v24  ;;  %6081 = vmatprep.subr.bf16.mxu0 %v6080_v27  ;;  %v6096_v24 = vpack.c.bf16 %v729_v20, %v721_v19  ;;  %v720_v27 = vld [vmem:[%s7579_s7 + $0xda0] sm:$0xff]  ;;  %v793_v19 = vld [vmem:[%s7579_s7 + $0xfe8] sm:$0xff]  ;;  %v787_v20 = vld [vmem:[%s7579_s7 + $0xfb8] sm:$0xff] }
 0x2d3   : > { %6593 = vmatprep.subr.bf16.mxu1 %v6592_v34  ;;  %v730_v34 = vld [vmem:[%s7579_s7 + $0xdf0] sm:$0xff]  ;;  %v6098_v41 = vpack.c.bf16 %v728_v28, %v720_v27  ;;  %v792_v27 = vld [vmem:[%s7579_s7 + $0xfe0] sm:$0xff] }
 0x2d4   : > { %v786_v28 = vld [vmem:[%s7579_s7 + $0xfb0] sm:$0xff] }
 0x2d5   : > { %6083 = vmatpush1.bf16.msra.mxu0 %v6082_v37  ;;  %v6610_v37 = vpack.c.bf16 %v730_v34, %v722_v29  ;;  %v6624_v29 = vpack.c.bf16 %v795_v21, %v787_v20  ;;  %v801_v34 = vld [vmem:[%s7579_s7 + $0x1028] sm:$0xff] }
 0x2d6   : > { %6595 = vmatpush1.bf16.msra.mxu1 %v6594_v39  ;;  %6085 = vmatprep.subr.bf16.mxu0 %v6084_v42  ;;  %v6100_v39 = vpack.c.bf16 %v745_v17, %v737_v33  ;;  %v736_v42 = vld [vmem:[%s7579_s7 + $0xe20] sm:$0xff]  ;;  %v809_v33 = vld [vmem:[%s7579_s7 + $0x1068] sm:$0xff]  ;;  %v803_v17 = vld [vmem:[%s7579_s7 + $0x1038] sm:$0xff] }
 0x2d7   : > { %6597 = vmatprep.subr.bf16.mxu1 %v6596_v46  ;;  %v746_v46 = vld [vmem:[%s7579_s7 + $0xe70] sm:$0xff]  ;;  %v6102_v54 = vpack.c.bf16 %v744_v43, %v736_v42  ;;  %v808_v42 = vld [vmem:[%s7579_s7 + $0x1060] sm:$0xff] }
 0x2d8   : > { %v802_v43 = vld [vmem:[%s7579_s7 + $0x1030] sm:$0xff] }
 0x2d9   : > { %6087 = vmatpush1.bf16.msra.mxu0 %v6086_v58  ;;  %v6614_v58 = vpack.c.bf16 %v746_v46, %v738_v44  ;;  %v6628_v44 = vpack.c.bf16 %v811_v35, %v803_v17  ;;  %v817_v46 = vld [vmem:[%s7579_s7 + $0x10a8] sm:$0xff] }
 0x2da   : > { %6599 = vmatpush1.bf16.msra.mxu1 %v6598_v59  ;;  %6089 = vmatprep.subr.bf16.mxu0 %v6088_v60  ;;  %v6104_v59 = vpack.c.bf16 %v761_v49, %v753_v48  ;;  %v752_v60 = vld [vmem:[%s7579_s7 + $0xea0] sm:$0xff]  ;;  %v825_v48 = vld [vmem:[%s7579_s7 + $0x10e8] sm:$0xff]  ;;  %v819_v49 = vld [vmem:[%s7579_s7 + $0x10b8] sm:$0xff] }
 0x2db   : > { %6601 = vmatprep.subr.bf16.mxu1 %v6600_v2  ;;  %v762_v2 = vld [vmem:[%s7579_s7 + $0xef0] sm:$0xff]  ;;  %v6106_v8 = vpack.c.bf16 %v760_v61, %v752_v60  ;;  %v824_v60 = vld [vmem:[%s7579_s7 + $0x10e0] sm:$0xff] }
 0x2dc   : > { %v818_v61 = vld [vmem:[%s7579_s7 + $0x10b0] sm:$0xff] }
 0x2dd   : > { %6091 = vmatpush1.bf16.msra.mxu0 %v6090_v9  ;;  %v6618_v9 = vpack.c.bf16 %v762_v2, %v754_v62  ;;  %v6632_v62 = vpack.c.bf16 %v827_v51, %v819_v49  ;;  %v833_v2 = vld [vmem:[%s7579_s7 + $0x1128] sm:$0xff] }
 0x2de   : > { %6603 = vmatpush1.bf16.msra.mxu1 %v6602_v10  ;;  %6093 = vmatprep.subr.bf16.mxu0 %v6092_v11  ;;  %v6108_v10 = vpack.c.bf16 %v777_v4, %v769_v3  ;;  %v768_v11 = vld [vmem:[%s7579_s7 + $0xf20] sm:$0xff]  ;;  %v841_v3 = vld [vmem:[%s7579_s7 + $0x1168] sm:$0xff]  ;;  %v835_v4 = vld [vmem:[%s7579_s7 + $0x1138] sm:$0xff] }
 0x2df   : > { %6605 = vmatprep.subr.bf16.mxu1 %v6604_v16  ;;  %v778_v16 = vld [vmem:[%s7579_s7 + $0xf70] sm:$0xff]  ;;  %v6110_v22 = vpack.c.bf16 %v776_v50, %v768_v11  ;;  %v840_v11 = vld [vmem:[%s7579_s7 + $0x1160] sm:$0xff] }
 0x2e0   : > { %v834_v50 = vld [vmem:[%s7579_s7 + $0x1130] sm:$0xff] }
 0x2e1   : > { %6095 = vmatpush1.bf16.msra.mxu0 %v6094_v26  ;;  %v6622_v26 = vpack.c.bf16 %v778_v16, %v770_v13  ;;  %v6636_v13 = vpack.c.bf16 %v843_v6, %v835_v4  ;;  %v849_v16 = vld [vmem:[%s7579_s7 + $0x11a8] sm:$0xff] }
 0x2e2   : > { %6607 = vmatpush1.bf16.msra.mxu1 %v6606_v23  ;;  %6097 = vmatprep.subr.bf16.mxu0 %v6096_v24  ;;  %v6112_v23 = vpack.c.bf16 %v793_v19, %v785_v18  ;;  %v784_v24 = vld [vmem:[%s7579_s7 + $0xfa0] sm:$0xff]  ;;  %v857_v18 = vld [vmem:[%s7579_s7 + $0x11e8] sm:$0xff]  ;;  %v859_v19 = vld [vmem:[%s7579_s7 + $0x11f8] sm:$0xff] }
 0x2e3   : > { %6609 = vmatprep.subr.bf16.mxu1 %v6608_v32  ;;  %v794_v32 = vld [vmem:[%s7579_s7 + $0xff0] sm:$0xff]  ;;  %v6114_v40 = vpack.c.bf16 %v792_v27, %v784_v24 }
 0x2e4   : > { %v850_v24 = vld [vmem:[%s7579_s7 + $0x11b0] sm:$0xff] }
 0x2e5   : > { %6099 = vmatpush1.bf16.msra.mxu0 %v6098_v41  ;;  %v6626_v41 = vpack.c.bf16 %v794_v32, %v786_v28  ;;  %v858_v28 = vld [vmem:[%s7579_s7 + $0x11f0] sm:$0xff]  ;;  %v867_v32 = vld [vmem:[%s7579_s7 + $0x1238] sm:$0xff] }
 0x2e6   : > { %6611 = vmatpush1.bf16.msra.mxu1 %v6610_v37  ;;  %6101 = vmatprep.subr.bf16.mxu0 %v6100_v39  ;;  %v6116_v37 = vpack.c.bf16 %v809_v33, %v801_v34  ;;  %v800_v39 = vld [vmem:[%s7579_s7 + $0x1020] sm:$0xff]  ;;  %v875_v34 = vld [vmem:[%s7579_s7 + $0x1278] sm:$0xff]  ;;  %v6642_v17 = vpack.c.bf16 %v858_v28, %v850_v24  ;;  %v929_v24 = vld [vmem:[%s7579_s7 + $0x1428] sm:$0xff] }
 0x2e7   : > { %6613 = vmatprep.subr.bf16.mxu1 %v6612_v45  ;;  %v810_v45 = vld [vmem:[%s7579_s7 + $0x1070] sm:$0xff]  ;;  %v6118_v52 = vpack.c.bf16 %v808_v42, %v800_v39  ;;  %v6644_v39 = vpack.c.bf16 %v875_v34, %v867_v32  ;;  %v931_v28 = vld [vmem:[%s7579_s7 + $0x1438] sm:$0xff] }
 0x2e8   : > { %v874_v42 = vld [vmem:[%s7579_s7 + $0x1270] sm:$0xff] }
 0x2e9   : > { %6103 = vmatpush1.bf16.msra.mxu0 %v6102_v54  ;;  %v6630_v54 = vpack.c.bf16 %v810_v45, %v802_v43  ;;  %v881_v43 = vld [vmem:[%s7579_s7 + $0x12a8] sm:$0xff]  ;;  %v883_v45 = vld [vmem:[%s7579_s7 + $0x12b8] sm:$0xff] }
 0x2ea   : > { %6615 = vmatpush1.bf16.msra.mxu1 %v6614_v58  ;;  %6105 = vmatprep.subr.bf16.mxu0 %v6104_v59  ;;  %v6120_v58 = vpack.c.bf16 %v825_v48, %v817_v46  ;;  %v816_v59 = vld [vmem:[%s7579_s7 + $0x10a0] sm:$0xff]  ;;  %v891_v46 = vld [vmem:[%s7579_s7 + $0x12f8] sm:$0xff] }
 0x2eb   : > { %6617 = vmatprep.subr.bf16.mxu1 %v6616_v1  ;;  %v826_v1 = vld [vmem:[%s7579_s7 + $0x10f0] sm:$0xff]  ;;  %v6122_v7 = vpack.c.bf16 %v824_v60, %v816_v59  ;;  %v6648_v59 = vpack.c.bf16 %v891_v46, %v883_v45 }
 0x2ec   : > { %v890_v60 = vld [vmem:[%s7579_s7 + $0x12f0] sm:$0xff] }
 0x2ed   : > { %6107 = vmatpush1.bf16.msra.mxu0 %v6106_v8  ;;  %v6634_v8 = vpack.c.bf16 %v826_v1, %v818_v61  ;;  %v897_v61 = vld [vmem:[%s7579_s7 + $0x1328] sm:$0xff]  ;;  %v899_v1 = vld [vmem:[%s7579_s7 + $0x1338] sm:$0xff] }
 0x2ee   : > { %6619 = vmatpush1.bf16.msra.mxu1 %v6618_v9  ;;  %6109 = vmatprep.subr.bf16.mxu0 %v6108_v10  ;;  %v6124_v9 = vpack.c.bf16 %v841_v3, %v833_v2  ;;  %v832_v10 = vld [vmem:[%s7579_s7 + $0x1120] sm:$0xff]  ;;  %v907_v2 = vld [vmem:[%s7579_s7 + $0x1378] sm:$0xff] }
 0x2ef   : > { %6621 = vmatprep.subr.bf16.mxu1 %v6620_v14  ;;  %v842_v14 = vld [vmem:[%s7579_s7 + $0x1170] sm:$0xff]  ;;  %v6126_v20 = vpack.c.bf16 %v840_v11, %v832_v10  ;;  %v6652_v10 = vpack.c.bf16 %v907_v2, %v899_v1 }
 0x2f0   : > { %v6638_v21 = vpack.c.bf16 %v842_v14, %v834_v50  ;;  %v906_v11 = vld [vmem:[%s7579_s7 + $0x1370] sm:$0xff]  ;;  %v913_v50 = vld [vmem:[%s7579_s7 + $0x13a8] sm:$0xff]  ;;  %v915_v14 = vld [vmem:[%s7579_s7 + $0x13b8] sm:$0xff] }
 0x2f1   : > { %6111 = vmatpush1.bf16.msra.mxu0 %v6110_v22  ;;  %v6128_v22 = vpack.c.bf16 %v857_v18, %v849_v16  ;;  %v923_v16 = vld [vmem:[%s7579_s7 + $0x13f8] sm:$0xff] }
 0x2f2   : > { %6623 = vmatpush1.bf16.msra.mxu1 %v6622_v26  ;;  %6113 = vmatprep.subr.bf16.mxu0 %v6112_v23  ;;  %v848_v26 = vld [vmem:[%s7579_s7 + $0x11a0] sm:$0xff] }
 0x2f3   : > { %6625 = vmatprep.subr.bf16.mxu1 %v6624_v29  ;;  %v856_v23 = vld [vmem:[%s7579_s7 + $0x11e0] sm:$0xff]  ;;  %v865_v29 = vld [vmem:[%s7579_s7 + $0x1228] sm:$0xff] }
 0x2f4   : > { %v6130_v33 = vpack.c.bf16 %v856_v23, %v848_v26  ;;  %v6656_v26 = vpack.c.bf16 %v923_v16, %v915_v14  ;;  %v922_v23 = vld [vmem:[%s7579_s7 + $0x13f0] sm:$0xff] }
 0x2f5   : > { %6115 = vmatpush1.bf16.msra.mxu0 %v6114_v40  ;;  %v864_v40 = vld [vmem:[%s7579_s7 + $0x1220] sm:$0xff] }
 0x2f6   : > { %6627 = vmatpush1.bf16.msra.mxu1 %v6626_v41  ;;  %6117 = vmatprep.subr.bf16.mxu0 %v6116_v37  ;;  %v872_v41 = vld [vmem:[%s7579_s7 + $0x1260] sm:$0xff]  ;;  %v866_v37 = vld [vmem:[%s7579_s7 + $0x1230] sm:$0xff] }
 0x2f7   : > { %6629 = vmatprep.subr.bf16.mxu1 %v6628_v44  ;;  %v889_v44 = vld [vmem:[%s7579_s7 + $0x12e8] sm:$0xff]  ;;  %v6134_v48 = vpack.c.bf16 %v872_v41, %v864_v40  ;;  %v6646_v49 = vpack.c.bf16 %v874_v42, %v866_v37  ;;  %v938_v41 = vld [vmem:[%s7579_s7 + $0x1470] sm:$0xff]  ;;  %v947_v42 = vld [vmem:[%s7579_s7 + $0x14b8] sm:$0xff] }
 0x2f8   : > { %3692 = vmatmul.mubr.f32.vlgmr.msra.gmra.mrb[2].mxu0 %v7767_v25  ;;  %v6136_v51 = vpack.c.bf16 %v889_v44, %v881_v43  ;;  %v945_v37 = vld [vmem:[%s7579_s7 + $0x14a8] sm:$0xff]  ;;  %v955_v43 = vld [vmem:[%s7579_s7 + $0x14f8] sm:$0xff] }
 0x2f9   : > { %6119 = vmatpush1.bf16.msra.mxu0 %v6118_v52  ;;  %4260 = vmatmul.mubr.f32.vlgmr.msra.gmra.mrb[2].mxu1 %v7767_v25  ;;  %v851_v25 = vld [vmem:[%s7579_s7 + $0x11b8] sm:$0xff]  ;;  %v880_v52 = vld [vmem:[%s7579_s7 + $0x12a0] sm:$0xff] }
 0x2fa   : > { %6631 = vmatpush1.bf16.msra.mxu1 %v6630_v54  ;;  %6121 = vmatprep.subr.bf16.mxu0 %v6120_v58  ;;  %v6640_v27 = vpack.c.bf16 %v859_v19, %v851_v25  ;;  %v888_v54 = vld [vmem:[%s7579_s7 + $0x12e0] sm:$0xff]  ;;  %v882_v58 = vld [vmem:[%s7579_s7 + $0x12b0] sm:$0xff] }
 0x2fb   : > { %6633 = vmatprep.subr.bf16.mxu1 %v6632_v62  ;;  %3762 = vmatprep.mubr.f32.mxu0 %v7925_v0  ;;  %v905_v62 = vld [vmem:[%s7579_s7 + $0x1368] sm:$0xff]  ;;  %v6138_v3 = vpack.c.bf16 %v888_v54, %v880_v52  ;;  %v6650_v4 = vpack.c.bf16 %v890_v60, %v882_v58  ;;  %v6664_v52 = vpack.c.bf16 %v955_v43, %v947_v42  ;;  %v954_v54 = vld [vmem:[%s7579_s7 + $0x14f0] sm:$0xff]  ;;  %v963_v60 = vld [vmem:[%s7579_s7 + $0x1538] sm:$0xff] }
 0x2fc   : > { %4330 = vmatprep.mubr.f32.mxu1 %v7925_v0  ;;  %v873_v0 = vld [vmem:[%s7579_s7 + $0x1268] sm:$0xff]  ;;  %v6140_v6 = vpack.c.bf16 %v905_v62, %v897_v61  ;;  %v971_v61 = vld [vmem:[%s7579_s7 + $0x1578] sm:$0xff] }
 0x2fd   : > { %6123 = vmatpush1.bf16.msra.mxu0 %v6122_v7  ;;  %v6132_v35 = vpack.c.bf16 %v873_v0, %v865_v29  ;;  %v896_v7 = vld [vmem:[%s7579_s7 + $0x1320] sm:$0xff]  ;;  %v939_v29 = vld [vmem:[%s7579_s7 + $0x1478] sm:$0xff]  ;;  %v961_v58 = vld [vmem:[%s7579_s7 + $0x1528] sm:$0xff] }
 0x2fe   : > { %6635 = vmatpush1.bf16.msra.mxu1 %v6634_v8  ;;  %6125 = vmatprep.subr.bf16.mxu0 %v6124_v9  ;;  %v904_v8 = vld [vmem:[%s7579_s7 + $0x1360] sm:$0xff]  ;;  %v898_v9 = vld [vmem:[%s7579_s7 + $0x1330] sm:$0xff]  ;;  %v6660_v40 = vpack.c.bf16 %v939_v29, %v931_v28 }
 0x2ff   : > { %6637 = vmatprep.subr.bf16.mxu1 %v6636_v13  ;;  %v921_v13 = vld [vmem:[%s7579_s7 + $0x13e8] sm:$0xff]  ;;  %v6142_v18 = vpack.c.bf16 %v904_v8, %v896_v7  ;;  %v6654_v25 = vpack.c.bf16 %v906_v11, %v898_v9  ;;  %v6668_v7 = vpack.c.bf16 %v971_v61, %v963_v60  ;;  %v970_v8 = vld [vmem:[%s7579_s7 + $0x1570] sm:$0xff]  ;;  %v979_v11 = vld [vmem:[%s7579_s7 + $0x15b8] sm:$0xff] }
 0x300   : > { %v6144_v19 = vpack.c.bf16 %v921_v13, %v913_v50  ;;  %v977_v9 = vld [vmem:[%s7579_s7 + $0x15a8] sm:$0xff]  ;;  %v987_v50 = vld [vmem:[%s7579_s7 + $0x15f8] sm:$0xff] }
 0x301   : > { %6127 = vmatpush1.bf16.msra.mxu0 %v6126_v20  ;;  %v912_v20 = vld [vmem:[%s7579_s7 + $0x13a0] sm:$0xff] }
 0x302   : > { %6639 = vmatpush1.bf16.msra.mxu1 %v6638_v21  ;;  %6129 = vmatprep.subr.bf16.mxu0 %v6128_v22  ;;  %v920_v21 = vld [vmem:[%s7579_s7 + $0x13e0] sm:$0xff]  ;;  %v914_v22 = vld [vmem:[%s7579_s7 + $0x13b0] sm:$0xff] }
 0x303   : > { %6641 = vmatprep.subr.bf16.mxu1 %v6640_v27  ;;  %v937_v27 = vld [vmem:[%s7579_s7 + $0x1468] sm:$0xff]  ;;  %v6146_v0 = vpack.c.bf16 %v920_v21, %v912_v20  ;;  %v6658_v32 = vpack.c.bf16 %v922_v23, %v914_v22  ;;  %v6672_v20 = vpack.c.bf16 %v987_v50, %v979_v11  ;;  %v986_v21 = vld [vmem:[%s7579_s7 + $0x15f0] sm:$0xff]  ;;  %v995_v23 = vld [vmem:[%s7579_s7 + $0x1638] sm:$0xff] }
 0x304   : > { %v6148_v34 = vpack.c.bf16 %v937_v27, %v929_v24  ;;  %v993_v22 = vld [vmem:[%s7579_s7 + $0x1628] sm:$0xff]  ;;  %v1003_v24 = vld [vmem:[%s7579_s7 + $0x1678] sm:$0xff] }
 0x305   : > { %6131 = vmatpush1.bf16.msra.mxu0 %v6130_v33  ;;  %v928_v33 = vld [vmem:[%s7579_s7 + $0x1420] sm:$0xff] }
 0x306   : > { %6643 = vmatpush1.bf16.msra.mxu1 %v6642_v17  ;;  %6133 = vmatprep.subr.bf16.mxu0 %v6132_v35  ;;  %v936_v17 = vld [vmem:[%s7579_s7 + $0x1460] sm:$0xff]  ;;  %v930_v35 = vld [vmem:[%s7579_s7 + $0x1430] sm:$0xff] }
 0x307   : > { %6645 = vmatprep.subr.bf16.mxu1 %v6644_v39  ;;  %v953_v39 = vld [vmem:[%s7579_s7 + $0x14e8] sm:$0xff]  ;;  %v6150_v44 = vpack.c.bf16 %v936_v17, %v928_v33  ;;  %v6662_v45 = vpack.c.bf16 %v938_v41, %v930_v35  ;;  %v6676_v33 = vpack.c.bf16 %v1003_v24, %v995_v23  ;;  %v1002_v17 = vld [vmem:[%s7579_s7 + $0x1670] sm:$0xff]  ;;  %v1011_v41 = vld [vmem:[%s7579_s7 + $0x16b8] sm:$0xff] }
 0x308   : > { %v6152_v46 = vpack.c.bf16 %v953_v39, %v945_v37  ;;  %v1009_v35 = vld [vmem:[%s7579_s7 + $0x16a8] sm:$0xff]  ;;  %v1019_v37 = vld [vmem:[%s7579_s7 + $0x16f8] sm:$0xff] }
 0x309   : > { %6135 = vmatpush1.bf16.msra.mxu0 %v6134_v48  ;;  %v944_v48 = vld [vmem:[%s7579_s7 + $0x14a0] sm:$0xff] }
 0x30a   : > { %6647 = vmatpush1.bf16.msra.mxu1 %v6646_v49  ;;  %6137 = vmatprep.subr.bf16.mxu0 %v6136_v51  ;;  %v952_v49 = vld [vmem:[%s7579_s7 + $0x14e0] sm:$0xff]  ;;  %v946_v51 = vld [vmem:[%s7579_s7 + $0x14b0] sm:$0xff] }
 0x30b   : > { %6649 = vmatprep.subr.bf16.mxu1 %v6648_v59  ;;  %v969_v59 = vld [vmem:[%s7579_s7 + $0x1568] sm:$0xff]  ;;  %v6154_v62 = vpack.c.bf16 %v952_v49, %v944_v48  ;;  %v6666_v1 = vpack.c.bf16 %v954_v54, %v946_v51  ;;  %v6680_v48 = vpack.c.bf16 %v1019_v37, %v1011_v41  ;;  %v1018_v49 = vld [vmem:[%s7579_s7 + $0x16f0] sm:$0xff]  ;;  %v1027_v54 = vld [vmem:[%s7579_s7 + $0x1738] sm:$0xff] }
 0x30c   : > { %v6156_v2 = vpack.c.bf16 %v969_v59, %v961_v58  ;;  %v1025_v51 = vld [vmem:[%s7579_s7 + $0x1728] sm:$0xff]  ;;  %v1035_v58 = vld [vmem:[%s7579_s7 + $0x1778] sm:$0xff] }
 0x30d   : > { %6139 = vmatpush1.bf16.msra.mxu0 %v6138_v3  ;;  %v960_v3 = vld [vmem:[%s7579_s7 + $0x1520] sm:$0xff] }
 0x30e   : > { %6651 = vmatpush1.bf16.msra.mxu1 %v6650_v4  ;;  %6141 = vmatprep.subr.bf16.mxu0 %v6140_v6  ;;  %v968_v4 = vld [vmem:[%s7579_s7 + $0x1560] sm:$0xff]  ;;  %v962_v6 = vld [vmem:[%s7579_s7 + $0x1530] sm:$0xff] }
 0x30f   : > { %6653 = vmatprep.subr.bf16.mxu1 %v6652_v10  ;;  %v985_v10 = vld [vmem:[%s7579_s7 + $0x15e8] sm:$0xff]  ;;  %v6158_v13 = vpack.c.bf16 %v968_v4, %v960_v3  ;;  %v6670_v14 = vpack.c.bf16 %v970_v8, %v962_v6  ;;  %v6684_v3 = vpack.c.bf16 %v1035_v58, %v1027_v54  ;;  %v1034_v4 = vld [vmem:[%s7579_s7 + $0x1770] sm:$0xff]  ;;  %v1043_v8 = vld [vmem:[%s7579_s7 + $0x17b8] sm:$0xff] }
 0x310   : > { %v6160_v16 = vpack.c.bf16 %v985_v10, %v977_v9  ;;  %v1041_v6 = vld [vmem:[%s7579_s7 + $0x17a8] sm:$0xff]  ;;  %v1051_v9 = vld [vmem:[%s7579_s7 + $0x17f8] sm:$0xff] }
 0x311   : > { %6143 = vmatpush1.bf16.msra.mxu0 %v6142_v18  ;;  %v976_v18 = vld [vmem:[%s7579_s7 + $0x15a0] sm:$0xff] }
 0x312   : > { %6655 = vmatpush1.bf16.msra.mxu1 %v6654_v25  ;;  %6145 = vmatprep.subr.bf16.mxu0 %v6144_v19  ;;  %v984_v25 = vld [vmem:[%s7579_s7 + $0x15e0] sm:$0xff]  ;;  %v978_v19 = vld [vmem:[%s7579_s7 + $0x15b0] sm:$0xff] }
 0x313   : > { %6657 = vmatprep.subr.bf16.mxu1 %v6656_v26  ;;  %v1001_v26 = vld [vmem:[%s7579_s7 + $0x1668] sm:$0xff]  ;;  %v6162_v27 = vpack.c.bf16 %v984_v25, %v976_v18  ;;  %v6674_v28 = vpack.c.bf16 %v986_v21, %v978_v19  ;;  %v6688_v18 = vpack.c.bf16 %v1051_v9, %v1043_v8  ;;  %v1050_v25 = vld [vmem:[%s7579_s7 + $0x17f0] sm:$0xff]  ;;  %v1059_v21 = vld [vmem:[%s7579_s7 + $0x1838] sm:$0xff] }
 0x314   : > { %v6164_v29 = vpack.c.bf16 %v1001_v26, %v993_v22  ;;  %v1057_v19 = vld [vmem:[%s7579_s7 + $0x1828] sm:$0xff]  ;;  %v1067_v22 = vld [vmem:[%s7579_s7 + $0x1878] sm:$0xff]  ;;  %v1104_v9 = vld [vmem:[%s7579_s7 + $0x19a0] sm:$0xff] }
 0x315   : > { %6147 = vmatpush1.bf16.msra.mxu0 %v6146_v0  ;;  %v992_v0 = vld [vmem:[%s7579_s7 + $0x1620] sm:$0xff] }
 0x316   : > { %6659 = vmatpush1.bf16.msra.mxu1 %v6658_v32  ;;  %6149 = vmatprep.subr.bf16.mxu0 %v6148_v34  ;;  %v1000_v32 = vld [vmem:[%s7579_s7 + $0x1660] sm:$0xff]  ;;  %v994_v34 = vld [vmem:[%s7579_s7 + $0x1630] sm:$0xff] }
 0x317   : > { %6661 = vmatprep.subr.bf16.mxu1 %v6660_v40  ;;  %v1017_v40 = vld [vmem:[%s7579_s7 + $0x16e8] sm:$0xff]  ;;  %v6166_v39 = vpack.c.bf16 %v1000_v32, %v992_v0  ;;  %v6678_v42 = vpack.c.bf16 %v1002_v17, %v994_v34  ;;  %v6692_v0 = vpack.c.bf16 %v1067_v22, %v1059_v21  ;;  %v1066_v32 = vld [vmem:[%s7579_s7 + $0x1870] sm:$0xff]  ;;  %v1075_v17 = vld [vmem:[%s7579_s7 + $0x18b8] sm:$0xff] }
 0x318   : > { %v6168_v43 = vpack.c.bf16 %v1017_v40, %v1009_v35  ;;  %v1073_v34 = vld [vmem:[%s7579_s7 + $0x18a8] sm:$0xff]  ;;  %v1083_v35 = vld [vmem:[%s7579_s7 + $0x18f8] sm:$0xff]  ;;  %v1120_v21 = vld [vmem:[%s7579_s7 + $0x1a20] sm:$0xff] }
 0x319   : > { %6151 = vmatpush1.bf16.msra.mxu0 %v6150_v44  ;;  %v1008_v44 = vld [vmem:[%s7579_s7 + $0x16a0] sm:$0xff] }
 0x31a   : > { %6663 = vmatpush1.bf16.msra.mxu1 %v6662_v45  ;;  %6153 = vmatprep.subr.bf16.mxu0 %v6152_v46  ;;  %v1016_v45 = vld [vmem:[%s7579_s7 + $0x16e0] sm:$0xff]  ;;  %v1010_v46 = vld [vmem:[%s7579_s7 + $0x16b0] sm:$0xff] }
 0x31b   : > { %6665 = vmatprep.subr.bf16.mxu1 %v6664_v52  ;;  %v1033_v52 = vld [vmem:[%s7579_s7 + $0x1768] sm:$0xff]  ;;  %v6170_v59 = vpack.c.bf16 %v1016_v45, %v1008_v44  ;;  %v6682_v60 = vpack.c.bf16 %v1018_v49, %v1010_v46  ;;  %v6696_v44 = vpack.c.bf16 %v1083_v35, %v1075_v17  ;;  %v1082_v45 = vld [vmem:[%s7579_s7 + $0x18f0] sm:$0xff]  ;;  %v1091_v49 = vld [vmem:[%s7579_s7 + $0x1938] sm:$0xff] }
 0x31c   : > { %v6172_v61 = vpack.c.bf16 %v1033_v52, %v1025_v51  ;;  %v1089_v46 = vld [vmem:[%s7579_s7 + $0x1928] sm:$0xff]  ;;  %v1099_v51 = vld [vmem:[%s7579_s7 + $0x1978] sm:$0xff]  ;;  %v1128_v22 = vld [vmem:[%s7579_s7 + $0x1a60] sm:$0xff] }
 0x31d   : > { %6155 = vmatpush1.bf16.msra.mxu0 %v6154_v62  ;;  %v1024_v62 = vld [vmem:[%s7579_s7 + $0x1720] sm:$0xff] }
 0x31e   : > { %6667 = vmatpush1.bf16.msra.mxu1 %v6666_v1  ;;  %6157 = vmatprep.subr.bf16.mxu0 %v6156_v2  ;;  %v1032_v1 = vld [vmem:[%s7579_s7 + $0x1760] sm:$0xff]  ;;  %v1026_v2 = vld [vmem:[%s7579_s7 + $0x1730] sm:$0xff] }
 0x31f   : > { %6669 = vmatprep.subr.bf16.mxu1 %v6668_v7  ;;  %v1049_v7 = vld [vmem:[%s7579_s7 + $0x17e8] sm:$0xff]  ;;  %v6174_v10 = vpack.c.bf16 %v1032_v1, %v1024_v62  ;;  %v6686_v11 = vpack.c.bf16 %v1034_v4, %v1026_v2  ;;  %v6700_v62 = vpack.c.bf16 %v1099_v51, %v1091_v49  ;;  %v1098_v1 = vld [vmem:[%s7579_s7 + $0x1970] sm:$0xff]  ;;  %v1115_v4 = vld [vmem:[%s7579_s7 + $0x19f8] sm:$0xff] }
 0x320   : > { %v6176_v50 = vpack.c.bf16 %v1049_v7, %v1041_v6  ;;  %v1105_v2 = vld [vmem:[%s7579_s7 + $0x19a8] sm:$0xff]  ;;  %v1136_v17 = vld [vmem:[%s7579_s7 + $0x1aa0] sm:$0xff] }
 0x321   : > { %6159 = vmatpush1.bf16.msra.mxu0 %v6158_v13  ;;  %v1040_v13 = vld [vmem:[%s7579_s7 + $0x17a0] sm:$0xff] }
 0x322   : > { %6671 = vmatpush1.bf16.msra.mxu1 %v6670_v14  ;;  %6161 = vmatprep.subr.bf16.mxu0 %v6160_v16  ;;  %v1048_v14 = vld [vmem:[%s7579_s7 + $0x17e0] sm:$0xff]  ;;  %v1042_v16 = vld [vmem:[%s7579_s7 + $0x17b0] sm:$0xff] }
 0x323   : > { %6673 = vmatprep.subr.bf16.mxu1 %v6672_v20  ;;  %v1065_v20 = vld [vmem:[%s7579_s7 + $0x1868] sm:$0xff]  ;;  %v6178_v26 = vpack.c.bf16 %v1048_v14, %v1040_v13  ;;  %v6690_v23 = vpack.c.bf16 %v1050_v25, %v1042_v16  ;;  %v1114_v13 = vld [vmem:[%s7579_s7 + $0x19f0] sm:$0xff]  ;;  %v1123_v16 = vld [vmem:[%s7579_s7 + $0x1a38] sm:$0xff] }
 0x324   : > { %v6180_v24 = vpack.c.bf16 %v1065_v20, %v1057_v19  ;;  %v1121_v14 = vld [vmem:[%s7579_s7 + $0x1a28] sm:$0xff]  ;;  %v1144_v35 = vld [vmem:[%s7579_s7 + $0x1ae0] sm:$0xff] }
 0x325   : > { %6163 = vmatpush1.bf16.msra.mxu0 %v6162_v27  ;;  %v1056_v27 = vld [vmem:[%s7579_s7 + $0x1820] sm:$0xff] }
 0x326   : > { %6675 = vmatpush1.bf16.msra.mxu1 %v6674_v28  ;;  %6165 = vmatprep.subr.bf16.mxu0 %v6164_v29  ;;  %v1064_v28 = vld [vmem:[%s7579_s7 + $0x1860] sm:$0xff]  ;;  %v1058_v29 = vld [vmem:[%s7579_s7 + $0x1830] sm:$0xff] }
 0x327   : > { %6677 = vmatprep.subr.bf16.mxu1 %v6676_v33  ;;  %v1081_v33 = vld [vmem:[%s7579_s7 + $0x18e8] sm:$0xff]  ;;  %v6182_v40 = vpack.c.bf16 %v1064_v28, %v1056_v27  ;;  %v6694_v41 = vpack.c.bf16 %v1066_v32, %v1058_v29  ;;  %v1139_v29 = vld [vmem:[%s7579_s7 + $0x1ab8] sm:$0xff]  ;;  %v6198_v32 = vpack.c.bf16 %v1128_v22, %v1120_v21  ;;  %v1152_v49 = vld [vmem:[%s7579_s7 + $0x1b20] sm:$0xff] }
 0x328   : > { %v6184_v37 = vpack.c.bf16 %v1081_v33, %v1073_v34  ;;  %v1137_v27 = vld [vmem:[%s7579_s7 + $0x1aa8] sm:$0xff]  ;;  %v1160_v51 = vld [vmem:[%s7579_s7 + $0x1b60] sm:$0xff] }
 0x329   : > { %6167 = vmatpush1.bf16.msra.mxu0 %v6166_v39  ;;  %v1072_v39 = vld [vmem:[%s7579_s7 + $0x18a0] sm:$0xff]  ;;  %v1145_v28 = vld [vmem:[%s7579_s7 + $0x1ae8] sm:$0xff] }
 0x32a   : > { %6679 = vmatpush1.bf16.msra.mxu1 %v6678_v42  ;;  %6169 = vmatprep.subr.bf16.mxu0 %v6168_v43  ;;  %v1080_v42 = vld [vmem:[%s7579_s7 + $0x18e0] sm:$0xff]  ;;  %v1074_v43 = vld [vmem:[%s7579_s7 + $0x18b0] sm:$0xff]  ;;  %v6200_v33 = vpack.c.bf16 %v1145_v28, %v1137_v27 }
 0x32b   : > { %6681 = vmatprep.subr.bf16.mxu1 %v6680_v48  ;;  %v1097_v48 = vld [vmem:[%s7579_s7 + $0x1968] sm:$0xff]  ;;  %v6186_v52 = vpack.c.bf16 %v1080_v42, %v1072_v39  ;;  %v6698_v54 = vpack.c.bf16 %v1082_v45, %v1074_v43  ;;  %v1155_v43 = vld [vmem:[%s7579_s7 + $0x1b38] sm:$0xff]  ;;  %v6202_v45 = vpack.c.bf16 %v1144_v35, %v1136_v17  ;;  %v278_v21 = vld [vmem:[%s7603_s4] sm:$0xff] }
 0x32c   : > { %v6188_v58 = vpack.c.bf16 %v1097_v48, %v1089_v46  ;;  %v1153_v39 = vld [vmem:[%s7579_s7 + $0x1b28] sm:$0xff]  ;;  %v1184_v27 = vld [vmem:[%s7579_s7 + $0x1c20] sm:$0xff]  ;;  %v1203_v35 = vld [vmem:[%s7579_s7 + $0x1cb8] sm:$0xff] }
 0x32d   : > { %6171 = vmatpush1.bf16.msra.mxu0 %v6170_v59  ;;  %v1088_v59 = vld [vmem:[%s7579_s7 + $0x1920] sm:$0xff]  ;;  %v1161_v42 = vld [vmem:[%s7579_s7 + $0x1b68] sm:$0xff] }
 0x32e   : > { %6683 = vmatpush1.bf16.msra.mxu1 %v6682_v60  ;;  %6173 = vmatprep.subr.bf16.mxu0 %v6172_v61  ;;  %v1096_v60 = vld [vmem:[%s7579_s7 + $0x1960] sm:$0xff]  ;;  %v1090_v61 = vld [vmem:[%s7579_s7 + $0x1930] sm:$0xff]  ;;  %v6204_v48 = vpack.c.bf16 %v1161_v42, %v1153_v39 }
 0x32f   : > { %6685 = vmatprep.subr.bf16.mxu1 %v6684_v3  ;;  %v1113_v3 = vld [vmem:[%s7579_s7 + $0x19e8] sm:$0xff]  ;;  %v6190_v6 = vpack.c.bf16 %v1096_v60, %v1088_v59  ;;  %v6702_v7 = vpack.c.bf16 %v1098_v1, %v1090_v61  ;;  %v1162_v59 = vld [vmem:[%s7579_s7 + $0x1b70] sm:$0xff]  ;;  %v1192_v28 = vld [vmem:[%s7579_s7 + $0x1c60] sm:$0xff] }
 0x330   : > { %v6192_v8 = vpack.c.bf16 %v1113_v3, %v1105_v2  ;;  %v1169_v60 = vld [vmem:[%s7579_s7 + $0x1ba8] sm:$0xff]  ;;  %v1171_v2 = vld [vmem:[%s7579_s7 + $0x1bb8] sm:$0xff]  ;;  %v1200_v42 = vld [vmem:[%s7579_s7 + $0x1ca0] sm:$0xff] }
 0x331   : > { %6175 = vmatpush1.bf16.msra.mxu0 %v6174_v10  ;;  %v1112_v10 = vld [vmem:[%s7579_s7 + $0x19e0] sm:$0xff]  ;;  %v1177_v61 = vld [vmem:[%s7579_s7 + $0x1be8] sm:$0xff]  ;;  %v1179_v3 = vld [vmem:[%s7579_s7 + $0x1bf8] sm:$0xff] }
 0x332   : > { %6687 = vmatpush1.bf16.msra.mxu1 %v6686_v11  ;;  %6177 = vmatprep.subr.bf16.mxu0 %v6176_v50  ;;  %v1106_v11 = vld [vmem:[%s7579_s7 + $0x19b0] sm:$0xff]  ;;  %v6194_v25 = vpack.c.bf16 %v1112_v10, %v1104_v9  ;;  %v6208_v9 = vpack.c.bf16 %v1177_v61, %v1169_v60  ;;  %v1168_v10 = vld [vmem:[%s7579_s7 + $0x1ba0] sm:$0xff] }
 0x333   : > { %6689 = vmatprep.subr.bf16.mxu1 %v6688_v18  ;;  %v1131_v18 = vld [vmem:[%s7579_s7 + $0x1a78] sm:$0xff]  ;;  %v6706_v19 = vpack.c.bf16 %v1114_v13, %v1106_v11  ;;  %v1176_v11 = vld [vmem:[%s7579_s7 + $0x1be0] sm:$0xff] }
 0x334   : > { %v6210_v22 = vpack.c.bf16 %v1176_v11, %v1168_v10  ;;  %v1216_v60 = vld [vmem:[%s7579_s7 + $0x1d20] sm:$0xff] }
 0x335   : > { %6179 = vmatpush1.bf16.msra.mxu0 %v6178_v26  ;;  %v1122_v26 = vld [vmem:[%s7579_s7 + $0x1a30] sm:$0xff]  ;;  %v1224_v61 = vld [vmem:[%s7579_s7 + $0x1d60] sm:$0xff] }
 0x336   : > { %6691 = vmatpush1.bf16.msra.mxu1 %v6690_v23  ;;  %6181 = vmatprep.subr.bf16.mxu0 %v6180_v24  ;;  %v6708_v23 = vpack.c.bf16 %v1131_v18, %v1123_v16  ;;  %v1130_v24 = vld [vmem:[%s7579_s7 + $0x1a70] sm:$0xff]  ;;  %v1185_v16 = vld [vmem:[%s7579_s7 + $0x1c28] sm:$0xff]  ;;  %v1232_v10 = vld [vmem:[%s7579_s7 + $0x1da0] sm:$0xff] }
 0x337   : > { %6693 = vmatprep.subr.bf16.mxu1 %v6692_v0  ;;  %v1147_v0 = vld [vmem:[%s7579_s7 + $0x1af8] sm:$0xff]  ;;  %v6710_v34 = vpack.c.bf16 %v1130_v24, %v1122_v26  ;;  %v1193_v18 = vld [vmem:[%s7579_s7 + $0x1c68] sm:$0xff]  ;;  %v1240_v11 = vld [vmem:[%s7579_s7 + $0x1de0] sm:$0xff] }
 0x338   : > { %3763 = vmatmul.mubr.f32.vlgmr.msra.gmra.mrb[2].mxu0 %v7915_v56  ;;  %v6212_v24 = vpack.c.bf16 %v1193_v18, %v1185_v16  ;;  %v1257_v16 = vld [vmem:[%s7579_s7 + $0x1e68] sm:$0xff]  ;;  %v1251_v18 = vld [vmem:[%s7579_s7 + $0x1e38] sm:$0xff] }
 0x339   : > { %6183 = vmatpush1.bf16.msra.mxu0 %v6182_v40  ;;  %4331 = vmatmul.mubr.f32.vlgmr.msra.gmra.mrb[2].mxu1 %v7915_v56  ;;  %v1107_v56 = vld [vmem:[%s7579_s7 + $0x19b8] sm:$0xff]  ;;  %v1138_v40 = vld [vmem:[%s7579_s7 + $0x1ab0] sm:$0xff] }
 0x33a   : > { %6695 = vmatpush1.bf16.msra.mxu1 %v6694_v41  ;;  %6185 = vmatprep.subr.bf16.mxu0 %v6184_v37  ;;  %v6704_v50 = vpack.c.bf16 %v1115_v4, %v1107_v56  ;;  %v6712_v41 = vpack.c.bf16 %v1147_v0, %v1139_v29  ;;  %v1146_v37 = vld [vmem:[%s7579_s7 + $0x1af0] sm:$0xff] }
 0x33b   : > { %6697 = vmatprep.subr.bf16.mxu1 %v6696_v44  ;;  %3833 = vmatprep.mubr.f32.mxu0 %v8063_v30  ;;  %v1163_v44 = vld [vmem:[%s7579_s7 + $0x1b78] sm:$0xff]  ;;  %v6714_v46 = vpack.c.bf16 %v1146_v37, %v1138_v40  ;;  %v1186_v29 = vld [vmem:[%s7579_s7 + $0x1c30] sm:$0xff] }
 0x33c   : > { %4401 = vmatprep.mubr.f32.mxu1 %v8063_v30  ;;  %v1129_v30 = vld [vmem:[%s7579_s7 + $0x1a68] sm:$0xff]  ;;  %v1211_v40 = vld [vmem:[%s7579_s7 + $0x1cf8] sm:$0xff] }
 0x33d   : > { %6187 = vmatpush1.bf16.msra.mxu0 %v6186_v52  ;;  %v6196_v20 = vpack.c.bf16 %v1129_v30, %v1121_v14  ;;  %v1154_v52 = vld [vmem:[%s7579_s7 + $0x1b30] sm:$0xff]  ;;  %v6720_v14 = vpack.c.bf16 %v1179_v3, %v1171_v2  ;;  %v1233_v3 = vld [vmem:[%s7579_s7 + $0x1da8] sm:$0xff] }
 0x33e   : > { %6699 = vmatpush1.bf16.msra.mxu1 %v6698_v54  ;;  %6189 = vmatprep.subr.bf16.mxu0 %v6188_v58  ;;  %v6716_v58 = vpack.c.bf16 %v1163_v44, %v1155_v43  ;;  %v1178_v30 = vld [vmem:[%s7579_s7 + $0x1bf0] sm:$0xff]  ;;  %v1208_v43 = vld [vmem:[%s7579_s7 + $0x1ce0] sm:$0xff] }
 0x33f   : > { %6701 = vmatprep.subr.bf16.mxu1 %v6700_v62  ;;  %v1202_v44 = vld [vmem:[%s7579_s7 + $0x1cb0] sm:$0xff] }
 0x340   : > { %v1226_v2 = vld [vmem:[%s7579_s7 + $0x1d70] sm:$0xff] }
 0x341   : > { %6191 = vmatpush1.bf16.msra.mxu0 %v6190_v6  ;;  %v6206_v6 = vpack.c.bf16 %v1160_v51, %v1152_v49  ;;  %v1225_v49 = vld [vmem:[%s7579_s7 + $0x1d68] sm:$0xff]  ;;  %v1219_v51 = vld [vmem:[%s7579_s7 + $0x1d38] sm:$0xff] }
 0x342   : > { %6703 = vmatpush1.bf16.msra.mxu1 %v6702_v7  ;;  %6193 = vmatprep.subr.bf16.mxu0 %v6192_v8  ;;  %v6718_v8 = vpack.c.bf16 %v1162_v59, %v1154_v52  ;;  %v1227_v52 = vld [vmem:[%s7579_s7 + $0x1d78] sm:$0xff] }
 0x343   : > { %6705 = vmatprep.subr.bf16.mxu1 %v6704_v50  ;;  %v1170_v50 = vld [vmem:[%s7579_s7 + $0x1bb0] sm:$0xff] }
 0x345   : > { %6195 = vmatpush1.bf16.msra.mxu0 %v6194_v25 }
 0x346   : > { %6707 = vmatpush1.bf16.msra.mxu1 %v6706_v19  ;;  %6197 = vmatprep.subr.bf16.mxu0 %v6196_v20  ;;  %v1187_v19 = vld [vmem:[%s7579_s7 + $0x1c38] sm:$0xff] }
 0x347   : > { %6709 = vmatprep.subr.bf16.mxu1 %v6708_v23  ;;  %v1195_v20 = vld [vmem:[%s7579_s7 + $0x1c78] sm:$0xff]  ;;  %v6722_v23 = vpack.c.bf16 %v1178_v30, %v1170_v50  ;;  %v1234_v50 = vld [vmem:[%s7579_s7 + $0x1db0] sm:$0xff]  ;;  %v1249_v30 = vld [vmem:[%s7579_s7 + $0x1e28] sm:$0xff] }
 0x348   : > { %v6724_v0 = vpack.c.bf16 %v1195_v20, %v1187_v19  ;;  %v6226_v19 = vpack.c.bf16 %v1240_v11, %v1232_v10  ;;  %v1313_v10 = vld [vmem:[%s7579_s7 + $0x2028] sm:$0xff] }
 0x349   : > { %6199 = vmatpush1.bf16.msra.mxu0 %v6198_v32  ;;  %v1194_v32 = vld [vmem:[%s7579_s7 + $0x1c70] sm:$0xff]  ;;  %v1321_v11 = vld [vmem:[%s7579_s7 + $0x2068] sm:$0xff] }
 0x34a   : > { %6711 = vmatpush1.bf16.msra.mxu1 %v6710_v34  ;;  %6201 = vmatprep.subr.bf16.mxu0 %v6200_v33  ;;  %v1201_v34 = vld [vmem:[%s7579_s7 + $0x1ca8] sm:$0xff]  ;;  %v6726_v37 = vpack.c.bf16 %v1194_v32, %v1186_v29  ;;  %v1275_v32 = vld [vmem:[%s7579_s7 + $0x1ef8] sm:$0xff] }
 0x34b   : > { %v2983_v54 = vpop.f32.mrb[0].mxu0  ;;  %6713 = vmatprep.subr.bf16.mxu1 %v6712_v41  ;;  %v1209_v33 = vld [vmem:[%s7579_s7 + $0x1ce8] sm:$0xff]  ;;  %v6214_v41 = vpack.c.bf16 %v1192_v28, %v1184_v27  ;;  %v1258_v27 = vld [vmem:[%s7579_s7 + $0x1e70] sm:$0xff] }
 0x34c   : > { %v3551_v62 = vpop.f32.mrb[0].mxu1  ;;  %v2985_v1 = vpop.f32.mrb[1].mxu0  ;;  %v6216_v39 = vpack.c.bf16 %v1209_v33, %v1201_v34  ;;  %v1265_v28 = vld [vmem:[%s7579_s7 + $0x1ea8] sm:$0xff] }
 0x34d   : > { %v4700_v56 = vcombine.low %v2983_v54, %v2985_v1  ;;  %v3553_v4 = vpop.f32.mrb[1].mxu1  ;;  %6203 = vmatpush1.bf16.msra.mxu0 %v6202_v45  ;;  %v6728_v45 = vpack.c.bf16 %v1211_v40, %v1203_v35  ;;  %v6218_v54 = vpack.c.bf16 %v1208_v43, %v1200_v42  ;;  %v6732_v1 = vpack.c.bf16 %v1227_v52, %v1219_v51  ;;  %v1273_v29 = vld [vmem:[%s7579_s7 + $0x1ee8] sm:$0xff]  ;;  %v1264_v35 = vld [vmem:[%s7579_s7 + $0x1ea0] sm:$0xff] }
 0x34e   : > { %v4701_v7 = vcombine.low %v3551_v62, %v3553_v4  ;;  %6715 = vmatpush1.bf16.msra.mxu1 %v6714_v46  ;;  %6205 = vmatprep.subr.bf16.mxu0 %v6204_v48  ;;  %v1210_v46 = vld [vmem:[%s7579_s7 + $0x1cf0] sm:$0xff]  ;;  %v1217_v48 = vld [vmem:[%s7579_s7 + $0x1d28] sm:$0xff]  ;;  %v1235_v4 = vld [vmem:[%s7579_s7 + $0x1db8] sm:$0xff] }
 0x34f   : > { %v4708_v13 = vrot.slane %v4700_v56, %v7703_v12  ;;  %6717 = vmatprep.subr.bf16.mxu1 %v6716_v58  ;;  %v6730_v58 = vpack.c.bf16 %v1210_v46, %v1202_v44  ;;  %v6220_v59 = vpack.c.bf16 %v1225_v49, %v1217_v48  ;;  %v1218_v62 = vld [vmem:[%s7579_s7 + $0x1d30] sm:$0xff]  ;;  %v1241_v56 = vld [vmem:[%s7579_s7 + $0x1de8] sm:$0xff]  ;;  %v1272_v40 = vld [vmem:[%s7579_s7 + $0x1ee0] sm:$0xff] }
 0x350   : > { %v4715_v25 = vrot.slane %v4701_v7, %v7703_v12  ;;  %v6222_v7 = vpack.c.bf16 %v1224_v61, %v1216_v60  ;;  %v1281_v42 = vld [vmem:[%s7579_s7 + $0x1f28] sm:$0xff]  ;;  %v1283_v44 = vld [vmem:[%s7579_s7 + $0x1f38] sm:$0xff]  ;;  %v6234_v46 = vpack.c.bf16 %v1272_v40, %v1264_v35  ;;  %v1280_v51 = vld [vmem:[%s7579_s7 + $0x1f20] sm:$0xff] }
 0x351   : > { %6207 = vmatpush1.bf16.msra.mxu0 %v6206_v6  ;;  %v1243_v6 = vld [vmem:[%s7579_s7 + $0x1df8] sm:$0xff]  ;;  %v1289_v43 = vld [vmem:[%s7579_s7 + $0x1f68] sm:$0xff]  ;;  %v1288_v52 = vld [vmem:[%s7579_s7 + $0x1f60] sm:$0xff] }
 0x352   : > { %v4716_v26 = vcombine.low %v4708_v13, %v4715_v25  ;;  %6719 = vmatpush1.bf16.msra.mxu1 %v6718_v8  ;;  %6209 = vmatprep.subr.bf16.mxu0 %v6208_v9  ;;  %v6734_v8 = vpack.c.bf16 %v1226_v2, %v1218_v62  ;;  %v6224_v9 = vpack.c.bf16 %v1241_v56, %v1233_v3  ;;  %v1259_v25 = vld [vmem:[%s7579_s7 + $0x1e78] sm:$0xff]  ;;  %v1297_v60 = vld [vmem:[%s7579_s7 + $0x1fa8] sm:$0xff] }
 0x353   : > { %6721 = vmatprep.subr.bf16.mxu1 %v6720_v14  ;;  %v6736_v13 = vpack.c.bf16 %v1243_v6, %v1235_v4  ;;  %v1242_v14 = vld [vmem:[%s7579_s7 + $0x1df0] sm:$0xff]  ;;  %v6236_v49 = vpack.c.bf16 %v1289_v43, %v1281_v42  ;;  %v1305_v61 = vld [vmem:[%s7579_s7 + $0x1fe8] sm:$0xff]  ;;  %v1299_v62 = vld [vmem:[%s7579_s7 + $0x1fb8] sm:$0xff]  ;;  %v6238_v2 = vpack.c.bf16 %v1288_v52, %v1280_v51 }
 0x354   : > { %v4736_v17 = vadd.f32 %v4716_v26, %v278_v21  ;;  %v6738_v20 = vpack.c.bf16 %v1242_v14, %v1234_v50  ;;  %v6228_v21 = vpack.c.bf16 %v1257_v16, %v1249_v30  ;;  %v1256_v26 = vld [vmem:[%s7579_s7 + $0x1e60] sm:$0xff]  ;;  %v6240_v56 = vpack.c.bf16 %v1305_v61, %v1297_v60  ;;  %v1315_v50 = vld [vmem:[%s7579_s7 + $0x2038] sm:$0xff]  ;;  %v1345_v35 = vld [vmem:[%s7579_s7 + $0x2128] sm:$0xff] }
 0x355   : > { %6211 = vmatpush1.bf16.msra.mxu0 %v6210_v22  ;;  %v1248_v22 = vld [vmem:[%s7579_s7 + $0x1e20] sm:$0xff]  ;;  %v6244_v16 = vpack.c.bf16 %v1321_v11, %v1313_v10  ;;  %v1353_v40 = vld [vmem:[%s7579_s7 + $0x2168] sm:$0xff] }
 0x356   : > { %4738 = vst [vmem:[%s7603_s4] sm:$0xff] %v4736_v17  ;;  %6723 = vmatpush1.bf16.msra.mxu1 %v6722_v23  ;;  %6213 = vmatprep.subr.bf16.mxu0 %v6212_v24  ;;  %v1250_v23 = vld [vmem:[%s7579_s7 + $0x1e30] sm:$0xff]  ;;  %v6740_v24 = vpack.c.bf16 %v1259_v25, %v1251_v18  ;;  %v6230_v34 = vpack.c.bf16 %v1256_v26, %v1248_v22  ;;  %v1296_v4 = vld [vmem:[%s7579_s7 + $0x1fa0] sm:$0xff]  ;;  %v1329_v22 = vld [vmem:[%s7579_s7 + $0x20a8] sm:$0xff] }
 0x357   : > { %6725 = vmatprep.subr.bf16.mxu1 %v6724_v0  ;;  %v1267_v0 = vld [vmem:[%s7579_s7 + $0x1eb8] sm:$0xff]  ;;  %v6742_v33 = vpack.c.bf16 %v1258_v27, %v1250_v23  ;;  %v6232_v17 = vpack.c.bf16 %v1273_v29, %v1265_v28  ;;  %v1304_v6 = vld [vmem:[%s7579_s7 + $0x1fe0] sm:$0xff]  ;;  %v1337_v26 = vld [vmem:[%s7579_s7 + $0x20e8] sm:$0xff]  ;;  %v6252_v43 = vpack.c.bf16 %v1353_v40, %v1345_v35 }
 0x358   : > { %v6242_v14 = vpack.c.bf16 %v1304_v6, %v1296_v4  ;;  %v1312_v18 = vld [vmem:[%s7579_s7 + $0x2020] sm:$0xff]  ;;  %v1331_v23 = vld [vmem:[%s7579_s7 + $0x20b8] sm:$0xff]  ;;  %v6248_v29 = vpack.c.bf16 %v1337_v26, %v1329_v22  ;;  %v1361_v51 = vld [vmem:[%s7579_s7 + $0x21a8] sm:$0xff] }
 0x359   : > { %6215 = vmatpush1.bf16.msra.mxu0 %v6214_v41  ;;  %v1266_v41 = vld [vmem:[%s7579_s7 + $0x1eb0] sm:$0xff]  ;;  %v1320_v25 = vld [vmem:[%s7579_s7 + $0x2060] sm:$0xff]  ;;  %v1369_v52 = vld [vmem:[%s7579_s7 + $0x21e8] sm:$0xff] }
 0x35a   : > { %6727 = vmatpush1.bf16.msra.mxu1 %v6726_v37  ;;  %6217 = vmatprep.subr.bf16.mxu0 %v6216_v39  ;;  %v6744_v37 = vpack.c.bf16 %v1275_v32, %v1267_v0  ;;  %v1274_v39 = vld [vmem:[%s7579_s7 + $0x1ef0] sm:$0xff]  ;;  %v6246_v27 = vpack.c.bf16 %v1320_v25, %v1312_v18  ;;  %v1328_v0 = vld [vmem:[%s7579_s7 + $0x20a0] sm:$0xff]  ;;  %v6256_v60 = vpack.c.bf16 %v1369_v52, %v1361_v51  ;;  %v1379_v4 = vld [vmem:[%s7579_s7 + $0x2238] sm:$0xff] }
 0x35b   : > { %6729 = vmatprep.subr.bf16.mxu1 %v6728_v45  ;;  %v1291_v45 = vld [vmem:[%s7579_s7 + $0x1f78] sm:$0xff]  ;;  %v6746_v48 = vpack.c.bf16 %v1274_v39, %v1266_v41  ;;  %v1336_v32 = vld [vmem:[%s7579_s7 + $0x20e0] sm:$0xff] }
 0x35c   : > { %v1347_v41 = vld [vmem:[%s7579_s7 + $0x2138] sm:$0xff]  ;;  %v6250_v39 = vpack.c.bf16 %v1336_v32, %v1328_v0  ;;  %v1360_v61 = vld [vmem:[%s7579_s7 + $0x21a0] sm:$0xff] }
 0x35d   : > { %6219 = vmatpush1.bf16.msra.mxu0 %v6218_v54  ;;  %v1282_v54 = vld [vmem:[%s7579_s7 + $0x1f30] sm:$0xff]  ;;  %v1387_v6 = vld [vmem:[%s7579_s7 + $0x2278] sm:$0xff]  ;;  %v1376_v10 = vld [vmem:[%s7579_s7 + $0x2220] sm:$0xff] }
 0x35e   : > { %6731 = vmatpush1.bf16.msra.mxu1 %v6730_v58  ;;  %6221 = vmatprep.subr.bf16.mxu0 %v6220_v59  ;;  %v6748_v58 = vpack.c.bf16 %v1291_v45, %v1283_v44  ;;  %v1290_v59 = vld [vmem:[%s7579_s7 + $0x1f70] sm:$0xff]  ;;  %v1344_v44 = vld [vmem:[%s7579_s7 + $0x2120] sm:$0xff]  ;;  %v1395_v18 = vld [vmem:[%s7579_s7 + $0x22b8] sm:$0xff] }
 0x35f   : > { %6733 = vmatprep.subr.bf16.mxu1 %v6732_v1  ;;  %v1307_v1 = vld [vmem:[%s7579_s7 + $0x1ff8] sm:$0xff]  ;;  %v6750_v3 = vpack.c.bf16 %v1290_v59, %v1282_v54  ;;  %v1352_v45 = vld [vmem:[%s7579_s7 + $0x2160] sm:$0xff] }
 0x360   : > { %v1371_v54 = vld [vmem:[%s7579_s7 + $0x21f8] sm:$0xff]  ;;  %v1384_v11 = vld [vmem:[%s7579_s7 + $0x2260] sm:$0xff] }
 0x361   : > { %6223 = vmatpush1.bf16.msra.mxu0 %v6222_v7  ;;  %v1298_v7 = vld [vmem:[%s7579_s7 + $0x1fb0] sm:$0xff]  ;;  %v1403_v25 = vld [vmem:[%s7579_s7 + $0x22f8] sm:$0xff]  ;;  %v1392_v22 = vld [vmem:[%s7579_s7 + $0x22a0] sm:$0xff] }
 0x362   : > { %6735 = vmatpush1.bf16.msra.mxu1 %v6734_v8  ;;  %6225 = vmatprep.subr.bf16.mxu0 %v6224_v9  ;;  %v6752_v8 = vpack.c.bf16 %v1307_v1, %v1299_v62  ;;  %v1306_v9 = vld [vmem:[%s7579_s7 + $0x1ff0] sm:$0xff]  ;;  %v1368_v62 = vld [vmem:[%s7579_s7 + $0x21e0] sm:$0xff]  ;;  %v1411_v0 = vld [vmem:[%s7579_s7 + $0x2338] sm:$0xff] }
 0x363   : > { %6737 = vmatprep.subr.bf16.mxu1 %v6736_v13  ;;  %v1323_v13 = vld [vmem:[%s7579_s7 + $0x2078] sm:$0xff]  ;;  %v6754_v30 = vpack.c.bf16 %v1306_v9, %v1298_v7  ;;  %v1362_v1 = vld [vmem:[%s7579_s7 + $0x21b0] sm:$0xff]  ;;  %v6258_v7 = vpack.c.bf16 %v1368_v62, %v1360_v61  ;;  %v1400_v26 = vld [vmem:[%s7579_s7 + $0x22e0] sm:$0xff] }
 0x364   : > { %v1419_v32 = vld [vmem:[%s7579_s7 + $0x2378] sm:$0xff]  ;;  %v1408_v35 = vld [vmem:[%s7579_s7 + $0x2320] sm:$0xff] }
 0x365   : > { %6227 = vmatpush1.bf16.msra.mxu0 %v6226_v19  ;;  %v1314_v19 = vld [vmem:[%s7579_s7 + $0x2030] sm:$0xff]  ;;  %v1416_v40 = vld [vmem:[%s7579_s7 + $0x2360] sm:$0xff]  ;;  %v1443_v61 = vld [vmem:[%s7579_s7 + $0x2438] sm:$0xff] }
 0x366   : > { %6739 = vmatpush1.bf16.msra.mxu1 %v6738_v20  ;;  %6229 = vmatprep.subr.bf16.mxu0 %v6228_v21  ;;  %v6756_v20 = vpack.c.bf16 %v1323_v13, %v1315_v50  ;;  %v1322_v21 = vld [vmem:[%s7579_s7 + $0x2070] sm:$0xff]  ;;  %v6772_v13 = vpack.c.bf16 %v1387_v6, %v1379_v4  ;;  %v1424_v51 = vld [vmem:[%s7579_s7 + $0x23a0] sm:$0xff]  ;;  %v1451_v62 = vld [vmem:[%s7579_s7 + $0x2478] sm:$0xff] }
 0x367   : > { %6741 = vmatprep.subr.bf16.mxu1 %v6740_v24  ;;  %v1339_v24 = vld [vmem:[%s7579_s7 + $0x20f8] sm:$0xff]  ;;  %v6758_v28 = vpack.c.bf16 %v1322_v21, %v1314_v19  ;;  %v1378_v50 = vld [vmem:[%s7579_s7 + $0x2230] sm:$0xff]  ;;  %v6262_v19 = vpack.c.bf16 %v1384_v11, %v1376_v10  ;;  %v1432_v52 = vld [vmem:[%s7579_s7 + $0x23e0] sm:$0xff]  ;;  %v6788_v6 = vpack.c.bf16 %v1451_v62, %v1443_v61 }
 0x368   : > { %v1442_v4 = vld [vmem:[%s7579_s7 + $0x2430] sm:$0xff]  ;;  %v1459_v10 = vld [vmem:[%s7579_s7 + $0x24b8] sm:$0xff] }
 0x369   : > { %6231 = vmatpush1.bf16.msra.mxu0 %v6230_v34  ;;  %v1330_v34 = vld [vmem:[%s7579_s7 + $0x20b0] sm:$0xff]  ;;  %v1467_v11 = vld [vmem:[%s7579_s7 + $0x24f8] sm:$0xff] }
 0x36a   : > { %6743 = vmatpush1.bf16.msra.mxu1 %v6742_v33  ;;  %6233 = vmatprep.subr.bf16.mxu0 %v6232_v17  ;;  %v6760_v33 = vpack.c.bf16 %v1339_v24, %v1331_v23  ;;  %v1338_v17 = vld [vmem:[%s7579_s7 + $0x20f0] sm:$0xff]  ;;  %v6776_v24 = vpack.c.bf16 %v1403_v25, %v1395_v18  ;;  %v6792_v25 = vpack.c.bf16 %v1467_v11, %v1459_v10 }
 0x36b   : > { %6745 = vmatprep.subr.bf16.mxu1 %v6744_v37  ;;  %v1355_v37 = vld [vmem:[%s7579_s7 + $0x2178] sm:$0xff]  ;;  %v6762_v42 = vpack.c.bf16 %v1338_v17, %v1330_v34  ;;  %v1394_v23 = vld [vmem:[%s7579_s7 + $0x22b0] sm:$0xff]  ;;  %v6266_v34 = vpack.c.bf16 %v1400_v26, %v1392_v22 }
 0x36c   : > { %v1458_v18 = vld [vmem:[%s7579_s7 + $0x24b0] sm:$0xff]  ;;  %v1475_v22 = vld [vmem:[%s7579_s7 + $0x2538] sm:$0xff] }
 0x36d   : > { %6235 = vmatpush1.bf16.msra.mxu0 %v6234_v46  ;;  %v1346_v46 = vld [vmem:[%s7579_s7 + $0x2130] sm:$0xff]  ;;  %v1483_v26 = vld [vmem:[%s7579_s7 + $0x2578] sm:$0xff] }
 0x36e   : > { %6747 = vmatpush1.bf16.msra.mxu1 %v6746_v48  ;;  %6237 = vmatprep.subr.bf16.mxu0 %v6236_v49  ;;  %v6764_v48 = vpack.c.bf16 %v1355_v37, %v1347_v41  ;;  %v1354_v49 = vld [vmem:[%s7579_s7 + $0x2170] sm:$0xff]  ;;  %v6780_v37 = vpack.c.bf16 %v1419_v32, %v1411_v0  ;;  %v6796_v32 = vpack.c.bf16 %v1483_v26, %v1475_v22 }
 0x36f   : > { %6749 = vmatprep.subr.bf16.mxu1 %v6748_v58  ;;  %v6254_v58 = vpack.c.bf16 %v1352_v45, %v1344_v44  ;;  %v6766_v59 = vpack.c.bf16 %v1354_v49, %v1346_v46  ;;  %v1410_v41 = vld [vmem:[%s7579_s7 + $0x2330] sm:$0xff]  ;;  %v1427_v44 = vld [vmem:[%s7579_s7 + $0x23b8] sm:$0xff]  ;;  %v6270_v46 = vpack.c.bf16 %v1416_v40, %v1408_v35 }
 0x370   : > { %v1435_v45 = vld [vmem:[%s7579_s7 + $0x23f8] sm:$0xff]  ;;  %v1474_v0 = vld [vmem:[%s7579_s7 + $0x2530] sm:$0xff] }
 0x371   : > { %6239 = vmatpush1.bf16.msra.mxu0 %v6238_v2  ;;  %v1491_v35 = vld [vmem:[%s7579_s7 + $0x25b8] sm:$0xff]  ;;  %v1506_v61 = vld [vmem:[%s7579_s7 + $0x2630] sm:$0xff] }
 0x372   : > { %6751 = vmatpush1.bf16.msra.mxu1 %v6750_v3  ;;  %6241 = vmatprep.subr.bf16.mxu0 %v6240_v56  ;;  %v1370_v3 = vld [vmem:[%s7579_s7 + $0x21f0] sm:$0xff]  ;;  %v1377_v56 = vld [vmem:[%s7579_s7 + $0x2228] sm:$0xff]  ;;  %v1499_v40 = vld [vmem:[%s7579_s7 + $0x25f8] sm:$0xff] }
 0x373   : > { %6753 = vmatprep.subr.bf16.mxu1 %v6752_v8  ;;  %v6770_v8 = vpack.c.bf16 %v1370_v3, %v1362_v1  ;;  %v6274_v1 = vpack.c.bf16 %v1432_v52, %v1424_v51  ;;  %v1507_v51 = vld [vmem:[%s7579_s7 + $0x2638] sm:$0xff]  ;;  %v1522_v10 = vld [vmem:[%s7579_s7 + $0x26b0] sm:$0xff] }
 0x374   : > { %v1515_v52 = vld [vmem:[%s7579_s7 + $0x2678] sm:$0xff]  ;;  %v1538_v22 = vld [vmem:[%s7579_s7 + $0x2730] sm:$0xff] }
 0x375   : > { %6243 = vmatpush1.bf16.msra.mxu0 %v6242_v14  ;;  %v1386_v14 = vld [vmem:[%s7579_s7 + $0x2270] sm:$0xff]  ;;  %v6804_v62 = vpack.c.bf16 %v1515_v52, %v1507_v51 }
 0x376   : > { %6755 = vmatpush1.bf16.msra.mxu1 %v6754_v30  ;;  %6245 = vmatprep.subr.bf16.mxu0 %v6244_v16  ;;  %v1393_v30 = vld [vmem:[%s7579_s7 + $0x22a8] sm:$0xff]  ;;  %v1570_v51 = vld [vmem:[%s7579_s7 + $0x2830] sm:$0xff] }
 0x377   : > { %6757 = vmatprep.subr.bf16.mxu1 %v6756_v20  ;;  %v1401_v16 = vld [vmem:[%s7579_s7 + $0x22e8] sm:$0xff]  ;;  %v6774_v20 = vpack.c.bf16 %v1386_v14, %v1378_v50 }
 0x378   : > { %3834 = vmatmul.mubr.f32.vlgmr.msra.gmra.mrb[2].mxu0 %v8051_v15  ;;  %v6264_v21 = vpack.c.bf16 %v1401_v16, %v1393_v30  ;;  %v1456_v30 = vld [vmem:[%s7579_s7 + $0x24a0] sm:$0xff] }
 0x379   : > { %6247 = vmatpush1.bf16.msra.mxu0 %v6246_v27  ;;  %4402 = vmatmul.mubr.f32.vlgmr.msra.gmra.mrb[2].mxu1 %v8051_v15  ;;  %v1363_v15 = vld [vmem:[%s7579_s7 + $0x21b8] sm:$0xff]  ;;  %v1402_v27 = vld [vmem:[%s7579_s7 + $0x22f0] sm:$0xff]  ;;  %v1464_v16 = vld [vmem:[%s7579_s7 + $0x24e0] sm:$0xff] }
 0x37a   : > { %6759 = vmatpush1.bf16.msra.mxu1 %v6758_v28  ;;  %6249 = vmatprep.subr.bf16.mxu0 %v6248_v29  ;;  %v6768_v2 = vpack.c.bf16 %v1371_v54, %v1363_v15  ;;  %v1409_v28 = vld [vmem:[%s7579_s7 + $0x2328] sm:$0xff]  ;;  %v1426_v15 = vld [vmem:[%s7579_s7 + $0x23b0] sm:$0xff]  ;;  %v6784_v54 = vpack.c.bf16 %v1435_v45, %v1427_v44  ;;  %v6800_v45 = vpack.c.bf16 %v1499_v40, %v1491_v35 }
 0x37b   : > { %6761 = vmatprep.subr.bf16.mxu1 %v6760_v33  ;;  %3904 = vmatprep.mubr.f32.mxu0 %v8206_v5  ;;  %v1417_v29 = vld [vmem:[%s7579_s7 + $0x2368] sm:$0xff]  ;;  %v6778_v33 = vpack.c.bf16 %v1402_v27, %v1394_v23  ;;  %v6282_v23 = vpack.c.bf16 %v1464_v16, %v1456_v30  ;;  %v1490_v44 = vld [vmem:[%s7579_s7 + $0x25b0] sm:$0xff]  ;;  %v1539_v30 = vld [vmem:[%s7579_s7 + $0x2738] sm:$0xff] }
 0x37c   : > { %4472 = vmatprep.mubr.f32.mxu1 %v8206_v5  ;;  %v1385_v5 = vld [vmem:[%s7579_s7 + $0x2268] sm:$0xff]  ;;  %v6268_v17 = vpack.c.bf16 %v1417_v29, %v1409_v28  ;;  %v1472_v28 = vld [vmem:[%s7579_s7 + $0x2520] sm:$0xff]  ;;  %v1547_v16 = vld [vmem:[%s7579_s7 + $0x2778] sm:$0xff] }
 0x37d   : > { %6251 = vmatpush1.bf16.msra.mxu0 %v6250_v39  ;;  %v6260_v9 = vpack.c.bf16 %v1385_v5, %v1377_v56  ;;  %v1418_v39 = vld [vmem:[%s7579_s7 + $0x2370] sm:$0xff]  ;;  %v1440_v56 = vld [vmem:[%s7579_s7 + $0x2420] sm:$0xff]  ;;  %v6812_v26 = vpack.c.bf16 %v1547_v16, %v1539_v30 }
 0x37e   : > { %6763 = vmatpush1.bf16.msra.mxu1 %v6762_v42  ;;  %6253 = vmatprep.subr.bf16.mxu0 %v6252_v43  ;;  %v1425_v42 = vld [vmem:[%s7579_s7 + $0x23a8] sm:$0xff]  ;;  %v1448_v5 = vld [vmem:[%s7579_s7 + $0x2460] sm:$0xff]  ;;  %v1554_v35 = vld [vmem:[%s7579_s7 + $0x27b0] sm:$0xff] }
 0x37f   : > { %6765 = vmatprep.subr.bf16.mxu1 %v6764_v48  ;;  %v1433_v43 = vld [vmem:[%s7579_s7 + $0x23e8] sm:$0xff]  ;;  %v6782_v48 = vpack.c.bf16 %v1418_v39, %v1410_v41  ;;  %v6278_v50 = vpack.c.bf16 %v1448_v5, %v1440_v56  ;;  %v1480_v29 = vld [vmem:[%s7579_s7 + $0x2560] sm:$0xff]  ;;  %v1523_v56 = vld [vmem:[%s7579_s7 + $0x26b8] sm:$0xff] }
 0x380   : > { %v6272_v49 = vpack.c.bf16 %v1433_v43, %v1425_v42  ;;  %v6286_v41 = vpack.c.bf16 %v1480_v29, %v1472_v28  ;;  %v1488_v42 = vld [vmem:[%s7579_s7 + $0x25a0] sm:$0xff]  ;;  %v1531_v5 = vld [vmem:[%s7579_s7 + $0x26f8] sm:$0xff]  ;;  %v1602_v30 = vld [vmem:[%s7579_s7 + $0x2930] sm:$0xff] }
 0x381   : > { %6255 = vmatpush1.bf16.msra.mxu0 %v6254_v58  ;;  %v1434_v58 = vld [vmem:[%s7579_s7 + $0x23f0] sm:$0xff]  ;;  %v1496_v43 = vld [vmem:[%s7579_s7 + $0x25e0] sm:$0xff]  ;;  %v6808_v11 = vpack.c.bf16 %v1531_v5, %v1523_v56  ;;  %v1555_v28 = vld [vmem:[%s7579_s7 + $0x27b8] sm:$0xff] }
 0x382   : > { %6767 = vmatpush1.bf16.msra.mxu1 %v6766_v59  ;;  %6257 = vmatprep.subr.bf16.mxu0 %v6256_v60  ;;  %v1441_v59 = vld [vmem:[%s7579_s7 + $0x2428] sm:$0xff]  ;;  %v1563_v29 = vld [vmem:[%s7579_s7 + $0x27f8] sm:$0xff]  ;;  %v1586_v56 = vld [vmem:[%s7579_s7 + $0x28b0] sm:$0xff] }
 0x383   : > { %6769 = vmatprep.subr.bf16.mxu1 %v6768_v2  ;;  %v1449_v60 = vld [vmem:[%s7579_s7 + $0x2468] sm:$0xff]  ;;  %v6786_v2 = vpack.c.bf16 %v1434_v58, %v1426_v15  ;;  %v6290_v15 = vpack.c.bf16 %v1496_v43, %v1488_v42  ;;  %v6816_v40 = vpack.c.bf16 %v1563_v29, %v1555_v28  ;;  %v1571_v42 = vld [vmem:[%s7579_s7 + $0x2838] sm:$0xff]  ;;  %v1626_v29 = vld [vmem:[%s7579_s7 + $0x29f0] sm:$0xff] }
 0x384   : > { %v6276_v3 = vpack.c.bf16 %v1449_v60, %v1441_v59  ;;  %v1504_v59 = vld [vmem:[%s7579_s7 + $0x2620] sm:$0xff]  ;;  %v1579_v43 = vld [vmem:[%s7579_s7 + $0x2878] sm:$0xff] }
 0x385   : > { %6259 = vmatpush1.bf16.msra.mxu0 %v6258_v7  ;;  %v1450_v7 = vld [vmem:[%s7579_s7 + $0x2470] sm:$0xff]  ;;  %v1512_v60 = vld [vmem:[%s7579_s7 + $0x2660] sm:$0xff]  ;;  %v6820_v52 = vpack.c.bf16 %v1579_v43, %v1571_v42  ;;  %v1649_v43 = vld [vmem:[%s7579_s7 + $0x2aa8] sm:$0xff] }
 0x386   : > { %6771 = vmatpush1.bf16.msra.mxu1 %v6770_v8  ;;  %6261 = vmatprep.subr.bf16.mxu0 %v6260_v9  ;;  %v1457_v8 = vld [vmem:[%s7579_s7 + $0x24a8] sm:$0xff]  ;;  %v1642_v42 = vld [vmem:[%s7579_s7 + $0x2a70] sm:$0xff] }
 0x387   : > { %6773 = vmatprep.subr.bf16.mxu1 %v6772_v13  ;;  %v1465_v9 = vld [vmem:[%s7579_s7 + $0x24e8] sm:$0xff]  ;;  %v6790_v13 = vpack.c.bf16 %v1450_v7, %v1442_v4  ;;  %v6294_v4 = vpack.c.bf16 %v1512_v60, %v1504_v59  ;;  %v1587_v59 = vld [vmem:[%s7579_s7 + $0x28b8] sm:$0xff] }
 0x388   : > { %v6280_v14 = vpack.c.bf16 %v1465_v9, %v1457_v8  ;;  %v1520_v8 = vld [vmem:[%s7579_s7 + $0x26a0] sm:$0xff]  ;;  %v1595_v60 = vld [vmem:[%s7579_s7 + $0x28f8] sm:$0xff] }
 0x389   : > { %6263 = vmatpush1.bf16.msra.mxu0 %v6262_v19  ;;  %v1466_v19 = vld [vmem:[%s7579_s7 + $0x24f0] sm:$0xff]  ;;  %v1528_v9 = vld [vmem:[%s7579_s7 + $0x26e0] sm:$0xff]  ;;  %v6824_v5 = vpack.c.bf16 %v1595_v60, %v1587_v59  ;;  %v1665_v60 = vld [vmem:[%s7579_s7 + $0x2b28] sm:$0xff] }
 0x38a   : > { %6775 = vmatpush1.bf16.msra.mxu1 %v6774_v20  ;;  %6265 = vmatprep.subr.bf16.mxu0 %v6264_v21  ;;  %v1473_v20 = vld [vmem:[%s7579_s7 + $0x2528] sm:$0xff]  ;;  %v1658_v59 = vld [vmem:[%s7579_s7 + $0x2af0] sm:$0xff] }
 0x38b   : > { %6777 = vmatprep.subr.bf16.mxu1 %v6776_v24  ;;  %v1481_v21 = vld [vmem:[%s7579_s7 + $0x2568] sm:$0xff]  ;;  %v6794_v24 = vpack.c.bf16 %v1466_v19, %v1458_v18  ;;  %v6298_v18 = vpack.c.bf16 %v1528_v9, %v1520_v8  ;;  %v1603_v8 = vld [vmem:[%s7579_s7 + $0x2938] sm:$0xff] }
 0x38c   : > { %v6284_v27 = vpack.c.bf16 %v1481_v21, %v1473_v20  ;;  %v1536_v20 = vld [vmem:[%s7579_s7 + $0x2720] sm:$0xff]  ;;  %v1611_v9 = vld [vmem:[%s7579_s7 + $0x2978] sm:$0xff] }
 0x38d   : > { %6267 = vmatpush1.bf16.msra.mxu0 %v6266_v34  ;;  %v1482_v34 = vld [vmem:[%s7579_s7 + $0x2570] sm:$0xff]  ;;  %v1544_v21 = vld [vmem:[%s7579_s7 + $0x2760] sm:$0xff]  ;;  %v6828_v16 = vpack.c.bf16 %v1611_v9, %v1603_v8  ;;  %v1681_v9 = vld [vmem:[%s7579_s7 + $0x2ba8] sm:$0xff] }
 0x38e   : > { %6779 = vmatpush1.bf16.msra.mxu1 %v6778_v33  ;;  %6269 = vmatprep.subr.bf16.mxu0 %v6268_v17  ;;  %v1489_v33 = vld [vmem:[%s7579_s7 + $0x25a8] sm:$0xff]  ;;  %v1674_v8 = vld [vmem:[%s7579_s7 + $0x2b70] sm:$0xff] }
 0x38f   : > { %6781 = vmatprep.subr.bf16.mxu1 %v6780_v37  ;;  %v1497_v17 = vld [vmem:[%s7579_s7 + $0x25e8] sm:$0xff]  ;;  %v6798_v37 = vpack.c.bf16 %v1482_v34, %v1474_v0  ;;  %v6302_v0 = vpack.c.bf16 %v1544_v21, %v1536_v20  ;;  %v1627_v20 = vld [vmem:[%s7579_s7 + $0x29f8] sm:$0xff] }
 0x390   : > { %v6288_v39 = vpack.c.bf16 %v1497_v17, %v1489_v33  ;;  %v1552_v33 = vld [vmem:[%s7579_s7 + $0x27a0] sm:$0xff] }
 0x391   : > { %6271 = vmatpush1.bf16.msra.mxu0 %v6270_v46  ;;  %v1498_v46 = vld [vmem:[%s7579_s7 + $0x25f0] sm:$0xff]  ;;  %v1560_v17 = vld [vmem:[%s7579_s7 + $0x27e0] sm:$0xff] }
 0x392   : > { %6783 = vmatpush1.bf16.msra.mxu1 %v6782_v48  ;;  %6273 = vmatprep.subr.bf16.mxu0 %v6272_v49  ;;  %v1505_v48 = vld [vmem:[%s7579_s7 + $0x2628] sm:$0xff] }
 0x393   : > { %6785 = vmatprep.subr.bf16.mxu1 %v6784_v54  ;;  %v1513_v49 = vld [vmem:[%s7579_s7 + $0x2668] sm:$0xff]  ;;  %v6802_v54 = vpack.c.bf16 %v1498_v46, %v1490_v44  ;;  %v6306_v44 = vpack.c.bf16 %v1560_v17, %v1552_v33 }
 0x394   : > { %v6292_v58 = vpack.c.bf16 %v1513_v49, %v1505_v48  ;;  %v1568_v48 = vld [vmem:[%s7579_s7 + $0x2820] sm:$0xff] }
 0x395   : > { %6275 = vmatpush1.bf16.msra.mxu0 %v6274_v1  ;;  %v1514_v1 = vld [vmem:[%s7579_s7 + $0x2670] sm:$0xff]  ;;  %v1576_v49 = vld [vmem:[%s7579_s7 + $0x2860] sm:$0xff] }
 0x396   : > { %6787 = vmatpush1.bf16.msra.mxu1 %v6786_v2  ;;  %6277 = vmatprep.subr.bf16.mxu0 %v6276_v3  ;;  %v1521_v2 = vld [vmem:[%s7579_s7 + $0x26a8] sm:$0xff] }
 0x397   : > { %6789 = vmatprep.subr.bf16.mxu1 %v6788_v6  ;;  %v1529_v3 = vld [vmem:[%s7579_s7 + $0x26e8] sm:$0xff]  ;;  %v6806_v6 = vpack.c.bf16 %v1514_v1, %v1506_v61  ;;  %v6310_v61 = vpack.c.bf16 %v1576_v49, %v1568_v48 }
 0x398   : > { %v6296_v7 = vpack.c.bf16 %v1529_v3, %v1521_v2  ;;  %v1584_v2 = vld [vmem:[%s7579_s7 + $0x28a0] sm:$0xff] }
 0x399   : > { %6279 = vmatpush1.bf16.msra.mxu0 %v6278_v50  ;;  %v1530_v50 = vld [vmem:[%s7579_s7 + $0x26f0] sm:$0xff]  ;;  %v1592_v3 = vld [vmem:[%s7579_s7 + $0x28e0] sm:$0xff] }
 0x39a   : > { %6791 = vmatpush1.bf16.msra.mxu1 %v6790_v13  ;;  %6281 = vmatprep.subr.bf16.mxu0 %v6280_v14  ;;  %v1537_v13 = vld [vmem:[%s7579_s7 + $0x2728] sm:$0xff] }
 0x39b   : > { %6793 = vmatprep.subr.bf16.mxu1 %v6792_v25  ;;  %v1545_v14 = vld [vmem:[%s7579_s7 + $0x2768] sm:$0xff]  ;;  %v6810_v25 = vpack.c.bf16 %v1530_v50, %v1522_v10  ;;  %v6314_v10 = vpack.c.bf16 %v1592_v3, %v1584_v2 }
 0x39c   : > { %v6300_v19 = vpack.c.bf16 %v1545_v14, %v1537_v13  ;;  %v1600_v13 = vld [vmem:[%s7579_s7 + $0x2920] sm:$0xff] }
 0x39d   : > { %6283 = vmatpush1.bf16.msra.mxu0 %v6282_v23  ;;  %v1546_v23 = vld [vmem:[%s7579_s7 + $0x2770] sm:$0xff]  ;;  %v1608_v14 = vld [vmem:[%s7579_s7 + $0x2960] sm:$0xff] }
 0x39e   : > { %6795 = vmatpush1.bf16.msra.mxu1 %v6794_v24  ;;  %6285 = vmatprep.subr.bf16.mxu0 %v6284_v27  ;;  %v1553_v24 = vld [vmem:[%s7579_s7 + $0x27a8] sm:$0xff]  ;;  %v6318_v21 = vpack.c.bf16 %v1608_v14, %v1600_v13 }
 0x39f   : > { %6797 = vmatprep.subr.bf16.mxu1 %v6796_v32  ;;  %v1561_v27 = vld [vmem:[%s7579_s7 + $0x27e8] sm:$0xff]  ;;  %v6814_v32 = vpack.c.bf16 %v1546_v23, %v1538_v22  ;;  %v1616_v23 = vld [vmem:[%s7579_s7 + $0x29a0] sm:$0xff] }
 0x3a0   : > { %v6304_v34 = vpack.c.bf16 %v1561_v27, %v1553_v24  ;;  %v1624_v24 = vld [vmem:[%s7579_s7 + $0x29e0] sm:$0xff]  ;;  %v1618_v27 = vld [vmem:[%s7579_s7 + $0x29b0] sm:$0xff] }
 0x3a1   : > { %6287 = vmatpush1.bf16.msra.mxu0 %v6286_v41  ;;  %v1562_v41 = vld [vmem:[%s7579_s7 + $0x27f0] sm:$0xff]  ;;  %v6322_v33 = vpack.c.bf16 %v1624_v24, %v1616_v23  ;;  %v6834_v17 = vpack.c.bf16 %v1626_v29, %v1618_v27  ;;  %v1704_v29 = vld [vmem:[%s7579_s7 + $0x2c60] sm:$0xff] }
 0x3a2   : > { %6799 = vmatpush1.bf16.msra.mxu1 %v6798_v37  ;;  %6289 = vmatprep.subr.bf16.mxu0 %v6288_v39  ;;  %v1569_v37 = vld [vmem:[%s7579_s7 + $0x2828] sm:$0xff] }
 0x3a3   : > { %6801 = vmatprep.subr.bf16.mxu1 %v6800_v45  ;;  %v1577_v39 = vld [vmem:[%s7579_s7 + $0x2868] sm:$0xff]  ;;  %v6818_v45 = vpack.c.bf16 %v1562_v41, %v1554_v35  ;;  %v1640_v41 = vld [vmem:[%s7579_s7 + $0x2a60] sm:$0xff] }
 0x3a4   : > { %v6308_v46 = vpack.c.bf16 %v1577_v39, %v1569_v37  ;;  %v1634_v37 = vld [vmem:[%s7579_s7 + $0x2a30] sm:$0xff] }
 0x3a5   : > { %6291 = vmatpush1.bf16.msra.mxu0 %v6290_v15  ;;  %v1578_v15 = vld [vmem:[%s7579_s7 + $0x2870] sm:$0xff]  ;;  %v6838_v49 = vpack.c.bf16 %v1642_v42, %v1634_v37  ;;  %v1720_v42 = vld [vmem:[%s7579_s7 + $0x2ce0] sm:$0xff] }
 0x3a6   : > { %6803 = vmatpush1.bf16.msra.mxu1 %v6802_v54  ;;  %6293 = vmatprep.subr.bf16.mxu0 %v6292_v58  ;;  %v1585_v54 = vld [vmem:[%s7579_s7 + $0x28a8] sm:$0xff] }
 0x3a7   : > { %6805 = vmatprep.subr.bf16.mxu1 %v6804_v62  ;;  %v1593_v58 = vld [vmem:[%s7579_s7 + $0x28e8] sm:$0xff]  ;;  %v6822_v62 = vpack.c.bf16 %v1578_v15, %v1570_v51  ;;  %v1656_v15 = vld [vmem:[%s7579_s7 + $0x2ae0] sm:$0xff] }
 0x3a8   : > { %v6312_v1 = vpack.c.bf16 %v1593_v58, %v1585_v54  ;;  %v1650_v54 = vld [vmem:[%s7579_s7 + $0x2ab0] sm:$0xff] }
 0x3a9   : > { %6295 = vmatpush1.bf16.msra.mxu0 %v6294_v4  ;;  %v1594_v4 = vld [vmem:[%s7579_s7 + $0x28f0] sm:$0xff]  ;;  %v6842_v3 = vpack.c.bf16 %v1658_v59, %v1650_v54  ;;  %v1736_v59 = vld [vmem:[%s7579_s7 + $0x2d60] sm:$0xff] }
 0x3aa   : > { %6807 = vmatpush1.bf16.msra.mxu1 %v6806_v6  ;;  %6297 = vmatprep.subr.bf16.mxu0 %v6296_v7  ;;  %v1601_v6 = vld [vmem:[%s7579_s7 + $0x2928] sm:$0xff] }
 0x3ab   : > { %6809 = vmatprep.subr.bf16.mxu1 %v6808_v11  ;;  %v1609_v7 = vld [vmem:[%s7579_s7 + $0x2968] sm:$0xff]  ;;  %v6826_v11 = vpack.c.bf16 %v1594_v4, %v1586_v56  ;;  %v1672_v4 = vld [vmem:[%s7579_s7 + $0x2b60] sm:$0xff] }
 0x3ac   : > { %v6316_v50 = vpack.c.bf16 %v1609_v7, %v1601_v6  ;;  %v1666_v6 = vld [vmem:[%s7579_s7 + $0x2b30] sm:$0xff] }
 0x3ad   : > { %6299 = vmatpush1.bf16.msra.mxu0 %v6298_v18  ;;  %v1610_v18 = vld [vmem:[%s7579_s7 + $0x2970] sm:$0xff]  ;;  %v6846_v14 = vpack.c.bf16 %v1674_v8, %v1666_v6  ;;  %v1752_v8 = vld [vmem:[%s7579_s7 + $0x2de0] sm:$0xff] }
 0x3ae   : > { %6811 = vmatpush1.bf16.msra.mxu1 %v6810_v25  ;;  %6301 = vmatprep.subr.bf16.mxu0 %v6300_v19  ;;  %v1617_v25 = vld [vmem:[%s7579_s7 + $0x29a8] sm:$0xff]  ;;  %v6830_v22 = vpack.c.bf16 %v1610_v18, %v1602_v30  ;;  %v1688_v18 = vld [vmem:[%s7579_s7 + $0x2be0] sm:$0xff] }
 0x3af   : > { %6813 = vmatprep.subr.bf16.mxu1 %v6812_v26  ;;  %v1625_v19 = vld [vmem:[%s7579_s7 + $0x29e8] sm:$0xff] }
 0x3b0   : > { %v6320_v26 = vpack.c.bf16 %v1625_v19, %v1617_v25  ;;  %v1682_v25 = vld [vmem:[%s7579_s7 + $0x2bb0] sm:$0xff] }
 0x3b1   : > { %6303 = vmatpush1.bf16.msra.mxu0 %v6302_v0  ;;  %v1633_v0 = vld [vmem:[%s7579_s7 + $0x2a28] sm:$0xff] }
 0x3b2   : > { %6815 = vmatpush1.bf16.msra.mxu1 %v6814_v32  ;;  %6305 = vmatprep.subr.bf16.mxu0 %v6304_v34  ;;  %v1635_v32 = vld [vmem:[%s7579_s7 + $0x2a38] sm:$0xff] }
 0x3b3   : > { %6817 = vmatprep.subr.bf16.mxu1 %v6816_v40  ;;  %v1643_v34 = vld [vmem:[%s7579_s7 + $0x2a78] sm:$0xff]  ;;  %v1632_v40 = vld [vmem:[%s7579_s7 + $0x2a20] sm:$0xff] }
 0x3b4   : > { %v6836_v39 = vpack.c.bf16 %v1643_v34, %v1635_v32  ;;  %v6326_v48 = vpack.c.bf16 %v1640_v41, %v1632_v40  ;;  %v1706_v32 = vld [vmem:[%s7579_s7 + $0x2c70] sm:$0xff]  ;;  %v1713_v34 = vld [vmem:[%s7579_s7 + $0x2ca8] sm:$0xff] }
 0x3b5   : > { %6307 = vmatpush1.bf16.msra.mxu0 %v6306_v44  ;;  %v1657_v44 = vld [vmem:[%s7579_s7 + $0x2ae8] sm:$0xff] }
 0x3b6   : > { %6819 = vmatpush1.bf16.msra.mxu1 %v6818_v45  ;;  %6309 = vmatprep.subr.bf16.mxu0 %v6308_v46  ;;  %v1651_v45 = vld [vmem:[%s7579_s7 + $0x2ab8] sm:$0xff]  ;;  %v6328_v51 = vpack.c.bf16 %v1657_v44, %v1649_v43  ;;  %v1714_v43 = vld [vmem:[%s7579_s7 + $0x2cb0] sm:$0xff] }
 0x3b7   : > { %6821 = vmatprep.subr.bf16.mxu1 %v6820_v52  ;;  %v1659_v46 = vld [vmem:[%s7579_s7 + $0x2af8] sm:$0xff]  ;;  %v1648_v52 = vld [vmem:[%s7579_s7 + $0x2aa0] sm:$0xff] }
 0x3b8   : > { %3905 = vmatmul.mubr.f32.vlgmr.msra.gmra.mrb[2].mxu0 %v8194_v53  ;;  %v6840_v58 = vpack.c.bf16 %v1659_v46, %v1651_v45  ;;  %v6330_v2 = vpack.c.bf16 %v1656_v15, %v1648_v52  ;;  %v1722_v45 = vld [vmem:[%s7579_s7 + $0x2cf0] sm:$0xff]  ;;  %v1729_v46 = vld [vmem:[%s7579_s7 + $0x2d28] sm:$0xff] }
 0x3b9   : > { %6311 = vmatpush1.bf16.msra.mxu0 %v6310_v61  ;;  %4473 = vmatmul.mubr.f32.vlgmr.msra.gmra.mrb[2].mxu1 %v8194_v53  ;;  %v1619_v53 = vld [vmem:[%s7579_s7 + $0x29b8] sm:$0xff]  ;;  %v1673_v61 = vld [vmem:[%s7579_s7 + $0x2b68] sm:$0xff]  ;;  %v6858_v15 = vpack.c.bf16 %v1722_v45, %v1714_v43  ;;  %v1800_v45 = vld [vmem:[%s7579_s7 + $0x2f60] sm:$0xff] }
 0x3ba   : > { %6823 = vmatpush1.bf16.msra.mxu1 %v6822_v62  ;;  %6313 = vmatprep.subr.bf16.mxu0 %v6312_v1  ;;  %v6832_v28 = vpack.c.bf16 %v1627_v20, %v1619_v53  ;;  %v1667_v62 = vld [vmem:[%s7579_s7 + $0x2b38] sm:$0xff]  ;;  %v6332_v56 = vpack.c.bf16 %v1673_v61, %v1665_v60  ;;  %v1690_v53 = vld [vmem:[%s7579_s7 + $0x2bf0] sm:$0xff]  ;;  %v1697_v20 = vld [vmem:[%s7579_s7 + $0x2c28] sm:$0xff] }
 0x3bb   : > { %6825 = vmatprep.subr.bf16.mxu1 %v6824_v5  ;;  %3975 = vmatprep.mubr.f32.mxu0 %v8347_v55  ;;  %v1675_v1 = vld [vmem:[%s7579_s7 + $0x2b78] sm:$0xff]  ;;  %v1664_v5 = vld [vmem:[%s7579_s7 + $0x2b20] sm:$0xff]  ;;  %v6850_v24 = vpack.c.bf16 %v1690_v53, %v1682_v25  ;;  %v1730_v60 = vld [vmem:[%s7579_s7 + $0x2d30] sm:$0xff] }
 0x3bc   : > { %4543 = vmatprep.mubr.f32.mxu1 %v8347_v55  ;;  %v1641_v55 = vld [vmem:[%s7579_s7 + $0x2a68] sm:$0xff]  ;;  %v6844_v7 = vpack.c.bf16 %v1675_v1, %v1667_v62  ;;  %v6334_v13 = vpack.c.bf16 %v1672_v4, %v1664_v5  ;;  %v1738_v62 = vld [vmem:[%s7579_s7 + $0x2d70] sm:$0xff]  ;;  %v1768_v53 = vld [vmem:[%s7579_s7 + $0x2e60] sm:$0xff] }
 0x3bd   : > { %6315 = vmatpush1.bf16.msra.mxu0 %v6314_v10  ;;  %v6324_v35 = vpack.c.bf16 %v1641_v55, %v1633_v0  ;;  %v1689_v10 = vld [vmem:[%s7579_s7 + $0x2be8] sm:$0xff]  ;;  %v1698_v0 = vld [vmem:[%s7579_s7 + $0x2c30] sm:$0xff]  ;;  %v6862_v4 = vpack.c.bf16 %v1738_v62, %v1730_v60  ;;  %v1816_v62 = vld [vmem:[%s7579_s7 + $0x2fe0] sm:$0xff] }
 0x3be   : > { %6827 = vmatpush1.bf16.msra.mxu1 %v6826_v11  ;;  %6317 = vmatprep.subr.bf16.mxu0 %v6316_v50  ;;  %v1683_v11 = vld [vmem:[%s7579_s7 + $0x2bb8] sm:$0xff]  ;;  %v6336_v30 = vpack.c.bf16 %v1689_v10, %v1681_v9  ;;  %v6854_v41 = vpack.c.bf16 %v1706_v32, %v1698_v0  ;;  %v1745_v1 = vld [vmem:[%s7579_s7 + $0x2da8] sm:$0xff]  ;;  %v1746_v9 = vld [vmem:[%s7579_s7 + $0x2db0] sm:$0xff] }
 0x3bf   : > { %6829 = vmatprep.subr.bf16.mxu1 %v6828_v16  ;;  %v1691_v50 = vld [vmem:[%s7579_s7 + $0x2bf8] sm:$0xff]  ;;  %v1680_v16 = vld [vmem:[%s7579_s7 + $0x2ba0] sm:$0xff] }
 0x3c0   : > { %v6848_v19 = vpack.c.bf16 %v1691_v50, %v1683_v11  ;;  %v6338_v23 = vpack.c.bf16 %v1688_v18, %v1680_v16  ;;  %v1754_v11 = vld [vmem:[%s7579_s7 + $0x2df0] sm:$0xff]  ;;  %v1761_v50 = vld [vmem:[%s7579_s7 + $0x2e28] sm:$0xff]  ;;  %v1784_v32 = vld [vmem:[%s7579_s7 + $0x2ee0] sm:$0xff] }
 0x3c1   : > { %6319 = vmatpush1.bf16.msra.mxu0 %v6318_v21  ;;  %v1705_v21 = vld [vmem:[%s7579_s7 + $0x2c68] sm:$0xff]  ;;  %v6866_v18 = vpack.c.bf16 %v1754_v11, %v1746_v9  ;;  %v1832_v11 = vld [vmem:[%s7579_s7 + $0x3060] sm:$0xff] }
 0x3c2   : > { %6831 = vmatpush1.bf16.msra.mxu1 %v6830_v22  ;;  %6321 = vmatprep.subr.bf16.mxu0 %v6320_v26  ;;  %v1699_v22 = vld [vmem:[%s7579_s7 + $0x2c38] sm:$0xff]  ;;  %v6340_v27 = vpack.c.bf16 %v1705_v21, %v1697_v20  ;;  %v1762_v20 = vld [vmem:[%s7579_s7 + $0x2e30] sm:$0xff] }
 0x3c3   : > { %6833 = vmatprep.subr.bf16.mxu1 %v6832_v28  ;;  %v1707_v26 = vld [vmem:[%s7579_s7 + $0x2c78] sm:$0xff]  ;;  %v1696_v28 = vld [vmem:[%s7579_s7 + $0x2c20] sm:$0xff] }
 0x3c4   : > { %v6852_v55 = vpack.c.bf16 %v1707_v26, %v1699_v22  ;;  %v6342_v40 = vpack.c.bf16 %v1704_v29, %v1696_v28  ;;  %v1770_v22 = vld [vmem:[%s7579_s7 + $0x2e70] sm:$0xff]  ;;  %v1777_v26 = vld [vmem:[%s7579_s7 + $0x2ea8] sm:$0xff] }
 0x3c5   : > { %6323 = vmatpush1.bf16.msra.mxu0 %v6322_v33  ;;  %v1721_v33 = vld [vmem:[%s7579_s7 + $0x2ce8] sm:$0xff]  ;;  %v6870_v29 = vpack.c.bf16 %v1770_v22, %v1762_v20  ;;  %v1848_v22 = vld [vmem:[%s7579_s7 + $0x30e0] sm:$0xff] }
 0x3c6   : > { %6835 = vmatpush1.bf16.msra.mxu1 %v6834_v17  ;;  %6325 = vmatprep.subr.bf16.mxu0 %v6324_v35  ;;  %v1715_v17 = vld [vmem:[%s7579_s7 + $0x2cb8] sm:$0xff]  ;;  %v6344_v37 = vpack.c.bf16 %v1721_v33, %v1713_v34  ;;  %v1778_v34 = vld [vmem:[%s7579_s7 + $0x2eb0] sm:$0xff] }
 0x3c7   : > { %6837 = vmatprep.subr.bf16.mxu1 %v6836_v39  ;;  %v1723_v35 = vld [vmem:[%s7579_s7 + $0x2cf8] sm:$0xff]  ;;  %v1712_v39 = vld [vmem:[%s7579_s7 + $0x2ca0] sm:$0xff] }
 0x3c8   : > { %v6856_v44 = vpack.c.bf16 %v1723_v35, %v1715_v17  ;;  %v6346_v52 = vpack.c.bf16 %v1720_v42, %v1712_v39  ;;  %v1786_v17 = vld [vmem:[%s7579_s7 + $0x2ef0] sm:$0xff]  ;;  %v1793_v35 = vld [vmem:[%s7579_s7 + $0x2f28] sm:$0xff] }
 0x3c9   : > { %6327 = vmatpush1.bf16.msra.mxu0 %v6326_v48  ;;  %v1737_v48 = vld [vmem:[%s7579_s7 + $0x2d68] sm:$0xff]  ;;  %v6874_v42 = vpack.c.bf16 %v1786_v17, %v1778_v34  ;;  %v1864_v17 = vld [vmem:[%s7579_s7 + $0x3160] sm:$0xff] }
 0x3ca   : > { %6839 = vmatpush1.bf16.msra.mxu1 %v6838_v49  ;;  %6329 = vmatprep.subr.bf16.mxu0 %v6328_v51  ;;  %v1731_v49 = vld [vmem:[%s7579_s7 + $0x2d38] sm:$0xff]  ;;  %v6348_v54 = vpack.c.bf16 %v1737_v48, %v1729_v46  ;;  %v1794_v46 = vld [vmem:[%s7579_s7 + $0x2f30] sm:$0xff] }
 0x3cb   : > { %6841 = vmatprep.subr.bf16.mxu1 %v6840_v58  ;;  %v1739_v51 = vld [vmem:[%s7579_s7 + $0x2d78] sm:$0xff]  ;;  %v1728_v58 = vld [vmem:[%s7579_s7 + $0x2d20] sm:$0xff] }
 0x3cc   : > { %v6860_v61 = vpack.c.bf16 %v1739_v51, %v1731_v49  ;;  %v6350_v5 = vpack.c.bf16 %v1736_v59, %v1728_v58  ;;  %v1802_v49 = vld [vmem:[%s7579_s7 + $0x2f70] sm:$0xff]  ;;  %v1809_v51 = vld [vmem:[%s7579_s7 + $0x2fa8] sm:$0xff] }
 0x3cd   : > { %6331 = vmatpush1.bf16.msra.mxu0 %v6330_v2  ;;  %v1753_v2 = vld [vmem:[%s7579_s7 + $0x2de8] sm:$0xff]  ;;  %v6878_v59 = vpack.c.bf16 %v1802_v49, %v1794_v46  ;;  %v1872_v46 = vld [vmem:[%s7579_s7 + $0x31a0] sm:$0xff]  ;;  %v1874_v49 = vld [vmem:[%s7579_s7 + $0x31b0] sm:$0xff] }
 0x3ce   : > { %6843 = vmatpush1.bf16.msra.mxu1 %v6842_v3  ;;  %6333 = vmatprep.subr.bf16.mxu0 %v6332_v56  ;;  %v1747_v3 = vld [vmem:[%s7579_s7 + $0x2db8] sm:$0xff]  ;;  %v6352_v6 = vpack.c.bf16 %v1753_v2, %v1745_v1  ;;  %v1810_v1 = vld [vmem:[%s7579_s7 + $0x2fb0] sm:$0xff] }
 0x3cf   : > { %6845 = vmatprep.subr.bf16.mxu1 %v6844_v7  ;;  %v1755_v56 = vld [vmem:[%s7579_s7 + $0x2df8] sm:$0xff]  ;;  %v1744_v7 = vld [vmem:[%s7579_s7 + $0x2da0] sm:$0xff] }
 0x3d0   : > { %v6864_v10 = vpack.c.bf16 %v1755_v56, %v1747_v3  ;;  %v6354_v16 = vpack.c.bf16 %v1752_v8, %v1744_v7  ;;  %v1818_v3 = vld [vmem:[%s7579_s7 + $0x2ff0] sm:$0xff]  ;;  %v1825_v56 = vld [vmem:[%s7579_s7 + $0x3028] sm:$0xff] }
 0x3d1   : > { %6335 = vmatpush1.bf16.msra.mxu0 %v6334_v13  ;;  %v1769_v13 = vld [vmem:[%s7579_s7 + $0x2e68] sm:$0xff]  ;;  %v6882_v8 = vpack.c.bf16 %v1818_v3, %v1810_v1  ;;  %v1896_v1 = vld [vmem:[%s7579_s7 + $0x3260] sm:$0xff] }
 0x3d2   : > { %6847 = vmatpush1.bf16.msra.mxu1 %v6846_v14  ;;  %6337 = vmatprep.subr.bf16.mxu0 %v6336_v30  ;;  %v1763_v14 = vld [vmem:[%s7579_s7 + $0x2e38] sm:$0xff]  ;;  %v6356_v25 = vpack.c.bf16 %v1769_v13, %v1761_v50  ;;  %v1826_v50 = vld [vmem:[%s7579_s7 + $0x3030] sm:$0xff] }
 0x3d3   : > { %6849 = vmatprep.subr.bf16.mxu1 %v6848_v19  ;;  %v1771_v30 = vld [vmem:[%s7579_s7 + $0x2e78] sm:$0xff]  ;;  %v1760_v19 = vld [vmem:[%s7579_s7 + $0x2e20] sm:$0xff] }
 0x3d4   : > { %v6868_v21 = vpack.c.bf16 %v1771_v30, %v1763_v14  ;;  %v6358_v28 = vpack.c.bf16 %v1768_v53, %v1760_v19  ;;  %v1834_v14 = vld [vmem:[%s7579_s7 + $0x3070] sm:$0xff]  ;;  %v1841_v30 = vld [vmem:[%s7579_s7 + $0x30a8] sm:$0xff] }
 0x3d5   : > { %6339 = vmatpush1.bf16.msra.mxu0 %v6338_v23  ;;  %v1785_v23 = vld [vmem:[%s7579_s7 + $0x2ee8] sm:$0xff]  ;;  %v6886_v53 = vpack.c.bf16 %v1834_v14, %v1826_v50  ;;  %v1912_v50 = vld [vmem:[%s7579_s7 + $0x32e0] sm:$0xff] }
 0x3d6   : > { %6851 = vmatpush1.bf16.msra.mxu1 %v6850_v24  ;;  %6341 = vmatprep.subr.bf16.mxu0 %v6340_v27  ;;  %v1779_v24 = vld [vmem:[%s7579_s7 + $0x2eb8] sm:$0xff]  ;;  %v6360_v0 = vpack.c.bf16 %v1785_v23, %v1777_v26  ;;  %v1842_v26 = vld [vmem:[%s7579_s7 + $0x30b0] sm:$0xff] }
 0x3d7   : > { %6853 = vmatprep.subr.bf16.mxu1 %v6852_v55  ;;  %v1787_v27 = vld [vmem:[%s7579_s7 + $0x2ef8] sm:$0xff]  ;;  %v1776_v55 = vld [vmem:[%s7579_s7 + $0x2ea0] sm:$0xff] }
 0x3d8   : > { %v6872_v33 = vpack.c.bf16 %v1787_v27, %v1779_v24  ;;  %v6362_v39 = vpack.c.bf16 %v1784_v32, %v1776_v55  ;;  %v1850_v24 = vld [vmem:[%s7579_s7 + $0x30f0] sm:$0xff]  ;;  %v1857_v27 = vld [vmem:[%s7579_s7 + $0x3128] sm:$0xff] }
 0x3d9   : > { %6343 = vmatpush1.bf16.msra.mxu0 %v6342_v40  ;;  %v1801_v40 = vld [vmem:[%s7579_s7 + $0x2f68] sm:$0xff]  ;;  %v6890_v32 = vpack.c.bf16 %v1850_v24, %v1842_v26  ;;  %v1928_v26 = vld [vmem:[%s7579_s7 + $0x3360] sm:$0xff] }
 0x3da   : > { %6855 = vmatpush1.bf16.msra.mxu1 %v6854_v41  ;;  %6345 = vmatprep.subr.bf16.mxu0 %v6344_v37  ;;  %v1795_v41 = vld [vmem:[%s7579_s7 + $0x2f38] sm:$0xff]  ;;  %v6364_v43 = vpack.c.bf16 %v1801_v40, %v1793_v35  ;;  %v1858_v35 = vld [vmem:[%s7579_s7 + $0x3130] sm:$0xff] }
 0x3db   : > { %6857 = vmatprep.subr.bf16.mxu1 %v6856_v44  ;;  %v1803_v37 = vld [vmem:[%s7579_s7 + $0x2f78] sm:$0xff]  ;;  %v1792_v44 = vld [vmem:[%s7579_s7 + $0x2f20] sm:$0xff] }
 0x3dc   : > { %v6876_v48 = vpack.c.bf16 %v1803_v37, %v1795_v41  ;;  %v6366_v58 = vpack.c.bf16 %v1800_v45, %v1792_v44  ;;  %v1866_v41 = vld [vmem:[%s7579_s7 + $0x3170] sm:$0xff]  ;;  %v1873_v37 = vld [vmem:[%s7579_s7 + $0x31a8] sm:$0xff] }
 0x3dd   : > { %6347 = vmatpush1.bf16.msra.mxu0 %v6346_v52  ;;  %v1817_v52 = vld [vmem:[%s7579_s7 + $0x2fe8] sm:$0xff]  ;;  %v6894_v44 = vpack.c.bf16 %v1866_v41, %v1858_v35  ;;  %v1944_v35 = vld [vmem:[%s7579_s7 + $0x33e0] sm:$0xff] }
 0x3de   : > { %6859 = vmatpush1.bf16.msra.mxu1 %v6858_v15  ;;  %6349 = vmatprep.subr.bf16.mxu0 %v6348_v54  ;;  %v1811_v15 = vld [vmem:[%s7579_s7 + $0x2fb8] sm:$0xff]  ;;  %v6368_v60 = vpack.c.bf16 %v1817_v52, %v1809_v51  ;;  %v1882_v52 = vld [vmem:[%s7579_s7 + $0x31f0] sm:$0xff] }
 0x3df   : > { %6861 = vmatprep.subr.bf16.mxu1 %v6860_v61  ;;  %v1819_v54 = vld [vmem:[%s7579_s7 + $0x2ff8] sm:$0xff]  ;;  %v1808_v61 = vld [vmem:[%s7579_s7 + $0x2fa0] sm:$0xff] }
 0x3e0   : > { %v6880_v2 = vpack.c.bf16 %v1819_v54, %v1811_v15  ;;  %v6370_v7 = vpack.c.bf16 %v1816_v62, %v1808_v61  ;;  %v1889_v15 = vld [vmem:[%s7579_s7 + $0x3228] sm:$0xff]  ;;  %v1891_v54 = vld [vmem:[%s7579_s7 + $0x3238] sm:$0xff]  ;;  %v1888_v62 = vld [vmem:[%s7579_s7 + $0x3220] sm:$0xff] }
 0x3e1   : > { %6351 = vmatpush1.bf16.msra.mxu0 %v6350_v5  ;;  %v1833_v5 = vld [vmem:[%s7579_s7 + $0x3068] sm:$0xff] }
 0x3e2   : > { %6863 = vmatpush1.bf16.msra.mxu1 %v6862_v4  ;;  %6353 = vmatprep.subr.bf16.mxu0 %v6352_v6  ;;  %v1827_v4 = vld [vmem:[%s7579_s7 + $0x3038] sm:$0xff]  ;;  %v6372_v9 = vpack.c.bf16 %v1833_v5, %v1825_v56  ;;  %v1898_v56 = vld [vmem:[%s7579_s7 + $0x3270] sm:$0xff]  ;;  %v1905_v5 = vld [vmem:[%s7579_s7 + $0x32a8] sm:$0xff] }
 0x3e3   : > { %6865 = vmatprep.subr.bf16.mxu1 %v6864_v10  ;;  %v1835_v6 = vld [vmem:[%s7579_s7 + $0x3078] sm:$0xff]  ;;  %v1824_v10 = vld [vmem:[%s7579_s7 + $0x3020] sm:$0xff] }
 0x3e4   : > { %v6884_v13 = vpack.c.bf16 %v1835_v6, %v1827_v4  ;;  %v6374_v19 = vpack.c.bf16 %v1832_v11, %v1824_v10  ;;  %v1913_v4 = vld [vmem:[%s7579_s7 + $0x32e8] sm:$0xff]  ;;  %v1907_v6 = vld [vmem:[%s7579_s7 + $0x32b8] sm:$0xff]  ;;  %v1904_v11 = vld [vmem:[%s7579_s7 + $0x32a0] sm:$0xff] }
 0x3e5   : > { %6355 = vmatpush1.bf16.msra.mxu0 %v6354_v16  ;;  %v1849_v16 = vld [vmem:[%s7579_s7 + $0x30e8] sm:$0xff]  ;;  %v6392_v10 = vpack.c.bf16 %v1913_v4, %v1905_v5  ;;  %v1978_v5 = vld [vmem:[%s7579_s7 + $0x34f0] sm:$0xff] }
 0x3e6   : > { %6867 = vmatpush1.bf16.msra.mxu1 %v6866_v18  ;;  %6357 = vmatprep.subr.bf16.mxu0 %v6356_v25  ;;  %v1843_v18 = vld [vmem:[%s7579_s7 + $0x30b8] sm:$0xff]  ;;  %v6376_v20 = vpack.c.bf16 %v1849_v16, %v1841_v30  ;;  %v1914_v30 = vld [vmem:[%s7579_s7 + $0x32f0] sm:$0xff]  ;;  %v1921_v16 = vld [vmem:[%s7579_s7 + $0x3328] sm:$0xff] }
 0x3e7   : > { %6869 = vmatprep.subr.bf16.mxu1 %v6868_v21  ;;  %v1851_v25 = vld [vmem:[%s7579_s7 + $0x30f8] sm:$0xff]  ;;  %v1840_v21 = vld [vmem:[%s7579_s7 + $0x30a0] sm:$0xff]  ;;  %v1985_v4 = vld [vmem:[%s7579_s7 + $0x3528] sm:$0xff] }
 0x3e8   : > { %v6888_v23 = vpack.c.bf16 %v1851_v25, %v1843_v18  ;;  %v6378_v55 = vpack.c.bf16 %v1848_v22, %v1840_v21  ;;  %v1929_v18 = vld [vmem:[%s7579_s7 + $0x3368] sm:$0xff]  ;;  %v1923_v25 = vld [vmem:[%s7579_s7 + $0x3338] sm:$0xff]  ;;  %v1920_v22 = vld [vmem:[%s7579_s7 + $0x3320] sm:$0xff] }
 0x3e9   : > { %6359 = vmatpush1.bf16.msra.mxu0 %v6358_v28  ;;  %v1865_v28 = vld [vmem:[%s7579_s7 + $0x3168] sm:$0xff]  ;;  %v6396_v21 = vpack.c.bf16 %v1929_v18, %v1921_v16  ;;  %v1994_v16 = vld [vmem:[%s7579_s7 + $0x3570] sm:$0xff] }
 0x3ea   : > { %6871 = vmatpush1.bf16.msra.mxu1 %v6870_v29  ;;  %6361 = vmatprep.subr.bf16.mxu0 %v6360_v0  ;;  %v1859_v29 = vld [vmem:[%s7579_s7 + $0x3138] sm:$0xff]  ;;  %v6380_v34 = vpack.c.bf16 %v1865_v28, %v1857_v27  ;;  %v1930_v27 = vld [vmem:[%s7579_s7 + $0x3370] sm:$0xff]  ;;  %v1937_v28 = vld [vmem:[%s7579_s7 + $0x33a8] sm:$0xff] }
 0x3eb   : > { %6873 = vmatprep.subr.bf16.mxu1 %v6872_v33  ;;  %v1867_v0 = vld [vmem:[%s7579_s7 + $0x3178] sm:$0xff]  ;;  %v1856_v33 = vld [vmem:[%s7579_s7 + $0x3120] sm:$0xff]  ;;  %v2001_v18 = vld [vmem:[%s7579_s7 + $0x35a8] sm:$0xff] }
 0x3ec   : > { %v6892_v40 = vpack.c.bf16 %v1867_v0, %v1859_v29  ;;  %v1945_v29 = vld [vmem:[%s7579_s7 + $0x33e8] sm:$0xff]  ;;  %v1939_v0 = vld [vmem:[%s7579_s7 + $0x33b8] sm:$0xff] }
 0x3ed   : > { %6363 = vmatpush1.bf16.msra.mxu0 %v6362_v39  ;;  %v1881_v39 = vld [vmem:[%s7579_s7 + $0x31e8] sm:$0xff] }
 0x3ee   : > { %6875 = vmatpush1.bf16.msra.mxu1 %v6874_v42  ;;  %6365 = vmatprep.subr.bf16.mxu0 %v6364_v43  ;;  %v1883_v42 = vld [vmem:[%s7579_s7 + $0x31f8] sm:$0xff]  ;;  %v6382_v43 = vpack.c.bf16 %v1864_v17, %v1856_v33  ;;  %v6384_v45 = vpack.c.bf16 %v1881_v39, %v1873_v37  ;;  %v6400_v33 = vpack.c.bf16 %v1945_v29, %v1937_v28  ;;  %v1936_v17 = vld [vmem:[%s7579_s7 + $0x33a0] sm:$0xff]  ;;  %v1946_v37 = vld [vmem:[%s7579_s7 + $0x33f0] sm:$0xff] }
 0x3ef   : > { %6877 = vmatprep.subr.bf16.mxu1 %v6876_v48  ;;  %v1880_v48 = vld [vmem:[%s7579_s7 + $0x31e0] sm:$0xff]  ;;  %v1953_v39 = vld [vmem:[%s7579_s7 + $0x3428] sm:$0xff]  ;;  %v2010_v28 = vld [vmem:[%s7579_s7 + $0x35f0] sm:$0xff] }
 0x3f0   : > { %v2017_v29 = vld [vmem:[%s7579_s7 + $0x3628] sm:$0xff] }
 0x3f1   : > { %6367 = vmatpush1.bf16.msra.mxu0 %v6366_v58  ;;  %v1899_v58 = vld [vmem:[%s7579_s7 + $0x3278] sm:$0xff] }
 0x3f2   : > { %6879 = vmatpush1.bf16.msra.mxu1 %v6878_v59  ;;  %6369 = vmatprep.subr.bf16.mxu0 %v6368_v60  ;;  %v6386_v59 = vpack.c.bf16 %v1880_v48, %v1872_v46  ;;  %v6898_v60 = vpack.c.bf16 %v1882_v52, %v1874_v49  ;;  %v6900_v3 = vpack.c.bf16 %v1899_v58, %v1891_v54  ;;  %v1952_v48 = vld [vmem:[%s7579_s7 + $0x3420] sm:$0xff]  ;;  %v1977_v54 = vld [vmem:[%s7579_s7 + $0x34e8] sm:$0xff]  ;;  %v1971_v58 = vld [vmem:[%s7579_s7 + $0x34b8] sm:$0xff] }
 0x3f3   : > { %6881 = vmatprep.subr.bf16.mxu1 %v6880_v2  ;;  %v1890_v2 = vld [vmem:[%s7579_s7 + $0x3230] sm:$0xff]  ;;  %v1960_v49 = vld [vmem:[%s7579_s7 + $0x3460] sm:$0xff] }
 0x3f5   : > { %6371 = vmatpush1.bf16.msra.mxu0 %v6370_v7  ;;  %v1915_v7 = vld [vmem:[%s7579_s7 + $0x32f8] sm:$0xff] }
 0x3f6   : > { %6883 = vmatpush1.bf16.msra.mxu1 %v6882_v8  ;;  %6373 = vmatprep.subr.bf16.mxu0 %v6372_v9  ;;  %v6390_v8 = vpack.c.bf16 %v1896_v1, %v1888_v62  ;;  %v6902_v9 = vpack.c.bf16 %v1898_v56, %v1890_v2  ;;  %v6904_v14 = vpack.c.bf16 %v1915_v7, %v1907_v6  ;;  %v1968_v1 = vld [vmem:[%s7579_s7 + $0x34a0] sm:$0xff]  ;;  %v1993_v6 = vld [vmem:[%s7579_s7 + $0x3568] sm:$0xff]  ;;  %v1987_v7 = vld [vmem:[%s7579_s7 + $0x3538] sm:$0xff] }
 0x3f7   : > { %6885 = vmatprep.subr.bf16.mxu1 %v6884_v13  ;;  %v1906_v13 = vld [vmem:[%s7579_s7 + $0x32b0] sm:$0xff]  ;;  %v1976_v2 = vld [vmem:[%s7579_s7 + $0x34e0] sm:$0xff] }
 0x3f8   : > { %3976 = vmatmul.mubr.f32.vlgmr.msra.gmra.mrb[2].mxu0 %v8335_v38 }
 0x3f9   : > { %6375 = vmatpush1.bf16.msra.mxu0 %v6374_v19  ;;  %4544 = vmatmul.mubr.f32.vlgmr.msra.gmra.mrb[2].mxu1 %v8335_v38  ;;  %v1875_v38 = vld [vmem:[%s7579_s7 + $0x31b8] sm:$0xff] }
 0x3fa   : > { %6887 = vmatpush1.bf16.msra.mxu1 %v6886_v53  ;;  %6377 = vmatprep.subr.bf16.mxu0 %v6376_v20  ;;  %v6896_v51 = vpack.c.bf16 %v1883_v42, %v1875_v38  ;;  %v1931_v19 = vld [vmem:[%s7579_s7 + $0x3378] sm:$0xff]  ;;  %v6394_v53 = vpack.c.bf16 %v1912_v50, %v1904_v11  ;;  %v6906_v20 = vpack.c.bf16 %v1914_v30, %v1906_v13  ;;  %v1961_v38 = vld [vmem:[%s7579_s7 + $0x3468] sm:$0xff]  ;;  %v1984_v50 = vld [vmem:[%s7579_s7 + $0x3520] sm:$0xff] }
 0x3fb   : > { %6889 = vmatprep.subr.bf16.mxu1 %v6888_v23  ;;  %4046 = vmatprep.mubr.f32.mxu0 %v8490_v47  ;;  %v1922_v23 = vld [vmem:[%s7579_s7 + $0x3330] sm:$0xff]  ;;  %v6908_v24 = vpack.c.bf16 %v1931_v19, %v1923_v25  ;;  %v1955_v42 = vld [vmem:[%s7579_s7 + $0x3438] sm:$0xff]  ;;  %v6404_v46 = vpack.c.bf16 %v1961_v38, %v1953_v39  ;;  %v6412_v11 = vpack.c.bf16 %v1993_v6, %v1985_v4  ;;  %v1992_v13 = vld [vmem:[%s7579_s7 + $0x3560] sm:$0xff] }
 0x3fc   : > { %4614 = vmatprep.mubr.f32.mxu1 %v8490_v47  ;;  %v1897_v47 = vld [vmem:[%s7579_s7 + $0x3268] sm:$0xff]  ;;  %v2003_v19 = vld [vmem:[%s7579_s7 + $0x35b8] sm:$0xff]  ;;  %v2026_v39 = vld [vmem:[%s7579_s7 + $0x3670] sm:$0xff] }
 0x3fd   : > { %6379 = vmatpush1.bf16.msra.mxu0 %v6378_v55  ;;  %v6388_v61 = vpack.c.bf16 %v1897_v47, %v1889_v15  ;;  %v1947_v55 = vld [vmem:[%s7579_s7 + $0x33f8] sm:$0xff]  ;;  %v1962_v15 = vld [vmem:[%s7579_s7 + $0x3470] sm:$0xff]  ;;  %v1969_v47 = vld [vmem:[%s7579_s7 + $0x34a8] sm:$0xff] }
 0x3fe   : > { %6891 = vmatpush1.bf16.msra.mxu1 %v6890_v32  ;;  %6381 = vmatprep.subr.bf16.mxu0 %v6380_v34  ;;  %v6398_v32 = vpack.c.bf16 %v1928_v26, %v1920_v22  ;;  %v6910_v34 = vpack.c.bf16 %v1930_v27, %v1922_v23  ;;  %v6912_v41 = vpack.c.bf16 %v1947_v55, %v1939_v0  ;;  %v2009_v25 = vld [vmem:[%s7579_s7 + $0x35e8] sm:$0xff]  ;;  %v2000_v26 = vld [vmem:[%s7579_s7 + $0x35a0] sm:$0xff]  ;;  %v2019_v55 = vld [vmem:[%s7579_s7 + $0x3638] sm:$0xff] }
 0x3ff   : > { %6893 = vmatprep.subr.bf16.mxu1 %v6892_v40  ;;  %v1938_v40 = vld [vmem:[%s7579_s7 + $0x33b0] sm:$0xff]  ;;  %v6408_v62 = vpack.c.bf16 %v1977_v54, %v1969_v47  ;;  %v6416_v22 = vpack.c.bf16 %v2009_v25, %v2001_v18  ;;  %v2008_v23 = vld [vmem:[%s7579_s7 + $0x35e0] sm:$0xff]  ;;  %v2025_v0 = vld [vmem:[%s7579_s7 + $0x3668] sm:$0xff] }
 0x400   : > { %v2033_v38 = vld [vmem:[%s7579_s7 + $0x36a8] sm:$0xff]  ;;  %v2042_v47 = vld [vmem:[%s7579_s7 + $0x36f0] sm:$0xff] }
 0x401   : > { %6383 = vmatpush1.bf16.msra.mxu0 %v6382_v43  ;;  %v1963_v43 = vld [vmem:[%s7579_s7 + $0x3478] sm:$0xff]  ;;  %v2049_v54 = vld [vmem:[%s7579_s7 + $0x3728] sm:$0xff]  ;;  %v2058_v4 = vld [vmem:[%s7579_s7 + $0x3770] sm:$0xff] }
 0x402   : > { %6895 = vmatpush1.bf16.msra.mxu1 %v6894_v44  ;;  %6385 = vmatprep.subr.bf16.mxu0 %v6384_v45  ;;  %v6402_v44 = vpack.c.bf16 %v1944_v35, %v1936_v17  ;;  %v6914_v45 = vpack.c.bf16 %v1946_v37, %v1938_v40  ;;  %v6916_v52 = vpack.c.bf16 %v1963_v43, %v1955_v42  ;;  %v2016_v35 = vld [vmem:[%s7579_s7 + $0x3620] sm:$0xff]  ;;  %v2041_v42 = vld [vmem:[%s7579_s7 + $0x36e8] sm:$0xff]  ;;  %v2035_v43 = vld [vmem:[%s7579_s7 + $0x36b8] sm:$0xff] }
 0x403   : > { %6897 = vmatprep.subr.bf16.mxu1 %v6896_v51  ;;  %v1954_v51 = vld [vmem:[%s7579_s7 + $0x3430] sm:$0xff]  ;;  %v6420_v17 = vpack.c.bf16 %v2025_v0, %v2017_v29  ;;  %v2024_v40 = vld [vmem:[%s7579_s7 + $0x3660] sm:$0xff]  ;;  %v2065_v6 = vld [vmem:[%s7579_s7 + $0x37a8] sm:$0xff] }
 0x404   : > { %v2074_v18 = vld [vmem:[%s7579_s7 + $0x37f0] sm:$0xff]  ;;  %v2081_v25 = vld [vmem:[%s7579_s7 + $0x3828] sm:$0xff] }
 0x405   : > { %6387 = vmatpush1.bf16.msra.mxu0 %v6386_v59  ;;  %v1979_v59 = vld [vmem:[%s7579_s7 + $0x34f8] sm:$0xff]  ;;  %v2090_v29 = vld [vmem:[%s7579_s7 + $0x3870] sm:$0xff]  ;;  %v2097_v0 = vld [vmem:[%s7579_s7 + $0x38a8] sm:$0xff] }
 0x406   : > { %6899 = vmatpush1.bf16.msra.mxu1 %v6898_v60  ;;  %6389 = vmatprep.subr.bf16.mxu0 %v6388_v61  ;;  %v6406_v60 = vpack.c.bf16 %v1960_v49, %v1952_v48  ;;  %v6918_v61 = vpack.c.bf16 %v1962_v15, %v1954_v51  ;;  %v6920_v56 = vpack.c.bf16 %v1979_v59, %v1971_v58  ;;  %v2032_v49 = vld [vmem:[%s7579_s7 + $0x36a0] sm:$0xff]  ;;  %v2057_v58 = vld [vmem:[%s7579_s7 + $0x3768] sm:$0xff]  ;;  %v2051_v59 = vld [vmem:[%s7579_s7 + $0x3738] sm:$0xff] }
 0x407   : > { %6901 = vmatprep.subr.bf16.mxu1 %v6900_v3  ;;  %v1970_v3 = vld [vmem:[%s7579_s7 + $0x34b0] sm:$0xff]  ;;  %v6424_v48 = vpack.c.bf16 %v2041_v42, %v2033_v38  ;;  %v2040_v51 = vld [vmem:[%s7579_s7 + $0x36e0] sm:$0xff]  ;;  %v2113_v42 = vld [vmem:[%s7579_s7 + $0x3928] sm:$0xff] }
 0x408   : > { %v2106_v38 = vld [vmem:[%s7579_s7 + $0x38f0] sm:$0xff] }
 0x409   : > { %6391 = vmatpush1.bf16.msra.mxu0 %v6390_v8  ;;  %v1995_v8 = vld [vmem:[%s7579_s7 + $0x3578] sm:$0xff] }
 0x40a   : > { %6903 = vmatpush1.bf16.msra.mxu1 %v6902_v9  ;;  %6393 = vmatprep.subr.bf16.mxu0 %v6392_v10  ;;  %v6410_v9 = vpack.c.bf16 %v1976_v2, %v1968_v1  ;;  %v6922_v10 = vpack.c.bf16 %v1978_v5, %v1970_v3  ;;  %v6924_v30 = vpack.c.bf16 %v1995_v8, %v1987_v7  ;;  %v2048_v2 = vld [vmem:[%s7579_s7 + $0x3720] sm:$0xff]  ;;  %v2073_v7 = vld [vmem:[%s7579_s7 + $0x37e8] sm:$0xff]  ;;  %v2067_v8 = vld [vmem:[%s7579_s7 + $0x37b8] sm:$0xff] }
 0x40b   : > { %6905 = vmatprep.subr.bf16.mxu1 %v6904_v14  ;;  %v1986_v14 = vld [vmem:[%s7579_s7 + $0x3530] sm:$0xff]  ;;  %v6428_v1 = vpack.c.bf16 %v2057_v58, %v2049_v54  ;;  %v2056_v3 = vld [vmem:[%s7579_s7 + $0x3760] sm:$0xff]  ;;  %v2129_v58 = vld [vmem:[%s7579_s7 + $0x39a8] sm:$0xff] }
 0x40c   : > { %v2122_v54 = vld [vmem:[%s7579_s7 + $0x3970] sm:$0xff] }
 0x40d   : > { %6395 = vmatpush1.bf16.msra.mxu0 %v6394_v53  ;;  %v2011_v53 = vld [vmem:[%s7579_s7 + $0x35f8] sm:$0xff] }
 0x40e   : > { %6907 = vmatpush1.bf16.msra.mxu1 %v6906_v20  ;;  %6397 = vmatprep.subr.bf16.mxu0 %v6396_v21  ;;  %v6414_v20 = vpack.c.bf16 %v1992_v13, %v1984_v50  ;;  %v6926_v21 = vpack.c.bf16 %v1994_v16, %v1986_v14  ;;  %v6928_v27 = vpack.c.bf16 %v2011_v53, %v2003_v19  ;;  %v2064_v13 = vld [vmem:[%s7579_s7 + $0x37a0] sm:$0xff]  ;;  %v2089_v19 = vld [vmem:[%s7579_s7 + $0x3868] sm:$0xff]  ;;  %v2083_v53 = vld [vmem:[%s7579_s7 + $0x3838] sm:$0xff] }
 0x40f   : > { %6909 = vmatprep.subr.bf16.mxu1 %v6908_v24  ;;  %v2002_v24 = vld [vmem:[%s7579_s7 + $0x35b0] sm:$0xff]  ;;  %v6432_v50 = vpack.c.bf16 %v2073_v7, %v2065_v6  ;;  %v2072_v14 = vld [vmem:[%s7579_s7 + $0x37e0] sm:$0xff]  ;;  %v2145_v6 = vld [vmem:[%s7579_s7 + $0x3a28] sm:$0xff] }
 0x410   : > { %v2147_v7 = vld [vmem:[%s7579_s7 + $0x3a38] sm:$0xff] }
 0x411   : > { %6399 = vmatpush1.bf16.msra.mxu0 %v6398_v32  ;;  %v2027_v32 = vld [vmem:[%s7579_s7 + $0x3678] sm:$0xff] }
 0x412   : > { %6911 = vmatpush1.bf16.msra.mxu1 %v6910_v34  ;;  %6401 = vmatprep.subr.bf16.mxu0 %v6400_v33  ;;  %v6418_v34 = vpack.c.bf16 %v2008_v23, %v2000_v26  ;;  %v6930_v33 = vpack.c.bf16 %v2010_v28, %v2002_v24  ;;  %v6932_v37 = vpack.c.bf16 %v2027_v32, %v2019_v55  ;;  %v2080_v23 = vld [vmem:[%s7579_s7 + $0x3820] sm:$0xff]  ;;  %v2105_v55 = vld [vmem:[%s7579_s7 + $0x38e8] sm:$0xff]  ;;  %v2099_v32 = vld [vmem:[%s7579_s7 + $0x38b8] sm:$0xff] }
 0x413   : > { %6913 = vmatprep.subr.bf16.mxu1 %v6912_v41  ;;  %v2018_v41 = vld [vmem:[%s7579_s7 + $0x3630] sm:$0xff]  ;;  %v6436_v26 = vpack.c.bf16 %v2089_v19, %v2081_v25  ;;  %v2088_v24 = vld [vmem:[%s7579_s7 + $0x3860] sm:$0xff]  ;;  %v2169_v25 = vld [vmem:[%s7579_s7 + $0x3ae8] sm:$0xff] }
 0x414   : > { %v2163_v19 = vld [vmem:[%s7579_s7 + $0x3ab8] sm:$0xff] }
 0x415   : > { %6403 = vmatpush1.bf16.msra.mxu0 %v6402_v44  ;;  %v2043_v44 = vld [vmem:[%s7579_s7 + $0x36f8] sm:$0xff] }
 0x416   : > { %6915 = vmatpush1.bf16.msra.mxu1 %v6914_v45  ;;  %6405 = vmatprep.subr.bf16.mxu0 %v6404_v46  ;;  %v6422_v45 = vpack.c.bf16 %v2024_v40, %v2016_v35  ;;  %v6934_v46 = vpack.c.bf16 %v2026_v39, %v2018_v41  ;;  %v6936_v15 = vpack.c.bf16 %v2043_v44, %v2035_v43  ;;  %v2096_v40 = vld [vmem:[%s7579_s7 + $0x38a0] sm:$0xff]  ;;  %v2121_v43 = vld [vmem:[%s7579_s7 + $0x3968] sm:$0xff]  ;;  %v2115_v44 = vld [vmem:[%s7579_s7 + $0x3938] sm:$0xff] }
 0x417   : > { %6917 = vmatprep.subr.bf16.mxu1 %v6916_v52  ;;  %v2034_v52 = vld [vmem:[%s7579_s7 + $0x36b0] sm:$0xff]  ;;  %v6440_v35 = vpack.c.bf16 %v2105_v55, %v2097_v0  ;;  %v2104_v41 = vld [vmem:[%s7579_s7 + $0x38e0] sm:$0xff]  ;;  %v2185_v0 = vld [vmem:[%s7579_s7 + $0x3b68] sm:$0xff] }
 0x418   : > { %v2179_v55 = vld [vmem:[%s7579_s7 + $0x3b38] sm:$0xff] }
 0x419   : > { %6407 = vmatpush1.bf16.msra.mxu0 %v6406_v60  ;;  %v2059_v60 = vld [vmem:[%s7579_s7 + $0x3778] sm:$0xff] }
 0x41a   : > { %6919 = vmatpush1.bf16.msra.mxu1 %v6918_v61  ;;  %6409 = vmatprep.subr.bf16.mxu0 %v6408_v62  ;;  %v6426_v61 = vpack.c.bf16 %v2040_v51, %v2032_v49  ;;  %v6938_v62 = vpack.c.bf16 %v2042_v47, %v2034_v52  ;;  %v6940_v5 = vpack.c.bf16 %v2059_v60, %v2051_v59  ;;  %v2112_v51 = vld [vmem:[%s7579_s7 + $0x3920] sm:$0xff]  ;;  %v2137_v59 = vld [vmem:[%s7579_s7 + $0x39e8] sm:$0xff]  ;;  %v2139_v60 = vld [vmem:[%s7579_s7 + $0x39f8] sm:$0xff] }
 0x41b   : > { %6921 = vmatprep.subr.bf16.mxu1 %v6920_v56  ;;  %v2050_v56 = vld [vmem:[%s7579_s7 + $0x3730] sm:$0xff]  ;;  %v6444_v49 = vpack.c.bf16 %v2121_v43, %v2113_v42  ;;  %v2120_v52 = vld [vmem:[%s7579_s7 + $0x3960] sm:$0xff]  ;;  %v2201_v42 = vld [vmem:[%s7579_s7 + $0x3be8] sm:$0xff] }
 0x41c   : > { %v2195_v43 = vld [vmem:[%s7579_s7 + $0x3bb8] sm:$0xff] }
 0x41d   : > { %6411 = vmatpush1.bf16.msra.mxu0 %v6410_v9  ;;  %v2075_v9 = vld [vmem:[%s7579_s7 + $0x37f8] sm:$0xff] }
 0x41e   : > { %6923 = vmatpush1.bf16.msra.mxu1 %v6922_v10  ;;  %6413 = vmatprep.subr.bf16.mxu0 %v6412_v11  ;;  %v6430_v10 = vpack.c.bf16 %v2056_v3, %v2048_v2  ;;  %v6942_v11 = vpack.c.bf16 %v2058_v4, %v2050_v56  ;;  %v6944_v16 = vpack.c.bf16 %v2075_v9, %v2067_v8  ;;  %v2128_v2 = vld [vmem:[%s7579_s7 + $0x39a0] sm:$0xff]  ;;  %v2130_v56 = vld [vmem:[%s7579_s7 + $0x39b0] sm:$0xff]  ;;  %v2155_v8 = vld [vmem:[%s7579_s7 + $0x3a78] sm:$0xff] }
 0x41f   : > { %6925 = vmatprep.subr.bf16.mxu1 %v6924_v30  ;;  %v2066_v30 = vld [vmem:[%s7579_s7 + $0x37b0] sm:$0xff]  ;;  %v2136_v3 = vld [vmem:[%s7579_s7 + $0x39e0] sm:$0xff] }
 0x420   : > { %v2138_v4 = vld [vmem:[%s7579_s7 + $0x39f0] sm:$0xff]  ;;  %v6450_v9 = vpack.c.bf16 %v2136_v3, %v2128_v2  ;;  %v2216_v2 = vld [vmem:[%s7579_s7 + $0x3c60] sm:$0xff] }
 0x421   : > { %6415 = vmatpush1.bf16.msra.mxu0 %v6414_v20  ;;  %v2091_v20 = vld [vmem:[%s7579_s7 + $0x3878] sm:$0xff]  ;;  %v2210_v3 = vld [vmem:[%s7579_s7 + $0x3c30] sm:$0xff] }
 0x422   : > { %6927 = vmatpush1.bf16.msra.mxu1 %v6926_v21  ;;  %6417 = vmatprep.subr.bf16.mxu0 %v6416_v22  ;;  %v6434_v21 = vpack.c.bf16 %v2072_v14, %v2064_v13  ;;  %v6946_v22 = vpack.c.bf16 %v2074_v18, %v2066_v30  ;;  %v6948_v28 = vpack.c.bf16 %v2091_v20, %v2083_v53  ;;  %v2152_v13 = vld [vmem:[%s7579_s7 + $0x3a60] sm:$0xff]  ;;  %v2146_v14 = vld [vmem:[%s7579_s7 + $0x3a30] sm:$0xff]  ;;  %v2161_v18 = vld [vmem:[%s7579_s7 + $0x3aa8] sm:$0xff] }
 0x423   : > { %6929 = vmatprep.subr.bf16.mxu1 %v6928_v27  ;;  %v2082_v27 = vld [vmem:[%s7579_s7 + $0x3830] sm:$0xff]  ;;  %v6964_v30 = vpack.c.bf16 %v2155_v8, %v2147_v7  ;;  %v2171_v53 = vld [vmem:[%s7579_s7 + $0x3af8] sm:$0xff] }
 0x424   : > { %v2235_v7 = vld [vmem:[%s7579_s7 + $0x3cf8] sm:$0xff] }
 0x425   : > { %6419 = vmatpush1.bf16.msra.mxu0 %v6418_v34  ;;  %v2107_v34 = vld [vmem:[%s7579_s7 + $0x38f8] sm:$0xff] }
 0x426   : > { %6931 = vmatpush1.bf16.msra.mxu1 %v6930_v33  ;;  %6421 = vmatprep.subr.bf16.mxu0 %v6420_v17  ;;  %v6438_v33 = vpack.c.bf16 %v2088_v24, %v2080_v23  ;;  %v6950_v17 = vpack.c.bf16 %v2090_v29, %v2082_v27  ;;  %v6952_v39 = vpack.c.bf16 %v2107_v34, %v2099_v32  ;;  %v2168_v23 = vld [vmem:[%s7579_s7 + $0x3ae0] sm:$0xff]  ;;  %v2162_v24 = vld [vmem:[%s7579_s7 + $0x3ab0] sm:$0xff]  ;;  %v2177_v29 = vld [vmem:[%s7579_s7 + $0x3b28] sm:$0xff] }
 0x427   : > { %6933 = vmatprep.subr.bf16.mxu1 %v6932_v37  ;;  %v2098_v37 = vld [vmem:[%s7579_s7 + $0x38b0] sm:$0xff]  ;;  %v6968_v27 = vpack.c.bf16 %v2171_v53, %v2163_v19  ;;  %v2187_v32 = vld [vmem:[%s7579_s7 + $0x3b78] sm:$0xff] }
 0x428   : > { %v2251_v19 = vld [vmem:[%s7579_s7 + $0x3d78] sm:$0xff] }
 0x429   : > { %6423 = vmatpush1.bf16.msra.mxu0 %v6422_v45  ;;  %v2123_v45 = vld [vmem:[%s7579_s7 + $0x3978] sm:$0xff] }
 0x42a   : > { %6935 = vmatpush1.bf16.msra.mxu1 %v6934_v46  ;;  %6425 = vmatprep.subr.bf16.mxu0 %v6424_v48  ;;  %v6442_v46 = vpack.c.bf16 %v2104_v41, %v2096_v40  ;;  %v6954_v48 = vpack.c.bf16 %v2106_v38, %v2098_v37  ;;  %v6956_v47 = vpack.c.bf16 %v2123_v45, %v2115_v44  ;;  %v2184_v40 = vld [vmem:[%s7579_s7 + $0x3b60] sm:$0xff]  ;;  %v2178_v41 = vld [vmem:[%s7579_s7 + $0x3b30] sm:$0xff]  ;;  %v2193_v38 = vld [vmem:[%s7579_s7 + $0x3ba8] sm:$0xff] }
 0x42b   : > { %6937 = vmatprep.subr.bf16.mxu1 %v6936_v15  ;;  %v2114_v15 = vld [vmem:[%s7579_s7 + $0x3930] sm:$0xff]  ;;  %v6972_v37 = vpack.c.bf16 %v2187_v32, %v2179_v55  ;;  %v2203_v44 = vld [vmem:[%s7579_s7 + $0x3bf8] sm:$0xff] }
 0x42c   : > { %v2267_v55 = vld [vmem:[%s7579_s7 + $0x3df8] sm:$0xff] }
 0x42d   : > { %6427 = vmatpush1.bf16.msra.mxu0 %v6426_v61  ;;  %v6446_v61 = vpack.c.bf16 %v2120_v52, %v2112_v51  ;;  %v2200_v51 = vld [vmem:[%s7579_s7 + $0x3be0] sm:$0xff]  ;;  %v2194_v52 = vld [vmem:[%s7579_s7 + $0x3bb0] sm:$0xff] }
 0x42e   : > { %6939 = vmatpush1.bf16.msra.mxu1 %v6938_v62  ;;  %6429 = vmatprep.subr.bf16.mxu0 %v6428_v1  ;;  %v6958_v62 = vpack.c.bf16 %v2122_v54, %v2114_v15  ;;  %v6448_v1 = vpack.c.bf16 %v2137_v59, %v2129_v58  ;;  %v6976_v15 = vpack.c.bf16 %v2203_v44, %v2195_v43  ;;  %v2209_v54 = vld [vmem:[%s7579_s7 + $0x3c28] sm:$0xff]  ;;  %v2211_v59 = vld [vmem:[%s7579_s7 + $0x3c38] sm:$0xff] }
 0x42f   : > { %6941 = vmatprep.subr.bf16.mxu1 %v6940_v5  ;;  %v2217_v58 = vld [vmem:[%s7579_s7 + $0x3c68] sm:$0xff]  ;;  %v2283_v43 = vld [vmem:[%s7579_s7 + $0x3e78] sm:$0xff] }
 0x431   : > { %6431 = vmatpush1.bf16.msra.mxu0 %v6430_v10  ;;  %v6962_v10 = vpack.c.bf16 %v2138_v4, %v2130_v56  ;;  %v2225_v4 = vld [vmem:[%s7579_s7 + $0x3ca8] sm:$0xff] }
 0x432   : > { %6943 = vmatpush1.bf16.msra.mxu1 %v6942_v11  ;;  %6433 = vmatprep.subr.bf16.mxu0 %v6432_v50  ;;  %v2144_v50 = vld [vmem:[%s7579_s7 + $0x3a20] sm:$0xff] }
 0x433   : > { %6945 = vmatprep.subr.bf16.mxu1 %v6944_v16  ;;  %v2154_v16 = vld [vmem:[%s7579_s7 + $0x3a70] sm:$0xff]  ;;  %v6454_v20 = vpack.c.bf16 %v2152_v13, %v2144_v50  ;;  %v2232_v50 = vld [vmem:[%s7579_s7 + $0x3ce0] sm:$0xff] }
 0x434   : > { %v2226_v13 = vld [vmem:[%s7579_s7 + $0x3cb0] sm:$0xff] }
 0x435   : > { %6435 = vmatpush1.bf16.msra.mxu0 %v6434_v21  ;;  %v6966_v21 = vpack.c.bf16 %v2154_v16, %v2146_v14  ;;  %v2241_v16 = vld [vmem:[%s7579_s7 + $0x3d28] sm:$0xff] }
 0x436   : > { %6947 = vmatpush1.bf16.msra.mxu1 %v6946_v22  ;;  %6437 = vmatprep.subr.bf16.mxu0 %v6436_v26  ;;  %v6456_v22 = vpack.c.bf16 %v2169_v25, %v2161_v18  ;;  %v2160_v26 = vld [vmem:[%s7579_s7 + $0x3aa0] sm:$0xff]  ;;  %v2249_v18 = vld [vmem:[%s7579_s7 + $0x3d68] sm:$0xff]  ;;  %v2243_v25 = vld [vmem:[%s7579_s7 + $0x3d38] sm:$0xff] }
 0x437   : > { %6949 = vmatprep.subr.bf16.mxu1 %v6948_v28  ;;  %v2170_v28 = vld [vmem:[%s7579_s7 + $0x3af0] sm:$0xff]  ;;  %v6458_v34 = vpack.c.bf16 %v2168_v23, %v2160_v26  ;;  %v2248_v26 = vld [vmem:[%s7579_s7 + $0x3d60] sm:$0xff] }
 0x438   : > { %4047 = vmatmul.mubr.f32.vlgmr.msra.gmra.mrb[2].mxu0 %v8478_v31  ;;  %v2242_v23 = vld [vmem:[%s7579_s7 + $0x3d30] sm:$0xff] }
 0x439   : > { %6439 = vmatpush1.bf16.msra.mxu0 %v6438_v33  ;;  %4615 = vmatmul.mubr.f32.vlgmr.msra.gmra.mrb[2].mxu1 %v8478_v31  ;;  %v2131_v31 = vld [vmem:[%s7579_s7 + $0x39b8] sm:$0xff]  ;;  %v6970_v33 = vpack.c.bf16 %v2170_v28, %v2162_v24  ;;  %v6988_v24 = vpack.c.bf16 %v2251_v19, %v2243_v25  ;;  %v2257_v28 = vld [vmem:[%s7579_s7 + $0x3da8] sm:$0xff] }
 0x43a   : > { %6951 = vmatpush1.bf16.msra.mxu1 %v6950_v17  ;;  %6441 = vmatprep.subr.bf16.mxu0 %v6440_v35  ;;  %v6960_v5 = vpack.c.bf16 %v2139_v60, %v2131_v31  ;;  %v6460_v17 = vpack.c.bf16 %v2185_v0, %v2177_v29  ;;  %v2176_v35 = vld [vmem:[%s7579_s7 + $0x3b20] sm:$0xff]  ;;  %v2219_v31 = vld [vmem:[%s7579_s7 + $0x3c78] sm:$0xff]  ;;  %v2265_v29 = vld [vmem:[%s7579_s7 + $0x3de8] sm:$0xff] }
 0x43b   : > { %6953 = vmatprep.subr.bf16.mxu1 %v6952_v39  ;;  %4117 = vmatprep.mubr.f32.mxu0 %v8631_v57  ;;  %v2186_v39 = vld [vmem:[%s7579_s7 + $0x3b70] sm:$0xff]  ;;  %v6462_v45 = vpack.c.bf16 %v2184_v40, %v2176_v35  ;;  %v6980_v56 = vpack.c.bf16 %v2219_v31, %v2211_v59  ;;  %v2259_v0 = vld [vmem:[%s7579_s7 + $0x3db8] sm:$0xff]  ;;  %v2264_v35 = vld [vmem:[%s7579_s7 + $0x3de0] sm:$0xff] }
 0x43c   : > { %4685 = vmatprep.mubr.f32.mxu1 %v8631_v57  ;;  %v2153_v57 = vld [vmem:[%s7579_s7 + $0x3a68] sm:$0xff]  ;;  %v2258_v40 = vld [vmem:[%s7579_s7 + $0x3db0] sm:$0xff]  ;;  %v2299_v59 = vld [vmem:[%s7579_s7 + $0x3ef8] sm:$0xff] }
 0x43d   : > { %6443 = vmatpush1.bf16.msra.mxu0 %v6442_v46  ;;  %v6452_v11 = vpack.c.bf16 %v2153_v57, %v2145_v6  ;;  %v6974_v46 = vpack.c.bf16 %v2186_v39, %v2178_v41  ;;  %v2233_v6 = vld [vmem:[%s7579_s7 + $0x3ce8] sm:$0xff]  ;;  %v2227_v57 = vld [vmem:[%s7579_s7 + $0x3cb8] sm:$0xff]  ;;  %v6992_v41 = vpack.c.bf16 %v2267_v55, %v2259_v0 }
 0x43e   : > { %6955 = vmatpush1.bf16.msra.mxu1 %v6954_v48  ;;  %6445 = vmatprep.subr.bf16.mxu0 %v6444_v49  ;;  %v6464_v48 = vpack.c.bf16 %v2201_v42, %v2193_v38  ;;  %v2192_v49 = vld [vmem:[%s7579_s7 + $0x3ba0] sm:$0xff]  ;;  %v6984_v14 = vpack.c.bf16 %v2235_v7, %v2227_v57  ;;  %v2273_v39 = vld [vmem:[%s7579_s7 + $0x3e28] sm:$0xff]  ;;  %v2275_v42 = vld [vmem:[%s7579_s7 + $0x3e38] sm:$0xff] }
 0x43f   : > { %6957 = vmatprep.subr.bf16.mxu1 %v6956_v47  ;;  %v2202_v47 = vld [vmem:[%s7579_s7 + $0x3bf0] sm:$0xff]  ;;  %v6466_v60 = vpack.c.bf16 %v2200_v51, %v2192_v49  ;;  %v2281_v38 = vld [vmem:[%s7579_s7 + $0x3e68] sm:$0xff]  ;;  %v2280_v49 = vld [vmem:[%s7579_s7 + $0x3e60] sm:$0xff] }
 0x440   : > { %v2274_v51 = vld [vmem:[%s7579_s7 + $0x3e30] sm:$0xff]  ;;  %v2315_v57 = vld [vmem:[%s7579_s7 + $0x3f78] sm:$0xff] }
 0x441   : > { %6447 = vmatpush1.bf16.msra.mxu0 %v6446_v61  ;;  %v6978_v61 = vpack.c.bf16 %v2202_v47, %v2194_v52  ;;  %v6996_v52 = vpack.c.bf16 %v2283_v43, %v2275_v42  ;;  %v2289_v47 = vld [vmem:[%s7579_s7 + $0x3ea8] sm:$0xff]  ;;  %v2331_v25 = vld [vmem:[%s7579_s7 + $0x3ff8] sm:$0xff]  ;;  %v4758_v42 = vsub.s32 (!%p4959_p3), 2, %v7692_v63  ;;  %v4762_v43 = vsub.s32 (!%p4959_p3), 3, %v7692_v63 }
 0x442   : > { %6959 = vmatpush1.bf16.msra.mxu1 %v6958_v62  ;;  %6449 = vmatprep.subr.bf16.mxu0 %v6448_v1  ;;  %v6468_v62 = vpack.c.bf16 %v2217_v58, %v2209_v54  ;;  %v2208_v1 = vld [vmem:[%s7579_s7 + $0x3c20] sm:$0xff]  ;;  %v2297_v54 = vld [vmem:[%s7579_s7 + $0x3ee8] sm:$0xff]  ;;  %v2291_v58 = vld [vmem:[%s7579_s7 + $0x3eb8] sm:$0xff] }
 0x443   : > { %6961 = vmatprep.subr.bf16.mxu1 %v6960_v5  ;;  %v2218_v5 = vld [vmem:[%s7579_s7 + $0x3c70] sm:$0xff]  ;;  %v6470_v8 = vpack.c.bf16 %v2216_v2, %v2208_v1  ;;  %v2296_v1 = vld [vmem:[%s7579_s7 + $0x3ee0] sm:$0xff] }
 0x444   : > { %v2290_v2 = vld [vmem:[%s7579_s7 + $0x3eb0] sm:$0xff] }
 0x445   : > { %6451 = vmatpush1.bf16.msra.mxu0 %v6450_v9  ;;  %v6982_v9 = vpack.c.bf16 %v2218_v5, %v2210_v3  ;;  %v7000_v3 = vpack.c.bf16 %v2299_v59, %v2291_v58  ;;  %v2305_v5 = vld [vmem:[%s7579_s7 + $0x3f28] sm:$0xff] }
 0x446   : > { %6963 = vmatpush1.bf16.msra.mxu1 %v6962_v10  ;;  %6453 = vmatprep.subr.bf16.mxu0 %v6452_v11  ;;  %v6472_v10 = vpack.c.bf16 %v2233_v6, %v2225_v4  ;;  %v2224_v11 = vld [vmem:[%s7579_s7 + $0x3ca0] sm:$0xff]  ;;  %v2313_v4 = vld [vmem:[%s7579_s7 + $0x3f68] sm:$0xff]  ;;  %v2307_v6 = vld [vmem:[%s7579_s7 + $0x3f38] sm:$0xff] }
 0x447   : > { %6965 = vmatprep.subr.bf16.mxu1 %v6964_v30  ;;  %v2234_v30 = vld [vmem:[%s7579_s7 + $0x3cf0] sm:$0xff]  ;;  %v6474_v53 = vpack.c.bf16 %v2232_v50, %v2224_v11  ;;  %v2312_v11 = vld [vmem:[%s7579_s7 + $0x3f60] sm:$0xff] }
 0x448   : > { %v2306_v50 = vld [vmem:[%s7579_s7 + $0x3f30] sm:$0xff] }
 0x449   : > { %6455 = vmatpush1.bf16.msra.mxu0 %v6454_v20  ;;  %v6986_v20 = vpack.c.bf16 %v2234_v30, %v2226_v13  ;;  %v7004_v13 = vpack.c.bf16 %v2315_v57, %v2307_v6  ;;  %v2321_v30 = vld [vmem:[%s7579_s7 + $0x3fa8] sm:$0xff] }
 0x44a   : > { %6967 = vmatpush1.bf16.msra.mxu1 %v6966_v21  ;;  %6457 = vmatprep.subr.bf16.mxu0 %v6456_v22  ;;  %v6476_v21 = vpack.c.bf16 %v2249_v18, %v2241_v16  ;;  %v2240_v22 = vld [vmem:[%s7579_s7 + $0x3d20] sm:$0xff]  ;;  %v2329_v16 = vld [vmem:[%s7579_s7 + $0x3fe8] sm:$0xff]  ;;  %v2323_v18 = vld [vmem:[%s7579_s7 + $0x3fb8] sm:$0xff] }
 0x44b   : > { %6969 = vmatprep.subr.bf16.mxu1 %v6968_v27  ;;  %v2250_v27 = vld [vmem:[%s7579_s7 + $0x3d70] sm:$0xff]  ;;  %v6478_v32 = vpack.c.bf16 %v2248_v26, %v2240_v22  ;;  %v2328_v22 = vld [vmem:[%s7579_s7 + $0x3fe0] sm:$0xff]  ;;  %v7008_v26 = vpack.c.bf16 %v2331_v25, %v2323_v18 }
 0x44d   : > { %6459 = vmatpush1.bf16.msra.mxu0 %v6458_v34  ;;  %v6990_v34 = vpack.c.bf16 %v2250_v27, %v2242_v23  ;;  %v2322_v23 = vld [vmem:[%s7579_s7 + $0x3fb0] sm:$0xff] }
 0x44e   : > { %6971 = vmatpush1.bf16.msra.mxu1 %v6970_v33  ;;  %6461 = vmatprep.subr.bf16.mxu0 %v6460_v17  ;;  %v6480_v33 = vpack.c.bf16 %v2265_v29, %v2257_v28  ;;  %v2256_v17 = vld [vmem:[%s7579_s7 + $0x3da0] sm:$0xff] }
 0x44f   : > { %6973 = vmatprep.subr.bf16.mxu1 %v6972_v37  ;;  %v2266_v37 = vld [vmem:[%s7579_s7 + $0x3df0] sm:$0xff]  ;;  %v6482_v44 = vpack.c.bf16 %v2264_v35, %v2256_v17 }
 0x451   : > { %6463 = vmatpush1.bf16.msra.mxu0 %v6462_v45  ;;  %v6994_v45 = vpack.c.bf16 %v2266_v37, %v2258_v40  ;;  %v279_v40 = vld [vmem:[%s7603_s4 + $0x8] sm:$0xff] }
 0x452   : > { %6975 = vmatpush1.bf16.msra.mxu1 %v6974_v46  ;;  %6465 = vmatprep.subr.bf16.mxu0 %v6464_v48  ;;  %v6484_v46 = vpack.c.bf16 %v2281_v38, %v2273_v39  ;;  %v2272_v48 = vld [vmem:[%s7579_s7 + $0x3e20] sm:$0xff]  ;;  %v4750_v39 = vsub.s32 (!%p4959_p3), 0, %v7692_v63  ;;  %v4754_v38 = vsub.s32 (!%p4959_p3), 1, %v7692_v63 }
 0x453   : > { %6977 = vmatprep.subr.bf16.mxu1 %v6976_v15  ;;  %v2282_v15 = vld [vmem:[%s7579_s7 + $0x3e70] sm:$0xff]  ;;  %v6486_v31 = vpack.c.bf16 %v2280_v49, %v2272_v48  ;;  %v4778_v48 = vsub.s32 (!%p4959_p3), 7, %v7692_v63 }
 0x455   : > { %6467 = vmatpush1.bf16.msra.mxu0 %v6466_v60  ;;  %v6998_v60 = vpack.c.bf16 %v2282_v15, %v2274_v51 }
 0x456   : > { %6979 = vmatpush1.bf16.msra.mxu1 %v6978_v61  ;;  %6469 = vmatprep.subr.bf16.mxu0 %v6468_v62  ;;  %v6488_v61 = vpack.c.bf16 %v2297_v54, %v2289_v47  ;;  %v2288_v62 = vld [vmem:[%s7579_s7 + $0x3ea0] sm:$0xff] }
 0x457   : > { %6981 = vmatprep.subr.bf16.mxu1 %v6980_v56  ;;  %v2298_v56 = vld [vmem:[%s7579_s7 + $0x3ef0] sm:$0xff]  ;;  %v6490_v7 = vpack.c.bf16 %v2296_v1, %v2288_v62 }
 0x459   : > { %6471 = vmatpush1.bf16.msra.mxu0 %v6470_v8  ;;  %v7002_v8 = vpack.c.bf16 %v2298_v56, %v2290_v2 }
 0x45a   : > { %6983 = vmatpush1.bf16.msra.mxu1 %v6982_v9  ;;  %6473 = vmatprep.subr.bf16.mxu0 %v6472_v10  ;;  %v6492_v9 = vpack.c.bf16 %v2313_v4, %v2305_v5  ;;  %v2304_v10 = vld [vmem:[%s7579_s7 + $0x3f20] sm:$0xff] }
 0x45b   : > { %6985 = vmatprep.subr.bf16.mxu1 %v6984_v14  ;;  %v2314_v14 = vld [vmem:[%s7579_s7 + $0x3f70] sm:$0xff]  ;;  %v6494_v19 = vpack.c.bf16 %v2312_v11, %v2304_v10 }
 0x45d   : > { %6475 = vmatpush1.bf16.msra.mxu0 %v6474_v53  ;;  %v7006_v53 = vpack.c.bf16 %v2314_v14, %v2306_v50 }
 0x45e   : > { %6987 = vmatpush1.bf16.msra.mxu1 %v6986_v20  ;;  %6477 = vmatprep.subr.bf16.mxu0 %v6476_v21  ;;  %v6496_v20 = vpack.c.bf16 %v2329_v16, %v2321_v30  ;;  %v2320_v21 = vld [vmem:[%s7579_s7 + $0x3fa0] sm:$0xff] }
 0x45f   : > { %6989 = vmatprep.subr.bf16.mxu1 %v6988_v24  ;;  %v2330_v24 = vld [vmem:[%s7579_s7 + $0x3ff0] sm:$0xff]  ;;  %v6498_v27 = vpack.c.bf16 %v2328_v22, %v2320_v21 }
 0x460   : > { %v7010_v28 = vpack.c.bf16 %v2330_v24, %v2322_v23 }
 0x461   : > { %6479 = vmatpush1.bf16.msra.mxu0 %v6478_v32 }
 0x462   : > { %6991 = vmatpush1.bf16.msra.mxu1 %v6990_v34  ;;  %6481 = vmatprep.subr.bf16.mxu0 %v6480_v33 }
 0x463   : > { %6993 = vmatprep.subr.bf16.mxu1 %v6992_v41 }
 0x465   : > { %6483 = vmatpush1.bf16.msra.mxu0 %v6482_v44  ;;  %v4766_v44 = vsub.s32 (!%p4959_p3), 4, %v7692_v63 }
 0x466   : > { %6995 = vmatpush1.bf16.msra.mxu1 %v6994_v45  ;;  %6485 = vmatprep.subr.bf16.mxu0 %v6484_v46  ;;  %v4770_v45 = vsub.s32 (!%p4959_p3), 5, %v7692_v63  ;;  %v4774_v46 = vsub.s32 (!%p4959_p3), 6, %v7692_v63  ;;  %v4744_v63 = vld [vmem:[%s7603_s4] sm:$0xff] (!%p4959_p3) }
 0x467   : > { %6997 = vmatprep.subr.bf16.mxu1 %v6996_v52 }
 0x469   : > { %6487 = vmatpush1.bf16.msra.mxu0 %v6486_v31 }
 0x46a   : > { %6999 = vmatpush1.bf16.msra.mxu1 %v6998_v60  ;;  %6489 = vmatprep.subr.bf16.mxu0 %v6488_v61 }
 0x46b   : > { %7001 = vmatprep.subr.bf16.mxu1 %v7000_v3 }
 0x46d   : > { %6491 = vmatpush1.bf16.msra.mxu0 %v6490_v7 }
 0x46e   : > { %7003 = vmatpush1.bf16.msra.mxu1 %v7002_v8  ;;  %6493 = vmatprep.subr.bf16.mxu0 %v6492_v9 }
 0x46f   : > { %7005 = vmatprep.subr.bf16.mxu1 %v7004_v13 }
 0x471   : > { %6495 = vmatpush1.bf16.msra.mxu0 %v6494_v19 }
 0x472   : > { %7007 = vmatpush1.bf16.msra.mxu1 %v7006_v53  ;;  %6497 = vmatprep.subr.bf16.mxu0 %v6496_v20 }
 0x473   : > { %7009 = vmatprep.subr.bf16.mxu1 %v7008_v26 }
 0x475   : > { %6499 = vmatpush1.bf16.msra.mxu0 %v6498_v27 }
 0x476   : > { %7011 = vmatpush1.bf16.msra.mxu1 %v7010_v28 }
 0x478   : > { %4118 = vmatmul.mubr.f32.vlgmr.msra.gmra.mrb[2].mxu0 %v8619_v36 }
 0x479   : > { %4686 = vmatmul.mubr.f32.vlgmr.msra.gmra.mrb[2].mxu1 %v8619_v36  ;;  %v4746_v36 = vld [vmem:[%s224_s10] sm:$0xff] (!%p4959_p3) }
 0x47a   : > { %v4751_v49 = vrot.slane (!%p4959_p3), %v4746_v36, %v4750_v39  ;;  %v4755_v51 = vrot.slane (!%p4959_p3), %v4746_v36, %v4754_v38  ;;  %v4759_v52 = vrot.slane (!%p4959_p3), %v4746_v36, %v4758_v42  ;;  %v4763_v15 = vrot.slane (!%p4959_p3), %v4746_v36, %v4762_v43 }
 0x47b   : > { %v4767_v47 = vrot.slane (!%p4959_p3), %v4746_v36, %v4766_v44  ;;  %v4771_v54 = vrot.slane (!%p4959_p3), %v4746_v36, %v4770_v45  ;;  %v4775_v58 = vrot.slane (!%p4959_p3), %v4746_v36, %v4774_v46  ;;  %v4779_v59 = vrot.slane (!%p4959_p3), %v4746_v36, %v4778_v48 }
 0x47c   : > { %v4780_v31 = vcombine.low (!%p4959_p3), %v4751_v49, %v4755_v51  ;;  %v4781_v60 = vcombine.low (!%p4959_p3), %v4759_v52, %v4763_v15 }
 0x47d   : > { %v4797_v61 = vcombine.low (!%p4959_p3), %v4767_v47, %v4771_v54  ;;  %v4798_v62 = vcombine.low (!%p4959_p3), %v4775_v58, %v4779_v59 }
 0x47e   : > { %v4788_v1 = vrot.slane (!%p4959_p3), %v4780_v31, %v7703_v12  ;;  %v4795_v2 = vrot.slane (!%p4959_p3), %v4781_v60, %v7703_v12 }
 0x47f   : > { %v4805_v3 = vrot.slane (!%p4959_p3), %v4797_v61, %v7703_v12  ;;  %v4812_v56 = vrot.slane (!%p4959_p3), %v4798_v62, %v7703_v12 }
 0x480   : > { %v4796_v5 = vcombine.low (!%p4959_p3), %v4788_v1, %v4795_v2 }
 0x481   : > { %v4813_v6 = vcombine.low (!%p4959_p3), %v4805_v3, %v4812_v56 }
 0x482   : > { %v4816_v57 = vadd.f32 (!%p4959_p3), %v4796_v5, %v4744_v63 }
 0x484   : > { %v4818_v8 = vmax.f32 (!%p4959_p3), %v4816_v57, 0.0 }
 0x486   : > { %4820 = vst [vmem:[%s7603_s4] sm:$0xff] (!%p4959_p3), %v4818_v8 }
 0x54b   : > { %v4119_v29 = vpop.f32.mrb[2].mxu0 }
 0x54c   : > { %v4687_v0 = vpop.f32.mrb[2].mxu1  ;;  %v4121_v55 = vpop.f32.mrb[3].mxu0 }
 0x54d   : > { %v4717_v32 = vcombine.low %v4119_v29, %v4121_v55  ;;  %v4689_v34 = vpop.f32.mrb[3].mxu1 }
 0x54e   : > { %v4718_v33 = vcombine.low %v4687_v0, %v4689_v34 }
 0x54f   : > { %v4725_v17 = vrot.slane %v4717_v32, %v7703_v12 }
 0x550   : > { %v4732_v35 = vrot.slane %v4718_v33, %v7703_v12  ;;  %4743 = sbr.rel (%p4959_p3) target bundleno = 1379 (0x563), region = 48 }
 0x552   : > { %v4733_v41 = vcombine.low %v4725_v17, %v4732_v35 }
 0x554   : > { %v4737_v37 = vadd.f32 %v4733_v41, %v279_v40 }
 0x556   : > { %4739 = vst [vmem:[%s7603_s4 + $0x8] sm:$0xff] %v4737_v37 }
 0x55d   : > { %v4745_v4 = vld [vmem:[%s7603_s4 + $0x8] sm:$0xff] }
 0x55e   : > { %v4817_v7 = vadd.f32 %v4813_v6, %v4745_v4 }
 0x560   : > { %v4819_v9 = vmax.f32 %v4817_v7, 0.0 }
 0x562   : > { %4821 = vst [vmem:[%s7603_s4 + $0x8] sm:$0xff] %v4819_v9 }
 0x563 PF: > { %s19_s22 = sadd.s32 1, %s7331_s22   ;;  %s9890_s7 = sld [smem:[#allocation8_spill]] }
 0x564   : > { %p16_p11 = scmp.ge.s32.totalorder %s19_s22, 38   ;;  %s9891_s12 = smov %s7295_s13 }
 0x565   : > { %s9892_s13 = smov %s7299_s14  ;;  %s9893_s14 = smov %s7528_s29 }
 0x566   : > { %s9894_s15 = smov %s7307_s16  ;;  %s9895_s16 = smov %s7311_s17 }
 0x567   : > { %s9896_s17 = smov %s7533_s6  ;;  %s9897_s18 = smov %s7323_s20 }
 0x568   : > { %s9898_s19 = smov %s7327_s21  ;;  %s9899_s20 = smov %s9902_s23 }
 0x569   : > { %s9900_s21 = smov %s9890_s7  ;;  %18 = sbr.rel (!%p16_p11) target bundleno = 11 (0xb), region = 96 }
 0x570   :  { %4844 = vsyncpa [#allocation3], 1 }
 0x571   :  { %4846 = vsyncpa [#allocation3 + $0x1], 1 }
 0x572   :  { %4847 = vsyncpa [#allocation5], 1 }
 0x573   :  { %4849 = vsyncpa [#allocation5 + $0x1], 1 }

</bundles_post_ra>
